<compile_context>
chip_gen: v6e
topology: v6e:2x2x1
jax: 0.10.0
libtpu: 0.0.40
codegen_flags: <defaults>
</compile_context>

<pallas_src>
import functools
import math

import jax
import jax.numpy as jnp
from jax.experimental import pallas as pl
from jax.experimental.pallas import tpu as pltpu

# ---------------- synthetic model hyper-parameters ----------------
B, CIN, H, W = 2, 3, 32, 32          # images
C = 32                               # backbone / RPN channels
A = 3                                # anchors per spatial location
ANCHOR_SIZES = (8.0, 16.0, 32.0)
PRE_NMS_TOP_N = 64
POST_NMS_TOP_N = 16                  # proposals per image (fixed size, masked)
RPN_NMS_THRESH = 0.7
RPN_MIN_SIZE = 1e-3
POOL = 7                             # RoIAlign output size
REP = 128                            # TwoMLPHead representation size
NUM_CLASSES = 5
BBOX_CLIP = math.log(1000.0 / 16.0)
# filter_ret defaults
FR_IOU = 0.5
FR_MAX_PROPOSALS = 300
FR_MIN_SCORE = 0.05


def _round_up(x, m):
    return ((x + m - 1) // m) * m


# ============================ Pallas kernels ============================

def _backbone_conv_kernel(x_ref, w_ref, b_ref, o_ref):
    """One K=27(->32) im2col matmul per image + bias + relu, bf16 output."""
    acc = jnp.dot(x_ref[...], w_ref[...], preferred_element_type=jnp.float32)
    o_ref[...] = jnp.maximum(acc + b_ref[...], 0.0).astype(o_ref.dtype)


def pallas_backbone_conv(x, w, b):
    """x: [B,H,W,Cin] NHWC, w: [3,3,Cin,Cout] -> [B,H,W,Cout] bf16."""
    bsz, h, wd, cin = x.shape
    cout = w.shape[-1]
    hw = h * wd
    k = 9 * cin
    kp = _round_up(k, 32)
    xp = jnp.pad(x, ((0, 0), (1, 1), (1, 1), (0, 0)))
    patches = jnp.concatenate(
        [xp[:, dy:dy + h, dx:dx + wd, :] for dy in range(3) for dx in range(3)],
        axis=-1).reshape(bsz, hw, k).astype(jnp.bfloat16)
    patches = jnp.pad(patches, ((0, 0), (0, 0), (0, kp - k)))
    wk = jnp.pad(w.reshape(k, cout).astype(jnp.bfloat16), ((0, kp - k), (0, 0)))
    bias = b.reshape(1, cout).astype(jnp.float32)

    out = pl.pallas_call(
        _backbone_conv_kernel,
        out_shape=jax.ShapeDtypeStruct((bsz, hw, cout), jnp.bfloat16),
        grid=(bsz,),
        in_specs=[pl.BlockSpec((None, hw, kp), lambda i: (i, 0, 0)),
                  pl.BlockSpec((kp, cout), lambda i: (0, 0)),
                  pl.BlockSpec((1, cout), lambda i: (0, 0))],
        out_specs=pl.BlockSpec((None, hw, cout), lambda i: (i, 0, 0)),
        compiler_params=pltpu.CompilerParams(dimension_semantics=("parallel",)),
    )(patches, wk, bias)
    return out.reshape(bsz, h, wd, cout)


def _rpn_fused_kernel(x_ref, wdx_ref, cb_ref, hw_w_ref, hw_b_ref, o_ref, *, hw, row):
    """Fused RPN: 3x3 conv (dy taps concatenated along K, one dot per dx) -> relu
    -> 1x1 cls+bbox head matmul, emitted lane-dense ([hw, 128])."""
    acc = None
    for dx in range(3):
        xv = x_ref[dx]                                          # [(H+2)*W, C]
        patch = jnp.concatenate(
            [xv[dy * row:dy * row + hw, :] for dy in range(3)], axis=-1)  # [H*W, 3C]
        p = jnp.dot(patch, wdx_ref[dx], preferred_element_type=jnp.float32)
        acc = p if acc is None else acc + p
    t = jnp.maximum(acc + cb_ref[...], 0.0)                     # conv + relu (VMEM only)
    head = jnp.dot(t.astype(jnp.bfloat16), hw_w_ref[...],
                   preferred_element_type=jnp.float32)
    o_ref[...] = head + hw_b_ref[...]


def pallas_rpn_head(feat, conv_w, conv_b, cls_w, cls_b, bbox_w, bbox_b):
    """feat [B,H,W,C] -> [B, H*W, 128] f32: cols [0,A) objectness logits,
    cols [A, A+4A) bbox deltas ((A,4)-major), rest zero padding."""
    bsz, h, wd, c = feat.shape
    hw = h * wd
    rows = (h + 2) * wd
    featp = jnp.pad(feat.astype(jnp.bfloat16), ((0, 0), (1, 1), (1, 1), (0, 0)))
    xs = jnp.stack(
        [featp[:, :, dx:dx + wd, :].reshape(bsz, rows, c) for dx in range(3)],
        axis=1)                                                  # [B, 3, rows, C]
    wdx = jnp.transpose(conv_w, (1, 0, 2, 3)).reshape(3, 3 * c, c).astype(jnp.bfloat16)
    cb = conv_b.reshape(1, c).astype(jnp.float32)
    nhead = cls_w.shape[1] + bbox_w.shape[1]                     # 5A = 15
    nhp = _round_up(nhead, 128)
    hw_w = jnp.pad(jnp.concatenate([cls_w, bbox_w], axis=1).astype(jnp.bfloat16),
                   ((0, 0), (0, nhp - nhead)))
    hw_b = jnp.pad(jnp.concatenate([cls_b, bbox_b], axis=0).reshape(1, nhead)
                   .astype(jnp.float32), ((0, 0), (0, nhp - nhead)))

    return pl.pallas_call(
        functools.partial(_rpn_fused_kernel, hw=hw, row=wd),
        out_shape=jax.ShapeDtypeStruct((bsz, hw, nhp), jnp.float32),
        grid=(bsz,),
        in_specs=[pl.BlockSpec((None, 3, rows, c), lambda i: (i, 0, 0, 0)),
                  pl.BlockSpec((3, 3 * c, c), lambda i: (0, 0, 0)),
                  pl.BlockSpec((1, c), lambda i: (0, 0)),
                  pl.BlockSpec((c, nhp), lambda i: (0, 0)),
                  pl.BlockSpec((1, nhp), lambda i: (0, 0))],
        out_specs=pl.BlockSpec((None, hw, nhp), lambda i: (i, 0, 0)),
        compiler_params=pltpu.CompilerParams(dimension_semantics=("parallel",)),
    )(xs, wdx, cb, hw_w, hw_b)


def _box_head_kernel(x_ref, w6_ref, b6_ref, w7_ref, b7_ref, wp_ref, bp_ref,
                     feat_ref, pred_ref):
    """TwoMLPHead + box_predictor fused: fc6 -> relu -> fc7 -> relu -> (cls|bbox)."""
    h6 = jnp.dot(x_ref[...], w6_ref[...], preferred_element_type=jnp.float32)
    h6 = jnp.maximum(h6 + b6_ref[...], 0.0)
    h7 = jnp.dot(h6.astype(jnp.bfloat16), w7_ref[...],
                 preferred_element_type=jnp.float32)
    h7 = jnp.maximum(h7 + b7_ref[...], 0.0)
    feat_ref[...] = h7
    pred = jnp.dot(h7.astype(jnp.bfloat16), wp_ref[...],
                   preferred_element_type=jnp.float32)
    pred_ref[...] = pred + bp_ref[...]


def pallas_box_head(x, w6, b6, w7, b7, w_cls, b_cls, w_box, b_box):
    M, K = x.shape
    rep = w6.shape[1]
    npred = w_cls.shape[1] + w_box.shape[1]
    Np = _round_up(npred, 128)
    # Two M-tiles so the "parallel" grid balances across v7x's two TensorCores.
    tm = M // 2 if (M % 16 == 0 and M >= 16) else _round_up(M, 8)
    Mp = _round_up(M, tm)

    xp = jnp.pad(x.astype(jnp.bfloat16), ((0, Mp - M), (0, 0)))   # K NOT padded
    wpred = jnp.concatenate([w_cls, w_box], axis=1)
    wpp = jnp.pad(wpred.astype(jnp.bfloat16), ((0, 0), (0, Np - npred)))
    bpred = jnp.concatenate([b_cls, b_box], axis=0).reshape(1, npred)
    bpp = jnp.pad(bpred.astype(jnp.float32), ((0, 0), (0, Np - npred)))

    feat, pred = pl.pallas_call(
        _box_head_kernel,
        out_shape=(jax.ShapeDtypeStruct((Mp, rep), jnp.float32),
                   jax.ShapeDtypeStruct((Mp, Np), jnp.float32)),
        grid=(Mp // tm,),
        in_specs=[pl.BlockSpec((tm, K), lambda i: (i, 0)),
                  pl.BlockSpec((K, rep), lambda i: (0, 0)),
                  pl.BlockSpec((1, rep), lambda i: (0, 0)),
                  pl.BlockSpec((rep, rep), lambda i: (0, 0)),
                  pl.BlockSpec((1, rep), lambda i: (0, 0)),
                  pl.BlockSpec((rep, Np), lambda i: (0, 0)),
                  pl.BlockSpec((1, Np), lambda i: (0, 0))],
        out_specs=(pl.BlockSpec((tm, rep), lambda i: (i, 0)),
                   pl.BlockSpec((tm, Np), lambda i: (i, 0))),
        compiler_params=pltpu.CompilerParams(dimension_semantics=("parallel",)),
    )(xp, w6.astype(jnp.bfloat16), b6.reshape(1, rep).astype(jnp.float32),
      w7.astype(jnp.bfloat16), b7.reshape(1, rep).astype(jnp.float32), wpp, bpp)
    return feat[:M], pred[:M, :npred]


def _decode_kernel(p_ref, o_ref, *, wx, wy, ww, wh, clip, img_h, img_w):
    """Lane-dense box decode; deltas (rows 0..3) + anchors (rows 4..7) packed into
    one (8, tn) block so all sublanes are used."""
    d = p_ref[0:4, :]
    a = p_ref[4:8, :]
    x1 = a[0:1, :]
    y1 = a[1:2, :]
    x2 = a[2:3, :]
    y2 = a[3:4, :]
    widths = x2 - x1
    heights = y2 - y1
    ctr_x = x1 + 0.5 * widths
    ctr_y = y1 + 0.5 * heights
    dx = d[0:1, :] / wx
    dy = d[1:2, :] / wy
    dw = jnp.minimum(d[2:3, :] / ww, clip)
    dh = jnp.minimum(d[3:4, :] / wh, clip)
    pred_ctr_x = dx * widths + ctr_x
    pred_ctr_y = dy * heights + ctr_y
    pred_w = jnp.exp(dw) * widths
    pred_h = jnp.exp(dh) * heights
    nx1 = jnp.clip(pred_ctr_x - 0.5 * pred_w, 0.0, img_w)
    ny1 = jnp.clip(pred_ctr_y - 0.5 * pred_h, 0.0, img_h)
    nx2 = jnp.clip(pred_ctr_x + 0.5 * pred_w, 0.0, img_w)
    ny2 = jnp.clip(pred_ctr_y + 0.5 * pred_h, 0.0, img_h)
    o_ref[...] = jnp.concatenate([nx1, ny1, nx2, ny2], axis=0)


def pallas_decode(deltas_t, anchors_t, weights, img_h, img_w, tn=1024):
    """torchvision BoxCoder.decode + clip_boxes_to_image; (4, N) lane-dense layout."""
    N = deltas_t.shape[1]
    Np = _round_up(N, tn)
    packed = jnp.concatenate([deltas_t, anchors_t], axis=0).astype(jnp.float32)
    packed = jnp.pad(packed, ((0, 0), (0, Np - N)))
    out = pl.pallas_call(
        functools.partial(_decode_kernel,
                          wx=float(weights[0]), wy=float(weights[1]),
                          ww=float(weights[2]), wh=float(weights[3]),
                          clip=BBOX_CLIP, img_h=float(img_h), img_w=float(img_w)),
        out_shape=jax.ShapeDtypeStruct((4, Np), jnp.float32),
        grid=(Np // tn,),
        in_specs=[pl.BlockSpec((8, tn), lambda i: (0, i))],
        out_specs=pl.BlockSpec((4, tn), lambda i: (0, i)),
        compiler_params=pltpu.CompilerParams(dimension_semantics=("parallel",)),
    )(packed)
    return out[:, :N]


# ============================ glue (plain JAX) ============================

def make_anchors(h, w, sizes=ANCHOR_SIZES):
    ys = jnp.arange(h, dtype=jnp.float32) + 0.5
    xs = jnp.arange(w, dtype=jnp.float32) + 0.5
    cy, cx = jnp.meshgrid(ys, xs, indexing="ij")
    per_size = []
    for s in sizes:
        half = s / 2.0
        per_size.append(jnp.stack([cx - half, cy - half, cx + half, cy + half], axis=-1))
    a = jnp.stack(per_size, axis=2)          # [H, W, A, 4]
    return a.reshape(-1, 4)                  # [H*W*A, 4], ordering (H, W, A)


def box_iou(a, b):
    area_a = (a[:, 2] - a[:, 0]) * (a[:, 3] - a[:, 1])
    area_b = (b[:, 2] - b[:, 0]) * (b[:, 3] - b[:, 1])
    lt = jnp.maximum(a[:, None, :2], b[None, :, :2])
    rb = jnp.minimum(a[:, None, 2:], b[None, :, 2:])
    wh = jnp.clip(rb - lt, 0.0, None)
    inter = wh[..., 0] * wh[..., 1]
    return inter / (area_a[:, None] + area_b[None, :] - inter + 1e-9)


def nms_fixed(boxes, scores, iou_thresh, valid):
    """Greedy NMS with fixed shapes: returns score-sorted boxes/scores, keep mask, order."""
    n = boxes.shape[0]
    order = jnp.argsort(-scores)
    b = boxes[order]
    s = scores[order]
    v = valid[order]
    iou = box_iou(b, b)
    idx = jnp.arange(n)

    def body(i, keep):
        suppress = (iou[i] > iou_thresh) & (idx > i) & keep[i]
        return keep & (~suppress)

    keep = jax.lax.fori_loop(0, n, body, v, unroll=8)
    return b, s, keep, order


def topk_after_nms(b, s, keep, k):
    masked = jnp.where(keep, s, -jnp.inf)
    vals, idxs = jax.lax.top_k(masked, k)
    out_valid = jnp.isfinite(vals)
    out_boxes = jnp.where(out_valid[:, None], b[idxs], 0.0)
    out_scores = jnp.where(out_valid, vals, 0.0)
    return out_boxes, out_scores, out_valid


def filter_proposals_one(props, scores):
    """XRegionProposalNetwork.filter_proposals for a single image / single level."""
    vals, idx = jax.lax.top_k(scores, PRE_NMS_TOP_N)     # pre-NMS top-n (objectness)
    b = props[idx]
    s = vals
    ws = b[:, 2] - b[:, 0]
    hs = b[:, 3] - b[:, 1]
    valid = (ws >= RPN_MIN_SIZE) & (hs >= RPN_MIN_SIZE)  # remove_small_boxes
    # score_thresh defaults to 0.0 -> all sigmoid scores pass
    bs, ss, keep, _ = nms_fixed(b, s, RPN_NMS_THRESH, valid)
    return topk_after_nms(bs, ss, keep, POST_NMS_TOP_N)


def _interp_matrix(coords, size):
    """Bilinear (clamped) interpolation weights as a dense [P, POOL, size] matrix."""
    c0 = jnp.floor(coords)
    i0 = jnp.clip(c0.astype(jnp.int32), 0, size - 1)
    i1 = jnp.clip(i0 + 1, 0, size - 1)
    frac = coords - c0
    grid = jnp.arange(size, dtype=jnp.int32)
    m0 = (grid[None, None, :] == i0[..., None]).astype(jnp.float32)
    m1 = (grid[None, None, :] == i1[..., None]).astype(jnp.float32)
    return m0 * (1.0 - frac)[..., None] + m1 * frac[..., None]


def roi_align_boxes(feat, boxes, out_size=POOL):
    """Gather-free RoIAlign: separable bilinear sampling as two batched matmuls (MXU)."""
    h, w, _ = feat.shape
    x1, y1, x2, y2 = boxes[:, 0], boxes[:, 1], boxes[:, 2], boxes[:, 3]
    steps = (jnp.arange(out_size, dtype=jnp.float32) + 0.5) / out_size
    ys = y1[:, None] + steps[None, :] * (y2 - y1)[:, None]     # [P, 7]
    xs = x1[:, None] + steps[None, :] * (x2 - x1)[:, None]     # [P, 7]
    ry = _interp_matrix(ys, h).astype(jnp.bfloat16)            # [P, 7, H]
    rx = _interp_matrix(xs, w).astype(jnp.bfloat16)            # [P, 7, W]
    # TODO(synk): matches the clamped single-sample bilinear used previously, not
    # torchvision RoIAlign's aligned=True / sampling_ratio>1 behaviour.
    rows = jnp.einsum('pih,hwc->piwc', ry, feat.astype(jnp.bfloat16),
                      preferred_element_type=jnp.float32)
    return jnp.einsum('pjw,piwc->pijc', rx, rows.astype(jnp.bfloat16),
                      preferred_element_type=jnp.float32)      # -> [P, 7, 7, C]


def filter_ret_fixed(boxes, scores, features, valid):
    """filter_ret: score>0.05 mask, batched_nms(single class, iou=0.5), top-300 (fixed size)."""
    mask = (scores > FR_MIN_SCORE) & valid
    b, s, keep, order = nms_fixed(boxes, scores, FR_IOU, mask)
    feats = features[order]
    # POST_NMS_TOP_N <= FR_MAX_PROPOSALS, so the top-300 truncation keeps everything.
    return {
        "boxes": jnp.where(keep[:, None], b, 0.0),
        "scores": jnp.where(keep, s, 0.0),
        "features": jnp.where(keep[:, None], feats, 0.0),
        "valid": keep,
    }


# ============================ forward pass ============================

def forward(params, images_nchw):
    bsz, _, h, w = images_nchw.shape

    # GeneralizedRCNNTransform: ImageNet normalization (no resize at this synthetic size).
    mean = jnp.array([0.485, 0.456, 0.406], jnp.float32).reshape(1, 3, 1, 1)
    std = jnp.array([0.229, 0.224, 0.225], jnp.float32).reshape(1, 3, 1, 1)
    x = (images_nchw - mean) / std
    x = jnp.transpose(x, (0, 2, 3, 1))                         # NCHW -> NHWC

    # Backbone (single feature level): one im2col matmul per image.
    feat = pallas_backbone_conv(x, params["backbone_w"], params["backbone_b"])  # bf16

    # Fused RPN conv + 1x1 cls/bbox head: one Pallas call, lane-dense 128-col output.
    head = pallas_rpn_head(feat, params["rpn_conv_w"], params["rpn_conv_b"],
                           params["rpn_cls_w"], params["rpn_cls_b"],
                           params["rpn_bbox_w"], params["rpn_bbox_b"])          # [B,HW,128]

    obj = jax.nn.sigmoid(head[:, :, :A].reshape(bsz, h * w * A))  # monotone: same top-k
    # TODO(synk): (A,4)-major delta channel order assumed, as in the original version;
    # verify against permute_and_flatten before loading real torchvision RPN weights.
    dl = head[:, :, A:A + 4 * A].reshape(bsz, h * w, A, 4)
    deltas_t = jnp.transpose(dl, (3, 0, 1, 2)).reshape(4, bsz * h * w * A)

    # Decode all anchors (BoxCoder weights (1,1,1,1)) + clip, lane-dense Pallas kernel.
    anchors_t = make_anchors(h, w).T                           # [4, H*W*A]
    all_anchors_t = jnp.tile(anchors_t, (1, bsz))
    proposals_t = pallas_decode(deltas_t, all_anchors_t, (1.0, 1.0, 1.0, 1.0), h, w)
    proposals = jnp.transpose(proposals_t.reshape(4, bsz, h * w * A), (1, 2, 0))

    # filter_proposals (fixed-size masked version of torchvision logic).
    prop_boxes, prop_scores, prop_valid = jax.vmap(filter_proposals_one)(proposals, obj)

    # RoI pooling (7x7) over the single feature level (gather-free, matmul based).
    roi_feats = jax.vmap(roi_align_boxes)(feat, prop_boxes)                     # [B,P,7,7,C]
    # TODO(synk): flattening is HWC (not torchvision's CHW) — fine for synthetic weights.
    roi_flat = roi_feats.reshape(bsz * POST_NMS_TOP_N, POOL * POOL * C)

    # box_head (TwoMLPHead) + box_predictor in ONE fused Pallas call (grid=(2,)).
    box_features, pred = pallas_box_head(
        roi_flat, params["fc6_w"], params["fc6_b"], params["fc7_w"], params["fc7_b"],
        params["cls_w"], params["cls_b"], params["bbox_w"], params["bbox_b"])
    class_logits = pred[:, :NUM_CLASSES]
    box_regression = pred[:, NUM_CLASSES:]
    # TODO(synk): postprocess_detections (per-class decode/softmax/NMS) output is unused
    # by AgnosticRoIExtractor and is not re-implemented.

    feats_per_image = box_features.reshape(bsz, POST_NMS_TOP_N, REP)

    # transform.postprocess is the identity here (no resize); attach features, then
    # filter_ret (vmapped over the batch instead of a Python loop).
    batched = jax.vmap(filter_ret_fixed)(prop_boxes, prop_scores,
                                         feats_per_image, prop_valid)
    results = [jax.tree_util.tree_map(lambda v: v[i], batched) for i in range(bsz)]
    return results, (class_logits, box_regression)


# ============================ main ============================

if __name__ == "__main__":
    key = jax.random.PRNGKey(0)
    keys = jax.random.split(key, 10)

    images = jax.random.uniform(keys[0], (B, CIN, H, W), jnp.float32)  # NCHW, like PyTorch

    s = 0.1
    params = {
        "backbone_w": jax.random.normal(keys[1], (3, 3, CIN, C), jnp.float32) * s,
        "backbone_b": jnp.zeros((C,), jnp.float32),
        "rpn_conv_w": jax.random.normal(keys[2], (3, 3, C, C), jnp.float32) * s,
        "rpn_conv_b": jnp.zeros((C,), jnp.float32),
        "rpn_cls_w": jax.random.normal(keys[3], (C, A), jnp.float32) * s,
        "rpn_cls_b": jnp.zeros((A,), jnp.float32),
        "rpn_bbox_w": jax.random.normal(keys[4], (C, A * 4), jnp.float32) * s,
        "rpn_bbox_b": jnp.zeros((A * 4,), jnp.float32),
        "fc6_w": jax.random.normal(keys[5], (POOL * POOL * C, REP), jnp.float32) * 0.02,
        "fc6_b": jnp.zeros((REP,), jnp.float32),
        "fc7_w": jax.random.normal(keys[6], (REP, REP), jnp.float32) * 0.02,
        "fc7_b": jnp.zeros((REP,), jnp.float32),
        "cls_w": jax.random.normal(keys[7], (REP, NUM_CLASSES), jnp.float32) * 0.02,
        "cls_b": jnp.zeros((NUM_CLASSES,), jnp.float32),
        "bbox_w": jax.random.normal(keys[8], (REP, NUM_CLASSES * 4), jnp.float32) * 0.02,
        "bbox_b": jnp.zeros((NUM_CLASSES * 4,), jnp.float32),
    }

    fwd = jax.jit(forward)
    out = fwd(params, images)
    jax.block_until_ready(out)
    print("KERNEL_OK")
</pallas_src>

<mosaic_0001>
module attributes {stable_mosaic.version = 11 : i64} {
  func.func @_backbone_conv_kernel(%arg0: i32, %arg1: memref<1x1024x32xbf16, #tpu.memory_space<vmem>>, %arg2: memref<32x32xbf16, #tpu.memory_space<vmem>>, %arg3: memref<1x32xf32, #tpu.memory_space<vmem>>, %arg4: memref<1x1024x32xbf16, #tpu.memory_space<vmem>>) attributes {dimension_semantics = [#tpu.dimension_semantics<parallel>], iteration_bounds = array<i64: 2>, scalar_prefetch = 0 : i64, scratch_operands = 0 : i64, tpu.core_type = #tpu.core_type<tc>, window_params = [{transform_indices = @transform_0, window_bounds = array<i64: 1, 1024, 32>}, {pipeline_mode = #tpu.pipeline_mode<synchronous>, transform_indices = @transform_1, window_bounds = array<i64: 32, 32>}, {pipeline_mode = #tpu.pipeline_mode<synchronous>, transform_indices = @transform_2, window_bounds = array<i64: 1, 32>}, {transform_indices = @transform_3, window_bounds = array<i64: 1, 1024, 32>}]} {
    %c0 = arith.constant 0 : index
    %c0_0 = arith.constant 0 : index
    %c0_1 = arith.constant 0 : index
    %0 = vector.load %arg1[%c0, %c0_0, %c0_1] : memref<1x1024x32xbf16, #tpu.memory_space<vmem>>, vector<1x1024x32xbf16>
    %1 = vector.shape_cast %0 : vector<1x1024x32xbf16> to vector<1024x32xbf16>
    %c0_2 = arith.constant 0 : index
    %c0_3 = arith.constant 0 : index
    %2 = vector.load %arg2[%c0_2, %c0_3] : memref<32x32xbf16, #tpu.memory_space<vmem>>, vector<32x32xbf16>
    %cst = arith.constant dense<0.000000e+00> : vector<1024x32xf32>
    %3 = tpu.matmul %1, %2, %cst {dimension_numbers = #tpu.dot_dimension_numbers<[1], [0], [0], [1], [0, 0, 1, 1], [], []>} : vector<1024x32xbf16>, vector<32x32xbf16>, vector<1024x32xf32> -> vector<1024x32xf32>
    %c0_4 = arith.constant 0 : index
    %c0_5 = arith.constant 0 : index
    %4 = vector.load %arg3[%c0_4, %c0_5] : memref<1x32xf32, #tpu.memory_space<vmem>>, vector<1x32xf32>
    %5 = vector.broadcast %4 : vector<1x32xf32> to vector<1024x32xf32>
    %6 = arith.addf %3, %5 : vector<1024x32xf32>
    %cst_6 = arith.constant 0.000000e+00 : f32
    %7 = vector.broadcast %cst_6 : f32 to vector<1024x32xf32>
    %8 = arith.maximumf %6, %7 : vector<1024x32xf32>
    %9 = arith.truncf %8 : vector<1024x32xf32> to vector<1024x32xbf16>
    %c0_7 = arith.constant 0 : index
    %c0_8 = arith.constant 0 : index
    %c0_9 = arith.constant 0 : index
    %10 = vector.load %arg4[%c0_7, %c0_8, %c0_9] : memref<1x1024x32xbf16, #tpu.memory_space<vmem>>, vector<1x1024x32xbf16>
    %11 = vector.shape_cast %10 : vector<1x1024x32xbf16> to vector<1024x32xbf16>
    %12 = vector.shape_cast %9 : vector<1024x32xbf16> to vector<1x1024x32xbf16>
    tpu.vector_store %arg4[%c0_7, %c0_8, %c0_9], %12 {strides = array<i32>} : memref<1x1024x32xbf16, #tpu.memory_space<vmem>>, vector<1x1024x32xbf16>,
    return
  }
  func.func @transform_0(%arg0: i32) -> (i32, i32, i32) {
    %c0_i32 = arith.constant 0 : i32
    %c0_i32_0 = arith.constant 0 : i32
    %c0_i32_1 = arith.constant 0 : i32
    return %arg0, %c0_i32, %c0_i32_0 : i32, i32, i32
  }
  func.func @transform_1(%arg0: i32) -> (i32, i32) {
    %c0_i32 = arith.constant 0 : i32
    %c0_i32_0 = arith.constant 0 : i32
    %c0_i32_1 = arith.constant 0 : i32
    return %c0_i32, %c0_i32_0 : i32, i32
  }
  func.func @transform_2(%arg0: i32) -> (i32, i32) {
    %c0_i32 = arith.constant 0 : i32
    %c0_i32_0 = arith.constant 0 : i32
    %c0_i32_1 = arith.constant 0 : i32
    return %c0_i32, %c0_i32_0 : i32, i32
  }
  func.func @transform_3(%arg0: i32) -> (i32, i32, i32) {
    %c0_i32 = arith.constant 0 : i32
    %c0_i32_0 = arith.constant 0 : i32
    %c0_i32_1 = arith.constant 0 : i32
    return %arg0, %c0_i32, %c0_i32_0 : i32, i32, i32
  }
}

module attributes {stable_mosaic.version = 11 : i64} {
  func.func @_rpn_fused_kernel(%arg0: i32, %arg1: memref<1x3x1088x32xbf16, #tpu.memory_space<vmem>>, %arg2: memref<3x96x32xbf16, #tpu.memory_space<vmem>>, %arg3: memref<1x32xf32, #tpu.memory_space<vmem>>, %arg4: memref<32x128xbf16, #tpu.memory_space<vmem>>, %arg5: memref<1x128xf32, #tpu.memory_space<vmem>>, %arg6: memref<1x1024x128xf32, #tpu.memory_space<vmem>>) attributes {dimension_semantics = [#tpu.dimension_semantics<parallel>], iteration_bounds = array<i64: 2>, scalar_prefetch = 0 : i64, scratch_operands = 0 : i64, tpu.core_type = #tpu.core_type<tc>, window_params = [{transform_indices = @transform_0, window_bounds = array<i64: 1, 3, 1088, 32>}, {pipeline_mode = #tpu.pipeline_mode<synchronous>, transform_indices = @transform_1, window_bounds = array<i64: 3, 96, 32>}, {pipeline_mode = #tpu.pipeline_mode<synchronous>, transform_indices = @transform_2, window_bounds = array<i64: 1, 32>}, {pipeline_mode = #tpu.pipeline_mode<synchronous>, transform_indices = @transform_3, window_bounds = array<i64: 32, 128>}, {pipeline_mode = #tpu.pipeline_mode<synchronous>, transform_indices = @transform_4, window_bounds = array<i64: 1, 128>}, {transform_indices = @transform_5, window_bounds = array<i64: 1, 1024, 128>}]} {
    %c0 = arith.constant 0 : index
    %c0_0 = arith.constant 0 : index
    %c0_1 = arith.constant 0 : index
    %c0_2 = arith.constant 0 : index
    %0 = vector.load %arg1[%c0, %c0_0, %c0_1, %c0_2] : memref<1x3x1088x32xbf16, #tpu.memory_space<vmem>>, vector<1x1x1088x32xbf16>
    %1 = vector.shape_cast %0 : vector<1x1x1088x32xbf16> to vector<1088x32xbf16>
    %2 = vector.extract_strided_slice %1 {offsets = [0, 0], sizes = [1024, 32], strides = [1, 1]} : vector<1088x32xbf16> to vector<1024x32xbf16>
    %3 = vector.extract_strided_slice %1 {offsets = [32, 0], sizes = [1024, 32], strides = [1, 1]} : vector<1088x32xbf16> to vector<1024x32xbf16>
    %4 = vector.extract_strided_slice %1 {offsets = [64, 0], sizes = [1024, 32], strides = [1, 1]} : vector<1088x32xbf16> to vector<1024x32xbf16>
    %5 = tpu.concatenate %2, %3, %4 in 1 : vector<1024x32xbf16>, vector<1024x32xbf16>, vector<1024x32xbf16> -> vector<1024x96xbf16>
    %c0_3 = arith.constant 0 : index
    %c0_4 = arith.constant 0 : index
    %c0_5 = arith.constant 0 : index
    %6 = vector.load %arg2[%c0_3, %c0_4, %c0_5] : memref<3x96x32xbf16, #tpu.memory_space<vmem>>, vector<1x96x32xbf16>
    %7 = vector.shape_cast %6 : vector<1x96x32xbf16> to vector<96x32xbf16>
    %cst = arith.constant dense<0.000000e+00> : vector<1024x32xf32>
    %8 = tpu.matmul %5, %7, %cst {dimension_numbers = #tpu.dot_dimension_numbers<[1], [0], [0], [1], [0, 0, 1, 1], [], []>} : vector<1024x96xbf16>, vector<96x32xbf16>, vector<1024x32xf32> -> vector<1024x32xf32>
    %c0_6 = arith.constant 0 : index
    %c1 = arith.constant 1 : index
    %c0_7 = arith.constant 0 : index
    %c0_8 = arith.constant 0 : index
    %9 = vector.load %arg1[%c0_6, %c1, %c0_7, %c0_8] : memref<1x3x1088x32xbf16, #tpu.memory_space<vmem>>, vector<1x1x1088x32xbf16>
    %10 = vector.shape_cast %9 : vector<1x1x1088x32xbf16> to vector<1088x32xbf16>
    %11 = vector.extract_strided_slice %10 {offsets = [0, 0], sizes = [1024, 32], strides = [1, 1]} : vector<1088x32xbf16> to vector<1024x32xbf16>
    %12 = vector.extract_strided_slice %10 {offsets = [32, 0], sizes = [1024, 32], strides = [1, 1]} : vector<1088x32xbf16> to vector<1024x32xbf16>
    %13 = vector.extract_strided_slice %10 {offsets = [64, 0], sizes = [1024, 32], strides = [1, 1]} : vector<1088x32xbf16> to vector<1024x32xbf16>
    %14 = tpu.concatenate %11, %12, %13 in 1 : vector<1024x32xbf16>, vector<1024x32xbf16>, vector<1024x32xbf16> -> vector<1024x96xbf16>
    %c1_9 = arith.constant 1 : index
    %c0_10 = arith.constant 0 : index
    %c0_11 = arith.constant 0 : index
    %15 = vector.load %arg2[%c1_9, %c0_10, %c0_11] : memref<3x96x32xbf16, #tpu.memory_space<vmem>>, vector<1x96x32xbf16>
    %16 = vector.shape_cast %15 : vector<1x96x32xbf16> to vector<96x32xbf16>
    %cst_12 = arith.constant dense<0.000000e+00> : vector<1024x32xf32>
    %17 = tpu.matmul %14, %16, %cst_12 {dimension_numbers = #tpu.dot_dimension_numbers<[1], [0], [0], [1], [0, 0, 1, 1], [], []>} : vector<1024x96xbf16>, vector<96x32xbf16>, vector<1024x32xf32> -> vector<1024x32xf32>
    %18 = arith.addf %8, %17 : vector<1024x32xf32>
    %c0_13 = arith.constant 0 : index
    %c2 = arith.constant 2 : index
    %c0_14 = arith.constant 0 : index
    %c0_15 = arith.constant 0 : index
    %19 = vector.load %arg1[%c0_13, %c2, %c0_14, %c0_15] : memref<1x3x1088x32xbf16, #tpu.memory_space<vmem>>, vector<1x1x1088x32xbf16>
    %20 = vector.shape_cast %19 : vector<1x1x1088x32xbf16> to vector<1088x32xbf16>
    %21 = vector.extract_strided_slice %20 {offsets = [0, 0], sizes = [1024, 32], strides = [1, 1]} : vector<1088x32xbf16> to vector<1024x32xbf16>
    %22 = vector.extract_strided_slice %20 {offsets = [32, 0], sizes = [1024, 32], strides = [1, 1]} : vector<1088x32xbf16> to vector<1024x32xbf16>
    %23 = vector.extract_strided_slice %20 {offsets = [64, 0], sizes = [1024, 32], strides = [1, 1]} : vector<1088x32xbf16> to vector<1024x32xbf16>
    %24 = tpu.concatenate %21, %22, %23 in 1 : vector<1024x32xbf16>, vector<1024x32xbf16>, vector<1024x32xbf16> -> vector<1024x96xbf16>
    %c2_16 = arith.constant 2 : index
    %c0_17 = arith.constant 0 : index
    %c0_18 = arith.constant 0 : index
    %25 = vector.load %arg2[%c2_16, %c0_17, %c0_18] : memref<3x96x32xbf16, #tpu.memory_space<vmem>>, vector<1x96x32xbf16>
    %26 = vector.shape_cast %25 : vector<1x96x32xbf16> to vector<96x32xbf16>
    %cst_19 = arith.constant dense<0.000000e+00> : vector<1024x32xf32>
    %27 = tpu.matmul %24, %26, %cst_19 {dimension_numbers = #tpu.dot_dimension_numbers<[1], [0], [0], [1], [0, 0, 1, 1], [], []>} : vector<1024x96xbf16>, vector<96x32xbf16>, vector<1024x32xf32> -> vector<1024x32xf32>
    %28 = arith.addf %18, %27 : vector<1024x32xf32>
    %c0_20 = arith.constant 0 : index
    %c0_21 = arith.constant 0 : index
    %29 = vector.load %arg3[%c0_20, %c0_21] : memref<1x32xf32, #tpu.memory_space<vmem>>, vector<1x32xf32>
    %30 = vector.broadcast %29 : vector<1x32xf32> to vector<1024x32xf32>
    %31 = arith.addf %28, %30 : vector<1024x32xf32>
    %cst_22 = arith.constant 0.000000e+00 : f32
    %32 = vector.broadcast %cst_22 : f32 to vector<1024x32xf32>
    %33 = arith.maximumf %31, %32 : vector<1024x32xf32>
    %34 = arith.truncf %33 : vector<1024x32xf32> to vector<1024x32xbf16>
    %c0_23 = arith.constant 0 : index
    %c0_24 = arith.constant 0 : index
    %35 = vector.load %arg4[%c0_23, %c0_24] : memref<32x128xbf16, #tpu.memory_space<vmem>>, vector<32x128xbf16>
    %cst_25 = arith.constant dense<0.000000e+00> : vector<1024x128xf32>
    %36 = tpu.matmul %34, %35, %cst_25 {dimension_numbers = #tpu.dot_dimension_numbers<[1], [0], [0], [1], [0, 0, 1, 1], [], []>} : vector<1024x32xbf16>, vector<32x128xbf16>, vector<1024x128xf32> -> vector<1024x128xf32>
    %c0_26 = arith.constant 0 : index
    %c0_27 = arith.constant 0 : index
    %37 = vector.load %arg5[%c0_26, %c0_27] : memref<1x128xf32, #tpu.memory_space<vmem>>, vector<1x128xf32>
    %38 = vector.broadcast %37 : vector<1x128xf32> to vector<1024x128xf32>
    %39 = arith.addf %36, %38 : vector<1024x128xf32>
    %c0_28 = arith.constant 0 : index
    %c0_29 = arith.constant 0 : index
    %c0_30 = arith.constant 0 : index
    %40 = vector.load %arg6[%c0_28, %c0_29, %c0_30] : memref<1x1024x128xf32, #tpu.memory_space<vmem>>, vector<1x1024x128xf32>
    %41 = vector.shape_cast %40 : vector<1x1024x128xf32> to vector<1024x128xf32>
    %42 = vector.shape_cast %39 : vector<1024x128xf32> to vector<1x1024x128xf32>
    tpu.vector_store %arg6[%c0_28, %c0_29, %c0_30], %42 {strides = array<i32>} : memref<1x1024x128xf32, #tpu.memory_space<vmem>>, vector<1x1024x128xf32>,
    return
  }
  func.func @transform_0(%arg0: i32) -> (i32, i32, i32, i32) {
    %c0_i32 = arith.constant 0 : i32
    %c0_i32_0 = arith.constant 0 : i32
    %c0_i32_1 = arith.constant 0 : i32
    %c0_i32_2 = arith.constant 0 : i32
    return %arg0, %c0_i32, %c0_i32_0, %c0_i32_1 : i32, i32, i32, i32
  }
  func.func @transform_1(%arg0: i32) -> (i32, i32, i32) {
    %c0_i32 = arith.constant 0 : i32
    %c0_i32_0 = arith.constant 0 : i32
    %c0_i32_1 = arith.constant 0 : i32
    %c0_i32_2 = arith.constant 0 : i32
    return %c0_i32, %c0_i32_0, %c0_i32_1 : i32, i32, i32
  }
  func.func @transform_2(%arg0: i32) -> (i32, i32) {
    %c0_i32 = arith.constant 0 : i32
    %c0_i32_0 = arith.constant 0 : i32
    %c0_i32_1 = arith.constant 0 : i32
    return %c0_i32, %c0_i32_0 : i32, i32
  }
  func.func @transform_3(%arg0: i32) -> (i32, i32) {
    %c0_i32 = arith.constant 0 : i32
    %c0_i32_0 = arith.constant 0 : i32
    %c0_i32_1 = arith.constant 0 : i32
    return %c0_i32, %c0_i32_0 : i32, i32
  }
  func.func @transform_4(%arg0: i32) -> (i32, i32) {
    %c0_i32 = arith.constant 0 : i32
    %c0_i32_0 = arith.constant 0 : i32
    %c0_i32_1 = arith.constant 0 : i32
    return %c0_i32, %c0_i32_0 : i32, i32
  }
  func.func @transform_5(%arg0: i32) -> (i32, i32, i32) {
    %c0_i32 = arith.constant 0 : i32
    %c0_i32_0 = arith.constant 0 : i32
    %c0_i32_1 = arith.constant 0 : i32
    return %arg0, %c0_i32, %c0_i32_0 : i32, i32, i32
  }
}

module attributes {stable_mosaic.version = 11 : i64} {
  func.func @_decode_kernel(%arg0: i32, %arg1: memref<8x1024xf32, #tpu.memory_space<vmem>>, %arg2: memref<4x1024xf32, #tpu.memory_space<vmem>>) attributes {dimension_semantics = [#tpu.dimension_semantics<parallel>], iteration_bounds = array<i64: 6>, scalar_prefetch = 0 : i64, scratch_operands = 0 : i64, tpu.core_type = #tpu.core_type<tc>, window_params = [{transform_indices = @transform_0, window_bounds = array<i64: 8, 1024>}, {transform_indices = @transform_1, window_bounds = array<i64: 4, 1024>}]} {
    %c0 = arith.constant 0 : index
    %c0_0 = arith.constant 0 : index
    %0 = vector.load %arg1[%c0, %c0_0] : memref<8x1024xf32, #tpu.memory_space<vmem>>, vector<4x1024xf32>
    %c4 = arith.constant 4 : index
    %c0_1 = arith.constant 0 : index
    %1 = vector.load %arg1[%c4, %c0_1] : memref<8x1024xf32, #tpu.memory_space<vmem>>, vector<4x1024xf32>
    %2 = vector.extract_strided_slice %1 {offsets = [0, 0], sizes = [1, 1024], strides = [1, 1]} : vector<4x1024xf32> to vector<1x1024xf32>
    %3 = vector.extract_strided_slice %1 {offsets = [1, 0], sizes = [1, 1024], strides = [1, 1]} : vector<4x1024xf32> to vector<1x1024xf32>
    %4 = vector.extract_strided_slice %1 {offsets = [2, 0], sizes = [1, 1024], strides = [1, 1]} : vector<4x1024xf32> to vector<1x1024xf32>
    %5 = vector.extract_strided_slice %1 {offsets = [3, 0], sizes = [1, 1024], strides = [1, 1]} : vector<4x1024xf32> to vector<1x1024xf32>
    %6 = arith.subf %4, %2 : vector<1x1024xf32>
    %7 = arith.subf %5, %3 : vector<1x1024xf32>
    %cst = arith.constant 5.000000e-01 : f32
    %8 = vector.broadcast %cst : f32 to vector<1x1024xf32>
    %9 = arith.mulf %8, %6 : vector<1x1024xf32>
    %10 = arith.addf %2, %9 : vector<1x1024xf32>
    %cst_2 = arith.constant 5.000000e-01 : f32
    %11 = vector.broadcast %cst_2 : f32 to vector<1x1024xf32>
    %12 = arith.mulf %11, %7 : vector<1x1024xf32>
    %13 = arith.addf %3, %12 : vector<1x1024xf32>
    %14 = vector.extract_strided_slice %0 {offsets = [0, 0], sizes = [1, 1024], strides = [1, 1]} : vector<4x1024xf32> to vector<1x1024xf32>
    %cst_3 = arith.constant 1.000000e+00 : f32
    %15 = vector.broadcast %cst_3 : f32 to vector<1x1024xf32>
    %16 = arith.divf %14, %15 : vector<1x1024xf32>
    %17 = vector.extract_strided_slice %0 {offsets = [1, 0], sizes = [1, 1024], strides = [1, 1]} : vector<4x1024xf32> to vector<1x1024xf32>
    %cst_4 = arith.constant 1.000000e+00 : f32
    %18 = vector.broadcast %cst_4 : f32 to vector<1x1024xf32>
    %19 = arith.divf %17, %18 : vector<1x1024xf32>
    %20 = vector.extract_strided_slice %0 {offsets = [2, 0], sizes = [1, 1024], strides = [1, 1]} : vector<4x1024xf32> to vector<1x1024xf32>
    %cst_5 = arith.constant 1.000000e+00 : f32
    %21 = vector.broadcast %cst_5 : f32 to vector<1x1024xf32>
    %22 = arith.divf %20, %21 : vector<1x1024xf32>
    %cst_6 = arith.constant 4.13516665 : f32
    %23 = vector.broadcast %cst_6 : f32 to vector<1x1024xf32>
    %24 = arith.minimumf %22, %23 : vector<1x1024xf32>
    %25 = vector.extract_strided_slice %0 {offsets = [3, 0], sizes = [1, 1024], strides = [1, 1]} : vector<4x1024xf32> to vector<1x1024xf32>
    %cst_7 = arith.constant 1.000000e+00 : f32
    %26 = vector.broadcast %cst_7 : f32 to vector<1x1024xf32>
    %27 = arith.divf %25, %26 : vector<1x1024xf32>
    %cst_8 = arith.constant 4.13516665 : f32
    %28 = vector.broadcast %cst_8 : f32 to vector<1x1024xf32>
    %29 = arith.minimumf %27, %28 : vector<1x1024xf32>
    %30 = arith.mulf %16, %6 : vector<1x1024xf32>
    %31 = arith.addf %30, %10 : vector<1x1024xf32>
    %32 = arith.mulf %19, %7 : vector<1x1024xf32>
    %33 = arith.addf %32, %13 : vector<1x1024xf32>
    %34 = math.exp %24 : vector<1x1024xf32>
    %35 = arith.mulf %34, %6 : vector<1x1024xf32>
    %36 = math.exp %29 : vector<1x1024xf32>
    %37 = arith.mulf %36, %7 : vector<1x1024xf32>
    %cst_9 = arith.constant 5.000000e-01 : f32
    %38 = vector.broadcast %cst_9 : f32 to vector<1x1024xf32>
    %39 = arith.mulf %38, %35 : vector<1x1024xf32>
    %40 = arith.subf %31, %39 : vector<1x1024xf32>
    %cst_10 = arith.constant 0.000000e+00 : f32
    %cst_11 = arith.constant 3.200000e+01 : f32
    %41 = vector.broadcast %cst_10 : f32 to vector<1x1024xf32>
    %42 = arith.maximumf %41, %40 : vector<1x1024xf32>
    %43 = vector.broadcast %cst_11 : f32 to vector<1x1024xf32>
    %44 = arith.minimumf %43, %42 : vector<1x1024xf32>
    %cst_12 = arith.constant 5.000000e-01 : f32
    %45 = vector.broadcast %cst_12 : f32 to vector<1x1024xf32>
    %46 = arith.mulf %45, %37 : vector<1x1024xf32>
    %47 = arith.subf %33, %46 : vector<1x1024xf32>
    %cst_13 = arith.constant 0.000000e+00 : f32
    %cst_14 = arith.constant 3.200000e+01 : f32
    %48 = vector.broadcast %cst_13 : f32 to vector<1x1024xf32>
    %49 = arith.maximumf %48, %47 : vector<1x1024xf32>
    %50 = vector.broadcast %cst_14 : f32 to vector<1x1024xf32>
    %51 = arith.minimumf %50, %49 : vector<1x1024xf32>
    %cst_15 = arith.constant 5.000000e-01 : f32
    %52 = vector.broadcast %cst_15 : f32 to vector<1x1024xf32>
    %53 = arith.mulf %52, %35 : vector<1x1024xf32>
    %54 = arith.addf %31, %53 : vector<1x1024xf32>
    %cst_16 = arith.constant 0.000000e+00 : f32
    %cst_17 = arith.constant 3.200000e+01 : f32
    %55 = vector.broadcast %cst_16 : f32 to vector<1x1024xf32>
    %56 = arith.maximumf %55, %54 : vector<1x1024xf32>
    %57 = vector.broadcast %cst_17 : f32 to vector<1x1024xf32>
    %58 = arith.minimumf %57, %56 : vector<1x1024xf32>
    %cst_18 = arith.constant 5.000000e-01 : f32
    %59 = vector.broadcast %cst_18 : f32 to vector<1x1024xf32>
    %60 = arith.mulf %59, %37 : vector<1x1024xf32>
    %61 = arith.addf %33, %60 : vector<1x1024xf32>
    %cst_19 = arith.constant 0.000000e+00 : f32
    %cst_20 = arith.constant 3.200000e+01 : f32
    %62 = vector.broadcast %cst_19 : f32 to vector<1x1024xf32>
    %63 = arith.maximumf %62, %61 : vector<1x1024xf32>
    %64 = vector.broadcast %cst_20 : f32 to vector<1x1024xf32>
    %65 = arith.minimumf %64, %63 : vector<1x1024xf32>
    %66 = tpu.concatenate %44, %51, %58, %65 in 0 : vector<1x1024xf32>, vector<1x1024xf32>, vector<1x1024xf32>, vector<1x1024xf32> -> vector<4x1024xf32>
    %c0_21 = arith.constant 0 : index
    %c0_22 = arith.constant 0 : index
    %67 = vector.load %arg2[%c0_21, %c0_22] : memref<4x1024xf32, #tpu.memory_space<vmem>>, vector<4x1024xf32>
    tpu.vector_store %arg2[%c0_21, %c0_22], %66 {strides = array<i32>} : memref<4x1024xf32, #tpu.memory_space<vmem>>, vector<4x1024xf32>,
    return
  }
  func.func @transform_0(%arg0: i32) -> (i32, i32) {
    %c0_i32 = arith.constant 0 : i32
    %c0_i32_0 = arith.constant 0 : i32
    return %c0_i32, %arg0 : i32, i32
  }
  func.func @transform_1(%arg0: i32) -> (i32, i32) {
    %c0_i32 = arith.constant 0 : i32
    %c0_i32_0 = arith.constant 0 : i32
    return %c0_i32, %arg0 : i32, i32
  }
}

module attributes {stable_mosaic.version = 11 : i64} {
  func.func @_box_head_kernel(%arg0: i32, %arg1: memref<16x1568xbf16, #tpu.memory_space<vmem>>, %arg2: memref<1568x128xbf16, #tpu.memory_space<vmem>>, %arg3: memref<1x128xf32, #tpu.memory_space<vmem>>, %arg4: memref<128x128xbf16, #tpu.memory_space<vmem>>, %arg5: memref<1x128xf32, #tpu.memory_space<vmem>>, %arg6: memref<128x128xbf16, #tpu.memory_space<vmem>>, %arg7: memref<1x128xf32, #tpu.memory_space<vmem>>, %arg8: memref<16x128xf32, #tpu.memory_space<vmem>>, %arg9: memref<16x128xf32, #tpu.memory_space<vmem>>) attributes {dimension_semantics = [#tpu.dimension_semantics<parallel>], iteration_bounds = array<i64: 2>, scalar_prefetch = 0 : i64, scratch_operands = 0 : i64, tpu.core_type = #tpu.core_type<tc>, window_params = [{transform_indices = @transform_0, window_bounds = array<i64: 16, 1568>}, {pipeline_mode = #tpu.pipeline_mode<synchronous>, transform_indices = @transform_1, window_bounds = array<i64: 1568, 128>}, {pipeline_mode = #tpu.pipeline_mode<synchronous>, transform_indices = @transform_2, window_bounds = array<i64: 1, 128>}, {pipeline_mode = #tpu.pipeline_mode<synchronous>, transform_indices = @transform_3, window_bounds = array<i64: 128, 128>}, {pipeline_mode = #tpu.pipeline_mode<synchronous>, transform_indices = @transform_4, window_bounds = array<i64: 1, 128>}, {pipeline_mode = #tpu.pipeline_mode<synchronous>, transform_indices = @transform_5, window_bounds = array<i64: 128, 128>}, {pipeline_mode = #tpu.pipeline_mode<synchronous>, transform_indices = @transform_6, window_bounds = array<i64: 1, 128>}, {transform_indices = @transform_7, window_bounds = array<i64: 16, 128>}, {transform_indices = @transform_8, window_bounds = array<i64: 16, 128>}]} {
    %c0 = arith.constant 0 : index
    %c0_0 = arith.constant 0 : index
    %0 = vector.load %arg1[%c0, %c0_0] : memref<16x1568xbf16, #tpu.memory_space<vmem>>, vector<16x1568xbf16>
    %c0_1 = arith.constant 0 : index
    %c0_2 = arith.constant 0 : index
    %1 = vector.load %arg2[%c0_1, %c0_2] : memref<1568x128xbf16, #tpu.memory_space<vmem>>, vector<1568x128xbf16>
    %cst = arith.constant dense<0.000000e+00> : vector<16x128xf32>
    %2 = tpu.matmul %0, %1, %cst {dimension_numbers = #tpu.dot_dimension_numbers<[1], [0], [0], [1], [0, 0, 1, 1], [], []>} : vector<16x1568xbf16>, vector<1568x128xbf16>, vector<16x128xf32> -> vector<16x128xf32>
    %c0_3 = arith.constant 0 : index
    %c0_4 = arith.constant 0 : index
    %3 = vector.load %arg3[%c0_3, %c0_4] : memref<1x128xf32, #tpu.memory_space<vmem>>, vector<1x128xf32>
    %4 = vector.broadcast %3 : vector<1x128xf32> to vector<16x128xf32>
    %5 = arith.addf %2, %4 : vector<16x128xf32>
    %cst_5 = arith.constant 0.000000e+00 : f32
    %6 = vector.broadcast %cst_5 : f32 to vector<16x128xf32>
    %7 = arith.maximumf %5, %6 : vector<16x128xf32>
    %8 = arith.truncf %7 : vector<16x128xf32> to vector<16x128xbf16>
    %c0_6 = arith.constant 0 : index
    %c0_7 = arith.constant 0 : index
    %9 = vector.load %arg4[%c0_6, %c0_7] : memref<128x128xbf16, #tpu.memory_space<vmem>>, vector<128x128xbf16>
    %cst_8 = arith.constant dense<0.000000e+00> : vector<16x128xf32>
    %10 = tpu.matmul %8, %9, %cst_8 {dimension_numbers = #tpu.dot_dimension_numbers<[1], [0], [0], [1], [0, 0, 1, 1], [], []>} : vector<16x128xbf16>, vector<128x128xbf16>, vector<16x128xf32> -> vector<16x128xf32>
    %c0_9 = arith.constant 0 : index
    %c0_10 = arith.constant 0 : index
    %11 = vector.load %arg5[%c0_9, %c0_10] : memref<1x128xf32, #tpu.memory_space<vmem>>, vector<1x128xf32>
    %12 = vector.broadcast %11 : vector<1x128xf32> to vector<16x128xf32>
    %13 = arith.addf %10, %12 : vector<16x128xf32>
    %cst_11 = arith.constant 0.000000e+00 : f32
    %14 = vector.broadcast %cst_11 : f32 to vector<16x128xf32>
    %15 = arith.maximumf %13, %14 : vector<16x128xf32>
    %c0_12 = arith.constant 0 : index
    %c0_13 = arith.constant 0 : index
    %16 = vector.load %arg8[%c0_12, %c0_13] : memref<16x128xf32, #tpu.memory_space<vmem>>, vector<16x128xf32>
    tpu.vector_store %arg8[%c0_12, %c0_13], %15 {strides = array<i32>} : memref<16x128xf32, #tpu.memory_space<vmem>>, vector<16x128xf32>,
    %17 = arith.truncf %15 : vector<16x128xf32> to vector<16x128xbf16>
    %c0_14 = arith.constant 0 : index
    %c0_15 = arith.constant 0 : index
    %18 = vector.load %arg6[%c0_14, %c0_15] : memref<128x128xbf16, #tpu.memory_space<vmem>>, vector<128x128xbf16>
    %cst_16 = arith.constant dense<0.000000e+00> : vector<16x128xf32>
    %19 = tpu.matmul %17, %18, %cst_16 {dimension_numbers = #tpu.dot_dimension_numbers<[1], [0], [0], [1], [0, 0, 1, 1], [], []>} : vector<16x128xbf16>, vector<128x128xbf16>, vector<16x128xf32> -> vector<16x128xf32>
    %c0_17 = arith.constant 0 : index
    %c0_18 = arith.constant 0 : index
    %20 = vector.load %arg7[%c0_17, %c0_18] : memref<1x128xf32, #tpu.memory_space<vmem>>, vector<1x128xf32>
    %21 = vector.broadcast %20 : vector<1x128xf32> to vector<16x128xf32>
    %22 = arith.addf %19, %21 : vector<16x128xf32>
    %c0_19 = arith.constant 0 : index
    %c0_20 = arith.constant 0 : index
    %23 = vector.load %arg9[%c0_19, %c0_20] : memref<16x128xf32, #tpu.memory_space<vmem>>, vector<16x128xf32>
    tpu.vector_store %arg9[%c0_19, %c0_20], %22 {strides = array<i32>} : memref<16x128xf32, #tpu.memory_space<vmem>>, vector<16x128xf32>,
    return
  }
  func.func @transform_0(%arg0: i32) -> (i32, i32) {
    %c0_i32 = arith.constant 0 : i32
    %c0_i32_0 = arith.constant 0 : i32
    return %arg0, %c0_i32 : i32, i32
  }
  func.func @transform_1(%arg0: i32) -> (i32, i32) {
    %c0_i32 = arith.constant 0 : i32
    %c0_i32_0 = arith.constant 0 : i32
    %c0_i32_1 = arith.constant 0 : i32
    return %c0_i32, %c0_i32_0 : i32, i32
  }
  func.func @transform_2(%arg0: i32) -> (i32, i32) {
    %c0_i32 = arith.constant 0 : i32
    %c0_i32_0 = arith.constant 0 : i32
    %c0_i32_1 = arith.constant 0 : i32
    return %c0_i32, %c0_i32_0 : i32, i32
  }
  func.func @transform_3(%arg0: i32) -> (i32, i32) {
    %c0_i32 = arith.constant 0 : i32
    %c0_i32_0 = arith.constant 0 : i32
    %c0_i32_1 = arith.constant 0 : i32
    return %c0_i32, %c0_i32_0 : i32, i32
  }
  func.func @transform_4(%arg0: i32) -> (i32, i32) {
    %c0_i32 = arith.constant 0 : i32
    %c0_i32_0 = arith.constant 0 : i32
    %c0_i32_1 = arith.constant 0 : i32
    return %c0_i32, %c0_i32_0 : i32, i32
  }
  func.func @transform_5(%arg0: i32) -> (i32, i32) {
    %c0_i32 = arith.constant 0 : i32
    %c0_i32_0 = arith.constant 0 : i32
    %c0_i32_1 = arith.constant 0 : i32
    return %c0_i32, %c0_i32_0 : i32, i32
  }
  func.func @transform_6(%arg0: i32) -> (i32, i32) {
    %c0_i32 = arith.constant 0 : i32
    %c0_i32_0 = arith.constant 0 : i32
    %c0_i32_1 = arith.constant 0 : i32
    return %c0_i32, %c0_i32_0 : i32, i32
  }
  func.func @transform_7(%arg0: i32) -> (i32, i32) {
    %c0_i32 = arith.constant 0 : i32
    %c0_i32_0 = arith.constant 0 : i32
    return %arg0, %c0_i32 : i32, i32
  }
  func.func @transform_8(%arg0: i32) -> (i32, i32) {
    %c0_i32 = arith.constant 0 : i32
    %c0_i32_0 = arith.constant 0 : i32
    return %arg0, %c0_i32 : i32, i32
  }
}

</mosaic_0001>

<bundles_post_ra>
// kernel: forward.4
= control target key start
LH: loop header
LB: loop body
LE: loop exit
PB: predicated region body
PF: predicated region fallthrough
CT: control target
= control target key end

     0   :  { %s2910_s12 = smov 0   ;;  %s3466_s0 = inlined_call_operand.vmem [shape: bf16[2,1024,32], index: 0, kind: input, shape index: {}]   ;;  %s3467_s1 = inlined_call_operand.vmem [shape: bf16[32,32], index: 1, kind: input, shape index: {}]   ;;  %s3468_s2 = inlined_call_operand.vmem [shape: f32[1,32], index: 2, kind: input, shape index: {}]   ;;  %s3469_s3 = inlined_call_operand.vmem [shape: bf16[2,1024,32], index: 3, kind: output, shape index: {}]  }
   0x1 LB: > { %s2205_s13 = sadd.s32 4294967295, %s2888_s12   ;;  %p2209_p0 = scmp.ge.s32.totalorder %s2888_s12, 1  ;;  %s2888_s12 = sphi %s2910_s12, %s13_s12  }
   0x2   : > { %p137_p1 = scmp.lt.s32.totalorder %s2888_s12, 3 }
   0x4   : > { %p138_p2 = pnand %p2209_p0, %p137_p1 }
   0x5   : > { %p161_p3 = scmp.lt.s32.totalorder (!%p138_p2), %s2205_s13, 1 }
   0x6   : > { %141 = sbr.rel (%p138_p2) target bundleno = 346 (0x15a), region = 32 }
   0xb   : > { %v2815_v0 = vld [vmem:[%s3467_s1 + $0x8] sm:$0xff]   ;;  %v2816_v1 = vld [vmem:[%s3467_s1] sm:$0xff]   ;;  %s3471_s13 = smov (!%p161_p3, %s2205_s13), 1  ;;  %vm643_vm0 = vcmask 261120   ;;  %vm2021_vm1 = vcmask 257024  }
   0xc   : > { %2671 = vmatprep.subr.bf16.mxu0 %v2815_v0  ;;  %2803 = vmatprep.subr.bf16.mxu1 %v2815_v0  ;;  %s2475_s18 = sshll.u32 %s3471_s13, 9 }
   0xd   : > { %2672 = vmatpush3.bf16.msra.mxu0 %v2815_v0  ;;  %2805 = vmatpush3.bf16.msra.mxu1 %v2815_v0  ;;  %s2932_s21 = scalar_lea.vmem %s3466_s0, %s2475_s18  ;;  %s3075_s26 = scalar_lea.vmem %s3469_s3, %s2475_s18 }
   0xe   : > { %2673 = vmatprep.subr.bf16.mxu0 %v2816_v1  ;;  %2804 = vmatprep.subr.bf16.mxu1 %v2816_v1  ;;  %v2817_v2 = vld [vmem:[%s2932_s21] sm:$0xff]   ;;  %v2819_v4 = vld [vmem:[%s2932_s21 + $0x8] sm:$0xff]   ;;  %v2821_v6 = vld [vmem:[%s2932_s21 + $0x10] sm:$0xff]  }
   0xf   : > { %v2818_v3 = vld [vmem:[%s2932_s21 + $0x100] sm:$0xff]   ;;  %2675 = vmatprep.mubr.msk.bf16.mxu0 %vm643_vm0, %v2817_v2  ;;  %v2820_v5 = vld [vmem:[%s2932_s21 + $0x108] sm:$0xff]   ;;  %v2822_v7 = vld [vmem:[%s2932_s21 + $0x110] sm:$0xff]  }
  0x10   : > { %2739 = vmatprep.mubr.msk.bf16.mxu1 %vm643_vm0, %v2818_v3  ;;  %v2823_v8 = vld [vmem:[%s2932_s21 + $0x18] sm:$0xff]   ;;  %v2825_v10 = vld [vmem:[%s2932_s21 + $0x20] sm:$0xff]   ;;  %v2827_v12 = vld [vmem:[%s2932_s21 + $0x28] sm:$0xff]  }
  0x11   : > { %2674 = vmatpush3.bf16.msra.mxu0 %v2816_v1  ;;  %2806 = vmatpush3.bf16.msra.mxu1 %v2816_v1  ;;  %v2824_v9 = vld [vmem:[%s2932_s21 + $0x118] sm:$0xff]   ;;  %v2826_v11 = vld [vmem:[%s2932_s21 + $0x120] sm:$0xff]   ;;  %v2828_v13 = vld [vmem:[%s2932_s21 + $0x128] sm:$0xff]  }
  0x12   : > { %v2829_v14 = vld [vmem:[%s2932_s21 + $0x30] sm:$0xff]   ;;  %v2831_v16 = vld [vmem:[%s2932_s21 + $0x38] sm:$0xff]   ;;  %v2833_v18 = vld [vmem:[%s2932_s21 + $0x40] sm:$0xff]  }
  0x13   : > { %v2830_v15 = vld [vmem:[%s2932_s21 + $0x130] sm:$0xff]   ;;  %v2832_v17 = vld [vmem:[%s2932_s21 + $0x138] sm:$0xff]   ;;  %v2834_v19 = vld [vmem:[%s2932_s21 + $0x140] sm:$0xff]  }
  0x14   : > { %2676 = vmatmul.mubr.msk.bf16.vlgmr.msra.gmra.mxu0 %vm643_vm0, %v2819_v4  ;;  %2740 = vmatmul.mubr.msk.bf16.vlgmr.msra.gmra.mxu1 %vm643_vm0, %v2820_v5  ;;  %v2835_v20 = vld [vmem:[%s2932_s21 + $0x48] sm:$0xff]   ;;  %v2837_v22 = vld [vmem:[%s2932_s21 + $0x50] sm:$0xff]   ;;  %v2839_v24 = vld [vmem:[%s2932_s21 + $0x58] sm:$0xff]  }
  0x15   : > { %2679 = vmatprep.mubr.msk.bf16.mxu0 %vm643_vm0, %v2821_v6  ;;  %2743 = vmatprep.mubr.msk.bf16.mxu1 %vm643_vm0, %v2822_v7  ;;  %v2836_v21 = vld [vmem:[%s2932_s21 + $0x148] sm:$0xff]   ;;  %v2838_v23 = vld [vmem:[%s2932_s21 + $0x150] sm:$0xff]   ;;  %v2840_v25 = vld [vmem:[%s2932_s21 + $0x158] sm:$0xff]  }
  0x16   : > { %v2841_v26 = vld [vmem:[%s2932_s21 + $0x60] sm:$0xff]   ;;  %v2843_v28 = vld [vmem:[%s2932_s21 + $0x68] sm:$0xff]   ;;  %v2845_v30 = vld [vmem:[%s2932_s21 + $0x70] sm:$0xff]  }
  0x17   : > { %v2842_v27 = vld [vmem:[%s2932_s21 + $0x160] sm:$0xff]   ;;  %v2844_v29 = vld [vmem:[%s2932_s21 + $0x168] sm:$0xff]   ;;  %v2846_v31 = vld [vmem:[%s2932_s21 + $0x170] sm:$0xff]  }
  0x18   : > { %v2847_v32 = vld [vmem:[%s2932_s21 + $0x78] sm:$0xff]   ;;  %v2849_v34 = vld [vmem:[%s2932_s21 + $0x80] sm:$0xff]   ;;  %v2851_v36 = vld [vmem:[%s2932_s21 + $0x88] sm:$0xff]  }
  0x19   : > { %v2848_v33 = vld [vmem:[%s2932_s21 + $0x178] sm:$0xff]   ;;  %v2850_v35 = vld [vmem:[%s2932_s21 + $0x180] sm:$0xff]   ;;  %v2852_v37 = vld [vmem:[%s2932_s21 + $0x188] sm:$0xff]  }
  0x1a   : > { %v2853_v38 = vld [vmem:[%s2932_s21 + $0x90] sm:$0xff]   ;;  %v2855_v40 = vld [vmem:[%s2932_s21 + $0x98] sm:$0xff]   ;;  %v2857_v42 = vld [vmem:[%s2932_s21 + $0xa0] sm:$0xff]  }
  0x1b   : > { %v2854_v39 = vld [vmem:[%s2932_s21 + $0x190] sm:$0xff]   ;;  %v2856_v41 = vld [vmem:[%s2932_s21 + $0x198] sm:$0xff]   ;;  %v2858_v43 = vld [vmem:[%s2932_s21 + $0x1a0] sm:$0xff]  }
  0x1c   : > { %2680 = vmatmul.mubr.msk.bf16.gmra.mxu0 %vm643_vm0, %v2823_v8  ;;  %2744 = vmatmul.mubr.msk.bf16.gmra.mxu1 %vm643_vm0, %v2824_v9  ;;  %v2859_v44 = vld [vmem:[%s2932_s21 + $0xa8] sm:$0xff]   ;;  %v2861_v46 = vld [vmem:[%s2932_s21 + $0xb0] sm:$0xff]   ;;  %v2863_v48 = vld [vmem:[%s2932_s21 + $0xb8] sm:$0xff]  }
  0x1d   : > { %2683 = vmatprep.mubr.msk.bf16.mxu0 %vm643_vm0, %v2825_v10  ;;  %2747 = vmatprep.mubr.msk.bf16.mxu1 %vm643_vm0, %v2826_v11  ;;  %v2860_v45 = vld [vmem:[%s2932_s21 + $0x1a8] sm:$0xff]   ;;  %v2862_v47 = vld [vmem:[%s2932_s21 + $0x1b0] sm:$0xff]   ;;  %v2864_v49 = vld [vmem:[%s2932_s21 + $0x1b8] sm:$0xff]  }
  0x1e   : > { %v2865_v50 = vld [vmem:[%s2932_s21 + $0xc0] sm:$0xff]   ;;  %v2867_v52 = vld [vmem:[%s2932_s21 + $0xc8] sm:$0xff]   ;;  %v2869_v54 = vld [vmem:[%s2932_s21 + $0xd0] sm:$0xff]  }
  0x1f   : > { %v2866_v51 = vld [vmem:[%s2932_s21 + $0x1c0] sm:$0xff]   ;;  %v2868_v53 = vld [vmem:[%s2932_s21 + $0x1c8] sm:$0xff]   ;;  %v2870_v55 = vld [vmem:[%s2932_s21 + $0x1d0] sm:$0xff]  }
  0x20   : > { %v2871_v56 = vld [vmem:[%s2932_s21 + $0xd8] sm:$0xff]   ;;  %v2873_v58 = vld [vmem:[%s2932_s21 + $0xe0] sm:$0xff]   ;;  %v2875_v60 = vld [vmem:[%s2932_s21 + $0xe8] sm:$0xff]  }
  0x21   : > { %v2872_v57 = vld [vmem:[%s2932_s21 + $0x1d8] sm:$0xff]   ;;  %v2874_v59 = vld [vmem:[%s2932_s21 + $0x1e0] sm:$0xff]   ;;  %v2876_v61 = vld [vmem:[%s2932_s21 + $0x1e8] sm:$0xff]  }
  0x22   : > { %v2877_v62 = vld [vmem:[%s2932_s21 + $0xf0] sm:$0xff]   ;;  %v2879_v0 = vld [vmem:[%s2932_s21 + $0xf8] sm:$0xff]   ;;  %v3065_v2 = vld [vmem:[%s3468_s2] ss:$0 sm:$0xff] }
  0x23   : > { %v2878_v63 = vld [vmem:[%s2932_s21 + $0x1f0] sm:$0xff]   ;;  %v2880_v1 = vld [vmem:[%s2932_s21 + $0x1f8] sm:$0xff]  }
  0x24   : > { %2684 = vmatmul.mubr.msk.bf16.gmra.mxu0 %vm643_vm0, %v2827_v12  ;;  %2748 = vmatmul.mubr.msk.bf16.gmra.mxu1 %vm643_vm0, %v2828_v13 }
  0x25   : > { %2687 = vmatprep.mubr.msk.bf16.mxu0 %vm643_vm0, %v2829_v14  ;;  %2751 = vmatprep.mubr.msk.bf16.mxu1 %vm643_vm0, %v2830_v15 }
  0x2c   : > { %2688 = vmatmul.mubr.msk.bf16.gmra.mxu0 %vm643_vm0, %v2831_v16  ;;  %2752 = vmatmul.mubr.msk.bf16.gmra.mxu1 %vm643_vm0, %v2832_v17 }
  0x2d   : > { %2691 = vmatprep.mubr.msk.bf16.mxu0 %vm643_vm0, %v2833_v18  ;;  %2755 = vmatprep.mubr.msk.bf16.mxu1 %vm643_vm0, %v2834_v19 }
  0x34   : > { %2692 = vmatmul.mubr.msk.bf16.gmra.mxu0 %vm643_vm0, %v2835_v20  ;;  %2756 = vmatmul.mubr.msk.bf16.gmra.mxu1 %vm643_vm0, %v2836_v21 }
  0x35   : > { %2695 = vmatprep.mubr.msk.bf16.mxu0 %vm643_vm0, %v2837_v22  ;;  %2759 = vmatprep.mubr.msk.bf16.mxu1 %vm643_vm0, %v2838_v23 }
  0x3c   : > { %2696 = vmatmul.mubr.msk.bf16.gmra.mxu0 %vm643_vm0, %v2839_v24  ;;  %2760 = vmatmul.mubr.msk.bf16.gmra.mxu1 %vm643_vm0, %v2840_v25 }
  0x3d   : > { %2699 = vmatprep.mubr.msk.bf16.mxu0 %vm643_vm0, %v2841_v26  ;;  %2763 = vmatprep.mubr.msk.bf16.mxu1 %vm643_vm0, %v2842_v27 }
  0x44   : > { %2700 = vmatmul.mubr.msk.bf16.gmra.mxu0 %vm643_vm0, %v2843_v28  ;;  %2764 = vmatmul.mubr.msk.bf16.gmra.mxu1 %vm643_vm0, %v2844_v29 }
  0x45   : > { %2703 = vmatprep.mubr.msk.bf16.mxu0 %vm643_vm0, %v2845_v30  ;;  %2767 = vmatprep.mubr.msk.bf16.mxu1 %vm643_vm0, %v2846_v31 }
  0x4c   : > { %2704 = vmatmul.mubr.msk.bf16.gmra.mxu0 %vm643_vm0, %v2847_v32  ;;  %2768 = vmatmul.mubr.msk.bf16.gmra.mxu1 %vm643_vm0, %v2848_v33 }
  0x4d   : > { %2707 = vmatprep.mubr.msk.bf16.mxu0 %vm643_vm0, %v2849_v34  ;;  %2771 = vmatprep.mubr.msk.bf16.mxu1 %vm643_vm0, %v2850_v35 }
  0x54   : > { %2708 = vmatmul.mubr.msk.bf16.gmra.mxu0 %vm643_vm0, %v2851_v36  ;;  %2772 = vmatmul.mubr.msk.bf16.gmra.mxu1 %vm643_vm0, %v2852_v37 }
  0x55   : > { %2711 = vmatprep.mubr.msk.bf16.mxu0 %vm643_vm0, %v2853_v38  ;;  %2775 = vmatprep.mubr.msk.bf16.mxu1 %vm643_vm0, %v2854_v39 }
  0x5c   : > { %2712 = vmatmul.mubr.msk.bf16.gmra.mxu0 %vm643_vm0, %v2855_v40  ;;  %2776 = vmatmul.mubr.msk.bf16.gmra.mxu1 %vm643_vm0, %v2856_v41 }
  0x5d   : > { %2715 = vmatprep.mubr.msk.bf16.mxu0 %vm643_vm0, %v2857_v42  ;;  %2779 = vmatprep.mubr.msk.bf16.mxu1 %vm643_vm0, %v2858_v43 }
  0x64   : > { %2716 = vmatmul.mubr.msk.bf16.gmra.mxu0 %vm643_vm0, %v2859_v44  ;;  %2780 = vmatmul.mubr.msk.bf16.gmra.mxu1 %vm643_vm0, %v2860_v45 }
  0x65   : > { %2719 = vmatprep.mubr.msk.bf16.mxu0 %vm643_vm0, %v2861_v46  ;;  %2783 = vmatprep.mubr.msk.bf16.mxu1 %vm643_vm0, %v2862_v47 }
  0x6c   : > { %2720 = vmatmul.mubr.msk.bf16.gmra.mxu0 %vm643_vm0, %v2863_v48  ;;  %2784 = vmatmul.mubr.msk.bf16.gmra.mxu1 %vm643_vm0, %v2864_v49 }
  0x6d   : > { %2723 = vmatprep.mubr.msk.bf16.mxu0 %vm643_vm0, %v2865_v50  ;;  %2787 = vmatprep.mubr.msk.bf16.mxu1 %vm643_vm0, %v2866_v51 }
  0x74   : > { %2724 = vmatmul.mubr.msk.bf16.gmra.mxu0 %vm643_vm0, %v2867_v52  ;;  %2788 = vmatmul.mubr.msk.bf16.gmra.mxu1 %vm643_vm0, %v2868_v53 }
  0x75   : > { %2727 = vmatprep.mubr.msk.bf16.mxu0 %vm643_vm0, %v2869_v54  ;;  %2791 = vmatprep.mubr.msk.bf16.mxu1 %vm643_vm0, %v2870_v55 }
  0x7c   : > { %2728 = vmatmul.mubr.msk.bf16.gmra.mxu0 %vm643_vm0, %v2871_v56  ;;  %2792 = vmatmul.mubr.msk.bf16.gmra.mxu1 %vm643_vm0, %v2872_v57 }
  0x7d   : > { %2731 = vmatprep.mubr.msk.bf16.mxu0 %vm643_vm0, %v2873_v58  ;;  %2795 = vmatprep.mubr.msk.bf16.mxu1 %vm643_vm0, %v2874_v59 }
  0x84   : > { %2732 = vmatmul.mubr.msk.bf16.gmra.mxu0 %vm643_vm0, %v2875_v60  ;;  %2796 = vmatmul.mubr.msk.bf16.gmra.mxu1 %vm643_vm0, %v2876_v61 }
  0x85   : > { %2735 = vmatprep.mubr.msk.bf16.mxu0 %vm643_vm0, %v2877_v62  ;;  %2799 = vmatprep.mubr.msk.bf16.mxu1 %vm643_vm0, %v2878_v63 }
  0x8c   : > { %2736 = vmatmul.mubr.msk.bf16.gmra.mxu0 %vm643_vm0, %v2879_v0  ;;  %2800 = vmatmul.mubr.msk.bf16.gmra.mxu1 %vm643_vm0, %v2880_v1 }
  0xd4   : > { %v2677_v3 = vpop.f32.mrf.mxu0  ;;  %v2741_v5 = vpop.f32.mrf.mxu1 }
  0xd5   : > { %v879_v4 = vadd.f32 %v2677_v3, %v3065_v2  ;;  %v1135_v6 = vadd.f32 %v2741_v5, %v3065_v2 }
  0xd6   : > { %v870_v7 = vpop.f32.mrf.mxu0  ;;  %v1126_v10 = vpop.f32.mrf.mxu1 }
  0xd7   : > { %v1383_v8 = vmax.f32 %v879_v4, 0.0  ;;  %v871_v9 = vadd.f32 %v3065_v2, %v870_v7  ;;  %v1447_v11 = vmax.f32 %v1135_v6, 0.0  ;;  %v1127_v12 = vadd.f32 %v3065_v2, %v1126_v10 }
  0xd8   : > { %v2678_v13 = vpop.f32.mrf.mxu0  ;;  %v2742_v17 = vpop.f32.mrf.mxu1 }
  0xd9   : > { %v2479_v14 = vpack.c.bf16 %v1383_v8, %v1383_v8  ;;  %v1381_v15 = vmax.f32 %v871_v9, 0.0  ;;  %v882_v16 = vadd.f32 %v2678_v13, %v3065_v2  ;;  %v2543_v18 = vpack.c.bf16 %v1447_v11, %v1447_v11 }
  0xda   : > { %v1445_v19 = vmax.f32 %v1127_v12, 0.0  ;;  %v1138_v20 = vadd.f32 %v2742_v17, %v3065_v2  ;;  %v873_v21 = vpop.f32.mrf.mxu0  ;;  %v1129_v25 = vpop.f32.mrf.mxu1 }
  0xdb   : > { %2024 = vst.msk [vmem:[%s3075_s26 + $0x8] sm:$0xf] %vm2021_vm1, %v2479_v14  ;;  %v2477_v22 = vpack.c.bf16 %v1381_v15, %v1381_v15  ;;  %v1384_v23 = vmax.f32 %v882_v16, 0.0  ;;  %v874_v24 = vadd.f32 %v3065_v2, %v873_v21  ;;  %2088 = vst.msk [vmem:[%s3075_s26 + $0x108] sm:$0xf] %vm2021_vm1, %v2543_v18  ;;  %v1130_v28 = vadd.f32 %v3065_v2, %v1129_v25 }
  0xdc   : > { %v2541_v26 = vpack.c.bf16 %v1445_v19, %v1445_v19  ;;  %v1448_v27 = vmax.f32 %v1138_v20, 0.0  ;;  %v2681_v29 = vpop.f32.mrf.mxu0  ;;  %v2745_v33 = vpop.f32.mrf.mxu1 }
  0xdd   : > { %2022 = vst.msk [vmem:[%s3075_s26] sm:$0xf] %vm2021_vm1, %v2477_v22  ;;  %v2480_v30 = vpack.c.bf16 %v1384_v23, %v1384_v23  ;;  %v1382_v31 = vmax.f32 %v874_v24, 0.0  ;;  %v895_v32 = vadd.f32 %v2681_v29, %v3065_v2  ;;  %v1446_v35 = vmax.f32 %v1130_v28, 0.0 }
  0xde   : > { %2086 = vst.msk [vmem:[%s3075_s26 + $0x100] sm:$0xf] %vm2021_vm1, %v2541_v26  ;;  %v2544_v34 = vpack.c.bf16 %v1448_v27, %v1448_v27  ;;  %v1151_v36 = vadd.f32 %v2745_v33, %v3065_v2  ;;  %v886_v37 = vpop.f32.mrf.mxu0  ;;  %v1142_v41 = vpop.f32.mrf.mxu1 }
  0xdf   : > { %2025 = vst.msk [vmem:[%s3075_s26 + $0xc] sm:$0xf] %vm2021_vm1, %v2480_v30  ;;  %v2478_v38 = vpack.c.bf16 %v1382_v31, %v1382_v31  ;;  %v1387_v39 = vmax.f32 %v895_v32, 0.0  ;;  %v887_v40 = vadd.f32 %v3065_v2, %v886_v37  ;;  %v2542_v42 = vpack.c.bf16 %v1446_v35, %v1446_v35 }
  0xe0   : > { %2089 = vst.msk [vmem:[%s3075_s26 + $0x10c] sm:$0xf] %vm2021_vm1, %v2544_v34  ;;  %v1451_v43 = vmax.f32 %v1151_v36, 0.0  ;;  %v1143_v44 = vadd.f32 %v3065_v2, %v1142_v41  ;;  %v2682_v45 = vpop.f32.mrf.mxu0  ;;  %v2746_v49 = vpop.f32.mrf.mxu1 }
  0xe1   : > { %2023 = vst.msk [vmem:[%s3075_s26 + $0x4] sm:$0xf] %vm2021_vm1, %v2478_v38  ;;  %v2483_v46 = vpack.c.bf16 %v1387_v39, %v1387_v39  ;;  %v1385_v47 = vmax.f32 %v887_v40, 0.0  ;;  %v898_v48 = vadd.f32 %v2682_v45, %v3065_v2  ;;  %2087 = vst.msk [vmem:[%s3075_s26 + $0x104] sm:$0xf] %vm2021_vm1, %v2542_v42  ;;  %v1154_v52 = vadd.f32 %v2746_v49, %v3065_v2 }
  0xe2   : > { %v2547_v50 = vpack.c.bf16 %v1451_v43, %v1451_v43  ;;  %v1449_v51 = vmax.f32 %v1143_v44, 0.0  ;;  %v889_v53 = vpop.f32.mrf.mxu0  ;;  %v1145_v57 = vpop.f32.mrf.mxu1 }
  0xe3   : > { %2028 = vst.msk [vmem:[%s3075_s26 + $0x18] sm:$0xf] %vm2021_vm1, %v2483_v46  ;;  %v2481_v54 = vpack.c.bf16 %v1385_v47, %v1385_v47  ;;  %v1388_v55 = vmax.f32 %v898_v48, 0.0  ;;  %v890_v56 = vadd.f32 %v3065_v2, %v889_v53  ;;  %v1452_v59 = vmax.f32 %v1154_v52, 0.0 }
  0xe4   : > { %2092 = vst.msk [vmem:[%s3075_s26 + $0x118] sm:$0xf] %vm2021_vm1, %v2547_v50  ;;  %v2545_v58 = vpack.c.bf16 %v1449_v51, %v1449_v51  ;;  %v1146_v60 = vadd.f32 %v3065_v2, %v1145_v57  ;;  %v2685_v61 = vpop.f32.mrf.mxu0  ;;  %v2749_v1 = vpop.f32.mrf.mxu1 }
  0xe5   : > { %2026 = vst.msk [vmem:[%s3075_s26 + $0x10] sm:$0xf] %vm2021_vm1, %v2481_v54  ;;  %v2484_v62 = vpack.c.bf16 %v1388_v55, %v1388_v55  ;;  %v1386_v63 = vmax.f32 %v890_v56, 0.0  ;;  %v911_v0 = vadd.f32 %v2685_v61, %v3065_v2  ;;  %v2548_v3 = vpack.c.bf16 %v1452_v59, %v1452_v59 }
  0xe6   : > { %2090 = vst.msk [vmem:[%s3075_s26 + $0x110] sm:$0xf] %vm2021_vm1, %v2545_v58  ;;  %v1450_v4 = vmax.f32 %v1146_v60, 0.0  ;;  %v1167_v5 = vadd.f32 %v2749_v1, %v3065_v2  ;;  %v902_v6 = vpop.f32.mrf.mxu0  ;;  %v1158_v10 = vpop.f32.mrf.mxu1 }
  0xe7   : > { %2029 = vst.msk [vmem:[%s3075_s26 + $0x1c] sm:$0xf] %vm2021_vm1, %v2484_v62  ;;  %v2482_v7 = vpack.c.bf16 %v1386_v63, %v1386_v63  ;;  %v1391_v8 = vmax.f32 %v911_v0, 0.0  ;;  %v903_v9 = vadd.f32 %v3065_v2, %v902_v6  ;;  %2093 = vst.msk [vmem:[%s3075_s26 + $0x11c] sm:$0xf] %vm2021_vm1, %v2548_v3  ;;  %v1159_v13 = vadd.f32 %v3065_v2, %v1158_v10 }
  0xe8   : > { %v2546_v11 = vpack.c.bf16 %v1450_v4, %v1450_v4  ;;  %v1455_v12 = vmax.f32 %v1167_v5, 0.0  ;;  %v2686_v14 = vpop.f32.mrf.mxu0  ;;  %v2750_v18 = vpop.f32.mrf.mxu1 }
  0xe9   : > { %2027 = vst.msk [vmem:[%s3075_s26 + $0x14] sm:$0xf] %vm2021_vm1, %v2482_v7  ;;  %v2487_v15 = vpack.c.bf16 %v1391_v8, %v1391_v8  ;;  %v1389_v16 = vmax.f32 %v903_v9, 0.0  ;;  %v914_v17 = vadd.f32 %v2686_v14, %v3065_v2  ;;  %v1453_v20 = vmax.f32 %v1159_v13, 0.0 }
  0xea   : > { %2091 = vst.msk [vmem:[%s3075_s26 + $0x114] sm:$0xf] %vm2021_vm1, %v2546_v11  ;;  %v2551_v19 = vpack.c.bf16 %v1455_v12, %v1455_v12  ;;  %v1170_v21 = vadd.f32 %v2750_v18, %v3065_v2  ;;  %v905_v22 = vpop.f32.mrf.mxu0  ;;  %v1161_v26 = vpop.f32.mrf.mxu1 }
  0xeb   : > { %2032 = vst.msk [vmem:[%s3075_s26 + $0x28] sm:$0xf] %vm2021_vm1, %v2487_v15  ;;  %v2485_v23 = vpack.c.bf16 %v1389_v16, %v1389_v16  ;;  %v1392_v24 = vmax.f32 %v914_v17, 0.0  ;;  %v906_v25 = vadd.f32 %v3065_v2, %v905_v22  ;;  %v2549_v27 = vpack.c.bf16 %v1453_v20, %v1453_v20 }
  0xec   : > { %2096 = vst.msk [vmem:[%s3075_s26 + $0x128] sm:$0xf] %vm2021_vm1, %v2551_v19  ;;  %v1456_v28 = vmax.f32 %v1170_v21, 0.0  ;;  %v1162_v29 = vadd.f32 %v3065_v2, %v1161_v26  ;;  %v2689_v30 = vpop.f32.mrf.mxu0  ;;  %v2753_v34 = vpop.f32.mrf.mxu1 }
  0xed   : > { %2030 = vst.msk [vmem:[%s3075_s26 + $0x20] sm:$0xf] %vm2021_vm1, %v2485_v23  ;;  %v2488_v31 = vpack.c.bf16 %v1392_v24, %v1392_v24  ;;  %v1390_v32 = vmax.f32 %v906_v25, 0.0  ;;  %v927_v33 = vadd.f32 %v2689_v30, %v3065_v2  ;;  %2094 = vst.msk [vmem:[%s3075_s26 + $0x120] sm:$0xf] %vm2021_vm1, %v2549_v27  ;;  %v1183_v37 = vadd.f32 %v2753_v34, %v3065_v2 }
  0xee   : > { %v2552_v35 = vpack.c.bf16 %v1456_v28, %v1456_v28  ;;  %v1454_v36 = vmax.f32 %v1162_v29, 0.0  ;;  %v918_v38 = vpop.f32.mrf.mxu0  ;;  %v1174_v42 = vpop.f32.mrf.mxu1 }
  0xef   : > { %2033 = vst.msk [vmem:[%s3075_s26 + $0x2c] sm:$0xf] %vm2021_vm1, %v2488_v31  ;;  %v2486_v39 = vpack.c.bf16 %v1390_v32, %v1390_v32  ;;  %v1395_v40 = vmax.f32 %v927_v33, 0.0  ;;  %v919_v41 = vadd.f32 %v3065_v2, %v918_v38  ;;  %v1459_v44 = vmax.f32 %v1183_v37, 0.0 }
  0xf0   : > { %2097 = vst.msk [vmem:[%s3075_s26 + $0x12c] sm:$0xf] %vm2021_vm1, %v2552_v35  ;;  %v2550_v43 = vpack.c.bf16 %v1454_v36, %v1454_v36  ;;  %v1175_v45 = vadd.f32 %v3065_v2, %v1174_v42  ;;  %v2690_v46 = vpop.f32.mrf.mxu0  ;;  %v2754_v50 = vpop.f32.mrf.mxu1 }
  0xf1   : > { %2031 = vst.msk [vmem:[%s3075_s26 + $0x24] sm:$0xf] %vm2021_vm1, %v2486_v39  ;;  %v2491_v47 = vpack.c.bf16 %v1395_v40, %v1395_v40  ;;  %v1393_v48 = vmax.f32 %v919_v41, 0.0  ;;  %v930_v49 = vadd.f32 %v2690_v46, %v3065_v2  ;;  %v2555_v51 = vpack.c.bf16 %v1459_v44, %v1459_v44 }
  0xf2   : > { %2095 = vst.msk [vmem:[%s3075_s26 + $0x124] sm:$0xf] %vm2021_vm1, %v2550_v43  ;;  %v1457_v52 = vmax.f32 %v1175_v45, 0.0  ;;  %v1186_v53 = vadd.f32 %v2754_v50, %v3065_v2  ;;  %v921_v54 = vpop.f32.mrf.mxu0  ;;  %v1177_v58 = vpop.f32.mrf.mxu1 }
  0xf3   : > { %2036 = vst.msk [vmem:[%s3075_s26 + $0x38] sm:$0xf] %vm2021_vm1, %v2491_v47  ;;  %v2489_v55 = vpack.c.bf16 %v1393_v48, %v1393_v48  ;;  %v1396_v56 = vmax.f32 %v930_v49, 0.0  ;;  %v922_v57 = vadd.f32 %v3065_v2, %v921_v54  ;;  %2100 = vst.msk [vmem:[%s3075_s26 + $0x138] sm:$0xf] %vm2021_vm1, %v2555_v51  ;;  %v1178_v61 = vadd.f32 %v3065_v2, %v1177_v58 }
  0xf4   : > { %v2553_v59 = vpack.c.bf16 %v1457_v52, %v1457_v52  ;;  %v1460_v60 = vmax.f32 %v1186_v53, 0.0  ;;  %v2693_v62 = vpop.f32.mrf.mxu0  ;;  %v2757_v3 = vpop.f32.mrf.mxu1 }
  0xf5   : > { %2034 = vst.msk [vmem:[%s3075_s26 + $0x30] sm:$0xf] %vm2021_vm1, %v2489_v55  ;;  %v2492_v63 = vpack.c.bf16 %v1396_v56, %v1396_v56  ;;  %v1394_v0 = vmax.f32 %v922_v57, 0.0  ;;  %v943_v1 = vadd.f32 %v2693_v62, %v3065_v2  ;;  %v1458_v5 = vmax.f32 %v1178_v61, 0.0 }
  0xf6   : > { %2098 = vst.msk [vmem:[%s3075_s26 + $0x130] sm:$0xf] %vm2021_vm1, %v2553_v59  ;;  %v2556_v4 = vpack.c.bf16 %v1460_v60, %v1460_v60  ;;  %v1199_v6 = vadd.f32 %v2757_v3, %v3065_v2  ;;  %v934_v7 = vpop.f32.mrf.mxu0  ;;  %v1190_v11 = vpop.f32.mrf.mxu1 }
  0xf7   : > { %2037 = vst.msk [vmem:[%s3075_s26 + $0x3c] sm:$0xf] %vm2021_vm1, %v2492_v63  ;;  %v2490_v8 = vpack.c.bf16 %v1394_v0, %v1394_v0  ;;  %v1399_v9 = vmax.f32 %v943_v1, 0.0  ;;  %v935_v10 = vadd.f32 %v3065_v2, %v934_v7  ;;  %v2554_v12 = vpack.c.bf16 %v1458_v5, %v1458_v5 }
  0xf8   : > { %2101 = vst.msk [vmem:[%s3075_s26 + $0x13c] sm:$0xf] %vm2021_vm1, %v2556_v4  ;;  %v1463_v13 = vmax.f32 %v1199_v6, 0.0  ;;  %v1191_v14 = vadd.f32 %v3065_v2, %v1190_v11  ;;  %v2694_v15 = vpop.f32.mrf.mxu0  ;;  %v2758_v19 = vpop.f32.mrf.mxu1 }
  0xf9   : > { %2035 = vst.msk [vmem:[%s3075_s26 + $0x34] sm:$0xf] %vm2021_vm1, %v2490_v8  ;;  %v2495_v16 = vpack.c.bf16 %v1399_v9, %v1399_v9  ;;  %v1397_v17 = vmax.f32 %v935_v10, 0.0  ;;  %v946_v18 = vadd.f32 %v2694_v15, %v3065_v2  ;;  %2099 = vst.msk [vmem:[%s3075_s26 + $0x134] sm:$0xf] %vm2021_vm1, %v2554_v12  ;;  %v1202_v22 = vadd.f32 %v2758_v19, %v3065_v2 }
  0xfa   : > { %v2559_v20 = vpack.c.bf16 %v1463_v13, %v1463_v13  ;;  %v1461_v21 = vmax.f32 %v1191_v14, 0.0  ;;  %v937_v23 = vpop.f32.mrf.mxu0  ;;  %v1193_v27 = vpop.f32.mrf.mxu1 }
  0xfb   : > { %2040 = vst.msk [vmem:[%s3075_s26 + $0x48] sm:$0xf] %vm2021_vm1, %v2495_v16  ;;  %v2493_v24 = vpack.c.bf16 %v1397_v17, %v1397_v17  ;;  %v1400_v25 = vmax.f32 %v946_v18, 0.0  ;;  %v938_v26 = vadd.f32 %v3065_v2, %v937_v23  ;;  %v1464_v29 = vmax.f32 %v1202_v22, 0.0 }
  0xfc   : > { %2104 = vst.msk [vmem:[%s3075_s26 + $0x148] sm:$0xf] %vm2021_vm1, %v2559_v20  ;;  %v2557_v28 = vpack.c.bf16 %v1461_v21, %v1461_v21  ;;  %v1194_v30 = vadd.f32 %v3065_v2, %v1193_v27  ;;  %v2697_v31 = vpop.f32.mrf.mxu0  ;;  %v2761_v35 = vpop.f32.mrf.mxu1 }
  0xfd   : > { %2038 = vst.msk [vmem:[%s3075_s26 + $0x40] sm:$0xf] %vm2021_vm1, %v2493_v24  ;;  %v2496_v32 = vpack.c.bf16 %v1400_v25, %v1400_v25  ;;  %v1398_v33 = vmax.f32 %v938_v26, 0.0  ;;  %v959_v34 = vadd.f32 %v2697_v31, %v3065_v2  ;;  %v2560_v36 = vpack.c.bf16 %v1464_v29, %v1464_v29 }
  0xfe   : > { %2102 = vst.msk [vmem:[%s3075_s26 + $0x140] sm:$0xf] %vm2021_vm1, %v2557_v28  ;;  %v1462_v37 = vmax.f32 %v1194_v30, 0.0  ;;  %v1215_v38 = vadd.f32 %v2761_v35, %v3065_v2  ;;  %v950_v39 = vpop.f32.mrf.mxu0  ;;  %v1206_v43 = vpop.f32.mrf.mxu1 }
  0xff   : > { %2041 = vst.msk [vmem:[%s3075_s26 + $0x4c] sm:$0xf] %vm2021_vm1, %v2496_v32  ;;  %v2494_v40 = vpack.c.bf16 %v1398_v33, %v1398_v33  ;;  %v1403_v41 = vmax.f32 %v959_v34, 0.0  ;;  %v951_v42 = vadd.f32 %v3065_v2, %v950_v39  ;;  %2105 = vst.msk [vmem:[%s3075_s26 + $0x14c] sm:$0xf] %vm2021_vm1, %v2560_v36  ;;  %v1207_v46 = vadd.f32 %v3065_v2, %v1206_v43 }
 0x100   : > { %v2558_v44 = vpack.c.bf16 %v1462_v37, %v1462_v37  ;;  %v1467_v45 = vmax.f32 %v1215_v38, 0.0  ;;  %v2698_v47 = vpop.f32.mrf.mxu0  ;;  %v2762_v51 = vpop.f32.mrf.mxu1 }
 0x101   : > { %2039 = vst.msk [vmem:[%s3075_s26 + $0x44] sm:$0xf] %vm2021_vm1, %v2494_v40  ;;  %v2499_v48 = vpack.c.bf16 %v1403_v41, %v1403_v41  ;;  %v1401_v49 = vmax.f32 %v951_v42, 0.0  ;;  %v962_v50 = vadd.f32 %v2698_v47, %v3065_v2  ;;  %v1465_v53 = vmax.f32 %v1207_v46, 0.0 }
 0x102   : > { %2103 = vst.msk [vmem:[%s3075_s26 + $0x144] sm:$0xf] %vm2021_vm1, %v2558_v44  ;;  %v2563_v52 = vpack.c.bf16 %v1467_v45, %v1467_v45  ;;  %v1218_v54 = vadd.f32 %v2762_v51, %v3065_v2  ;;  %v953_v55 = vpop.f32.mrf.mxu0  ;;  %v1209_v59 = vpop.f32.mrf.mxu1 }
 0x103   : > { %2044 = vst.msk [vmem:[%s3075_s26 + $0x58] sm:$0xf] %vm2021_vm1, %v2499_v48  ;;  %v2497_v56 = vpack.c.bf16 %v1401_v49, %v1401_v49  ;;  %v1404_v57 = vmax.f32 %v962_v50, 0.0  ;;  %v954_v58 = vadd.f32 %v3065_v2, %v953_v55  ;;  %v2561_v60 = vpack.c.bf16 %v1465_v53, %v1465_v53 }
 0x104   : > { %2108 = vst.msk [vmem:[%s3075_s26 + $0x158] sm:$0xf] %vm2021_vm1, %v2563_v52  ;;  %v1468_v61 = vmax.f32 %v1218_v54, 0.0  ;;  %v1210_v62 = vadd.f32 %v3065_v2, %v1209_v59  ;;  %v2701_v63 = vpop.f32.mrf.mxu0  ;;  %v2765_v4 = vpop.f32.mrf.mxu1 }
 0x105   : > { %2042 = vst.msk [vmem:[%s3075_s26 + $0x50] sm:$0xf] %vm2021_vm1, %v2497_v56  ;;  %v2500_v0 = vpack.c.bf16 %v1404_v57, %v1404_v57  ;;  %v1402_v1 = vmax.f32 %v954_v58, 0.0  ;;  %v975_v3 = vadd.f32 %v2701_v63, %v3065_v2  ;;  %2106 = vst.msk [vmem:[%s3075_s26 + $0x150] sm:$0xf] %vm2021_vm1, %v2561_v60  ;;  %v1231_v7 = vadd.f32 %v2765_v4, %v3065_v2 }
 0x106   : > { %v2564_v5 = vpack.c.bf16 %v1468_v61, %v1468_v61  ;;  %v1466_v6 = vmax.f32 %v1210_v62, 0.0  ;;  %v966_v8 = vpop.f32.mrf.mxu0  ;;  %v1222_v12 = vpop.f32.mrf.mxu1 }
 0x107   : > { %2045 = vst.msk [vmem:[%s3075_s26 + $0x5c] sm:$0xf] %vm2021_vm1, %v2500_v0  ;;  %v2498_v9 = vpack.c.bf16 %v1402_v1, %v1402_v1  ;;  %v1407_v10 = vmax.f32 %v975_v3, 0.0  ;;  %v967_v11 = vadd.f32 %v3065_v2, %v966_v8  ;;  %v1471_v14 = vmax.f32 %v1231_v7, 0.0 }
 0x108   : > { %2109 = vst.msk [vmem:[%s3075_s26 + $0x15c] sm:$0xf] %vm2021_vm1, %v2564_v5  ;;  %v2562_v13 = vpack.c.bf16 %v1466_v6, %v1466_v6  ;;  %v1223_v15 = vadd.f32 %v3065_v2, %v1222_v12  ;;  %v2702_v16 = vpop.f32.mrf.mxu0  ;;  %v2766_v20 = vpop.f32.mrf.mxu1 }
 0x109   : > { %2043 = vst.msk [vmem:[%s3075_s26 + $0x54] sm:$0xf] %vm2021_vm1, %v2498_v9  ;;  %v2503_v17 = vpack.c.bf16 %v1407_v10, %v1407_v10  ;;  %v1405_v18 = vmax.f32 %v967_v11, 0.0  ;;  %v978_v19 = vadd.f32 %v2702_v16, %v3065_v2  ;;  %v2567_v21 = vpack.c.bf16 %v1471_v14, %v1471_v14 }
 0x10a   : > { %2107 = vst.msk [vmem:[%s3075_s26 + $0x154] sm:$0xf] %vm2021_vm1, %v2562_v13  ;;  %v1469_v22 = vmax.f32 %v1223_v15, 0.0  ;;  %v1234_v23 = vadd.f32 %v2766_v20, %v3065_v2  ;;  %v969_v24 = vpop.f32.mrf.mxu0  ;;  %v1225_v28 = vpop.f32.mrf.mxu1 }
 0x10b   : > { %2048 = vst.msk [vmem:[%s3075_s26 + $0x68] sm:$0xf] %vm2021_vm1, %v2503_v17  ;;  %v2501_v25 = vpack.c.bf16 %v1405_v18, %v1405_v18  ;;  %v1408_v26 = vmax.f32 %v978_v19, 0.0  ;;  %v970_v27 = vadd.f32 %v3065_v2, %v969_v24  ;;  %2112 = vst.msk [vmem:[%s3075_s26 + $0x168] sm:$0xf] %vm2021_vm1, %v2567_v21  ;;  %v1226_v31 = vadd.f32 %v3065_v2, %v1225_v28 }
 0x10c   : > { %v2565_v29 = vpack.c.bf16 %v1469_v22, %v1469_v22  ;;  %v1472_v30 = vmax.f32 %v1234_v23, 0.0  ;;  %v2705_v32 = vpop.f32.mrf.mxu0  ;;  %v2769_v36 = vpop.f32.mrf.mxu1 }
 0x10d   : > { %2046 = vst.msk [vmem:[%s3075_s26 + $0x60] sm:$0xf] %vm2021_vm1, %v2501_v25  ;;  %v2504_v33 = vpack.c.bf16 %v1408_v26, %v1408_v26  ;;  %v1406_v34 = vmax.f32 %v970_v27, 0.0  ;;  %v991_v35 = vadd.f32 %v2705_v32, %v3065_v2  ;;  %v1470_v38 = vmax.f32 %v1226_v31, 0.0 }
 0x10e   : > { %2110 = vst.msk [vmem:[%s3075_s26 + $0x160] sm:$0xf] %vm2021_vm1, %v2565_v29  ;;  %v2568_v37 = vpack.c.bf16 %v1472_v30, %v1472_v30  ;;  %v1247_v39 = vadd.f32 %v2769_v36, %v3065_v2  ;;  %v982_v40 = vpop.f32.mrf.mxu0  ;;  %v1238_v44 = vpop.f32.mrf.mxu1 }
 0x10f   : > { %2049 = vst.msk [vmem:[%s3075_s26 + $0x6c] sm:$0xf] %vm2021_vm1, %v2504_v33  ;;  %v2502_v41 = vpack.c.bf16 %v1406_v34, %v1406_v34  ;;  %v1411_v42 = vmax.f32 %v991_v35, 0.0  ;;  %v983_v43 = vadd.f32 %v3065_v2, %v982_v40  ;;  %v2566_v45 = vpack.c.bf16 %v1470_v38, %v1470_v38 }
 0x110   : > { %2113 = vst.msk [vmem:[%s3075_s26 + $0x16c] sm:$0xf] %vm2021_vm1, %v2568_v37  ;;  %v1475_v46 = vmax.f32 %v1247_v39, 0.0  ;;  %v1239_v47 = vadd.f32 %v3065_v2, %v1238_v44  ;;  %v2706_v48 = vpop.f32.mrf.mxu0  ;;  %v2770_v52 = vpop.f32.mrf.mxu1 }
 0x111   : > { %2047 = vst.msk [vmem:[%s3075_s26 + $0x64] sm:$0xf] %vm2021_vm1, %v2502_v41  ;;  %v2507_v49 = vpack.c.bf16 %v1411_v42, %v1411_v42  ;;  %v1409_v50 = vmax.f32 %v983_v43, 0.0  ;;  %v994_v51 = vadd.f32 %v2706_v48, %v3065_v2  ;;  %2111 = vst.msk [vmem:[%s3075_s26 + $0x164] sm:$0xf] %vm2021_vm1, %v2566_v45  ;;  %v1250_v55 = vadd.f32 %v2770_v52, %v3065_v2 }
 0x112   : > { %v2571_v53 = vpack.c.bf16 %v1475_v46, %v1475_v46  ;;  %v1473_v54 = vmax.f32 %v1239_v47, 0.0  ;;  %v985_v56 = vpop.f32.mrf.mxu0  ;;  %v1241_v60 = vpop.f32.mrf.mxu1 }
 0x113   : > { %2052 = vst.msk [vmem:[%s3075_s26 + $0x78] sm:$0xf] %vm2021_vm1, %v2507_v49  ;;  %v2505_v57 = vpack.c.bf16 %v1409_v50, %v1409_v50  ;;  %v1412_v58 = vmax.f32 %v994_v51, 0.0  ;;  %v986_v59 = vadd.f32 %v3065_v2, %v985_v56  ;;  %v1476_v62 = vmax.f32 %v1250_v55, 0.0 }
 0x114   : > { %2116 = vst.msk [vmem:[%s3075_s26 + $0x178] sm:$0xf] %vm2021_vm1, %v2571_v53  ;;  %v2569_v61 = vpack.c.bf16 %v1473_v54, %v1473_v54  ;;  %v1242_v63 = vadd.f32 %v3065_v2, %v1241_v60  ;;  %v2709_v0 = vpop.f32.mrf.mxu0  ;;  %v2773_v5 = vpop.f32.mrf.mxu1 }
 0x115   : > { %2050 = vst.msk [vmem:[%s3075_s26 + $0x70] sm:$0xf] %vm2021_vm1, %v2505_v57  ;;  %v2508_v1 = vpack.c.bf16 %v1412_v58, %v1412_v58  ;;  %v1410_v3 = vmax.f32 %v986_v59, 0.0  ;;  %v1007_v4 = vadd.f32 %v2709_v0, %v3065_v2  ;;  %v2572_v6 = vpack.c.bf16 %v1476_v62, %v1476_v62 }
 0x116   : > { %2114 = vst.msk [vmem:[%s3075_s26 + $0x170] sm:$0xf] %vm2021_vm1, %v2569_v61  ;;  %v1474_v7 = vmax.f32 %v1242_v63, 0.0  ;;  %v1263_v8 = vadd.f32 %v2773_v5, %v3065_v2  ;;  %v998_v9 = vpop.f32.mrf.mxu0  ;;  %v1254_v13 = vpop.f32.mrf.mxu1 }
 0x117   : > { %2053 = vst.msk [vmem:[%s3075_s26 + $0x7c] sm:$0xf] %vm2021_vm1, %v2508_v1  ;;  %v2506_v10 = vpack.c.bf16 %v1410_v3, %v1410_v3  ;;  %v1415_v11 = vmax.f32 %v1007_v4, 0.0  ;;  %v999_v12 = vadd.f32 %v3065_v2, %v998_v9  ;;  %2117 = vst.msk [vmem:[%s3075_s26 + $0x17c] sm:$0xf] %vm2021_vm1, %v2572_v6  ;;  %v1255_v16 = vadd.f32 %v3065_v2, %v1254_v13 }
 0x118   : > { %v2570_v14 = vpack.c.bf16 %v1474_v7, %v1474_v7  ;;  %v1479_v15 = vmax.f32 %v1263_v8, 0.0  ;;  %v2710_v17 = vpop.f32.mrf.mxu0  ;;  %v2774_v21 = vpop.f32.mrf.mxu1 }
 0x119   : > { %2051 = vst.msk [vmem:[%s3075_s26 + $0x74] sm:$0xf] %vm2021_vm1, %v2506_v10  ;;  %v2511_v18 = vpack.c.bf16 %v1415_v11, %v1415_v11  ;;  %v1413_v19 = vmax.f32 %v999_v12, 0.0  ;;  %v1010_v20 = vadd.f32 %v2710_v17, %v3065_v2  ;;  %v1477_v23 = vmax.f32 %v1255_v16, 0.0 }
 0x11a   : > { %2115 = vst.msk [vmem:[%s3075_s26 + $0x174] sm:$0xf] %vm2021_vm1, %v2570_v14  ;;  %v2575_v22 = vpack.c.bf16 %v1479_v15, %v1479_v15  ;;  %v1266_v24 = vadd.f32 %v2774_v21, %v3065_v2  ;;  %v1001_v25 = vpop.f32.mrf.mxu0  ;;  %v1257_v29 = vpop.f32.mrf.mxu1 }
 0x11b   : > { %2056 = vst.msk [vmem:[%s3075_s26 + $0x88] sm:$0xf] %vm2021_vm1, %v2511_v18  ;;  %v2509_v26 = vpack.c.bf16 %v1413_v19, %v1413_v19  ;;  %v1416_v27 = vmax.f32 %v1010_v20, 0.0  ;;  %v1002_v28 = vadd.f32 %v3065_v2, %v1001_v25  ;;  %v2573_v30 = vpack.c.bf16 %v1477_v23, %v1477_v23 }
 0x11c   : > { %2120 = vst.msk [vmem:[%s3075_s26 + $0x188] sm:$0xf] %vm2021_vm1, %v2575_v22  ;;  %v1480_v31 = vmax.f32 %v1266_v24, 0.0  ;;  %v1258_v32 = vadd.f32 %v3065_v2, %v1257_v29  ;;  %v2713_v33 = vpop.f32.mrf.mxu0  ;;  %v2777_v37 = vpop.f32.mrf.mxu1 }
 0x11d   : > { %2054 = vst.msk [vmem:[%s3075_s26 + $0x80] sm:$0xf] %vm2021_vm1, %v2509_v26  ;;  %v2512_v34 = vpack.c.bf16 %v1416_v27, %v1416_v27  ;;  %v1414_v35 = vmax.f32 %v1002_v28, 0.0  ;;  %v1023_v36 = vadd.f32 %v2713_v33, %v3065_v2  ;;  %2118 = vst.msk [vmem:[%s3075_s26 + $0x180] sm:$0xf] %vm2021_vm1, %v2573_v30  ;;  %v1279_v40 = vadd.f32 %v2777_v37, %v3065_v2 }
 0x11e   : > { %v2576_v38 = vpack.c.bf16 %v1480_v31, %v1480_v31  ;;  %v1478_v39 = vmax.f32 %v1258_v32, 0.0  ;;  %v1014_v41 = vpop.f32.mrf.mxu0  ;;  %v1270_v45 = vpop.f32.mrf.mxu1 }
 0x11f   : > { %2057 = vst.msk [vmem:[%s3075_s26 + $0x8c] sm:$0xf] %vm2021_vm1, %v2512_v34  ;;  %v2510_v42 = vpack.c.bf16 %v1414_v35, %v1414_v35  ;;  %v1419_v43 = vmax.f32 %v1023_v36, 0.0  ;;  %v1015_v44 = vadd.f32 %v3065_v2, %v1014_v41  ;;  %v1483_v47 = vmax.f32 %v1279_v40, 0.0 }
 0x120   : > { %2121 = vst.msk [vmem:[%s3075_s26 + $0x18c] sm:$0xf] %vm2021_vm1, %v2576_v38  ;;  %v2574_v46 = vpack.c.bf16 %v1478_v39, %v1478_v39  ;;  %v1271_v48 = vadd.f32 %v3065_v2, %v1270_v45  ;;  %v2714_v49 = vpop.f32.mrf.mxu0  ;;  %v2778_v53 = vpop.f32.mrf.mxu1 }
 0x121   : > { %2055 = vst.msk [vmem:[%s3075_s26 + $0x84] sm:$0xf] %vm2021_vm1, %v2510_v42  ;;  %v2515_v50 = vpack.c.bf16 %v1419_v43, %v1419_v43  ;;  %v1417_v51 = vmax.f32 %v1015_v44, 0.0  ;;  %v1026_v52 = vadd.f32 %v2714_v49, %v3065_v2  ;;  %v2579_v54 = vpack.c.bf16 %v1483_v47, %v1483_v47 }
 0x122   : > { %2119 = vst.msk [vmem:[%s3075_s26 + $0x184] sm:$0xf] %vm2021_vm1, %v2574_v46  ;;  %v1481_v55 = vmax.f32 %v1271_v48, 0.0  ;;  %v1282_v56 = vadd.f32 %v2778_v53, %v3065_v2  ;;  %v1017_v57 = vpop.f32.mrf.mxu0  ;;  %v1273_v61 = vpop.f32.mrf.mxu1 }
 0x123   : > { %2060 = vst.msk [vmem:[%s3075_s26 + $0x98] sm:$0xf] %vm2021_vm1, %v2515_v50  ;;  %v2513_v58 = vpack.c.bf16 %v1417_v51, %v1417_v51  ;;  %v1420_v59 = vmax.f32 %v1026_v52, 0.0  ;;  %v1018_v60 = vadd.f32 %v3065_v2, %v1017_v57  ;;  %2124 = vst.msk [vmem:[%s3075_s26 + $0x198] sm:$0xf] %vm2021_vm1, %v2579_v54  ;;  %v1274_v0 = vadd.f32 %v3065_v2, %v1273_v61 }
 0x124   : > { %v2577_v62 = vpack.c.bf16 %v1481_v55, %v1481_v55  ;;  %v1484_v63 = vmax.f32 %v1282_v56, 0.0  ;;  %v2717_v1 = vpop.f32.mrf.mxu0  ;;  %v2781_v6 = vpop.f32.mrf.mxu1 }
 0x125   : > { %2058 = vst.msk [vmem:[%s3075_s26 + $0x90] sm:$0xf] %vm2021_vm1, %v2513_v58  ;;  %v2516_v3 = vpack.c.bf16 %v1420_v59, %v1420_v59  ;;  %v1418_v4 = vmax.f32 %v1018_v60, 0.0  ;;  %v1039_v5 = vadd.f32 %v2717_v1, %v3065_v2  ;;  %v1482_v8 = vmax.f32 %v1274_v0, 0.0 }
 0x126   : > { %2122 = vst.msk [vmem:[%s3075_s26 + $0x190] sm:$0xf] %vm2021_vm1, %v2577_v62  ;;  %v2580_v7 = vpack.c.bf16 %v1484_v63, %v1484_v63  ;;  %v1295_v9 = vadd.f32 %v2781_v6, %v3065_v2  ;;  %v1030_v10 = vpop.f32.mrf.mxu0  ;;  %v1286_v14 = vpop.f32.mrf.mxu1 }
 0x127   : > { %2061 = vst.msk [vmem:[%s3075_s26 + $0x9c] sm:$0xf] %vm2021_vm1, %v2516_v3  ;;  %v2514_v11 = vpack.c.bf16 %v1418_v4, %v1418_v4  ;;  %v1423_v12 = vmax.f32 %v1039_v5, 0.0  ;;  %v1031_v13 = vadd.f32 %v3065_v2, %v1030_v10  ;;  %v2578_v15 = vpack.c.bf16 %v1482_v8, %v1482_v8 }
 0x128   : > { %2125 = vst.msk [vmem:[%s3075_s26 + $0x19c] sm:$0xf] %vm2021_vm1, %v2580_v7  ;;  %v1487_v16 = vmax.f32 %v1295_v9, 0.0  ;;  %v1287_v17 = vadd.f32 %v3065_v2, %v1286_v14  ;;  %v2718_v18 = vpop.f32.mrf.mxu0  ;;  %v2782_v22 = vpop.f32.mrf.mxu1 }
 0x129   : > { %2059 = vst.msk [vmem:[%s3075_s26 + $0x94] sm:$0xf] %vm2021_vm1, %v2514_v11  ;;  %v2519_v19 = vpack.c.bf16 %v1423_v12, %v1423_v12  ;;  %v1421_v20 = vmax.f32 %v1031_v13, 0.0  ;;  %v1042_v21 = vadd.f32 %v2718_v18, %v3065_v2  ;;  %2123 = vst.msk [vmem:[%s3075_s26 + $0x194] sm:$0xf] %vm2021_vm1, %v2578_v15  ;;  %v1298_v25 = vadd.f32 %v2782_v22, %v3065_v2 }
 0x12a   : > { %v2583_v23 = vpack.c.bf16 %v1487_v16, %v1487_v16  ;;  %v1485_v24 = vmax.f32 %v1287_v17, 0.0  ;;  %v1033_v26 = vpop.f32.mrf.mxu0  ;;  %v1289_v30 = vpop.f32.mrf.mxu1 }
 0x12b   : > { %2064 = vst.msk [vmem:[%s3075_s26 + $0xa8] sm:$0xf] %vm2021_vm1, %v2519_v19  ;;  %v2517_v27 = vpack.c.bf16 %v1421_v20, %v1421_v20  ;;  %v1424_v28 = vmax.f32 %v1042_v21, 0.0  ;;  %v1034_v29 = vadd.f32 %v3065_v2, %v1033_v26  ;;  %v1488_v32 = vmax.f32 %v1298_v25, 0.0 }
 0x12c   : > { %2128 = vst.msk [vmem:[%s3075_s26 + $0x1a8] sm:$0xf] %vm2021_vm1, %v2583_v23  ;;  %v2581_v31 = vpack.c.bf16 %v1485_v24, %v1485_v24  ;;  %v1290_v33 = vadd.f32 %v3065_v2, %v1289_v30  ;;  %v2721_v34 = vpop.f32.mrf.mxu0  ;;  %v2785_v38 = vpop.f32.mrf.mxu1 }
 0x12d   : > { %2062 = vst.msk [vmem:[%s3075_s26 + $0xa0] sm:$0xf] %vm2021_vm1, %v2517_v27  ;;  %v2520_v35 = vpack.c.bf16 %v1424_v28, %v1424_v28  ;;  %v1422_v36 = vmax.f32 %v1034_v29, 0.0  ;;  %v1055_v37 = vadd.f32 %v2721_v34, %v3065_v2  ;;  %v2584_v39 = vpack.c.bf16 %v1488_v32, %v1488_v32 }
 0x12e   : > { %2126 = vst.msk [vmem:[%s3075_s26 + $0x1a0] sm:$0xf] %vm2021_vm1, %v2581_v31  ;;  %v1486_v40 = vmax.f32 %v1290_v33, 0.0  ;;  %v1311_v41 = vadd.f32 %v2785_v38, %v3065_v2  ;;  %v1046_v42 = vpop.f32.mrf.mxu0  ;;  %v1302_v46 = vpop.f32.mrf.mxu1  ;;  %v3379_v38 = vld [vmem:[%s3468_s2] ss:$0 sm:$0xff] }
 0x12f   : > { %2065 = vst.msk [vmem:[%s3075_s26 + $0xac] sm:$0xf] %vm2021_vm1, %v2520_v35  ;;  %v2518_v43 = vpack.c.bf16 %v1422_v36, %v1422_v36  ;;  %v1427_v44 = vmax.f32 %v1055_v37, 0.0  ;;  %v1047_v45 = vadd.f32 %v3065_v2, %v1046_v42  ;;  %2129 = vst.msk [vmem:[%s3075_s26 + $0x1ac] sm:$0xf] %vm2021_vm1, %v2584_v39  ;;  %v1303_v49 = vadd.f32 %v3065_v2, %v1302_v46 }
 0x130   : > { %v2582_v47 = vpack.c.bf16 %v1486_v40, %v1486_v40  ;;  %v1491_v48 = vmax.f32 %v1311_v41, 0.0  ;;  %v2722_v50 = vpop.f32.mrf.mxu0  ;;  %v2786_v54 = vpop.f32.mrf.mxu1 }
 0x131   : > { %2063 = vst.msk [vmem:[%s3075_s26 + $0xa4] sm:$0xf] %vm2021_vm1, %v2518_v43  ;;  %v2523_v51 = vpack.c.bf16 %v1427_v44, %v1427_v44  ;;  %v1425_v52 = vmax.f32 %v1047_v45, 0.0  ;;  %v1058_v53 = vadd.f32 %v2722_v50, %v3065_v2  ;;  %v1489_v56 = vmax.f32 %v1303_v49, 0.0 }
 0x132   : > { %2127 = vst.msk [vmem:[%s3075_s26 + $0x1a4] sm:$0xf] %vm2021_vm1, %v2582_v47  ;;  %v2587_v55 = vpack.c.bf16 %v1491_v48, %v1491_v48  ;;  %v1314_v57 = vadd.f32 %v2786_v54, %v3065_v2  ;;  %v1049_v58 = vpop.f32.mrf.mxu0  ;;  %v1305_v62 = vpop.f32.mrf.mxu1 }
 0x133   : > { %2068 = vst.msk [vmem:[%s3075_s26 + $0xb8] sm:$0xf] %vm2021_vm1, %v2523_v51  ;;  %v2521_v59 = vpack.c.bf16 %v1425_v52, %v1425_v52  ;;  %v1428_v60 = vmax.f32 %v1058_v53, 0.0  ;;  %v1050_v61 = vadd.f32 %v3065_v2, %v1049_v58  ;;  %v2585_v63 = vpack.c.bf16 %v1489_v56, %v1489_v56 }
 0x134   : > { %2132 = vst.msk [vmem:[%s3075_s26 + $0x1b8] sm:$0xf] %vm2021_vm1, %v2587_v55  ;;  %v1492_v0 = vmax.f32 %v1314_v57, 0.0  ;;  %v1306_v1 = vadd.f32 %v3065_v2, %v1305_v62  ;;  %v2725_v3 = vpop.f32.mrf.mxu0  ;;  %v2789_v7 = vpop.f32.mrf.mxu1 }
 0x135   : > { %2066 = vst.msk [vmem:[%s3075_s26 + $0xb0] sm:$0xf] %vm2021_vm1, %v2521_v59  ;;  %v2524_v4 = vpack.c.bf16 %v1428_v60, %v1428_v60  ;;  %v1426_v5 = vmax.f32 %v1050_v61, 0.0  ;;  %v1071_v6 = vadd.f32 %v2725_v3, %v3065_v2  ;;  %2130 = vst.msk [vmem:[%s3075_s26 + $0x1b0] sm:$0xf] %vm2021_vm1, %v2585_v63  ;;  %v1327_v10 = vadd.f32 %v2789_v7, %v3065_v2 }
 0x136   : > { %v2588_v8 = vpack.c.bf16 %v1492_v0, %v1492_v0  ;;  %v1490_v9 = vmax.f32 %v1306_v1, 0.0  ;;  %v1062_v11 = vpop.f32.mrf.mxu0  ;;  %v1318_v15 = vpop.f32.mrf.mxu1 }
 0x137   : > { %2069 = vst.msk [vmem:[%s3075_s26 + $0xbc] sm:$0xf] %vm2021_vm1, %v2524_v4  ;;  %v2522_v12 = vpack.c.bf16 %v1426_v5, %v1426_v5  ;;  %v1431_v13 = vmax.f32 %v1071_v6, 0.0  ;;  %v1063_v14 = vadd.f32 %v3065_v2, %v1062_v11  ;;  %v1495_v17 = vmax.f32 %v1327_v10, 0.0 }
 0x138   : > { %2133 = vst.msk [vmem:[%s3075_s26 + $0x1bc] sm:$0xf] %vm2021_vm1, %v2588_v8  ;;  %v2586_v16 = vpack.c.bf16 %v1490_v9, %v1490_v9  ;;  %v1319_v18 = vadd.f32 %v3065_v2, %v1318_v15  ;;  %v2726_v19 = vpop.f32.mrf.mxu0  ;;  %v2790_v23 = vpop.f32.mrf.mxu1 }
 0x139   : > { %2067 = vst.msk [vmem:[%s3075_s26 + $0xb4] sm:$0xf] %vm2021_vm1, %v2522_v12  ;;  %v2527_v20 = vpack.c.bf16 %v1431_v13, %v1431_v13  ;;  %v1429_v21 = vmax.f32 %v1063_v14, 0.0  ;;  %v1074_v22 = vadd.f32 %v2726_v19, %v3065_v2  ;;  %v2591_v24 = vpack.c.bf16 %v1495_v17, %v1495_v17 }
 0x13a   : > { %2131 = vst.msk [vmem:[%s3075_s26 + $0x1b4] sm:$0xf] %vm2021_vm1, %v2586_v16  ;;  %v1493_v25 = vmax.f32 %v1319_v18, 0.0  ;;  %v1330_v26 = vadd.f32 %v2790_v23, %v3065_v2  ;;  %v1065_v27 = vpop.f32.mrf.mxu0  ;;  %v1321_v31 = vpop.f32.mrf.mxu1 }
 0x13b   : > { %2072 = vst.msk [vmem:[%s3075_s26 + $0xc8] sm:$0xf] %vm2021_vm1, %v2527_v20  ;;  %v2525_v28 = vpack.c.bf16 %v1429_v21, %v1429_v21  ;;  %v1432_v29 = vmax.f32 %v1074_v22, 0.0  ;;  %v1066_v30 = vadd.f32 %v3065_v2, %v1065_v27  ;;  %2136 = vst.msk [vmem:[%s3075_s26 + $0x1c8] sm:$0xf] %vm2021_vm1, %v2591_v24  ;;  %v1322_v34 = vadd.f32 %v3065_v2, %v1321_v31 }
 0x13c   : > { %v2589_v32 = vpack.c.bf16 %v1493_v25, %v1493_v25  ;;  %v1496_v33 = vmax.f32 %v1330_v26, 0.0  ;;  %v2729_v35 = vpop.f32.mrf.mxu0  ;;  %v2793_v40 = vpop.f32.mrf.mxu1 }
 0x13d   : > { %2070 = vst.msk [vmem:[%s3075_s26 + $0xc0] sm:$0xf] %vm2021_vm1, %v2525_v28  ;;  %v2528_v36 = vpack.c.bf16 %v1432_v29, %v1432_v29  ;;  %v1430_v37 = vmax.f32 %v1066_v30, 0.0  ;;  %v1087_v39 = vadd.f32 %v3379_v38, %v2729_v35  ;;  %v1494_v42 = vmax.f32 %v1322_v34, 0.0 }
 0x13e   : > { %2134 = vst.msk [vmem:[%s3075_s26 + $0x1c0] sm:$0xf] %vm2021_vm1, %v2589_v32  ;;  %v2592_v41 = vpack.c.bf16 %v1496_v33, %v1496_v33  ;;  %v1343_v2 = vadd.f32 %v3379_v38, %v2793_v40  ;;  %v1078_v43 = vpop.f32.mrf.mxu0  ;;  %v1334_v47 = vpop.f32.mrf.mxu1 }
 0x13f   : > { %2073 = vst.msk [vmem:[%s3075_s26 + $0xcc] sm:$0xf] %vm2021_vm1, %v2528_v36  ;;  %v2526_v44 = vpack.c.bf16 %v1430_v37, %v1430_v37  ;;  %v1435_v45 = vmax.f32 %v1087_v39, 0.0  ;;  %v1079_v46 = vadd.f32 %v3379_v38, %v1078_v43  ;;  %v2590_v48 = vpack.c.bf16 %v1494_v42, %v1494_v42 }
 0x140   : > { %2137 = vst.msk [vmem:[%s3075_s26 + $0x1cc] sm:$0xf] %vm2021_vm1, %v2592_v41  ;;  %v1499_v49 = vmax.f32 %v1343_v2, 0.0  ;;  %v1335_v50 = vadd.f32 %v3379_v38, %v1334_v47  ;;  %v2730_v51 = vpop.f32.mrf.mxu0  ;;  %v2794_v55 = vpop.f32.mrf.mxu1 }
 0x141   : > { %2071 = vst.msk [vmem:[%s3075_s26 + $0xc4] sm:$0xf] %vm2021_vm1, %v2526_v44  ;;  %v2531_v52 = vpack.c.bf16 %v1435_v45, %v1435_v45  ;;  %v1433_v53 = vmax.f32 %v1079_v46, 0.0  ;;  %v1090_v54 = vadd.f32 %v3379_v38, %v2730_v51  ;;  %2135 = vst.msk [vmem:[%s3075_s26 + $0x1c4] sm:$0xf] %vm2021_vm1, %v2590_v48  ;;  %v1346_v58 = vadd.f32 %v3379_v38, %v2794_v55 }
 0x142   : > { %v2595_v56 = vpack.c.bf16 %v1499_v49, %v1499_v49  ;;  %v1497_v57 = vmax.f32 %v1335_v50, 0.0  ;;  %v1081_v59 = vpop.f32.mrf.mxu0  ;;  %v1337_v63 = vpop.f32.mrf.mxu1 }
 0x143   : > { %2076 = vst.msk [vmem:[%s3075_s26 + $0xd8] sm:$0xf] %vm2021_vm1, %v2531_v52  ;;  %v2529_v60 = vpack.c.bf16 %v1433_v53, %v1433_v53  ;;  %v1436_v61 = vmax.f32 %v1090_v54, 0.0  ;;  %v1082_v62 = vadd.f32 %v3379_v38, %v1081_v59  ;;  %v1500_v1 = vmax.f32 %v1346_v58, 0.0 }
 0x144   : > { %2140 = vst.msk [vmem:[%s3075_s26 + $0x1d8] sm:$0xf] %vm2021_vm1, %v2595_v56  ;;  %v2593_v0 = vpack.c.bf16 %v1497_v57, %v1497_v57  ;;  %v1338_v3 = vadd.f32 %v3379_v38, %v1337_v63  ;;  %v2733_v4 = vpop.f32.mrf.mxu0  ;;  %v2797_v8 = vpop.f32.mrf.mxu1 }
 0x145   : > { %2074 = vst.msk [vmem:[%s3075_s26 + $0xd0] sm:$0xf] %vm2021_vm1, %v2529_v60  ;;  %v2532_v5 = vpack.c.bf16 %v1436_v61, %v1436_v61  ;;  %v1434_v6 = vmax.f32 %v1082_v62, 0.0  ;;  %v1103_v7 = vadd.f32 %v3379_v38, %v2733_v4  ;;  %v2596_v9 = vpack.c.bf16 %v1500_v1, %v1500_v1 }
 0x146   : > { %2138 = vst.msk [vmem:[%s3075_s26 + $0x1d0] sm:$0xf] %vm2021_vm1, %v2593_v0  ;;  %v1498_v10 = vmax.f32 %v1338_v3, 0.0  ;;  %v1359_v11 = vadd.f32 %v3379_v38, %v2797_v8  ;;  %v1094_v12 = vpop.f32.mrf.mxu0  ;;  %v1350_v16 = vpop.f32.mrf.mxu1 }
 0x147   : > { %2077 = vst.msk [vmem:[%s3075_s26 + $0xdc] sm:$0xf] %vm2021_vm1, %v2532_v5  ;;  %v2530_v13 = vpack.c.bf16 %v1434_v6, %v1434_v6  ;;  %v1439_v14 = vmax.f32 %v1103_v7, 0.0  ;;  %v1095_v15 = vadd.f32 %v3379_v38, %v1094_v12  ;;  %2141 = vst.msk [vmem:[%s3075_s26 + $0x1dc] sm:$0xf] %vm2021_vm1, %v2596_v9  ;;  %v1351_v19 = vadd.f32 %v3379_v38, %v1350_v16 }
 0x148   : > { %v2594_v17 = vpack.c.bf16 %v1498_v10, %v1498_v10  ;;  %v1503_v18 = vmax.f32 %v1359_v11, 0.0  ;;  %v2734_v20 = vpop.f32.mrf.mxu0  ;;  %v2798_v24 = vpop.f32.mrf.mxu1 }
 0x149   : > { %2075 = vst.msk [vmem:[%s3075_s26 + $0xd4] sm:$0xf] %vm2021_vm1, %v2530_v13  ;;  %v2535_v21 = vpack.c.bf16 %v1439_v14, %v1439_v14  ;;  %v1437_v22 = vmax.f32 %v1095_v15, 0.0  ;;  %v1106_v23 = vadd.f32 %v3379_v38, %v2734_v20  ;;  %v1501_v26 = vmax.f32 %v1351_v19, 0.0 }
 0x14a   : > { %2139 = vst.msk [vmem:[%s3075_s26 + $0x1d4] sm:$0xf] %vm2021_vm1, %v2594_v17  ;;  %v2599_v25 = vpack.c.bf16 %v1503_v18, %v1503_v18  ;;  %v1362_v27 = vadd.f32 %v3379_v38, %v2798_v24  ;;  %v1097_v28 = vpop.f32.mrf.mxu0  ;;  %v1353_v32 = vpop.f32.mrf.mxu1 }
 0x14b   : > { %2080 = vst.msk [vmem:[%s3075_s26 + $0xe8] sm:$0xf] %vm2021_vm1, %v2535_v21  ;;  %v2533_v29 = vpack.c.bf16 %v1437_v22, %v1437_v22  ;;  %v1440_v30 = vmax.f32 %v1106_v23, 0.0  ;;  %v1098_v31 = vadd.f32 %v3379_v38, %v1097_v28  ;;  %v2597_v33 = vpack.c.bf16 %v1501_v26, %v1501_v26 }
 0x14c   : > { %2144 = vst.msk [vmem:[%s3075_s26 + $0x1e8] sm:$0xf] %vm2021_vm1, %v2599_v25  ;;  %v1504_v34 = vmax.f32 %v1362_v27, 0.0  ;;  %v1354_v35 = vadd.f32 %v3379_v38, %v1353_v32  ;;  %v2737_v36 = vpop.f32.mrf.mxu0  ;;  %v2801_v41 = vpop.f32.mrf.mxu1 }
 0x14d   : > { %2078 = vst.msk [vmem:[%s3075_s26 + $0xe0] sm:$0xf] %vm2021_vm1, %v2533_v29  ;;  %v2536_v37 = vpack.c.bf16 %v1440_v30, %v1440_v30  ;;  %v1438_v39 = vmax.f32 %v1098_v31, 0.0  ;;  %v1119_v40 = vadd.f32 %v3379_v38, %v2737_v36  ;;  %2142 = vst.msk [vmem:[%s3075_s26 + $0x1e0] sm:$0xf] %vm2021_vm1, %v2597_v33  ;;  %v1375_v43 = vadd.f32 %v3379_v38, %v2801_v41 }
 0x14e   : > { %v2600_v42 = vpack.c.bf16 %v1504_v34, %v1504_v34  ;;  %v1502_v2 = vmax.f32 %v1354_v35, 0.0  ;;  %v1110_v44 = vpop.f32.mrf.mxu0  ;;  %v1366_v48 = vpop.f32.mrf.mxu1 }
 0x14f   : > { %2081 = vst.msk [vmem:[%s3075_s26 + $0xec] sm:$0xf] %vm2021_vm1, %v2536_v37  ;;  %v2534_v45 = vpack.c.bf16 %v1438_v39, %v1438_v39  ;;  %v1443_v46 = vmax.f32 %v1119_v40, 0.0  ;;  %v1111_v47 = vadd.f32 %v3379_v38, %v1110_v44  ;;  %v1507_v50 = vmax.f32 %v1375_v43, 0.0 }
 0x150   : > { %2145 = vst.msk [vmem:[%s3075_s26 + $0x1ec] sm:$0xf] %vm2021_vm1, %v2600_v42  ;;  %v2598_v49 = vpack.c.bf16 %v1502_v2, %v1502_v2  ;;  %v1367_v51 = vadd.f32 %v3379_v38, %v1366_v48  ;;  %v2738_v52 = vpop.f32.mrf.mxu0  ;;  %v2802_v56 = vpop.f32.mrf.mxu1 }
 0x151   : > { %2079 = vst.msk [vmem:[%s3075_s26 + $0xe4] sm:$0xf] %vm2021_vm1, %v2534_v45  ;;  %v2539_v53 = vpack.c.bf16 %v1443_v46, %v1443_v46  ;;  %v1441_v54 = vmax.f32 %v1111_v47, 0.0  ;;  %v1122_v55 = vadd.f32 %v3379_v38, %v2738_v52  ;;  %v2603_v57 = vpack.c.bf16 %v1507_v50, %v1507_v50 }
 0x152   : > { %2143 = vst.msk [vmem:[%s3075_s26 + $0x1e4] sm:$0xf] %vm2021_vm1, %v2598_v49  ;;  %v1505_v58 = vmax.f32 %v1367_v51, 0.0  ;;  %v1378_v59 = vadd.f32 %v3379_v38, %v2802_v56  ;;  %v1113_v60 = vpop.f32.mrf.mxu0  ;;  %v1369_v0 = vpop.f32.mrf.mxu1 }
 0x153   : > { %2084 = vst.msk [vmem:[%s3075_s26 + $0xf8] sm:$0xf] %vm2021_vm1, %v2539_v53  ;;  %v2537_v61 = vpack.c.bf16 %v1441_v54, %v1441_v54  ;;  %v1444_v62 = vmax.f32 %v1122_v55, 0.0  ;;  %v1114_v63 = vadd.f32 %v3379_v38, %v1113_v60  ;;  %2148 = vst.msk [vmem:[%s3075_s26 + $0x1f8] sm:$0xf] %vm2021_vm1, %v2603_v57  ;;  %v1370_v4 = vadd.f32 %v3379_v38, %v1369_v0 }
 0x154   : > { %v2601_v1 = vpack.c.bf16 %v1505_v58, %v1505_v58  ;;  %v1508_v3 = vmax.f32 %v1378_v59, 0.0 }
 0x155   : > { %2082 = vst.msk [vmem:[%s3075_s26 + $0xf0] sm:$0xf] %vm2021_vm1, %v2537_v61  ;;  %v2540_v5 = vpack.c.bf16 %v1444_v62, %v1444_v62  ;;  %v1442_v6 = vmax.f32 %v1114_v63, 0.0  ;;  %v1506_v8 = vmax.f32 %v1370_v4, 0.0 }
 0x156   : > { %2146 = vst.msk [vmem:[%s3075_s26 + $0x1f0] sm:$0xf] %vm2021_vm1, %v2601_v1  ;;  %v2604_v7 = vpack.c.bf16 %v1508_v3, %v1508_v3 }
 0x157   : > { %2085 = vst.msk [vmem:[%s3075_s26 + $0xfc] sm:$0xf] %vm2021_vm1, %v2540_v5  ;;  %v2538_v9 = vpack.c.bf16 %v1442_v6, %v1442_v6  ;;  %v2602_v10 = vpack.c.bf16 %v1506_v8, %v1506_v8 }
 0x158   : > { %2149 = vst.msk [vmem:[%s3075_s26 + $0x1fc] sm:$0xf] %vm2021_vm1, %v2604_v7 }
 0x159   : > { %2083 = vst.msk [vmem:[%s3075_s26 + $0xf4] sm:$0xf] %vm2021_vm1, %v2538_v9  ;;  %2147 = vst.msk [vmem:[%s3075_s26 + $0x1f4] sm:$0xf] %vm2021_vm1, %v2602_v10 }
 0x15a PF: > { %s13_s12 = sadd.s32 1, %s2888_s12  }
 0x15b   : > { %p10_p4 = scmp.ge.s32.totalorder %s13_s12, 4  }
 0x15d   :  { %12 = sbr.rel (!%p10_p4) target bundleno = 1 (0x1), region = 62 }

// kernel: forward.5
= control target key start
LH: loop header
LB: loop body
LE: loop exit
PB: predicated region body
PF: predicated region fallthrough
CT: control target
= control target key end

     0   :  { %s8854_s18 = smov 0   ;;  %s12475_s0 = inlined_call_operand.vmem [shape: bf16[2,3,1088,32], index: 0, kind: input, shape index: {}]   ;;  %s12476_s1 = inlined_call_operand.vmem [shape: bf16[3,96,32], index: 1, kind: input, shape index: {}]   ;;  %s12477_s2 = inlined_call_operand.vmem [shape: f32[1,32], index: 2, kind: input, shape index: {}]   ;;  %s12478_s3 = inlined_call_operand.vmem [shape: bf16[32,128], index: 3, kind: input, shape index: {}]   ;;  %s12479_s4 = inlined_call_operand.vmem [shape: f32[1,128], index: 4, kind: input, shape index: {}]   ;;  %s12480_s5 = inlined_call_operand.vmem [shape: f32[2,1024,128], index: 5, kind: output, shape index: {}]  }
   0x1 LB: > { %s6950_s19 = sadd.s32 4294967295, %s8820_s18   ;;  %p6954_p0 = scmp.ge.s32.totalorder %s8820_s18, 1  ;;  %s8820_s18 = sphi %s8854_s18, %s15_s18  }
   0x2   : > { %p187_p1 = scmp.lt.s32.totalorder %s8820_s18, 3 }
   0x4   : > { %p188_p2 = pnand %p6954_p0, %p187_p1 }
   0x6   : > { %191 = sbr.rel (%p188_p2) target bundleno = 1310 (0x51e), region = 40 }
   0xb   : > { %p215_p3 = scmp.lt.s32.totalorder %s6950_s19, 1  ;;  %v8604_v0 = vld [vmem:[%s12476_s1 + $0x58] sm:$0xff]   ;;  %v8607_v1 = vld [vmem:[%s12476_s1 + $0x50] sm:$0xff]   ;;  %v8608_v2 = vld [vmem:[%s12476_s1 + $0x48] sm:$0xff]   ;;  %s8822_s7 = smov 64   ;;  %vm958_vm0 = vcmask 261120  }
   0xc   : > { %8015 = vmatprep.subr.bf16.mxu0 %v8604_v0  ;;  %v8611_v4 = vld [vmem:[%s12476_s1 + $0x40] sm:$0xff]   ;;  %s8823_s8 = smov 32   ;;  %v8612_v8 = vld [vmem:[%s12476_s1 + $0x38] sm:$0xff]   ;;  %v8616_v9 = vld [vmem:[%s12476_s1 + $0x30] sm:$0xff]   ;;  %vm1151_vm1 = vcmask 523264   ;;  %vm2394_vm2 = vcmask 785408  }
   0xd   : > { %s12917_s19 = smov (!%p215_p3, %s6950_s19), 1  ;;  %8016 = vmatpush3.bf16.msra.mxu0 %v8604_v0 }
   0xe   : > { %s8567_s24 = smul.u32 1632, %s12917_s19  ;;  %8017 = vmatprep.subr.bf16.mxu0 %v8607_v1 }
  0x10   : > { %s8877_s29 = scalar_lea.vmem %s12475_s0, %s8567_s24  ;;  %s7738_s24 = sshll.u32 %s12917_s19, 10 }
  0x11   : > { %v8880_v3 = vld [vmem:[%s8877_s29 + $0x240] sm:$0xff]   ;;  %v8886_v5 = vld [vmem:[%s8877_s29 + $0x230] sm:$0xff]   ;;  %8018 = vmatpush3.bf16.msra.mxu0 %v8607_v1  ;;  %v8891_v6 = vld [vmem:[%s8877_s29 + $0x248] sm:$0xff]   ;;  %s12134_s19 = scalar_lea.vmem %s12480_s5, %s7738_s24 }
  0x12   : > { %1897 = vrot.lane.b32.xlu1 %v8880_v3, %s8822_s7  ;;  %8019 = vmatprep.subr.bf16.mxu0 %v8608_v2  ;;  %v8896_v7 = vld [vmem:[%s8877_s29 + $0x238] sm:$0xff]   ;;  %v8916_v11 = vld [vmem:[%s8877_s29 + $0x250] sm:$0xff]   ;;  %v8925_v12 = vld [vmem:[%s8877_s29 + $0x268] sm:$0xff]  }
  0x13   : > { %1759 = vrot.lane.b32.xlu0 %v8886_v5, %s8823_s8  ;;  %v8911_v10 = vld [vmem:[%s8877_s29 + $0x258] sm:$0xff]   ;;  %v8930_v13 = vld [vmem:[%s8877_s29 + $0x260] sm:$0xff]   ;;  %v8944_v15 = vld [vmem:[%s8877_s29 + $0x270] sm:$0xff]  }
  0x14   : > { %v8939_v14 = vld [vmem:[%s8877_s29 + $0x278] sm:$0xff]   ;;  %v8588_v16 = vld [vmem:[%s8877_s29 + $0x288] sm:$0xff]   ;;  %v8589_v17 = vld [vmem:[%s8877_s29 + $0x280] sm:$0xff]  }
  0x15   : > { %8020 = vmatpush3.bf16.msra.mxu0 %v8608_v2  ;;  %v8590_v18 = vld [vmem:[%s8877_s29 + $0x298] sm:$0xff]   ;;  %v8591_v19 = vld [vmem:[%s8877_s29 + $0x290] sm:$0xff]   ;;  %v8592_v20 = vld [vmem:[%s8877_s29 + $0x2a8] sm:$0xff]  }
  0x16   : > { %1899 = vrot.lane.b32.xlu1 %v8891_v6, %s8822_s7  ;;  %8021 = vmatprep.subr.bf16.mxu0 %v8611_v4  ;;  %v8593_v21 = vld [vmem:[%s8877_s29 + $0x2a0] sm:$0xff]   ;;  %v8594_v22 = vld [vmem:[%s8877_s29 + $0x2b8] sm:$0xff]   ;;  %v8595_v23 = vld [vmem:[%s8877_s29 + $0x2b0] sm:$0xff]  }
  0x17   : > { %1761 = vrot.lane.b32.xlu0 %v8896_v7, %s8823_s8  ;;  %v8596_v24 = vld [vmem:[%s8877_s29 + $0x2c8] sm:$0xff]   ;;  %v8597_v25 = vld [vmem:[%s8877_s29 + $0x2c0] sm:$0xff]   ;;  %v8983_v26 = vld [vmem:[%s8877_s29 + $0x2d8] sm:$0xff]  }
  0x18   : > { %v8986_v27 = vld [vmem:[%s8877_s29 + $0x2d0] sm:$0xff]   ;;  %v8995_v28 = vld [vmem:[%s8877_s29 + $0x2e8] sm:$0xff]   ;;  %v8998_v29 = vld [vmem:[%s8877_s29 + $0x2e0] sm:$0xff]  }
  0x19   : > { %8022 = vmatpush3.bf16.msra.mxu0 %v8611_v4  ;;  %v9009_v30 = vld [vmem:[%s8877_s29 + $0x2f8] sm:$0xff]   ;;  %v9012_v31 = vld [vmem:[%s8877_s29 + $0x2f0] sm:$0xff]   ;;  %v9023_v32 = vld [vmem:[%s8877_s29 + $0x308] sm:$0xff]  }
  0x1a   : > { %1765 = vrot.lane.b32.xlu1 %v8891_v6, %s8823_s8  ;;  %8023 = vmatprep.subr.bf16.mxu0 %v8612_v8  ;;  %v9026_v33 = vld [vmem:[%s8877_s29 + $0x300] sm:$0xff]   ;;  %v9037_v34 = vld [vmem:[%s8877_s29 + $0x318] sm:$0xff]   ;;  %v9040_v35 = vld [vmem:[%s8877_s29 + $0x310] sm:$0xff]  }
  0x1b   : > { %1763 = vrot.lane.b32.xlu0 %v8880_v3, %s8823_s8  ;;  %v8613_v36 = vld [vmem:[%s8877_s29 + $0x220] sm:$0xff]   ;;  %v9052_v37 = vld [vmem:[%s8877_s29 + $0x328] sm:$0xff]   ;;  %v9070_v45 = vld [vmem:[%s8877_s29 + $0x338] sm:$0xff]  }
  0x1c   : > { %v9055_v38 = vld [vmem:[%s8877_s29 + $0x320] sm:$0xff]   ;;  %v8617_v41 = vld [vmem:[%s8877_s29 + $0x228] sm:$0xff]   ;;  %v9073_v47 = vld [vmem:[%s8877_s29 + $0x330] sm:$0xff]  }
  0x1d   : > { %8024 = vmatpush3.bf16.msra.mxu0 %v8612_v8  ;;  %v9089_v54 = vld [vmem:[%s8877_s29 + $0x348] sm:$0xff]   ;;  %v9095_v58 = vld [vmem:[%s8877_s29 + $0x340] sm:$0xff]   ;;  %v9111_v0 = vld [vmem:[%s8877_s29 + $0x358] sm:$0xff]  }
  0x1e   : > { %1903 = vrot.lane.b32.xlu1 %v8911_v10, %s8822_s7  ;;  %8025 = vmatprep.subr.bf16.mxu0 %v8616_v9 }
  0x1f   : > { %1901 = vrot.lane.b32.xlu0 %v8916_v11, %s8822_s7 }
  0x21   : > { %8026 = vmatpush3.bf16.msra.mxu0 %v8616_v9 }
  0x22   : > { %1769 = vrot.lane.b32.xlu1 %v8911_v10, %s8823_s8 }
  0x23   : > { %1767 = vrot.lane.b32.xlu0 %v8916_v11, %s8823_s8 }
  0x26   : > { %1907 = vrot.lane.b32.xlu1 %v8925_v12, %s8822_s7 }
  0x27   : > { %1905 = vrot.lane.b32.xlu0 %v8930_v13, %s8822_s7 }
  0x2a   : > { %1773 = vrot.lane.b32.xlu1 %v8925_v12, %s8823_s8 }
  0x2b   : > { %1771 = vrot.lane.b32.xlu0 %v8930_v13, %s8823_s8 }
  0x2e   : > { %1911 = vrot.lane.b32.xlu1 %v8939_v14, %s8822_s7 }
  0x2f   : > { %1909 = vrot.lane.b32.xlu0 %v8944_v15, %s8822_s7 }
  0x32   : > { %1777 = vrot.lane.b32.xlu1 %v8939_v14, %s8823_s8 }
  0x33   : > { %1775 = vrot.lane.b32.xlu0 %v8944_v15, %s8823_s8 }
  0x36   : > { %1915 = vrot.lane.b32.xlu1 %v8588_v16, %s8822_s7 }
  0x37   : > { %1913 = vrot.lane.b32.xlu0 %v8589_v17, %s8822_s7 }
  0x3a   : > { %1781 = vrot.lane.b32.xlu1 %v8588_v16, %s8823_s8  ;;  %v9133_v16 = vld [vmem:[%s8877_s29 + $0x368] sm:$0xff]  }
  0x3b   : > { %1779 = vrot.lane.b32.xlu0 %v8589_v17, %s8823_s8 }
  0x3e   : > { %1919 = vrot.lane.b32.xlu1 %v8590_v18, %s8822_s7 }
  0x3f   : > { %1917 = vrot.lane.b32.xlu0 %v8591_v19, %s8822_s7 }
  0x42   : > { %1785 = vrot.lane.b32.xlu1 %v8590_v18, %s8823_s8 }
  0x43   : > { %1783 = vrot.lane.b32.xlu0 %v8591_v19, %s8823_s8 }
  0x46   : > { %1923 = vrot.lane.b32.xlu1 %v8592_v20, %s8822_s7 }
  0x47   : > { %1921 = vrot.lane.b32.xlu0 %v8593_v21, %s8822_s7 }
  0x4a   : > { %1789 = vrot.lane.b32.xlu1 %v8592_v20, %s8823_s8  ;;  %v9139_v20 = vld [vmem:[%s8877_s29 + $0x360] sm:$0xff]  }
  0x4b   : > { %1787 = vrot.lane.b32.xlu0 %v8593_v21, %s8823_s8 }
  0x4e   : > { %1927 = vrot.lane.b32.xlu1 %v8594_v22, %s8822_s7 }
  0x4f   : > { %1925 = vrot.lane.b32.xlu0 %v8595_v23, %s8822_s7 }
  0x52   : > { %1793 = vrot.lane.b32.xlu1 %v8594_v22, %s8823_s8 }
  0x53   : > { %1791 = vrot.lane.b32.xlu0 %v8595_v23, %s8823_s8 }
  0x56   : > { %1931 = vrot.lane.b32.xlu1 %v8596_v24, %s8822_s7 }
  0x57   : > { %1929 = vrot.lane.b32.xlu0 %v8597_v25, %s8822_s7 }
  0x5a   : > { %1797 = vrot.lane.b32.xlu1 %v8596_v24, %s8823_s8  ;;  %v9155_v24 = vld [vmem:[%s8877_s29 + $0x378] sm:$0xff]  }
  0x5b   : > { %1795 = vrot.lane.b32.xlu0 %v8597_v25, %s8823_s8 }
  0x5e   : > { %1935 = vrot.lane.b32.xlu1 %v8983_v26, %s8822_s7 }
  0x5f   : > { %1933 = vrot.lane.b32.xlu0 %v8986_v27, %s8822_s7 }
  0x62   : > { %1801 = vrot.lane.b32.xlu1 %v8983_v26, %s8823_s8 }
  0x63   : > { %1799 = vrot.lane.b32.xlu0 %v8986_v27, %s8823_s8 }
  0x66   : > { %1939 = vrot.lane.b32.xlu1 %v8995_v28, %s8822_s7 }
  0x67   : > { %1937 = vrot.lane.b32.xlu0 %v8998_v29, %s8822_s7 }
  0x6a   : > { %1805 = vrot.lane.b32.xlu1 %v8995_v28, %s8823_s8 }
  0x6b   : > { %1803 = vrot.lane.b32.xlu0 %v8998_v29, %s8823_s8 }
  0x6e   : > { %1943 = vrot.lane.b32.xlu1 %v9009_v30, %s8822_s7 }
  0x6f   : > { %1941 = vrot.lane.b32.xlu0 %v9012_v31, %s8822_s7 }
  0x72   : > { %1809 = vrot.lane.b32.xlu1 %v9009_v30, %s8823_s8 }
  0x73   : > { %1807 = vrot.lane.b32.xlu0 %v9012_v31, %s8823_s8 }
  0x76   : > { %1947 = vrot.lane.b32.xlu1 %v9023_v32, %s8822_s7 }
  0x77   : > { %1945 = vrot.lane.b32.xlu0 %v9026_v33, %s8822_s7 }
  0x7a   : > { %1813 = vrot.lane.b32.xlu1 %v9023_v32, %s8823_s8 }
  0x7b   : > { %1811 = vrot.lane.b32.xlu0 %v9026_v33, %s8823_s8 }
  0x7e   : > { %1951 = vrot.lane.b32.xlu1 %v9037_v34, %s8822_s7 }
  0x7f   : > { %1949 = vrot.lane.b32.xlu0 %v9040_v35, %s8822_s7 }
  0x82   : > { %1817 = vrot.lane.b32.xlu1 %v9037_v34, %s8823_s8 }
  0x83   : > { %1815 = vrot.lane.b32.xlu0 %v9040_v35, %s8823_s8 }
  0x84   : > { %v1898_v39 = vpop.permute.xlu1 %1897 }
  0x85   : > { %v1760_v40 = vpop.permute.xlu0 %1759 }
  0x86   : > { %v2027_v42 = vsel %vm958_vm0, %v8613_v36, %v1760_v40  ;;  %1955 = vrot.lane.b32.xlu1 %v9052_v37, %s8822_s7  ;;  %v9161_v40 = vld [vmem:[%s8877_s29 + $0x370] sm:$0xff]  }
  0x87   : > { %1953 = vrot.lane.b32.xlu0 %v9055_v38, %s8822_s7  ;;  %v2218_v43 = vsel %vm1151_vm1, %v2027_v42, %v1898_v39 }
  0x88   : > { %8027 = vmatprep.mubr.msk.bf16.mxu0 %vm2394_vm2, %v2218_v43  ;;  %v1900_v44 = vpop.permute.xlu1 %1899 }
  0x89   : > { %v1762_v46 = vpop.permute.xlu0 %1761 }
  0x8a   : > { %v2030_v48 = vsel %vm958_vm0, %v8617_v41, %v1762_v46  ;;  %1821 = vrot.lane.b32.xlu1 %v9052_v37, %s8823_s8 }
  0x8b   : > { %1819 = vrot.lane.b32.xlu0 %v9055_v38, %s8823_s8  ;;  %v2220_v49 = vsel %vm1151_vm1, %v2030_v48, %v1900_v44  ;;  %v9177_v44 = vld [vmem:[%s8877_s29 + $0x388] sm:$0xff]  }
  0x8c   : > { %8028 = vmatmul.mubr.msk.bf16.vlgmr.msra.gmra.mxu0 %vm2394_vm2, %v2220_v49  ;;  %v1766_v50 = vpop.permute.xlu1 %1765 }
  0x8d   : > { %v1764_v51 = vpop.permute.xlu0 %1763  ;;  %v2036_v52 = vsel %vm958_vm0, %v8896_v7, %v1766_v50  ;;  %v9183_v50 = vld [vmem:[%s8877_s29 + $0x380] sm:$0xff]  }
  0x8e   : > { %1959 = vrot.lane.b32.xlu1 %v9070_v45, %s8822_s7  ;;  %v2033_v55 = vsel %vm958_vm0, %v8886_v5, %v1764_v51  ;;  %v9117_v5 = vld [vmem:[%s8877_s29 + $0x350] sm:$0xff]  }
  0x8f   : > { %1957 = vrot.lane.b32.xlu0 %v9073_v47, %s8822_s7 }
  0x90   : > { %v1904_v53 = vpop.permute.xlu1 %1903 }
  0x91   : > { %v2224_v56 = vsel %vm1151_vm1, %v2036_v52, %v1904_v53  ;;  %v1902_v57 = vpop.permute.xlu0 %1901  ;;  %v8802_v52 = vld [vmem:[%s8877_s29 + $0x288] sm:$0xff]  }
  0x92   : > { %v2222_v59 = vsel %vm1151_vm1, %v2033_v55, %v1902_v57  ;;  %1825 = vrot.lane.b32.xlu1 %v9070_v45, %s8823_s8 }
  0x93   : > { %1823 = vrot.lane.b32.xlu0 %v9073_v47, %s8823_s8  ;;  %8031 = vmatprep.mubr.msk.bf16.mxu0 %vm2394_vm2, %v2222_v59 }
  0x94   : > { %8032 = vmatmul.mubr.msk.bf16.gmra.mxu0 %vm2394_vm2, %v2224_v56  ;;  %v1770_v60 = vpop.permute.xlu1 %1769  ;;  %v8803_v56 = vld [vmem:[%s8877_s29 + $0x280] sm:$0xff]  }
  0x95   : > { %v1768_v61 = vpop.permute.xlu0 %1767  ;;  %v2042_v62 = vsel %vm958_vm0, %v8891_v6, %v1770_v60 }
  0x96   : > { %1963 = vrot.lane.b32.xlu1 %v9089_v54, %s8822_s7  ;;  %v2039_v1 = vsel %vm958_vm0, %v8880_v3, %v1768_v61  ;;  %v9202_v61 = vld [vmem:[%s8877_s29 + $0x398] sm:$0xff]  }
  0x97   : > { %1961 = vrot.lane.b32.xlu0 %v9095_v58, %s8822_s7 }
  0x98   : > { %v1908_v63 = vpop.permute.xlu1 %1907 }
  0x99   : > { %v2228_v2 = vsel %vm1151_vm1, %v2042_v62, %v1908_v63  ;;  %v1906_v4 = vpop.permute.xlu0 %1905  ;;  %v9211_v63 = vld [vmem:[%s8877_s29 + $0x390] sm:$0xff]  }
  0x9a   : > { %v2226_v7 = vsel %vm1151_vm1, %v2039_v1, %v1906_v4  ;;  %1829 = vrot.lane.b32.xlu1 %v9089_v54, %s8823_s8  ;;  %v8804_v4 = vld [vmem:[%s8877_s29 + $0x298] sm:$0xff]  }
  0x9b   : > { %1827 = vrot.lane.b32.xlu0 %v9095_v58, %s8823_s8  ;;  %8035 = vmatprep.mubr.msk.bf16.mxu0 %vm2394_vm2, %v2226_v7 }
  0x9c   : > { %8036 = vmatmul.mubr.msk.bf16.gmra.mxu0 %vm2394_vm2, %v2228_v2  ;;  %v1774_v6 = vpop.permute.xlu1 %1773 }
  0x9d   : > { %v1772_v3 = vpop.permute.xlu0 %1771  ;;  %v2048_v8 = vsel %vm958_vm0, %v8911_v10, %v1774_v6 }
  0x9e   : > { %1967 = vrot.lane.b32.xlu1 %v9111_v0, %s8822_s7  ;;  %v2045_v17 = vsel %vm958_vm0, %v8916_v11, %v1772_v3  ;;  %v8805_v3 = vld [vmem:[%s8877_s29 + $0x290] sm:$0xff]  }
  0x9f   : > { %1965 = vrot.lane.b32.xlu0 %v9117_v5, %s8822_s7 }
  0xa0   : > { %v1912_v9 = vpop.permute.xlu1 %1911 }
  0xa1   : > { %v2232_v18 = vsel %vm1151_vm1, %v2048_v8, %v1912_v9  ;;  %v1910_v19 = vpop.permute.xlu0 %1909 }
  0xa2   : > { %v2230_v21 = vsel %vm1151_vm1, %v2045_v17, %v1910_v19  ;;  %1833 = vrot.lane.b32.xlu1 %v9111_v0, %s8823_s8  ;;  %v9227_v19 = vld [vmem:[%s8877_s29 + $0x3a8] sm:$0xff]  }
  0xa3   : > { %1831 = vrot.lane.b32.xlu0 %v9117_v5, %s8823_s8  ;;  %8039 = vmatprep.mubr.msk.bf16.mxu0 %vm2394_vm2, %v2230_v21  ;;  %v9233_v21 = vld [vmem:[%s8877_s29 + $0x3a0] sm:$0xff]  }
  0xa4   : > { %8040 = vmatmul.mubr.msk.bf16.gmra.mxu0 %vm2394_vm2, %v2232_v18  ;;  %v1778_v10 = vpop.permute.xlu1 %1777 }
  0xa5   : > { %v1776_v11 = vpop.permute.xlu0 %1775  ;;  %v2054_v22 = vsel %vm958_vm0, %v8925_v12, %v1778_v10 }
  0xa6   : > { %1971 = vrot.lane.b32.xlu1 %v9133_v16, %s8822_s7  ;;  %v2051_v25 = vsel %vm958_vm0, %v8930_v13, %v1776_v11 }
  0xa7   : > { %1969 = vrot.lane.b32.xlu0 %v9139_v20, %s8822_s7 }
  0xa8   : > { %v1916_v23 = vpop.permute.xlu1 %1915 }
  0xa9   : > { %v2236_v36 = vsel %vm1151_vm1, %v2054_v22, %v1916_v23  ;;  %v1914_v39 = vpop.permute.xlu0 %1913  ;;  %v8806_v22 = vld [vmem:[%s8877_s29 + $0x2a8] sm:$0xff]  }
  0xaa   : > { %v2234_v41 = vsel %vm1151_vm1, %v2051_v25, %v1914_v39  ;;  %1837 = vrot.lane.b32.xlu1 %v9133_v16, %s8823_s8 }
  0xab   : > { %1835 = vrot.lane.b32.xlu0 %v9139_v20, %s8823_s8  ;;  %8043 = vmatprep.mubr.msk.bf16.mxu0 %vm2394_vm2, %v2234_v41 }
  0xac   : > { %8044 = vmatmul.mubr.msk.bf16.gmra.mxu0 %vm2394_vm2, %v2236_v36  ;;  %v1782_v12 = vpop.permute.xlu1 %1781  ;;  %v8807_v36 = vld [vmem:[%s8877_s29 + $0x2a0] sm:$0xff]  }
  0xad   : > { %v1780_v13 = vpop.permute.xlu0 %1779  ;;  %v2060_v42 = vsel %vm958_vm0, %v8939_v14, %v1782_v12 }
  0xae   : > { %1975 = vrot.lane.b32.xlu1 %v9155_v24, %s8822_s7  ;;  %v2057_v46 = vsel %vm958_vm0, %v8944_v15, %v1780_v13  ;;  %v8668_v13 = vld [vmem:[%s12476_s1 + $0x28] sm:$0xff]  }
  0xaf   : > { %1973 = vrot.lane.b32.xlu0 %v9161_v40, %s8822_s7  ;;  %8155 = vmatprep.subr.bf16.mxu1 %v8668_v13 }
  0xb0   : > { %v1920_v43 = vpop.permute.xlu1 %1919  ;;  %8156 = vmatpush3.bf16.msra.mxu1 %v8668_v13 }
  0xb1   : > { %v2240_v48 = vsel %vm1151_vm1, %v2060_v42, %v1920_v43  ;;  %v1918_v49 = vpop.permute.xlu0 %1917  ;;  %v9252_v43 = vld [vmem:[%s8877_s29 + $0x3b8] sm:$0xff]  }
  0xb2   : > { %v2238_v51 = vsel %vm1151_vm1, %v2057_v46, %v1918_v49  ;;  %1841 = vrot.lane.b32.xlu1 %v9155_v24, %s8823_s8  ;;  %v9258_v46 = vld [vmem:[%s8877_s29 + $0x3b0] sm:$0xff]  }
  0xb3   : > { %1839 = vrot.lane.b32.xlu0 %v9161_v40, %s8823_s8  ;;  %8047 = vmatprep.mubr.msk.bf16.mxu0 %vm2394_vm2, %v2238_v51  ;;  %v8671_v51 = vld [vmem:[%s12476_s1 + $0x20] sm:$0xff]  }
  0xb4   : > { %8048 = vmatmul.mubr.msk.bf16.gmra.mxu0 %vm2394_vm2, %v2240_v48  ;;  %v1786_v14 = vpop.permute.xlu1 %1785  ;;  %8157 = vmatprep.subr.bf16.mxu1 %v8671_v51 }
  0xb5   : > { %v1784_v15 = vpop.permute.xlu0 %1783  ;;  %v2066_v53 = vsel %vm958_vm0, %v8802_v52, %v1786_v14  ;;  %v8808_v14 = vld [vmem:[%s8877_s29 + $0x2b8] sm:$0xff]   ;;  %8158 = vmatpush3.bf16.msra.mxu1 %v8671_v51 }
  0xb6   : > { %1979 = vrot.lane.b32.xlu1 %v9177_v44, %s8822_s7  ;;  %v2063_v57 = vsel %vm958_vm0, %v8803_v56, %v1784_v15 }
  0xb7   : > { %1977 = vrot.lane.b32.xlu0 %v9183_v50, %s8822_s7 }
  0xb8   : > { %v1924_v55 = vpop.permute.xlu1 %1923 }
  0xb9   : > { %v2244_v59 = vsel %vm1151_vm1, %v2066_v53, %v1924_v55  ;;  %v1922_v60 = vpop.permute.xlu0 %1921  ;;  %v8809_v53 = vld [vmem:[%s8877_s29 + $0x2b0] sm:$0xff]  }
  0xba   : > { %v2242_v62 = vsel %vm1151_vm1, %v2063_v57, %v1922_v60  ;;  %1845 = vrot.lane.b32.xlu1 %v9177_v44, %s8823_s8 }
  0xbb   : > { %1843 = vrot.lane.b32.xlu0 %v9183_v50, %s8823_s8  ;;  %8051 = vmatprep.mubr.msk.bf16.mxu0 %vm2394_vm2, %v2242_v62  ;;  %v9280_v62 = vld [vmem:[%s8877_s29 + $0x3c8] sm:$0xff]  }
  0xbc   : > { %8052 = vmatmul.mubr.msk.bf16.gmra.mxu0 %vm2394_vm2, %v2244_v59  ;;  %v1790_v1 = vpop.permute.xlu1 %1789  ;;  %v8674_v59 = vld [vmem:[%s12476_s1 + $0x18] sm:$0xff]  }
  0xbd   : > { %v1788_v2 = vpop.permute.xlu0 %1787  ;;  %v2072_v7 = vsel %vm958_vm0, %v8804_v4, %v1790_v1  ;;  %v9286_v1 = vld [vmem:[%s8877_s29 + $0x3c0] sm:$0xff]   ;;  %8159 = vmatprep.subr.bf16.mxu1 %v8674_v59 }
  0xbe   : > { %1983 = vrot.lane.b32.xlu1 %v9202_v61, %s8822_s7  ;;  %v2069_v8 = vsel %vm958_vm0, %v8805_v3, %v1788_v2  ;;  %8160 = vmatpush3.bf16.msra.mxu1 %v8674_v59 }
  0xbf   : > { %1981 = vrot.lane.b32.xlu0 %v9211_v63, %s8822_s7 }
  0xc0   : > { %v1928_v6 = vpop.permute.xlu1 %1927 }
  0xc1   : > { %v2248_v9 = vsel %vm1151_vm1, %v2072_v7, %v1928_v6  ;;  %v1926_v17 = vpop.permute.xlu0 %1925  ;;  %v8676_v7 = vld [vmem:[%s12476_s1 + $0x10] sm:$0xff]   ;;  %v8810_v6 = vld [vmem:[%s8877_s29 + $0x2c8] sm:$0xff]  }
  0xc2   : > { %v2246_v18 = vsel %vm1151_vm1, %v2069_v8, %v1926_v17  ;;  %1849 = vrot.lane.b32.xlu1 %v9202_v61, %s8823_s8  ;;  %8161 = vmatprep.subr.bf16.mxu1 %v8676_v7 }
  0xc3   : > { %1847 = vrot.lane.b32.xlu0 %v9211_v63, %s8823_s8  ;;  %8055 = vmatprep.mubr.msk.bf16.mxu0 %vm2394_vm2, %v2246_v18 }
  0xc4   : > { %8056 = vmatmul.mubr.msk.bf16.gmra.mxu0 %vm2394_vm2, %v2248_v9  ;;  %v1794_v10 = vpop.permute.xlu1 %1793  ;;  %v8811_v9 = vld [vmem:[%s8877_s29 + $0x2c0] sm:$0xff]   ;;  %8162 = vmatpush3.bf16.msra.mxu1 %v8676_v7 }
  0xc5   : > { %v1792_v11 = vpop.permute.xlu0 %1791  ;;  %v2078_v23 = vsel %vm958_vm0, %v8806_v22, %v1794_v10 }
  0xc6   : > { %1987 = vrot.lane.b32.xlu1 %v9227_v19, %s8822_s7  ;;  %v2075_v39 = vsel %vm958_vm0, %v8807_v36, %v1792_v11  ;;  %v8679_v11 = vld [vmem:[%s12476_s1 + $0x8] sm:$0xff]  }
  0xc7   : > { %1985 = vrot.lane.b32.xlu0 %v9233_v21, %s8822_s7  ;;  %8163 = vmatprep.subr.bf16.mxu1 %v8679_v11 }
  0xc8   : > { %v1932_v25 = vpop.permute.xlu1 %1931  ;;  %8164 = vmatpush3.bf16.msra.mxu1 %v8679_v11  ;;  %v9392_v11 = vld [vmem:[%s8877_s29 + $0x3f0] sm:$0xff]  }
  0xc9   : > { %v2252_v41 = vsel %vm1151_vm1, %v2078_v23, %v1932_v25  ;;  %v1930_v12 = vpop.permute.xlu0 %1929  ;;  %v9308_v23 = vld [vmem:[%s8877_s29 + $0x3d8] sm:$0xff]   ;;  %v9314_v25 = vld [vmem:[%s8877_s29 + $0x3d0] sm:$0xff]  }
  0xca   : > { %v2250_v42 = vsel %vm1151_vm1, %v2075_v39, %v1930_v12  ;;  %1853 = vrot.lane.b32.xlu1 %v9227_v19, %s8823_s8  ;;  %v9325_v12 = vld [vmem:[%s8877_s29 + $0x10] sm:$0xff]  }
  0xcb   : > { %1851 = vrot.lane.b32.xlu0 %v9233_v21, %s8823_s8  ;;  %8059 = vmatprep.mubr.msk.bf16.mxu0 %vm2394_vm2, %v2250_v42 }
  0xcc   : > { %8060 = vmatmul.mubr.msk.bf16.gmra.mxu0 %vm2394_vm2, %v2252_v41  ;;  %v1798_v48 = vpop.permute.xlu1 %1797  ;;  %v8681_v41 = vld [vmem:[%s12476_s1] sm:$0xff]  }
  0xcd   : > { %v1796_v49 = vpop.permute.xlu0 %1795  ;;  %v2084_v15 = vsel %vm958_vm0, %v8808_v14, %v1798_v48  ;;  %8165 = vmatprep.subr.bf16.mxu1 %v8681_v41 }
  0xce   : > { %1991 = vrot.lane.b32.xlu1 %v9252_v43, %s8822_s7  ;;  %v2081_v55 = vsel %vm958_vm0, %v8809_v53, %v1796_v49  ;;  %8166 = vmatpush3.bf16.msra.mxu1 %v8681_v41  ;;  %v9348_v53 = vld [vmem:[%s8877_s29 + $0x3e0] sm:$0xff]  }
  0xcf   : > { %1989 = vrot.lane.b32.xlu0 %v9258_v46, %s8822_s7 }
  0xd0   : > { %v1936_v52 = vpop.permute.xlu1 %1935 }
  0xd1   : > { %v2256_v56 = vsel %vm1151_vm1, %v2084_v15, %v1936_v52  ;;  %v1934_v57 = vpop.permute.xlu0 %1933  ;;  %v9336_v15 = vld [vmem:[%s8877_s29 + $0x20] sm:$0xff]  }
  0xd2   : > { %v2254_v60 = vsel %vm1151_vm1, %v2081_v55, %v1934_v57  ;;  %1857 = vrot.lane.b32.xlu1 %v9252_v43, %s8823_s8 }
  0xd3   : > { %1855 = vrot.lane.b32.xlu0 %v9258_v46, %s8823_s8  ;;  %8063 = vmatprep.mubr.msk.bf16.mxu0 %vm2394_vm2, %v2254_v60 }
  0xd4   : > { %8064 = vmatmul.mubr.msk.bf16.gmra.mxu0 %vm2394_vm2, %v2256_v56  ;;  %v1802_v2 = vpop.permute.xlu1 %1801 }
  0xd5   : > { %v1800_v4 = vpop.permute.xlu0 %1799  ;;  %v2090_v3 = vsel %vm958_vm0, %v8810_v6, %v1802_v2 }
  0xd6   : > { %1995 = vrot.lane.b32.xlu1 %v9280_v62, %s8822_s7  ;;  %v2087_v17 = vsel %vm958_vm0, %v8811_v9, %v1800_v4  ;;  %v9361_v4 = vld [vmem:[%s8877_s29 + $0x3e8] sm:$0xff]  }
  0xd7   : > { %1993 = vrot.lane.b32.xlu0 %v9286_v1, %s8822_s7 }
  0xd8   : > { %v1940_v8 = vpop.permute.xlu1 %1939 }
  0xd9   : > { %v2260_v18 = vsel %vm1151_vm1, %v2090_v3, %v1940_v8  ;;  %v1938_v10 = vpop.permute.xlu0 %1937 }
  0xda   : > { %v2258_v22 = vsel %vm1151_vm1, %v2087_v17, %v1938_v10  ;;  %1861 = vrot.lane.b32.xlu1 %v9280_v62, %s8823_s8  ;;  %v9383_v10 = vld [vmem:[%s8877_s29 + $0x30] sm:$0xff]  }
  0xdb   : > { %1859 = vrot.lane.b32.xlu0 %v9286_v1, %s8823_s8  ;;  %8067 = vmatprep.mubr.msk.bf16.mxu0 %vm2394_vm2, %v2258_v22 }
  0xdc   : > { %8068 = vmatmul.mubr.msk.bf16.gmra.mxu0 %vm2394_vm2, %v2260_v18  ;;  %v1806_v36 = vpop.permute.xlu1 %1805 }
  0xdd   : > { %v1804_v39 = vpop.permute.xlu0 %1803  ;;  %v2096_v13 = vsel %vm958_vm0, %v8983_v26, %v1806_v36  ;;  %v9342_v26 = vld [vmem:[%s8877_s29 + $0x18] sm:$0xff]  }
  0xde   : > { %1999 = vrot.lane.b32.xlu1 %v9308_v23, %s8822_s7  ;;  %v2093_v48 = vsel %vm958_vm0, %v8986_v27, %v1804_v39 }
  0xdf   : > { %1997 = vrot.lane.b32.xlu0 %v9314_v25, %s8822_s7 }
  0xe0   : > { %v1944_v42 = vpop.permute.xlu1 %1943 }
  0xe1   : > { %v2264_v49 = vsel %vm1151_vm1, %v2096_v13, %v1944_v42  ;;  %v1942_v51 = vpop.permute.xlu0 %1941 }
  0xe2   : > { %v2262_v14 = vsel %vm1151_vm1, %v2093_v48, %v1942_v51  ;;  %1863 = vrot.lane.b32.xlu1 %v9314_v25, %s8823_s8  ;;  %v9405_v48 = vld [vmem:[%s8877_s29 + $0x3f8] sm:$0xff]  }
  0xe3   : > { %8071 = vmatprep.mubr.msk.bf16.mxu0 %vm2394_vm2, %v2262_v14  ;;  %692 = vrot.lane.b32.xlu0 %v9325_v12, %s8823_s8 }
  0xe4   : > { %8072 = vmatmul.mubr.msk.bf16.gmra.mxu0 %vm2394_vm2, %v2264_v49  ;;  %v1810_v27 = vpop.permute.xlu1 %1809 }
  0xe5   : > { %v1808_v52 = vpop.permute.xlu0 %1807  ;;  %v2102_v55 = vsel %vm958_vm0, %v8995_v28, %v1810_v27  ;;  %v9367_v28 = vld [vmem:[%s8877_s29 + $0x28] sm:$0xff]  }
  0xe6   : > { %830 = vrot.lane.b32.xlu1 %v9336_v15, %s8822_s7  ;;  %v2099_v57 = vsel %vm958_vm0, %v8998_v29, %v1808_v52 }
  0xe7   : > { %694 = vrot.lane.b32.xlu0 %v9342_v26, %s8823_s8 }
  0xe8   : > { %v1948_v56 = vpop.permute.xlu1 %1947 }
  0xe9   : > { %v2268_v59 = vsel %vm1151_vm1, %v2102_v55, %v1948_v56  ;;  %v1946_v60 = vpop.permute.xlu0 %1945 }
  0xea   : > { %v2266_v2 = vsel %vm1151_vm1, %v2099_v57, %v1946_v60  ;;  %2001 = vrot.lane.b32.xlu1 %v9348_v53, %s8822_s7  ;;  %v9427_v57 = vld [vmem:[%s8877_s29 + $0x40] sm:$0xff]  }
  0xeb   : > { %8075 = vmatprep.mubr.msk.bf16.mxu0 %vm2394_vm2, %v2266_v2  ;;  %1865 = vrot.lane.b32.xlu0 %v9308_v23, %s8823_s8 }
  0xec   : > { %8076 = vmatmul.mubr.msk.bf16.gmra.mxu0 %vm2394_vm2, %v2268_v59  ;;  %v1814_v29 = vpop.permute.xlu1 %1813  ;;  %v9436_v59 = vld [vmem:[%s8877_s29 + $0x400] sm:$0xff]  }
  0xed   : > { %v1812_v7 = vpop.permute.xlu0 %1811  ;;  %v2108_v6 = vsel %vm958_vm0, %v9009_v30, %v1814_v29 }
  0xee   : > { %2003 = vrot.lane.b32.xlu1 %v9361_v4, %s8822_s7  ;;  %v2105_v8 = vsel %vm958_vm0, %v9012_v31, %v1812_v7 }
  0xef   : > { %832 = vrot.lane.b32.xlu0 %v9367_v28, %s8822_s7 }
  0xf0   : > { %v1952_v3 = vpop.permute.xlu1 %1951 }
  0xf1   : > { %v2272_v9 = vsel %vm1151_vm1, %v2108_v6, %v1952_v3  ;;  %v1950_v17 = vpop.permute.xlu0 %1949 }
  0xf2   : > { %v2270_v18 = vsel %vm1151_vm1, %v2105_v8, %v1950_v17  ;;  %1867 = vrot.lane.b32.xlu1 %v9348_v53, %s8823_s8  ;;  %v9449_v8 = vld [vmem:[%s8877_s29 + $0x408] sm:$0xff]  }
  0xf3   : > { %8079 = vmatprep.mubr.msk.bf16.mxu0 %vm2394_vm2, %v2270_v18  ;;  %696 = vrot.lane.b32.xlu0 %v9336_v15, %s8823_s8 }
  0xf4   : > { %8080 = vmatmul.mubr.msk.bf16.gmra.mxu0 %vm2394_vm2, %v2272_v9  ;;  %v1818_v30 = vpop.permute.xlu1 %1817  ;;  %v8693_v9 = vld [vmem:[%s12476_s1 + $0x88] sm:$0xff]  }
  0xf5   : > { %v1816_v31 = vpop.permute.xlu0 %1815  ;;  %v2114_v22 = vsel %vm958_vm0, %v9023_v32, %v1818_v30  ;;  %v9411_v32 = vld [vmem:[%s8877_s29 + $0x38] sm:$0xff]   ;;  %8295 = vmatprep.subr.bf16.mxu0 %v8693_v9 }
  0xf6   : > { %834 = vrot.lane.b32.xlu1 %v9383_v10, %s8822_s7  ;;  %v2111_v39 = vsel %vm958_vm0, %v9026_v33, %v1816_v31  ;;  %8296 = vmatpush3.bf16.msra.mxu0 %v8693_v9 }
  0xf7   : > { %698 = vrot.lane.b32.xlu0 %v9367_v28, %s8823_s8 }
  0xf8   : > { %v1956_v36 = vpop.permute.xlu1 %1955 }
  0xf9   : > { %v2276_v41 = vsel %vm1151_vm1, %v2114_v22, %v1956_v36  ;;  %v1954_v13 = vpop.permute.xlu0 %1953 }
  0xfa   : > { %v2274_v42 = vsel %vm1151_vm1, %v2111_v39, %v1954_v13  ;;  %2005 = vrot.lane.b32.xlu1 %v9392_v11, %s8822_s7  ;;  %v9483_v13 = vld [vmem:[%s8877_s29 + $0x410] sm:$0xff]  }
  0xfb   : > { %8083 = vmatprep.mubr.msk.bf16.mxu0 %vm2394_vm2, %v2274_v42  ;;  %1869 = vrot.lane.b32.xlu0 %v9361_v4, %s8823_s8 }
  0xfc   : > { %8084 = vmatmul.mubr.msk.bf16.gmra.mxu0 %vm2394_vm2, %v2276_v41  ;;  %v1822_v33 = vpop.permute.xlu1 %1821  ;;  %v9474_v41 = vld [vmem:[%s8877_s29 + $0x50] sm:$0xff]  }
  0xfd   : > { %v1820_v49 = vpop.permute.xlu0 %1819  ;;  %v2120_v51 = vsel %vm958_vm0, %v9037_v34, %v1822_v33 }
  0xfe   : > { %2007 = vrot.lane.b32.xlu1 %v9405_v48, %s8822_s7  ;;  %v2117_v27 = vsel %vm958_vm0, %v9040_v35, %v1820_v49 }
  0xff   : > { %836 = vrot.lane.b32.xlu0 %v9411_v32, %s8822_s7 }
 0x100   : > { %v1960_v14 = vpop.permute.xlu1 %1959 }
 0x101   : > { %v2280_v52 = vsel %vm1151_vm1, %v2120_v51, %v1960_v14  ;;  %v1958_v55 = vpop.permute.xlu0 %1957 }
 0x102   : > { %v2278_v56 = vsel %vm1151_vm1, %v2117_v27, %v1958_v55  ;;  %1871 = vrot.lane.b32.xlu1 %v9392_v11, %s8823_s8 }
 0x103   : > { %8087 = vmatprep.mubr.msk.bf16.mxu0 %vm2394_vm2, %v2278_v56  ;;  %700 = vrot.lane.b32.xlu0 %v9383_v10, %s8823_s8 }
 0x104   : > { %8088 = vmatmul.mubr.msk.bf16.gmra.mxu0 %vm2394_vm2, %v2280_v52  ;;  %v1826_v34 = vpop.permute.xlu1 %1825  ;;  %v9496_v52 = vld [vmem:[%s8877_s29 + $0x418] sm:$0xff]  }
 0x105   : > { %v1824_v35 = vpop.permute.xlu0 %1823  ;;  %v2126_v60 = vsel %vm958_vm0, %v9052_v37, %v1826_v34  ;;  %v9458_v37 = vld [vmem:[%s8877_s29 + $0x48] sm:$0xff]  }
 0x106   : > { %838 = vrot.lane.b32.xlu1 %v9427_v57, %s8822_s7  ;;  %v2123_v29 = vsel %vm958_vm0, %v9055_v38, %v1824_v35 }
 0x107   : > { %702 = vrot.lane.b32.xlu0 %v9411_v32, %s8823_s8 }
 0x108   : > { %v1964_v2 = vpop.permute.xlu1 %1963 }
 0x109   : > { %v2284_v7 = vsel %vm1151_vm1, %v2126_v60, %v1964_v2  ;;  %v1962_v6 = vpop.permute.xlu0 %1961 }
 0x10a   : > { %v2282_v3 = vsel %vm1151_vm1, %v2123_v29, %v1962_v6  ;;  %2009 = vrot.lane.b32.xlu1 %v9436_v59, %s8822_s7  ;;  %v8659_v6 = vld [vmem:[%s8877_s29 + $0x420] sm:$0xff]  }
 0x10b   : > { %8091 = vmatprep.mubr.msk.bf16.mxu0 %vm2394_vm2, %v2282_v3  ;;  %1873 = vrot.lane.b32.xlu0 %v9405_v48, %s8823_s8 }
 0x10c   : > { %8092 = vmatmul.mubr.msk.bf16.gmra.mxu0 %vm2394_vm2, %v2284_v7  ;;  %v1830_v38 = vpop.permute.xlu1 %1829  ;;  %v9518_v7 = vld [vmem:[%s8877_s29 + $0x60] sm:$0xff]  }
 0x10d   : > { %v1828_v17 = vpop.permute.xlu0 %1827  ;;  %v2132_v18 = vsel %vm958_vm0, %v9070_v45, %v1830_v38 }
 0x10e   : > { %2011 = vrot.lane.b32.xlu1 %v9449_v8, %s8822_s7  ;;  %v2129_v31 = vsel %vm958_vm0, %v9073_v47, %v1828_v17 }
 0x10f   : > { %840 = vrot.lane.b32.xlu0 %v9458_v37, %s8822_s7 }
 0x110   : > { %v1968_v30 = vpop.permute.xlu1 %1967 }
 0x111   : > { %v2288_v22 = vsel %vm1151_vm1, %v2132_v18, %v1968_v30  ;;  %v1966_v36 = vpop.permute.xlu0 %1965 }
 0x112   : > { %v2286_v39 = vsel %vm1151_vm1, %v2129_v31, %v1966_v36  ;;  %1875 = vrot.lane.b32.xlu1 %v9436_v59, %s8823_s8  ;;  %v8660_v31 = vld [vmem:[%s8877_s29 + $0x428] sm:$0xff]   ;;  %v8703_v36 = vld [vmem:[%s12476_s1 + $0x80] sm:$0xff]  }
 0x113   : > { %8095 = vmatprep.mubr.msk.bf16.mxu0 %vm2394_vm2, %v2286_v39  ;;  %704 = vrot.lane.b32.xlu0 %v9427_v57, %s8823_s8 }
 0x114   : > { %8096 = vmatmul.mubr.msk.bf16.gmra.mxu0 %vm2394_vm2, %v2288_v22  ;;  %v1834_v45 = vpop.permute.xlu1 %1833  ;;  %v9541_v22 = vld [vmem:[%s8877_s29 + $0x68] sm:$0xff]   ;;  %8297 = vmatprep.subr.bf16.mxu0 %v8703_v36 }
 0x115   : > { %v1832_v47 = vpop.permute.xlu0 %1831  ;;  %v2138_v42 = vsel %vm958_vm0, %v9089_v54, %v1834_v45  ;;  %v9502_v54 = vld [vmem:[%s8877_s29 + $0x58] sm:$0xff]   ;;  %8298 = vmatpush3.bf16.msra.mxu0 %v8703_v36 }
 0x116   : > { %842 = vrot.lane.b32.xlu1 %v9474_v41, %s8822_s7  ;;  %v2135_v49 = vsel %vm958_vm0, %v9095_v58, %v1832_v47  ;;  %v9624_v36 = vld [vmem:[%s8877_s29 + $0x458] sm:$0xff]  }
 0x117   : > { %706 = vrot.lane.b32.xlu0 %v9458_v37, %s8823_s8 }
 0x118   : > { %v1972_v33 = vpop.permute.xlu1 %1971 }
 0x119   : > { %v2292_v51 = vsel %vm1151_vm1, %v2138_v42, %v1972_v33  ;;  %v1970_v14 = vpop.permute.xlu0 %1969 }
 0x11a   : > { %v2290_v27 = vsel %vm1151_vm1, %v2135_v49, %v1970_v14  ;;  %2013 = vrot.lane.b32.xlu1 %v9483_v13, %s8822_s7  ;;  %v8706_v49 = vld [vmem:[%s12476_s1 + $0x78] sm:$0xff]   ;;  %v9561_v14 = vld [vmem:[%s8877_s29 + $0x70] sm:$0xff]  }
 0x11b   : > { %8099 = vmatprep.mubr.msk.bf16.mxu0 %vm2394_vm2, %v2290_v27  ;;  %1877 = vrot.lane.b32.xlu0 %v9449_v8, %s8823_s8  ;;  %v8708_v27 = vld [vmem:[%s12476_s1 + $0x70] sm:$0xff]  }
 0x11c   : > { %8100 = vmatmul.mubr.msk.bf16.gmra.mxu0 %vm2394_vm2, %v2292_v51  ;;  %v1838_v58 = vpop.permute.xlu1 %1837  ;;  %8299 = vmatprep.subr.bf16.mxu0 %v8706_v49 }
 0x11d   : > { %v1836_v55 = vpop.permute.xlu0 %1835  ;;  %v2144_v56 = vsel %vm958_vm0, %v9111_v0, %v1838_v58  ;;  %8300 = vmatpush3.bf16.msra.mxu0 %v8706_v49  ;;  %v8663_v58 = vld [vmem:[%s8877_s29 + $0x430] sm:$0xff]  }
 0x11e   : > { %2015 = vrot.lane.b32.xlu1 %v9496_v52, %s8822_s7  ;;  %v2141_v35 = vsel %vm958_vm0, %v9117_v5, %v1836_v55  ;;  %8301 = vmatprep.subr.bf16.mxu0 %v8708_v27 }
 0x11f   : > { %844 = vrot.lane.b32.xlu0 %v9502_v54, %s8822_s7 }
 0x120   : > { %v1976_v34 = vpop.permute.xlu1 %1975 }
 0x121   : > { %v2296_v60 = vsel %vm1151_vm1, %v2144_v56, %v1976_v34  ;;  %v1974_v2 = vpop.permute.xlu0 %1973  ;;  %8302 = vmatpush3.bf16.msra.mxu0 %v8708_v27 }
 0x122   : > { %v2294_v29 = vsel %vm1151_vm1, %v2141_v35, %v1974_v2  ;;  %1879 = vrot.lane.b32.xlu1 %v9483_v13, %s8823_s8  ;;  %v8710_v2 = vld [vmem:[%s12476_s1 + $0x68] sm:$0xff]  }
 0x123   : > { %8103 = vmatprep.mubr.msk.bf16.mxu0 %vm2394_vm2, %v2294_v29  ;;  %708 = vrot.lane.b32.xlu0 %v9474_v41, %s8823_s8 }
 0x124   : > { %8104 = vmatmul.mubr.msk.bf16.gmra.mxu0 %vm2394_vm2, %v2296_v60  ;;  %v1842_v0 = vpop.permute.xlu1 %1841  ;;  %8303 = vmatprep.subr.bf16.mxu0 %v8710_v2 }
 0x125   : > { %v1840_v5 = vpop.permute.xlu0 %1839  ;;  %v2150_v3 = vsel %vm958_vm0, %v9133_v16, %v1842_v0  ;;  %v8664_v0 = vld [vmem:[%s8877_s29 + $0x438] sm:$0xff]   ;;  %8304 = vmatpush3.bf16.msra.mxu0 %v8710_v2 }
 0x126   : > { %846 = vrot.lane.b32.xlu1 %v9518_v7, %s8822_s7  ;;  %v2147_v38 = vsel %vm958_vm0, %v9139_v20, %v1840_v5 }
 0x127   : > { %710 = vrot.lane.b32.xlu0 %v9502_v54, %s8823_s8 }
 0x128   : > { %v1980_v9 = vpop.permute.xlu1 %1979 }
 0x129   : > { %v2300_v17 = vsel %vm1151_vm1, %v2150_v3, %v1980_v9  ;;  %v1978_v18 = vpop.permute.xlu0 %1977  ;;  %v9597_v3 = vld [vmem:[%s8877_s29 + $0x450] sm:$0xff]  }
 0x12a   : > { %v2298_v30 = vsel %vm1151_vm1, %v2147_v38, %v1978_v18  ;;  %2017 = vrot.lane.b32.xlu1 %v8659_v6, %s8822_s7 }
 0x12b   : > { %8107 = vmatprep.mubr.msk.bf16.mxu0 %vm2394_vm2, %v2298_v30  ;;  %1881 = vrot.lane.b32.xlu0 %v9496_v52, %s8823_s8 }
 0x12c   : > { %8108 = vmatmul.mubr.msk.bf16.gmra.mxu0 %vm2394_vm2, %v2300_v17  ;;  %v1846_v16 = vpop.permute.xlu1 %1845 }
 0x12d   : > { %v1844_v20 = vpop.permute.xlu0 %1843  ;;  %v2156_v39 = vsel %vm958_vm0, %v9155_v24, %v1846_v16  ;;  %v9610_v16 = vld [vmem:[%s8877_s29 + $0x80] sm:$0xff]  }
 0x12e   : > { %2019 = vrot.lane.b32.xlu1 %v8660_v31, %s8822_s7  ;;  %v2153_v47 = vsel %vm958_vm0, %v9161_v40, %v1844_v20  ;;  %v9619_v20 = vld [vmem:[%s8877_s29 + $0x460] sm:$0xff]  }
 0x12f   : > { %848 = vrot.lane.b32.xlu0 %v9541_v22, %s8822_s7 }
 0x130   : > { %v1984_v45 = vpop.permute.xlu1 %1983 }
 0x131   : > { %v2304_v42 = vsel %vm1151_vm1, %v2156_v39, %v1984_v45  ;;  %v1982_v33 = vpop.permute.xlu0 %1981 }
 0x132   : > { %v2302_v51 = vsel %vm1151_vm1, %v2153_v47, %v1982_v33  ;;  %1883 = vrot.lane.b32.xlu1 %v8659_v6, %s8823_s8  ;;  %v8713_v6 = vld [vmem:[%s12476_s1 + $0x60] sm:$0xff]  }
 0x133   : > { %8111 = vmatprep.mubr.msk.bf16.mxu0 %vm2394_vm2, %v2302_v51  ;;  %712 = vrot.lane.b32.xlu0 %v9518_v7, %s8823_s8  ;;  %v9635_v51 = vld [vmem:[%s8877_s29 + $0x468] sm:$0xff]  }
 0x134   : > { %8112 = vmatmul.mubr.msk.bf16.gmra.mxu0 %vm2394_vm2, %v2304_v42  ;;  %v1850_v24 = vpop.permute.xlu1 %1849  ;;  %8305 = vmatprep.subr.bf16.mxu0 %v8713_v6 }
 0x135   : > { %v1848_v40 = vpop.permute.xlu0 %1847  ;;  %v2162_v55 = vsel %vm958_vm0, %v9177_v44, %v1850_v24  ;;  %v9589_v44 = vld [vmem:[%s8877_s29 + $0x78] sm:$0xff]   ;;  %8306 = vmatpush3.bf16.msra.mxu0 %v8713_v6 }
 0x136   : > { %850 = vrot.lane.b32.xlu1 %v9561_v14, %s8822_s7  ;;  %v2159_v34 = vsel %vm958_vm0, %v9183_v50, %v1848_v40 }
 0x137   : > { %714 = vrot.lane.b32.xlu0 %v9541_v22, %s8823_s8 }
 0x138   : > { %v1988_v56 = vpop.permute.xlu1 %1987 }
 0x139   : > { %v2308_v35 = vsel %vm1151_vm1, %v2162_v55, %v1988_v56  ;;  %v1986_v60 = vpop.permute.xlu0 %1985 }
 0x13a   : > { %v2306_v29 = vsel %vm1151_vm1, %v2159_v34, %v1986_v60  ;;  %2021 = vrot.lane.b32.xlu1 %v8663_v58, %s8822_s7 }
 0x13b   : > { %8115 = vmatprep.mubr.msk.bf16.mxu0 %vm2394_vm2, %v2306_v29  ;;  %1885 = vrot.lane.b32.xlu0 %v8660_v31, %s8823_s8 }
 0x13c   : > { %8116 = vmatmul.mubr.msk.bf16.gmra.mxu0 %vm2394_vm2, %v2308_v35  ;;  %v1854_v50 = vpop.permute.xlu1 %1853 }
 0x13d   : > { %v1852_v5 = vpop.permute.xlu0 %1851  ;;  %v2168_v9 = vsel %vm958_vm0, %v9202_v61, %v1854_v50  ;;  %v8675_v50 = vld [vmem:[%s8877_s29] sm:$0xff]  }
 0x13e   : > { %2023 = vrot.lane.b32.xlu1 %v8664_v0, %s8822_s7  ;;  %v2165_v17 = vsel %vm958_vm0, %v9211_v63, %v1852_v5  ;;  %v9665_v0 = vld [vmem:[%s8877_s29 + $0x90] sm:$0xff]  }
 0x13f   : > { %852 = vrot.lane.b32.xlu0 %v9589_v44, %s8822_s7 }
 0x140   : > { %v1992_v38 = vpop.permute.xlu1 %1991 }
 0x141   : > { %v2312_v18 = vsel %vm1151_vm1, %v2168_v9, %v1992_v38  ;;  %v1990_v30 = vpop.permute.xlu0 %1989  ;;  %v9679_v9 = vld [vmem:[%s8877_s29 + $0x470] sm:$0xff]  }
 0x142   : > { %v2310_v31 = vsel %vm1151_vm1, %v2165_v17, %v1990_v30  ;;  %4244 = vrot.lane.b32.xlu1 %v9597_v3, %s8823_s8 }
 0x143   : > { %8119 = vmatprep.mubr.msk.bf16.mxu0 %vm2394_vm2, %v2310_v31  ;;  %716 = vrot.lane.b32.xlu0 %v9561_v14, %s8823_s8 }
 0x144   : > { %8120 = vmatmul.mubr.msk.bf16.gmra.mxu0 %vm2394_vm2, %v2312_v18  ;;  %v1858_v61 = vpop.permute.xlu1 %1857 }
 0x145   : > { %v1856_v63 = vpop.permute.xlu0 %1855  ;;  %v2174_v39 = vsel %vm958_vm0, %v9227_v19, %v1858_v61  ;;  %v9641_v19 = vld [vmem:[%s8877_s29 + $0x88] sm:$0xff]  }
 0x146   : > { %854 = vrot.lane.b32.xlu1 %v9610_v16, %s8822_s7  ;;  %v2171_v47 = vsel %vm958_vm0, %v9233_v21, %v1856_v63  ;;  %v9693_v63 = vld [vmem:[%s8877_s29 + $0x478] sm:$0xff]  }
 0x147   : > { %718 = vrot.lane.b32.xlu0 %v9589_v44, %s8823_s8 }
 0x148   : > { %v1996_v45 = vpop.permute.xlu1 %1995 }
 0x149   : > { %v2316_v42 = vsel %vm1151_vm1, %v2174_v39, %v1996_v45  ;;  %v1994_v33 = vpop.permute.xlu0 %1993  ;;  %v9698_v39 = vld [vmem:[%s8877_s29 + $0x98] sm:$0xff]  }
 0x14a   : > { %v2314_v49 = vsel %vm1151_vm1, %v2171_v47, %v1994_v33  ;;  %4382 = vrot.lane.b32.xlu1 %v9619_v20, %s8822_s7  ;;  %v8678_v33 = vld [vmem:[%s8877_s29 + $0x8] sm:$0xff]  }
 0x14b   : > { %8123 = vmatprep.mubr.msk.bf16.mxu0 %vm2394_vm2, %v2314_v49  ;;  %4246 = vrot.lane.b32.xlu0 %v9624_v36, %s8823_s8 }
 0x14c   : > { %v9643_v24 = vpop.f32.mrf.mxu0  ;;  %8124 = vmatmul.mubr.msk.bf16.gmra.mxu0 %vm2394_vm2, %v2316_v42  ;;  %v1862_v21 = vpop.permute.xlu1 %1861 }
 0x14d   : > { %v1860_v40 = vpop.permute.xlu0 %1859  ;;  %v2180_v58 = vsel %vm958_vm0, %v9252_v43, %v1862_v21 }
 0x14e   : > { %v9646_v27 = vpop.f32.mrf.mxu0  ;;  %4384 = vrot.lane.b32.xlu1 %v9635_v51, %s8822_s7  ;;  %v2177_v34 = vsel %vm958_vm0, %v9258_v46, %v1860_v40 }
 0x14f   : > { %856 = vrot.lane.b32.xlu0 %v9641_v19, %s8822_s7 }
 0x150   : > { %v9654_v55 = vpop.f32.mrf.mxu0  ;;  %v2000_v56 = vpop.permute.xlu1 %1999 }
 0x151   : > { %v2320_v35 = vsel %vm1151_vm1, %v2180_v58, %v2000_v56  ;;  %v1998_v60 = vpop.permute.xlu0 %1997 }
 0x152   : > { %v2318_v2 = vsel %vm1151_vm1, %v2177_v34, %v1998_v60  ;;  %v9660_v29 = vpop.f32.mrf.mxu0  ;;  %4248 = vrot.lane.b32.xlu1 %v9619_v20, %s8823_s8 }
 0x153   : > { %8127 = vmatprep.mubr.msk.bf16.mxu0 %vm2394_vm2, %v2318_v2  ;;  %720 = vrot.lane.b32.xlu0 %v9610_v16, %s8823_s8 }
 0x154   : > { %v9670_v43 = vpop.f32.mrf.mxu0  ;;  %8128 = vmatmul.mubr.msk.bf16.gmra.mxu0 %vm2394_vm2, %v2320_v35  ;;  %v1864_v46 = vpop.permute.xlu1 %1863 }
 0x155   : > { %12490 = vst [vmem:[#allocation2_spill] sm:$0xff] %v9670_v43  ;;  %v693_v5 = vpop.permute.xlu0 %692  ;;  %v2183_v45 = vsel %vm958_vm0, %v9286_v1, %v1864_v46 }
 0x156   : > { %v9674_v6 = vpop.f32.mrf.mxu0  ;;  %858 = vrot.lane.b32.xlu1 %v9665_v0, %s8822_s7  ;;  %v961_v38 = vsel %vm958_vm0, %v8675_v50, %v693_v5  ;;  %v9726_v50 = vld [vmem:[%s8877_s29 + $0xa0] sm:$0xff]  }
 0x157   : > { %722 = vrot.lane.b32.xlu0 %v9641_v19, %s8823_s8 }
 0x158   : > { %v9684_v17 = vpop.f32.mrf.mxu0  ;;  %v831_v18 = vpop.permute.xlu1 %830 }
 0x159   : > { %12491 = vst [vmem:[#allocation3_spill] sm:$0xff] %v9684_v17  ;;  %v695_v30 = vpop.permute.xlu0 %694  ;;  %v1153_v31 = vsel %vm1151_vm1, %v961_v38, %v831_v18 }
 0x15a   : > { %v9687_v61 = vpop.f32.mrf.mxu0  ;;  %4386 = vrot.lane.b32.xlu1 %v9679_v9, %s8822_s7  ;;  %8167 = vmatprep.mubr.msk.bf16.mxu1 %vm2394_vm2, %v1153_v31  ;;  %v964_v34 = vsel %vm958_vm0, %v8678_v33, %v695_v30  ;;  %v9738_v30 = vld [vmem:[%s8877_s29 + $0x480] sm:$0xff]  }
 0x15b   : > { %4250 = vrot.lane.b32.xlu0 %v9635_v51, %s8823_s8 }
 0x15c   : > { %v9702_v47 = vpop.f32.mrf.mxu0  ;;  %v2002_v42 = vpop.permute.xlu1 %2001 }
 0x15d   : > { %12492 = vst [vmem:[#allocation4_spill] sm:$0xff] %v9702_v47  ;;  %v2322_v49 = vsel %vm1151_vm1, %v2183_v45, %v2002_v42  ;;  %v1866_v21 = vpop.permute.xlu0 %1865 }
 0x15e   : > { %v9706_v40 = vpop.f32.mrf.mxu0  ;;  %4388 = vrot.lane.b32.xlu1 %v9693_v63, %s8822_s7  ;;  %8131 = vmatprep.mubr.msk.bf16.mxu0 %vm2394_vm2, %v2322_v49  ;;  %v2186_v1 = vsel %vm958_vm0, %v9280_v62, %v1866_v21 }
 0x15f   : > { %12493 = vst [vmem:[#allocation5_spill] sm:$0xff] %v9706_v40  ;;  %860 = vrot.lane.b32.xlu0 %v9698_v39, %s8822_s7 }
 0x160   : > { %v9715_v58 = vpop.f32.mrf.mxu0  ;;  %v2004_v56 = vpop.permute.xlu1 %2003 }
 0x161   : > { %12494 = vst [vmem:[#allocation6_spill] sm:$0xff] %v9715_v58  ;;  %v2324_v35 = vsel %vm1151_vm1, %v2186_v1, %v2004_v56  ;;  %v833_v60 = vpop.permute.xlu0 %832  ;;  %v9753_v1 = vld [vmem:[%s8877_s29 + $0x488] sm:$0xff]  }
 0x162   : > { %v1155_v2 = vsel %vm1151_vm1, %v964_v34, %v833_v60  ;;  %v9720_v46 = vpop.f32.mrf.mxu0  ;;  %4252 = vrot.lane.b32.xlu1 %v9679_v9, %s8823_s8  ;;  %8132 = vmatmul.mubr.msk.bf16.gmra.mxu0 %vm2394_vm2, %v2324_v35  ;;  %v9758_v56 = vld [vmem:[%s8877_s29 + $0xa8] sm:$0xff]  }
 0x163   : > { %12495 = vst [vmem:[#allocation7_spill] sm:$0xff] %v9720_v46  ;;  %724 = vrot.lane.b32.xlu0 %v9665_v0, %s8823_s8  ;;  %8168 = vmatmul.mubr.msk.bf16.vlgmr.msra.gmra.mxu1 %vm2394_vm2, %v1155_v2  ;;  %v10970_v46 = vld [vmem:[%s8877_s29 + $0x1f8] sm:$0xff]  }
 0x164   : > { %v9731_v62 = vpop.f32.mrf.mxu0  ;;  %v1868_v5 = vpop.permute.xlu1 %1867  ;;  %12633 = vst [vmem:[#allocation145_spill] sm:$0xff] %v10970_v46 }
 0x165   : > { %12496 = vst [vmem:[#allocation8_spill] sm:$0xff] %v9731_v62  ;;  %v697_v38 = vpop.permute.xlu0 %696 }
 0x166   : > { %v9733_v18 = vpop.f32.mrf.mxu0  ;;  %862 = vrot.lane.b32.xlu1 %v9726_v50, %s8822_s7  ;;  %v967_v31 = vsel %vm958_vm0, %v9325_v12, %v697_v38  ;;  %v2189_v12 = vsel %vm958_vm0, %v9314_v25, %v1868_v5 }
 0x167   : > { %12497 = vst [vmem:[#allocation9_spill] sm:$0xff] %v9733_v18  ;;  %726 = vrot.lane.b32.xlu0 %v9698_v39, %s8823_s8 }
 0x168   : > { %v9744_v45 = vpop.f32.mrf.mxu0  ;;  %v835_v42 = vpop.permute.xlu1 %834 }
 0x169   : > { %12498 = vst [vmem:[#allocation10_spill] sm:$0xff] %v9744_v45  ;;  %v1157_v33 = vsel %vm1151_vm1, %v967_v31, %v835_v42  ;;  %v699_v49 = vpop.permute.xlu0 %698  ;;  %v10655_v45 = vld [vmem:[%s8877_s29 + $0x588] sm:$0xff]  }
 0x16a   : > { %v9747_v21 = vpop.f32.mrf.mxu0  ;;  %4390 = vrot.lane.b32.xlu1 %v9738_v30, %s8822_s7  ;;  %8171 = vmatprep.mubr.msk.bf16.mxu1 %vm2394_vm2, %v1157_v33  ;;  %v970_v42 = vsel %vm958_vm0, %v9342_v26, %v699_v49 }
 0x16b   : > { %12499 = vst [vmem:[#allocation11_spill] sm:$0xff] %v9747_v21  ;;  %4254 = vrot.lane.b32.xlu0 %v9693_v63, %s8823_s8  ;;  %v10688_v21 = vld [vmem:[%s8877_s29 + $0x1b0] sm:$0xff]  }
 0x16c   : > { %v9762_v34 = vpop.f32.mrf.mxu0  ;;  %v2006_v35 = vpop.permute.xlu1 %2005 }
 0x16d   : > { %12500 = vst [vmem:[#allocation12_spill] sm:$0xff] %v9762_v34  ;;  %v2326_v60 = vsel %vm1151_vm1, %v2189_v12, %v2006_v35  ;;  %v1870_v2 = vpop.permute.xlu0 %1869 }
 0x16e   : > { %v9765_v38 = vpop.f32.mrf.mxu0  ;;  %4392 = vrot.lane.b32.xlu1 %v9753_v1, %s8822_s7  ;;  %8135 = vmatprep.mubr.msk.bf16.mxu0 %vm2394_vm2, %v2326_v60  ;;  %v2192_v25 = vsel %vm958_vm0, %v9308_v23, %v1870_v2  ;;  %v9786_v23 = vld [vmem:[%s8877_s29 + $0xb0] sm:$0xff]  }
 0x16f   : > { %12501 = vst [vmem:[#allocation13_spill] sm:$0xff] %v9765_v38  ;;  %864 = vrot.lane.b32.xlu0 %v9758_v56, %s8822_s7 }
 0x170   : > { %v9774_v5 = vpop.f32.mrf.mxu0  ;;  %v2008_v31 = vpop.permute.xlu1 %2007 }
 0x171   : > { %12502 = vst [vmem:[#allocation14_spill] sm:$0xff] %v9774_v5  ;;  %v2328_v33 = vsel %vm1151_vm1, %v2192_v25, %v2008_v31  ;;  %v837_v12 = vpop.permute.xlu0 %836  ;;  %v9798_v25 = vld [vmem:[%s8877_s29 + $0x490] sm:$0xff]   ;;  %v9818_v5 = vld [vmem:[%s8877_s29 + $0xb8] sm:$0xff]  }
 0x172   : > { %v1159_v35 = vsel %vm1151_vm1, %v970_v42, %v837_v12  ;;  %v9780_v34 = vpop.f32.mrf.mxu0  ;;  %4256 = vrot.lane.b32.xlu1 %v9738_v30, %s8823_s8  ;;  %8136 = vmatmul.mubr.msk.bf16.gmra.mxu0 %vm2394_vm2, %v2328_v33 }
 0x173   : > { %12503 = vst [vmem:[#allocation15_spill] sm:$0xff] %v9780_v34  ;;  %728 = vrot.lane.b32.xlu0 %v9726_v50, %s8823_s8  ;;  %8172 = vmatmul.mubr.msk.bf16.gmra.mxu1 %vm2394_vm2, %v1159_v35 }
 0x174   : > { %v9791_v26 = vpop.f32.mrf.mxu0  ;;  %v1872_v49 = vpop.permute.xlu1 %1871 }
 0x175   : > { %12504 = vst [vmem:[#allocation16_spill] sm:$0xff] %v9791_v26  ;;  %v701_v60 = vpop.permute.xlu0 %700 }
 0x176   : > { %v9793_v2 = vpop.f32.mrf.mxu0  ;;  %866 = vrot.lane.b32.xlu1 %v9786_v23, %s8822_s7  ;;  %v973_v31 = vsel %vm958_vm0, %v9336_v15, %v701_v60  ;;  %v2195_v15 = vsel %vm958_vm0, %v9348_v53, %v1872_v49 }
 0x177   : > { %12505 = vst [vmem:[#allocation17_spill] sm:$0xff] %v9793_v2  ;;  %730 = vrot.lane.b32.xlu0 %v9758_v56, %s8823_s8  ;;  %v9813_v2 = vld [vmem:[%s8877_s29 + $0x498] sm:$0xff]  }
 0x178   : > { %v9804_v42 = vpop.f32.mrf.mxu0  ;;  %v839_v33 = vpop.permute.xlu1 %838 }
 0x179   : > { %12506 = vst [vmem:[#allocation18_spill] sm:$0xff] %v9804_v42  ;;  %v1161_v12 = vsel %vm1151_vm1, %v973_v31, %v839_v33  ;;  %v703_v35 = vpop.permute.xlu0 %702 }
 0x17a   : > { %v9807_v26 = vpop.f32.mrf.mxu0  ;;  %4394 = vrot.lane.b32.xlu1 %v9798_v25, %s8822_s7  ;;  %8175 = vmatprep.mubr.msk.bf16.mxu1 %vm2394_vm2, %v1161_v12 }
 0x17b   : > { %12507 = vst [vmem:[#allocation19_spill] sm:$0xff] %v9807_v26  ;;  %4258 = vrot.lane.b32.xlu0 %v9753_v1, %s8823_s8 }
 0x17c   : > { %v9822_v60 = vpop.f32.mrf.mxu0  ;;  %v2010_v31 = vpop.permute.xlu1 %2009 }
 0x17d   : > { %12508 = vst [vmem:[#allocation20_spill] sm:$0xff] %v9822_v60  ;;  %v2330_v33 = vsel %vm1151_vm1, %v2195_v15, %v2010_v31  ;;  %v1874_v42 = vpop.permute.xlu0 %1873  ;;  %v976_v15 = vsel %vm958_vm0, %v9367_v28, %v703_v35 }
 0x17e   : > { %v9825_v26 = vpop.f32.mrf.mxu0  ;;  %4396 = vrot.lane.b32.xlu1 %v9813_v2, %s8822_s7  ;;  %8139 = vmatprep.mubr.msk.bf16.mxu0 %vm2394_vm2, %v2330_v33  ;;  %v2198_v53 = vsel %vm958_vm0, %v9361_v4, %v1874_v42  ;;  %v9846_v4 = vld [vmem:[%s8877_s29 + $0xc0] sm:$0xff]  }
 0x17f   : > { %12509 = vst [vmem:[#allocation21_spill] sm:$0xff] %v9825_v26  ;;  %868 = vrot.lane.b32.xlu0 %v9818_v5, %s8822_s7  ;;  %v9858_v33 = vld [vmem:[%s8877_s29 + $0x4a0] sm:$0xff]  }
 0x180   : > { %v9834_v49 = vpop.f32.mrf.mxu0  ;;  %v2012_v12 = vpop.permute.xlu1 %2011 }
 0x181   : > { %12510 = vst [vmem:[#allocation22_spill] sm:$0xff] %v9834_v49  ;;  %v2332_v31 = vsel %vm1151_vm1, %v2198_v53, %v2012_v12  ;;  %v841_v60 = vpop.permute.xlu0 %840  ;;  %v9878_v49 = vld [vmem:[%s8877_s29 + $0xc8] sm:$0xff]  }
 0x182   : > { %v1163_v26 = vsel %vm1151_vm1, %v976_v15, %v841_v60  ;;  %v9840_v38 = vpop.f32.mrf.mxu0  ;;  %4260 = vrot.lane.b32.xlu1 %v9798_v25, %s8823_s8  ;;  %8140 = vmatmul.mubr.msk.bf16.gmra.mxu0 %vm2394_vm2, %v2332_v31 }
 0x183   : > { %12511 = vst [vmem:[#allocation23_spill] sm:$0xff] %v9840_v38  ;;  %732 = vrot.lane.b32.xlu0 %v9786_v23, %s8823_s8  ;;  %8176 = vmatmul.mubr.msk.bf16.gmra.mxu1 %vm2394_vm2, %v1163_v26 }
 0x184   : > { %v9851_v28 = vpop.f32.mrf.mxu0  ;;  %v1876_v42 = vpop.permute.xlu1 %1875 }
 0x185   : > { %12512 = vst [vmem:[#allocation24_spill] sm:$0xff] %v9851_v28  ;;  %v705_v35 = vpop.permute.xlu0 %704 }
 0x186   : > { %v9853_v60 = vpop.f32.mrf.mxu0  ;;  %870 = vrot.lane.b32.xlu1 %v9846_v4, %s8822_s7  ;;  %v979_v53 = vsel %vm958_vm0, %v9383_v10, %v705_v35  ;;  %v2201_v10 = vsel %vm958_vm0, %v9392_v11, %v1876_v42 }
 0x187   : > { %12513 = vst [vmem:[#allocation25_spill] sm:$0xff] %v9853_v60  ;;  %734 = vrot.lane.b32.xlu0 %v9818_v5, %s8823_s8  ;;  %v9873_v60 = vld [vmem:[%s8877_s29 + $0x4a8] sm:$0xff]  }
 0x188   : > { %v9864_v26 = vpop.f32.mrf.mxu0  ;;  %v843_v12 = vpop.permute.xlu1 %842 }
 0x189   : > { %12514 = vst [vmem:[#allocation26_spill] sm:$0xff] %v9864_v26  ;;  %v1165_v15 = vsel %vm1151_vm1, %v979_v53, %v843_v12  ;;  %v707_v31 = vpop.permute.xlu0 %706 }
 0x18a   : > { %v9867_v28 = vpop.f32.mrf.mxu0  ;;  %4398 = vrot.lane.b32.xlu1 %v9858_v33, %s8822_s7  ;;  %8179 = vmatprep.mubr.msk.bf16.mxu1 %vm2394_vm2, %v1165_v15 }
 0x18b   : > { %12515 = vst [vmem:[#allocation27_spill] sm:$0xff] %v9867_v28  ;;  %4262 = vrot.lane.b32.xlu0 %v9813_v2, %s8823_s8 }
 0x18c   : > { %v9882_v35 = vpop.f32.mrf.mxu0  ;;  %v2014_v53 = vpop.permute.xlu1 %2013 }
 0x18d   : > { %12516 = vst [vmem:[#allocation28_spill] sm:$0xff] %v9882_v35  ;;  %v2334_v12 = vsel %vm1151_vm1, %v2201_v10, %v2014_v53  ;;  %v1878_v26 = vpop.permute.xlu0 %1877  ;;  %v982_v10 = vsel %vm958_vm0, %v9411_v32, %v707_v31 }
 0x18e   : > { %v9885_v28 = vpop.f32.mrf.mxu0  ;;  %4400 = vrot.lane.b32.xlu1 %v9873_v60, %s8822_s7  ;;  %8143 = vmatprep.mubr.msk.bf16.mxu0 %vm2394_vm2, %v2334_v12  ;;  %v2204_v11 = vsel %vm958_vm0, %v9405_v48, %v1878_v26  ;;  %v9906_v48 = vld [vmem:[%s8877_s29 + $0xd0] sm:$0xff]  }
 0x18f   : > { %12517 = vst [vmem:[#allocation29_spill] sm:$0xff] %v9885_v28  ;;  %872 = vrot.lane.b32.xlu0 %v9878_v49, %s8822_s7  ;;  %v9918_v12 = vld [vmem:[%s8877_s29 + $0x4b0] sm:$0xff]  }
 0x190   : > { %v9894_v42 = vpop.f32.mrf.mxu0  ;;  %v2016_v15 = vpop.permute.xlu1 %2015 }
 0x191   : > { %12518 = vst [vmem:[#allocation30_spill] sm:$0xff] %v9894_v42  ;;  %v2336_v53 = vsel %vm1151_vm1, %v2204_v11, %v2016_v15  ;;  %v845_v35 = vpop.permute.xlu0 %844  ;;  %v9938_v42 = vld [vmem:[%s8877_s29 + $0xd8] sm:$0xff]  }
 0x192   : > { %v1167_v28 = vsel %vm1151_vm1, %v982_v10, %v845_v35  ;;  %v9900_v38 = vpop.f32.mrf.mxu0  ;;  %4264 = vrot.lane.b32.xlu1 %v9858_v33, %s8823_s8  ;;  %8144 = vmatmul.mubr.msk.bf16.gmra.mxu0 %vm2394_vm2, %v2336_v53 }
 0x193   : > { %12519 = vst [vmem:[#allocation31_spill] sm:$0xff] %v9900_v38  ;;  %736 = vrot.lane.b32.xlu0 %v9846_v4, %s8823_s8  ;;  %8180 = vmatmul.mubr.msk.bf16.gmra.mxu1 %vm2394_vm2, %v1167_v28 }
 0x194   : > { %v9911_v32 = vpop.f32.mrf.mxu0  ;;  %v1880_v26 = vpop.permute.xlu1 %1879 }
 0x195   : > { %12520 = vst [vmem:[#allocation32_spill] sm:$0xff] %v9911_v32  ;;  %v709_v31 = vpop.permute.xlu0 %708 }
 0x196   : > { %v9913_v35 = vpop.f32.mrf.mxu0  ;;  %874 = vrot.lane.b32.xlu1 %v9906_v48, %s8822_s7  ;;  %v985_v11 = vsel %vm958_vm0, %v9427_v57, %v709_v31  ;;  %v2207_v57 = vsel %vm958_vm0, %v9436_v59, %v1880_v26 }
 0x197   : > { %12521 = vst [vmem:[#allocation33_spill] sm:$0xff] %v9913_v35  ;;  %738 = vrot.lane.b32.xlu0 %v9878_v49, %s8823_s8  ;;  %v9933_v35 = vld [vmem:[%s8877_s29 + $0x4b8] sm:$0xff]  }
 0x198   : > { %v9924_v28 = vpop.f32.mrf.mxu0  ;;  %v847_v15 = vpop.permute.xlu1 %846 }
 0x199   : > { %12522 = vst [vmem:[#allocation34_spill] sm:$0xff] %v9924_v28  ;;  %v1169_v10 = vsel %vm1151_vm1, %v985_v11, %v847_v15  ;;  %v711_v53 = vpop.permute.xlu0 %710 }
 0x19a   : > { %v9927_v32 = vpop.f32.mrf.mxu0  ;;  %4402 = vrot.lane.b32.xlu1 %v9918_v12, %s8822_s7  ;;  %8183 = vmatprep.mubr.msk.bf16.mxu1 %vm2394_vm2, %v1169_v10 }
 0x19b   : > { %12523 = vst [vmem:[#allocation35_spill] sm:$0xff] %v9927_v32  ;;  %4266 = vrot.lane.b32.xlu0 %v9873_v60, %s8823_s8 }
 0x19c   : > { %v9942_v31 = vpop.f32.mrf.mxu0  ;;  %v2018_v11 = vpop.permute.xlu1 %2017 }
 0x19d   : > { %12524 = vst [vmem:[#allocation36_spill] sm:$0xff] %v9942_v31  ;;  %v2338_v15 = vsel %vm1151_vm1, %v2207_v57, %v2018_v11  ;;  %v1882_v28 = vpop.permute.xlu0 %1881  ;;  %v988_v57 = vsel %vm958_vm0, %v9458_v37, %v711_v53 }
 0x19e   : > { %v9945_v32 = vpop.f32.mrf.mxu0  ;;  %4404 = vrot.lane.b32.xlu1 %v9933_v35, %s8822_s7  ;;  %8147 = vmatprep.mubr.msk.bf16.mxu0 %vm2394_vm2, %v2338_v15  ;;  %v2210_v59 = vsel %vm958_vm0, %v9449_v8, %v1882_v28  ;;  %v9966_v8 = vld [vmem:[%s8877_s29 + $0xe0] sm:$0xff]  }
 0x19f   : > { %12525 = vst [vmem:[#allocation37_spill] sm:$0xff] %v9945_v32  ;;  %876 = vrot.lane.b32.xlu0 %v9938_v42, %s8822_s7  ;;  %v9978_v15 = vld [vmem:[%s8877_s29 + $0x4c0] sm:$0xff]  }
 0x1a0   : > { %v9954_v26 = vpop.f32.mrf.mxu0  ;;  %v2020_v10 = vpop.permute.xlu1 %2019 }
 0x1a1   : > { %12526 = vst [vmem:[#allocation38_spill] sm:$0xff] %v9954_v26  ;;  %v2340_v11 = vsel %vm1151_vm1, %v2210_v59, %v2020_v10  ;;  %v849_v31 = vpop.permute.xlu0 %848  ;;  %v9998_v26 = vld [vmem:[%s8877_s29 + $0xe8] sm:$0xff]  }
 0x1a2   : > { %v1171_v32 = vsel %vm1151_vm1, %v988_v57, %v849_v31  ;;  %v9960_v38 = vpop.f32.mrf.mxu0  ;;  %4268 = vrot.lane.b32.xlu1 %v9918_v12, %s8823_s8  ;;  %8148 = vmatmul.mubr.msk.bf16.gmra.mxu0 %vm2394_vm2, %v2340_v11 }
 0x1a3   : > { %12527 = vst [vmem:[#allocation39_spill] sm:$0xff] %v9960_v38  ;;  %740 = vrot.lane.b32.xlu0 %v9906_v48, %s8823_s8  ;;  %8184 = vmatmul.mubr.msk.bf16.gmra.mxu1 %vm2394_vm2, %v1171_v32  ;;  %v10059_v38 = vld [vmem:[%s8877_s29 + $0xf8] sm:$0xff]  }
 0x1a4   : > { %v9971_v37 = vpop.f32.mrf.mxu0  ;;  %v1884_v28 = vpop.permute.xlu1 %1883 }
 0x1a5   : > { %12528 = vst [vmem:[#allocation40_spill] sm:$0xff] %v9971_v37  ;;  %v713_v53 = vpop.permute.xlu0 %712 }
 0x1a6   : > { %v9973_v31 = vpop.f32.mrf.mxu0  ;;  %878 = vrot.lane.b32.xlu1 %v9966_v8, %s8822_s7  ;;  %v991_v59 = vsel %vm958_vm0, %v9474_v41, %v713_v53  ;;  %v2213_v41 = vsel %vm958_vm0, %v9483_v13, %v1884_v28 }
 0x1a7   : > { %12529 = vst [vmem:[#allocation41_spill] sm:$0xff] %v9973_v31  ;;  %742 = vrot.lane.b32.xlu0 %v9938_v42, %s8823_s8  ;;  %v9993_v31 = vld [vmem:[%s8877_s29 + $0x4c8] sm:$0xff]  }
 0x1a8   : > { %v9984_v32 = vpop.f32.mrf.mxu0  ;;  %v851_v10 = vpop.permute.xlu1 %850 }
 0x1a9   : > { %12530 = vst [vmem:[#allocation42_spill] sm:$0xff] %v9984_v32  ;;  %v1173_v57 = vsel %vm1151_vm1, %v991_v59, %v851_v10  ;;  %v715_v11 = vpop.permute.xlu0 %714 }
 0x1aa   : > { %v9987_v37 = vpop.f32.mrf.mxu0  ;;  %4406 = vrot.lane.b32.xlu1 %v9978_v15, %s8822_s7  ;;  %8187 = vmatprep.mubr.msk.bf16.mxu1 %vm2394_vm2, %v1173_v57 }
 0x1ab   : > { %12531 = vst [vmem:[#allocation43_spill] sm:$0xff] %v9987_v37  ;;  %4270 = vrot.lane.b32.xlu0 %v9933_v35, %s8823_s8 }
 0x1ac   : > { %v10002_v53 = vpop.f32.mrf.mxu0  ;;  %v2022_v59 = vpop.permute.xlu1 %2021 }
 0x1ad   : > { %12532 = vst [vmem:[#allocation44_spill] sm:$0xff] %v10002_v53  ;;  %v2342_v10 = vsel %vm1151_vm1, %v2213_v41, %v2022_v59  ;;  %v1886_v32 = vpop.permute.xlu0 %1885  ;;  %v994_v41 = vsel %vm958_vm0, %v9502_v54, %v715_v11 }
 0x1ae   : > { %v10005_v37 = vpop.f32.mrf.mxu0  ;;  %4408 = vrot.lane.b32.xlu1 %v9993_v31, %s8822_s7  ;;  %8151 = vmatprep.mubr.msk.bf16.mxu0 %vm2394_vm2, %v2342_v10  ;;  %v2216_v13 = vsel %vm958_vm0, %v9496_v52, %v1886_v32  ;;  %v10026_v52 = vld [vmem:[%s8877_s29 + $0xf0] sm:$0xff]  }
 0x1af   : > { %12533 = vst [vmem:[#allocation45_spill] sm:$0xff] %v10005_v37  ;;  %880 = vrot.lane.b32.xlu0 %v9998_v26, %s8822_s7 }
 0x1b0   : > { %v10014_v28 = vpop.f32.mrf.mxu0  ;;  %v2024_v57 = vpop.permute.xlu1 %2023 }
 0x1b1   : > { %12534 = vst [vmem:[#allocation46_spill] sm:$0xff] %v10014_v28  ;;  %v2344_v59 = vsel %vm1151_vm1, %v2216_v13, %v2024_v57  ;;  %v853_v53 = vpop.permute.xlu0 %852  ;;  %v10038_v13 = vld [vmem:[%s8877_s29 + $0x4d0] sm:$0xff]   ;;  %v8707_v57 = vld [vmem:[%s8877_s29 + $0x440] sm:$0xff]  }
 0x1b2   : > { %v1175_v37 = vsel %vm1151_vm1, %v994_v41, %v853_v53  ;;  %v10020_v10 = vpop.f32.mrf.mxu0  ;;  %4272 = vrot.lane.b32.xlu1 %v9978_v15, %s8823_s8  ;;  %8152 = vmatmul.mubr.msk.bf16.gmra.mxu0 %vm2394_vm2, %v2344_v59 }
 0x1b3   : > { %12535 = vst [vmem:[#allocation47_spill] sm:$0xff] %v10020_v10  ;;  %744 = vrot.lane.b32.xlu0 %v9966_v8, %s8823_s8  ;;  %8188 = vmatmul.mubr.msk.bf16.gmra.mxu1 %vm2394_vm2, %v1175_v37  ;;  %v10054_v10 = vld [vmem:[%s8877_s29 + $0x4d8] sm:$0xff]  }
 0x1b4   : > { %v10031_v54 = vpop.f32.mrf.mxu0  ;;  %v4245_v32 = vpop.permute.xlu1 %4244 }
 0x1b5   : > { %12536 = vst [vmem:[#allocation48_spill] sm:$0xff] %v10031_v54  ;;  %v717_v11 = vpop.permute.xlu0 %716 }
 0x1b6   : > { %v10033_v53 = vpop.f32.mrf.mxu0  ;;  %882 = vrot.lane.b32.xlu1 %v10026_v52, %s8822_s7  ;;  %v997_v37 = vsel %vm958_vm0, %v9518_v7, %v717_v11  ;;  %v4512_v7 = vsel %vm958_vm0, %v8707_v57, %v4245_v32 }
 0x1b7   : > { %12537 = vst [vmem:[#allocation49_spill] sm:$0xff] %v10033_v53  ;;  %746 = vrot.lane.b32.xlu0 %v9998_v26, %s8823_s8 }
 0x1b8   : > { %v10045_v41 = vpop.f32.mrf.mxu0  ;;  %v855_v59 = vpop.permute.xlu1 %854 }
 0x1b9   : > { %12538 = vst [vmem:[#allocation50_spill] sm:$0xff] %v10045_v41  ;;  %v1177_v54 = vsel %vm1151_vm1, %v997_v37, %v855_v59  ;;  %v719_v28 = vpop.permute.xlu0 %718  ;;  %v8712_v59 = vld [vmem:[%s8877_s29 + $0x448] sm:$0xff]  }
 0x1ba   : > { %v10048_v53 = vpop.f32.mrf.mxu0  ;;  %4410 = vrot.lane.b32.xlu1 %v10038_v13, %s8822_s7  ;;  %8191 = vmatprep.mubr.msk.bf16.mxu1 %vm2394_vm2, %v1177_v54 }
 0x1bb   : > { %12539 = vst [vmem:[#allocation51_spill] sm:$0xff] %v10048_v53  ;;  %4274 = vrot.lane.b32.xlu0 %v9993_v31, %s8823_s8 }
 0x1bc   : > { %v10062_v11 = vpop.f32.mrf.mxu0  ;;  %v4383_v37 = vpop.permute.xlu1 %4382 }
 0x1bd   : > { %12540 = vst [vmem:[#allocation52_spill] sm:$0xff] %v10062_v11  ;;  %v4703_v41 = vsel %vm1151_vm1, %v4512_v7, %v4383_v37  ;;  %v4247_v53 = vpop.permute.xlu0 %4246  ;;  %v1000_v7 = vsel %vm958_vm0, %v9541_v22, %v719_v28 }
 0x1be   : > { %v10066_v62 = vpop.f32.mrf.mxu0  ;;  %4412 = vrot.lane.b32.xlu1 %v10054_v10, %s8822_s7  ;;  %8307 = vmatprep.mubr.msk.bf16.mxu0 %vm2394_vm2, %v4703_v41  ;;  %v4515_v54 = vsel %vm958_vm0, %v8712_v59, %v4247_v53  ;;  %v10086_v53 = vld [vmem:[%s8877_s29 + $0x100] sm:$0xff]  }
 0x1bf   : > { %12541 = vst [vmem:[#allocation53_spill] sm:$0xff] %v10066_v62  ;;  %884 = vrot.lane.b32.xlu0 %v10059_v38, %s8822_s7  ;;  %v10098_v59 = vld [vmem:[%s8877_s29 + $0x4e0] sm:$0xff]  }
 0x1c0   : > { %v10074_v32 = vpop.f32.mrf.mxu0  ;;  %v4385_v57 = vpop.permute.xlu1 %4384 }
 0x1c1   : > { %12542 = vst [vmem:[#allocation54_spill] sm:$0xff] %v10074_v32  ;;  %v4705_v37 = vsel %vm1151_vm1, %v4515_v54, %v4385_v57  ;;  %v857_v11 = vpop.permute.xlu0 %856  ;;  %v10118_v32 = vld [vmem:[%s8877_s29 + $0x108] sm:$0xff]  }
 0x1c2   : > { %v1179_v62 = vsel %vm1151_vm1, %v1000_v7, %v857_v11  ;;  %v10080_v34 = vpop.f32.mrf.mxu0  ;;  %4276 = vrot.lane.b32.xlu1 %v10038_v13, %s8823_s8  ;;  %8308 = vmatmul.mubr.msk.bf16.vlgmr.msra.gmra.mxu0 %vm2394_vm2, %v4705_v37 }
 0x1c3   : > { %12543 = vst [vmem:[#allocation55_spill] sm:$0xff] %v10080_v34  ;;  %748 = vrot.lane.b32.xlu0 %v10026_v52, %s8823_s8  ;;  %8192 = vmatmul.mubr.msk.bf16.gmra.mxu1 %vm2394_vm2, %v1179_v62 }
 0x1c4   : > { %v10091_v22 = vpop.f32.mrf.mxu0  ;;  %v4249_v28 = vpop.permute.xlu1 %4248 }
 0x1c5   : > { %12544 = vst [vmem:[#allocation56_spill] sm:$0xff] %v10091_v22  ;;  %v721_v41 = vpop.permute.xlu0 %720 }
 0x1c6   : > { %v10093_v11 = vpop.f32.mrf.mxu0  ;;  %886 = vrot.lane.b32.xlu1 %v10086_v53, %s8822_s7  ;;  %v1003_v54 = vsel %vm958_vm0, %v9561_v14, %v721_v41  ;;  %v4518_v14 = vsel %vm958_vm0, %v9597_v3, %v4249_v28 }
 0x1c7   : > { %12545 = vst [vmem:[#allocation57_spill] sm:$0xff] %v10093_v11  ;;  %750 = vrot.lane.b32.xlu0 %v10059_v38, %s8823_s8  ;;  %v10113_v11 = vld [vmem:[%s8877_s29 + $0x4e8] sm:$0xff]  }
 0x1c8   : > { %v10104_v62 = vpop.f32.mrf.mxu0  ;;  %v859_v57 = vpop.permute.xlu1 %858 }
 0x1c9   : > { %12546 = vst [vmem:[#allocation58_spill] sm:$0xff] %v10104_v62  ;;  %v1181_v7 = vsel %vm1151_vm1, %v1003_v54, %v859_v57  ;;  %v723_v37 = vpop.permute.xlu0 %722 }
 0x1ca   : > { %v10107_v22 = vpop.f32.mrf.mxu0  ;;  %4414 = vrot.lane.b32.xlu1 %v10098_v59, %s8822_s7  ;;  %8195 = vmatprep.mubr.msk.bf16.mxu1 %vm2394_vm2, %v1181_v7 }
 0x1cb   : > { %12547 = vst [vmem:[#allocation59_spill] sm:$0xff] %v10107_v22  ;;  %4278 = vrot.lane.b32.xlu0 %v10054_v10, %s8823_s8 }
 0x1cc   : > { %v10122_v41 = vpop.f32.mrf.mxu0  ;;  %v4387_v54 = vpop.permute.xlu1 %4386 }
 0x1cd   : > { %12548 = vst [vmem:[#allocation60_spill] sm:$0xff] %v10122_v41  ;;  %v4707_v57 = vsel %vm1151_vm1, %v4518_v14, %v4387_v54  ;;  %v4251_v62 = vpop.permute.xlu0 %4250  ;;  %v1006_v14 = vsel %vm958_vm0, %v9589_v44, %v723_v37 }
 0x1ce   : > { %v10125_v22 = vpop.f32.mrf.mxu0  ;;  %4416 = vrot.lane.b32.xlu1 %v10113_v11, %s8822_s7  ;;  %8311 = vmatprep.mubr.msk.bf16.mxu0 %vm2394_vm2, %v4707_v57  ;;  %v4521_v3 = vsel %vm958_vm0, %v9624_v36, %v4251_v62  ;;  %v10146_v36 = vld [vmem:[%s8877_s29 + $0x110] sm:$0xff]  }
 0x1cf   : > { %12549 = vst [vmem:[#allocation61_spill] sm:$0xff] %v10125_v22  ;;  %888 = vrot.lane.b32.xlu0 %v10118_v32, %s8822_s7  ;;  %v10158_v57 = vld [vmem:[%s8877_s29 + $0x4f0] sm:$0xff]  }
 0x1d0   : > { %v10134_v28 = vpop.f32.mrf.mxu0  ;;  %v4389_v7 = vpop.permute.xlu1 %4388 }
 0x1d1   : > { %12550 = vst [vmem:[#allocation62_spill] sm:$0xff] %v10134_v28  ;;  %v4709_v54 = vsel %vm1151_vm1, %v4521_v3, %v4389_v7  ;;  %v861_v41 = vpop.permute.xlu0 %860  ;;  %v8753_v28 = vld [vmem:[%s12478_s3 + $0x8] sm:$0xff]  }
 0x1d2   : > { %v1183_v22 = vsel %vm1151_vm1, %v1006_v14, %v861_v41  ;;  %v10140_v34 = vpop.f32.mrf.mxu0  ;;  %4280 = vrot.lane.b32.xlu1 %v10098_v59, %s8823_s8  ;;  %8312 = vmatmul.mubr.msk.bf16.gmra.mxu0 %vm2394_vm2, %v4709_v54 }
 0x1d3   : > { %12551 = vst [vmem:[#allocation63_spill] sm:$0xff] %v10140_v34  ;;  %752 = vrot.lane.b32.xlu0 %v10086_v53, %s8823_s8  ;;  %8196 = vmatmul.mubr.msk.bf16.gmra.mxu1 %vm2394_vm2, %v1183_v22 }
 0x1d4   : > { %v10151_v44 = vpop.f32.mrf.mxu0  ;;  %v4253_v62 = vpop.permute.xlu1 %4252  ;;  %8435 = vmatprep.subr.bf16.mxu1 %v8753_v28 }
 0x1d5   : > { %12552 = vst [vmem:[#allocation64_spill] sm:$0xff] %v10151_v44  ;;  %v725_v37 = vpop.permute.xlu0 %724  ;;  %8436 = vmatpush3.bf16.msra.mxu1 %v8753_v28 }
 0x1d6   : > { %v10153_v41 = vpop.f32.mrf.mxu0  ;;  %890 = vrot.lane.b32.xlu1 %v10146_v36, %s8822_s7  ;;  %v1009_v3 = vsel %vm958_vm0, %v9610_v16, %v725_v37  ;;  %v10181_v16 = vld [vmem:[%s8877_s29 + $0x118] sm:$0xff]   ;;  %v4524_v37 = vsel %vm958_vm0, %v9619_v20, %v4253_v62 }
 0x1d7   : > { %12553 = vst [vmem:[#allocation65_spill] sm:$0xff] %v10153_v41  ;;  %754 = vrot.lane.b32.xlu0 %v10118_v32, %s8823_s8  ;;  %v10173_v41 = vld [vmem:[%s8877_s29 + $0x4f8] sm:$0xff]  }
 0x1d8   : > { %v10164_v22 = vpop.f32.mrf.mxu0  ;;  %v863_v7 = vpop.permute.xlu1 %862 }
 0x1d9   : > { %12554 = vst [vmem:[#allocation66_spill] sm:$0xff] %v10164_v22  ;;  %v1185_v14 = vsel %vm1151_vm1, %v1009_v3, %v863_v7  ;;  %v727_v54 = vpop.permute.xlu0 %726 }
 0x1da   : > { %v10167_v44 = vpop.f32.mrf.mxu0  ;;  %4418 = vrot.lane.b32.xlu1 %v10158_v57, %s8822_s7  ;;  %8199 = vmatprep.mubr.msk.bf16.mxu1 %vm2394_vm2, %v1185_v14 }
 0x1db   : > { %12555 = vst [vmem:[#allocation67_spill] sm:$0xff] %v10167_v44  ;;  %4282 = vrot.lane.b32.xlu0 %v10113_v11, %s8823_s8 }
 0x1dc   : > { %v4391_v3 = vpop.permute.xlu1 %4390  ;;  %v10186_v22 = vpop.f32.mrf.mxu0 }
 0x1dd   : > { %v4711_v7 = vsel %vm1151_vm1, %v4524_v37, %v4391_v3  ;;  %v4255_v14 = vpop.permute.xlu0 %4254  ;;  %12556 = vst [vmem:[#allocation68_spill] sm:$0xff] %v10186_v22  ;;  %v1012_v37 = vsel %vm958_vm0, %v9641_v19, %v727_v54 }
 0x1de   : > { %4420 = vrot.lane.b32.xlu1 %v10173_v41, %s8822_s7  ;;  %8315 = vmatprep.mubr.msk.bf16.mxu0 %vm2394_vm2, %v4711_v7  ;;  %v4527_v20 = vsel %vm958_vm0, %v9635_v51, %v4255_v14  ;;  %v10198_v22 = vpop.f32.mrf.mxu0  ;;  %v10205_v7 = vld [vmem:[%s8877_s29 + $0x120] sm:$0xff]  }
 0x1df   : > { %892 = vrot.lane.b32.xlu0 %v10181_v16, %s8822_s7  ;;  %12557 = vst [vmem:[#allocation69_spill] sm:$0xff] %v10198_v22  ;;  %v10215_v14 = vld [vmem:[%s8877_s29 + $0x500] sm:$0xff]  }
 0x1e0   : > { %v4393_v62 = vpop.permute.xlu1 %4392  ;;  %v10210_v54 = vpop.f32.mrf.mxu0 }
 0x1e1   : > { %v4713_v28 = vsel %vm1151_vm1, %v4527_v20, %v4393_v62  ;;  %v865_v3 = vpop.permute.xlu0 %864  ;;  %12558 = vst [vmem:[#allocation70_spill] sm:$0xff] %v10210_v54  ;;  %v10233_v54 = vld [vmem:[%s8877_s29 + $0x128] sm:$0xff]  }
 0x1e2   : > { %v1187_v44 = vsel %vm1151_vm1, %v1012_v37, %v865_v3  ;;  %4284 = vrot.lane.b32.xlu1 %v10158_v57, %s8823_s8  ;;  %8316 = vmatmul.mubr.msk.bf16.gmra.mxu0 %vm2394_vm2, %v4713_v28  ;;  %v10222_v28 = vpop.f32.mrf.mxu0  ;;  %v10228_v3 = vld [vmem:[%s8877_s29 + $0x508] sm:$0xff]  }
 0x1e3   : > { %756 = vrot.lane.b32.xlu0 %v10146_v36, %s8823_s8  ;;  %8200 = vmatmul.mubr.msk.bf16.gmra.mxu1 %vm2394_vm2, %v1187_v44  ;;  %12559 = vst [vmem:[#allocation71_spill] sm:$0xff] %v10222_v28 }
 0x1e4   : > { %v4257_v51 = vpop.permute.xlu1 %4256  ;;  %v10238_v22 = vpop.f32.mrf.mxu0 }
 0x1e5   : > { %v729_v19 = vpop.permute.xlu0 %728  ;;  %12560 = vst [vmem:[#allocation72_spill] sm:$0xff] %v10238_v22 }
 0x1e6   : > { %894 = vrot.lane.b32.xlu1 %v10205_v7, %s8822_s7  ;;  %v1015_v20 = vsel %vm958_vm0, %v9665_v0, %v729_v19  ;;  %v4530_v0 = vsel %vm958_vm0, %v9679_v9, %v4257_v51  ;;  %v10250_v22 = vpop.f32.mrf.mxu0 }
 0x1e7   : > { %758 = vrot.lane.b32.xlu0 %v10181_v16, %s8823_s8  ;;  %12561 = vst [vmem:[#allocation73_spill] sm:$0xff] %v10250_v22 }
 0x1e8   : > { %v867_v62 = vpop.permute.xlu1 %866 }
 0x1e9   : > { %v1189_v37 = vsel %vm1151_vm1, %v1015_v20, %v867_v62  ;;  %v731_v44 = vpop.permute.xlu0 %730 }
 0x1ea   : > { %4422 = vrot.lane.b32.xlu1 %v10215_v14, %s8822_s7  ;;  %8203 = vmatprep.mubr.msk.bf16.mxu1 %vm2394_vm2, %v1189_v37  ;;  %v1018_v51 = vsel %vm958_vm0, %v9698_v39, %v731_v44  ;;  %v10262_v44 = vpop.f32.mrf.mxu0 }
 0x1eb   : > { %4286 = vrot.lane.b32.xlu0 %v10173_v41, %s8823_s8  ;;  %12562 = vst [vmem:[#allocation74_spill] sm:$0xff] %v10262_v44  ;;  %v10285_v44 = vld [vmem:[%s8877_s29 + $0x138] sm:$0xff]  }
 0x1ec   : > { %v4395_v19 = vpop.permute.xlu1 %4394 }
 0x1ed   : > { %v4715_v20 = vsel %vm1151_vm1, %v4530_v0, %v4395_v19  ;;  %v4259_v62 = vpop.permute.xlu0 %4258 }
 0x1ee   : > { %4424 = vrot.lane.b32.xlu1 %v10228_v3, %s8822_s7  ;;  %8319 = vmatprep.mubr.msk.bf16.mxu0 %vm2394_vm2, %v4715_v20  ;;  %v4533_v37 = vsel %vm958_vm0, %v9693_v63, %v4259_v62  ;;  %v10257_v20 = vld [vmem:[%s8877_s29 + $0x130] sm:$0xff]  }
 0x1ef   : > { %896 = vrot.lane.b32.xlu0 %v10233_v54, %s8822_s7  ;;  %v10267_v62 = vld [vmem:[%s8877_s29 + $0x510] sm:$0xff]  }
 0x1f0   : > { %v4397_v9 = vpop.permute.xlu1 %4396 }
 0x1f1   : > { %v4717_v0 = vsel %vm1151_vm1, %v4533_v37, %v4397_v9  ;;  %v869_v19 = vpop.permute.xlu0 %868 }
 0x1f2   : > { %v1191_v28 = vsel %vm1151_vm1, %v1018_v51, %v869_v19  ;;  %4288 = vrot.lane.b32.xlu1 %v10215_v14, %s8823_s8  ;;  %8320 = vmatmul.mubr.msk.bf16.gmra.mxu0 %vm2394_vm2, %v4717_v0  ;;  %v10274_v0 = vpop.f32.mrf.mxu0  ;;  %v10280_v19 = vld [vmem:[%s8877_s29 + $0x518] sm:$0xff]  }
 0x1f3   : > { %760 = vrot.lane.b32.xlu0 %v10205_v7, %s8823_s8  ;;  %8204 = vmatmul.mubr.msk.bf16.gmra.mxu1 %vm2394_vm2, %v1191_v28  ;;  %12563 = vst [vmem:[#allocation75_spill] sm:$0xff] %v10274_v0 }
 0x1f4   : > { %v4261_v63 = vpop.permute.xlu1 %4260  ;;  %v10290_v22 = vpop.f32.mrf.mxu0 }
 0x1f5   : > { %v733_v39 = vpop.permute.xlu0 %732  ;;  %12564 = vst [vmem:[#allocation76_spill] sm:$0xff] %v10290_v22 }
 0x1f6   : > { %898 = vrot.lane.b32.xlu1 %v10257_v20, %s8822_s7  ;;  %v1021_v37 = vsel %vm958_vm0, %v9726_v50, %v733_v39  ;;  %v4536_v50 = vsel %vm958_vm0, %v9738_v30, %v4261_v63  ;;  %v10302_v22 = vpop.f32.mrf.mxu0 }
 0x1f7   : > { %762 = vrot.lane.b32.xlu0 %v10233_v54, %s8823_s8  ;;  %12565 = vst [vmem:[#allocation77_spill] sm:$0xff] %v10302_v22 }
 0x1f8   : > { %v871_v9 = vpop.permute.xlu1 %870 }
 0x1f9   : > { %v1193_v51 = vsel %vm1151_vm1, %v1021_v37, %v871_v9  ;;  %v735_v28 = vpop.permute.xlu0 %734 }
 0x1fa   : > { %4426 = vrot.lane.b32.xlu1 %v10267_v62, %s8822_s7  ;;  %8207 = vmatprep.mubr.msk.bf16.mxu1 %vm2394_vm2, %v1193_v51  ;;  %v1024_v63 = vsel %vm958_vm0, %v9758_v56, %v735_v28  ;;  %v10314_v28 = vpop.f32.mrf.mxu0 }
 0x1fb   : > { %4290 = vrot.lane.b32.xlu0 %v10228_v3, %s8823_s8  ;;  %12566 = vst [vmem:[#allocation78_spill] sm:$0xff] %v10314_v28  ;;  %v10337_v28 = vld [vmem:[%s8877_s29 + $0x148] sm:$0xff]  }
 0x1fc   : > { %v4399_v39 = vpop.permute.xlu1 %4398 }
 0x1fd   : > { %v4719_v37 = vsel %vm1151_vm1, %v4536_v50, %v4399_v39  ;;  %v4263_v9 = vpop.permute.xlu0 %4262 }
 0x1fe   : > { %4428 = vrot.lane.b32.xlu1 %v10280_v19, %s8822_s7  ;;  %8323 = vmatprep.mubr.msk.bf16.mxu0 %vm2394_vm2, %v4719_v37  ;;  %v4539_v51 = vsel %vm958_vm0, %v9753_v1, %v4263_v9  ;;  %v10309_v37 = vld [vmem:[%s8877_s29 + $0x140] sm:$0xff]  }
 0x1ff   : > { %900 = vrot.lane.b32.xlu0 %v10285_v44, %s8822_s7  ;;  %v10319_v9 = vld [vmem:[%s8877_s29 + $0x520] sm:$0xff]  }
 0x200   : > { %v4401_v30 = vpop.permute.xlu1 %4400 }
 0x201   : > { %v4721_v50 = vsel %vm1151_vm1, %v4539_v51, %v4401_v30  ;;  %v873_v39 = vpop.permute.xlu0 %872 }
 0x202   : > { %v1195_v0 = vsel %vm1151_vm1, %v1024_v63, %v873_v39  ;;  %4292 = vrot.lane.b32.xlu1 %v10267_v62, %s8823_s8  ;;  %8324 = vmatmul.mubr.msk.bf16.gmra.mxu0 %vm2394_vm2, %v4721_v50  ;;  %v10326_v50 = vpop.f32.mrf.mxu0  ;;  %v10332_v39 = vld [vmem:[%s8877_s29 + $0x528] sm:$0xff]  }
 0x203   : > { %764 = vrot.lane.b32.xlu0 %v10257_v20, %s8823_s8  ;;  %8208 = vmatmul.mubr.msk.bf16.gmra.mxu1 %vm2394_vm2, %v1195_v0  ;;  %12567 = vst [vmem:[#allocation79_spill] sm:$0xff] %v10326_v50 }
 0x204   : > { %v4265_v1 = vpop.permute.xlu1 %4264  ;;  %v10342_v22 = vpop.f32.mrf.mxu0 }
 0x205   : > { %v737_v56 = vpop.permute.xlu0 %736  ;;  %12568 = vst [vmem:[#allocation80_spill] sm:$0xff] %v10342_v22 }
 0x206   : > { %902 = vrot.lane.b32.xlu1 %v10309_v37, %s8822_s7  ;;  %v1027_v51 = vsel %vm958_vm0, %v9786_v23, %v737_v56  ;;  %v4542_v23 = vsel %vm958_vm0, %v9798_v25, %v4265_v1  ;;  %v10354_v22 = vpop.f32.mrf.mxu0 }
 0x207   : > { %766 = vrot.lane.b32.xlu0 %v10285_v44, %s8823_s8  ;;  %12569 = vst [vmem:[#allocation81_spill] sm:$0xff] %v10354_v22 }
 0x208   : > { %v875_v30 = vpop.permute.xlu1 %874 }
 0x209   : > { %v1197_v63 = vsel %vm1151_vm1, %v1027_v51, %v875_v30  ;;  %v739_v0 = vpop.permute.xlu0 %738 }
 0x20a   : > { %4430 = vrot.lane.b32.xlu1 %v10319_v9, %s8822_s7  ;;  %8211 = vmatprep.mubr.msk.bf16.mxu1 %vm2394_vm2, %v1197_v63  ;;  %v1030_v1 = vsel %vm958_vm0, %v9818_v5, %v739_v0  ;;  %v10366_v0 = vpop.f32.mrf.mxu0 }
 0x20b   : > { %4294 = vrot.lane.b32.xlu0 %v10280_v19, %s8823_s8  ;;  %12570 = vst [vmem:[#allocation82_spill] sm:$0xff] %v10366_v0  ;;  %v10389_v0 = vld [vmem:[%s8877_s29 + $0x158] sm:$0xff]  }
 0x20c   : > { %v4403_v56 = vpop.permute.xlu1 %4402 }
 0x20d   : > { %v4723_v51 = vsel %vm1151_vm1, %v4542_v23, %v4403_v56  ;;  %v4267_v30 = vpop.permute.xlu0 %4266 }
 0x20e   : > { %4432 = vrot.lane.b32.xlu1 %v10332_v39, %s8822_s7  ;;  %8327 = vmatprep.mubr.msk.bf16.mxu0 %vm2394_vm2, %v4723_v51  ;;  %v4545_v63 = vsel %vm958_vm0, %v9813_v2, %v4267_v30  ;;  %v10361_v51 = vld [vmem:[%s8877_s29 + $0x150] sm:$0xff]  }
 0x20f   : > { %904 = vrot.lane.b32.xlu0 %v10337_v28, %s8822_s7  ;;  %v10371_v30 = vld [vmem:[%s8877_s29 + $0x530] sm:$0xff]  }
 0x210   : > { %v4405_v25 = vpop.permute.xlu1 %4404 }
 0x211   : > { %v4725_v23 = vsel %vm1151_vm1, %v4545_v63, %v4405_v25  ;;  %v877_v56 = vpop.permute.xlu0 %876 }
 0x212   : > { %v1199_v50 = vsel %vm1151_vm1, %v1030_v1, %v877_v56  ;;  %4296 = vrot.lane.b32.xlu1 %v10319_v9, %s8823_s8  ;;  %8328 = vmatmul.mubr.msk.bf16.gmra.mxu0 %vm2394_vm2, %v4725_v23  ;;  %v10378_v23 = vpop.f32.mrf.mxu0  ;;  %v10384_v56 = vld [vmem:[%s8877_s29 + $0x538] sm:$0xff]  }
 0x213   : > { %768 = vrot.lane.b32.xlu0 %v10309_v37, %s8823_s8  ;;  %8212 = vmatmul.mubr.msk.bf16.gmra.mxu1 %vm2394_vm2, %v1199_v50  ;;  %12571 = vst [vmem:[#allocation83_spill] sm:$0xff] %v10378_v23 }
 0x214   : > { %v4269_v5 = vpop.permute.xlu1 %4268  ;;  %v10394_v22 = vpop.f32.mrf.mxu0 }
 0x215   : > { %v741_v2 = vpop.permute.xlu0 %740  ;;  %12572 = vst [vmem:[#allocation84_spill] sm:$0xff] %v10394_v22 }
 0x216   : > { %906 = vrot.lane.b32.xlu1 %v10361_v51, %s8822_s7  ;;  %v1033_v63 = vsel %vm958_vm0, %v9846_v4, %v741_v2  ;;  %v4548_v4 = vsel %vm958_vm0, %v9858_v33, %v4269_v5  ;;  %v10406_v22 = vpop.f32.mrf.mxu0 }
 0x217   : > { %770 = vrot.lane.b32.xlu0 %v10337_v28, %s8823_s8  ;;  %12573 = vst [vmem:[#allocation85_spill] sm:$0xff] %v10406_v22 }
 0x218   : > { %v879_v25 = vpop.permute.xlu1 %878 }
 0x219   : > { %v1201_v1 = vsel %vm1151_vm1, %v1033_v63, %v879_v25  ;;  %v743_v50 = vpop.permute.xlu0 %742 }
 0x21a   : > { %4434 = vrot.lane.b32.xlu1 %v10371_v30, %s8822_s7  ;;  %8215 = vmatprep.mubr.msk.bf16.mxu1 %vm2394_vm2, %v1201_v1  ;;  %v1036_v5 = vsel %vm958_vm0, %v9878_v49, %v743_v50  ;;  %v10418_v50 = vpop.f32.mrf.mxu0 }
 0x21b   : > { %4298 = vrot.lane.b32.xlu0 %v10332_v39, %s8823_s8  ;;  %12574 = vst [vmem:[#allocation86_spill] sm:$0xff] %v10418_v50  ;;  %v10441_v50 = vld [vmem:[%s8877_s29 + $0x168] sm:$0xff]  }
 0x21c   : > { %v4407_v2 = vpop.permute.xlu1 %4406 }
 0x21d   : > { %v4727_v63 = vsel %vm1151_vm1, %v4548_v4, %v4407_v2  ;;  %v4271_v25 = vpop.permute.xlu0 %4270 }
 0x21e   : > { %4436 = vrot.lane.b32.xlu1 %v10384_v56, %s8822_s7  ;;  %8331 = vmatprep.mubr.msk.bf16.mxu0 %vm2394_vm2, %v4727_v63  ;;  %v4551_v1 = vsel %vm958_vm0, %v9873_v60, %v4271_v25  ;;  %v10413_v63 = vld [vmem:[%s8877_s29 + $0x160] sm:$0xff]  }
 0x21f   : > { %908 = vrot.lane.b32.xlu0 %v10389_v0, %s8822_s7  ;;  %v10423_v25 = vld [vmem:[%s8877_s29 + $0x540] sm:$0xff]  }
 0x220   : > { %v4409_v33 = vpop.permute.xlu1 %4408 }
 0x221   : > { %v4729_v4 = vsel %vm1151_vm1, %v4551_v1, %v4409_v33  ;;  %v881_v2 = vpop.permute.xlu0 %880 }
 0x222   : > { %v1203_v23 = vsel %vm1151_vm1, %v1036_v5, %v881_v2  ;;  %4300 = vrot.lane.b32.xlu1 %v10371_v30, %s8823_s8  ;;  %8332 = vmatmul.mubr.msk.bf16.gmra.mxu0 %vm2394_vm2, %v4729_v4  ;;  %v10430_v4 = vpop.f32.mrf.mxu0  ;;  %v10436_v2 = vld [vmem:[%s8877_s29 + $0x548] sm:$0xff]  }
 0x223   : > { %772 = vrot.lane.b32.xlu0 %v10361_v51, %s8823_s8  ;;  %8216 = vmatmul.mubr.msk.bf16.gmra.mxu1 %vm2394_vm2, %v1203_v23  ;;  %12575 = vst [vmem:[#allocation87_spill] sm:$0xff] %v10430_v4 }
 0x224   : > { %v4273_v49 = vpop.permute.xlu1 %4272  ;;  %v10446_v22 = vpop.f32.mrf.mxu0 }
 0x225   : > { %v745_v60 = vpop.permute.xlu0 %744  ;;  %12576 = vst [vmem:[#allocation88_spill] sm:$0xff] %v10446_v22 }
 0x226   : > { %910 = vrot.lane.b32.xlu1 %v10413_v63, %s8822_s7  ;;  %v1039_v1 = vsel %vm958_vm0, %v9906_v48, %v745_v60  ;;  %v4554_v48 = vsel %vm958_vm0, %v9918_v12, %v4273_v49  ;;  %v10458_v22 = vpop.f32.mrf.mxu0 }
 0x227   : > { %774 = vrot.lane.b32.xlu0 %v10389_v0, %s8823_s8  ;;  %12577 = vst [vmem:[#allocation89_spill] sm:$0xff] %v10458_v22 }
 0x228   : > { %v883_v33 = vpop.permute.xlu1 %882 }
 0x229   : > { %v1205_v5 = vsel %vm1151_vm1, %v1039_v1, %v883_v33  ;;  %v747_v23 = vpop.permute.xlu0 %746 }
 0x22a   : > { %4438 = vrot.lane.b32.xlu1 %v10423_v25, %s8822_s7  ;;  %8219 = vmatprep.mubr.msk.bf16.mxu1 %vm2394_vm2, %v1205_v5  ;;  %v1042_v49 = vsel %vm958_vm0, %v9938_v42, %v747_v23  ;;  %v10470_v23 = vpop.f32.mrf.mxu0 }
 0x22b   : > { %4302 = vrot.lane.b32.xlu0 %v10384_v56, %s8823_s8  ;;  %12578 = vst [vmem:[#allocation90_spill] sm:$0xff] %v10470_v23  ;;  %v10493_v23 = vld [vmem:[%s8877_s29 + $0x178] sm:$0xff]  }
 0x22c   : > { %v4411_v60 = vpop.permute.xlu1 %4410 }
 0x22d   : > { %v4731_v1 = vsel %vm1151_vm1, %v4554_v48, %v4411_v60  ;;  %v4275_v33 = vpop.permute.xlu0 %4274 }
 0x22e   : > { %4440 = vrot.lane.b32.xlu1 %v10436_v2, %s8822_s7  ;;  %8335 = vmatprep.mubr.msk.bf16.mxu0 %vm2394_vm2, %v4731_v1  ;;  %v4557_v5 = vsel %vm958_vm0, %v9933_v35, %v4275_v33  ;;  %v10465_v1 = vld [vmem:[%s8877_s29 + $0x170] sm:$0xff]  }
 0x22f   : > { %912 = vrot.lane.b32.xlu0 %v10441_v50, %s8822_s7  ;;  %v10475_v33 = vld [vmem:[%s8877_s29 + $0x550] sm:$0xff]  }
 0x230   : > { %v4413_v12 = vpop.permute.xlu1 %4412 }
 0x231   : > { %v4733_v48 = vsel %vm1151_vm1, %v4557_v5, %v4413_v12  ;;  %v885_v60 = vpop.permute.xlu0 %884 }
 0x232   : > { %v1207_v4 = vsel %vm1151_vm1, %v1042_v49, %v885_v60  ;;  %4304 = vrot.lane.b32.xlu1 %v10423_v25, %s8823_s8  ;;  %8336 = vmatmul.mubr.msk.bf16.gmra.mxu0 %vm2394_vm2, %v4733_v48  ;;  %v10482_v48 = vpop.f32.mrf.mxu0  ;;  %v10488_v60 = vld [vmem:[%s8877_s29 + $0x558] sm:$0xff]  }
 0x233   : > { %776 = vrot.lane.b32.xlu0 %v10413_v63, %s8823_s8  ;;  %8220 = vmatmul.mubr.msk.bf16.gmra.mxu1 %vm2394_vm2, %v1207_v4  ;;  %12579 = vst [vmem:[#allocation91_spill] sm:$0xff] %v10482_v48 }
 0x234   : > { %v4277_v42 = vpop.permute.xlu1 %4276  ;;  %v10498_v22 = vpop.f32.mrf.mxu0 }
 0x235   : > { %v749_v35 = vpop.permute.xlu0 %748  ;;  %12580 = vst [vmem:[#allocation92_spill] sm:$0xff] %v10498_v22 }
 0x236   : > { %914 = vrot.lane.b32.xlu1 %v10465_v1, %s8822_s7  ;;  %v1045_v5 = vsel %vm958_vm0, %v9966_v8, %v749_v35  ;;  %v4560_v8 = vsel %vm958_vm0, %v9978_v15, %v4277_v42  ;;  %v10510_v22 = vpop.f32.mrf.mxu0 }
 0x237   : > { %778 = vrot.lane.b32.xlu0 %v10441_v50, %s8823_s8  ;;  %12581 = vst [vmem:[#allocation93_spill] sm:$0xff] %v10510_v22 }
 0x238   : > { %v887_v12 = vpop.permute.xlu1 %886 }
 0x239   : > { %v1209_v49 = vsel %vm1151_vm1, %v1045_v5, %v887_v12  ;;  %v751_v4 = vpop.permute.xlu0 %750 }
 0x23a   : > { %4442 = vrot.lane.b32.xlu1 %v10475_v33, %s8822_s7  ;;  %8223 = vmatprep.mubr.msk.bf16.mxu1 %vm2394_vm2, %v1209_v49  ;;  %v1048_v42 = vsel %vm958_vm0, %v9998_v26, %v751_v4  ;;  %v10522_v4 = vpop.f32.mrf.mxu0 }
 0x23b   : > { %4306 = vrot.lane.b32.xlu0 %v10436_v2, %s8823_s8  ;;  %12582 = vst [vmem:[#allocation94_spill] sm:$0xff] %v10522_v4  ;;  %v10545_v4 = vld [vmem:[%s8877_s29 + $0x188] sm:$0xff]  }
 0x23c   : > { %v4415_v35 = vpop.permute.xlu1 %4414 }
 0x23d   : > { %v4735_v5 = vsel %vm1151_vm1, %v4560_v8, %v4415_v35  ;;  %v4279_v12 = vpop.permute.xlu0 %4278 }
 0x23e   : > { %4444 = vrot.lane.b32.xlu1 %v10488_v60, %s8822_s7  ;;  %8339 = vmatprep.mubr.msk.bf16.mxu0 %vm2394_vm2, %v4735_v5  ;;  %v4563_v49 = vsel %vm958_vm0, %v9993_v31, %v4279_v12  ;;  %v10517_v5 = vld [vmem:[%s8877_s29 + $0x180] sm:$0xff]  }
 0x23f   : > { %916 = vrot.lane.b32.xlu0 %v10493_v23, %s8822_s7  ;;  %v10527_v12 = vld [vmem:[%s8877_s29 + $0x560] sm:$0xff]  }
 0x240   : > { %v4417_v15 = vpop.permute.xlu1 %4416 }
 0x241   : > { %v4737_v8 = vsel %vm1151_vm1, %v4563_v49, %v4417_v15  ;;  %v889_v35 = vpop.permute.xlu0 %888 }
 0x242   : > { %v1211_v48 = vsel %vm1151_vm1, %v1048_v42, %v889_v35  ;;  %4308 = vrot.lane.b32.xlu1 %v10475_v33, %s8823_s8  ;;  %8340 = vmatmul.mubr.msk.bf16.gmra.mxu0 %vm2394_vm2, %v4737_v8  ;;  %v10534_v8 = vpop.f32.mrf.mxu0  ;;  %v10540_v35 = vld [vmem:[%s8877_s29 + $0x568] sm:$0xff]  }
 0x243   : > { %780 = vrot.lane.b32.xlu0 %v10465_v1, %s8823_s8  ;;  %8224 = vmatmul.mubr.msk.bf16.gmra.mxu1 %vm2394_vm2, %v1211_v48  ;;  %12583 = vst [vmem:[#allocation95_spill] sm:$0xff] %v10534_v8 }
 0x244   : > { %v4281_v26 = vpop.permute.xlu1 %4280  ;;  %v10550_v8 = vpop.f32.mrf.mxu0 }
 0x245   : > { %v753_v31 = vpop.permute.xlu0 %752  ;;  %12584 = vst [vmem:[#allocation96_spill] sm:$0xff] %v10550_v8 }
 0x246   : > { %918 = vrot.lane.b32.xlu1 %v10517_v5, %s8822_s7  ;;  %v1051_v49 = vsel %vm958_vm0, %v10026_v52, %v753_v31  ;;  %v4566_v52 = vsel %vm958_vm0, %v10038_v13, %v4281_v26  ;;  %v10562_v8 = vpop.f32.mrf.mxu0 }
 0x247   : > { %782 = vrot.lane.b32.xlu0 %v10493_v23, %s8823_s8  ;;  %12585 = vst [vmem:[#allocation97_spill] sm:$0xff] %v10562_v8 }
 0x248   : > { %v891_v15 = vpop.permute.xlu1 %890 }
 0x249   : > { %v1213_v42 = vsel %vm1151_vm1, %v1051_v49, %v891_v15  ;;  %v755_v48 = vpop.permute.xlu0 %754 }
 0x24a   : > { %4446 = vrot.lane.b32.xlu1 %v10527_v12, %s8822_s7  ;;  %8227 = vmatprep.mubr.msk.bf16.mxu1 %vm2394_vm2, %v1213_v42  ;;  %v1054_v26 = vsel %vm958_vm0, %v10059_v38, %v755_v48  ;;  %v10574_v48 = vpop.f32.mrf.mxu0 }
 0x24b   : > { %4310 = vrot.lane.b32.xlu0 %v10488_v60, %s8823_s8  ;;  %12586 = vst [vmem:[#allocation98_spill] sm:$0xff] %v10574_v48  ;;  %v10597_v48 = vld [vmem:[%s8877_s29 + $0x198] sm:$0xff]  }
 0x24c   : > { %v4419_v31 = vpop.permute.xlu1 %4418 }
 0x24d   : > { %v4739_v49 = vsel %vm1151_vm1, %v4566_v52, %v4419_v31  ;;  %v4283_v15 = vpop.permute.xlu0 %4282 }
 0x24e   : > { %4448 = vrot.lane.b32.xlu1 %v10540_v35, %s8822_s7  ;;  %8343 = vmatprep.mubr.msk.bf16.mxu0 %vm2394_vm2, %v4739_v49  ;;  %v4569_v42 = vsel %vm958_vm0, %v10054_v10, %v4283_v15  ;;  %v10569_v49 = vld [vmem:[%s8877_s29 + $0x190] sm:$0xff]  }
 0x24f   : > { %920 = vrot.lane.b32.xlu0 %v10545_v4, %s8822_s7  ;;  %v10579_v15 = vld [vmem:[%s8877_s29 + $0x570] sm:$0xff]  }
 0x250   : > { %v4421_v13 = vpop.permute.xlu1 %4420 }
 0x251   : > { %v4741_v52 = vsel %vm1151_vm1, %v4569_v42, %v4421_v13  ;;  %v893_v31 = vpop.permute.xlu0 %892 }
 0x252   : > { %v1215_v22 = vsel %vm1151_vm1, %v1054_v26, %v893_v31  ;;  %4312 = vrot.lane.b32.xlu1 %v10527_v12, %s8823_s8  ;;  %8344 = vmatmul.mubr.msk.bf16.gmra.mxu0 %vm2394_vm2, %v4741_v52  ;;  %v10586_v52 = vpop.f32.mrf.mxu0  ;;  %v10592_v31 = vld [vmem:[%s8877_s29 + $0x578] sm:$0xff]  }
 0x253   : > { %784 = vrot.lane.b32.xlu0 %v10517_v5, %s8823_s8  ;;  %8228 = vmatmul.mubr.msk.bf16.gmra.mxu1 %vm2394_vm2, %v1215_v22  ;;  %12587 = vst [vmem:[#allocation99_spill] sm:$0xff] %v10586_v52 }
 0x254   : > { %v4285_v38 = vpop.permute.xlu1 %4284  ;;  %v10599_v8 = vpop.f32.mrf.mxu0 }
 0x255   : > { %v757_v10 = vpop.permute.xlu0 %756  ;;  %12588 = vst [vmem:[#allocation100_spill] sm:$0xff] %v10599_v8 }
 0x256   : > { %922 = vrot.lane.b32.xlu1 %v10569_v49, %s8822_s7  ;;  %v1057_v42 = vsel %vm958_vm0, %v10086_v53, %v757_v10  ;;  %v4572_v53 = vsel %vm958_vm0, %v10098_v59, %v4285_v38  ;;  %v10612_v8 = vpop.f32.mrf.mxu0 }
 0x257   : > { %786 = vrot.lane.b32.xlu0 %v10545_v4, %s8823_s8  ;;  %12589 = vst [vmem:[#allocation101_spill] sm:$0xff] %v10612_v8  ;;  %v10626_v8 = vld [vmem:[%s8877_s29 + $0x1a0] sm:$0xff]  }
 0x258   : > { %v895_v13 = vpop.permute.xlu1 %894 }
 0x259   : > { %v1217_v26 = vsel %vm1151_vm1, %v1057_v42, %v895_v13  ;;  %v759_v22 = vpop.permute.xlu0 %758 }
 0x25a   : > { %4450 = vrot.lane.b32.xlu1 %v10579_v15, %s8822_s7  ;;  %8231 = vmatprep.mubr.msk.bf16.mxu1 %vm2394_vm2, %v1217_v26  ;;  %v8787_v26 = vld [vmem:[%s12478_s3] sm:$0xff]  }
 0x25b   : > { %4314 = vrot.lane.b32.xlu0 %v10540_v35, %s8823_s8  ;;  %8437 = vmatprep.subr.bf16.mxu1 %v8787_v26 }
 0x25c   : > { %v4423_v10 = vpop.permute.xlu1 %4422  ;;  %8438 = vmatpush3.bf16.msra.mxu1 %v8787_v26 }
 0x25d   : > { %v4743_v42 = vsel %vm1151_vm1, %v4572_v53, %v4423_v10  ;;  %v4287_v13 = vpop.permute.xlu0 %4286  ;;  %v10616_v53 = vpop.f32.mrf.mxu1  ;;  %v1060_v10 = vsel %vm958_vm0, %v10118_v32, %v759_v22 }
 0x25e   : > { %4452 = vrot.lane.b32.xlu1 %v10592_v31, %s8822_s7  ;;  %8347 = vmatprep.mubr.msk.bf16.mxu0 %vm2394_vm2, %v4743_v42  ;;  %v4575_v59 = vsel %vm958_vm0, %v10113_v11, %v4287_v13  ;;  %v10631_v32 = vpop.f32.mrf.mxu0  ;;  %v10638_v13 = vld [vmem:[%s8877_s29 + $0x580] sm:$0xff]  }
 0x25f   : > { %924 = vrot.lane.b32.xlu0 %v10597_v48, %s8822_s7  ;;  %12590 = vst [vmem:[#allocation102_spill] sm:$0xff] %v10631_v32  ;;  %v10633_v22 = vpop.f32.mrf.mxu1 }
 0x260   : > { %v4425_v38 = vpop.permute.xlu1 %4424 }
 0x261   : > { %v4745_v42 = vsel %vm1151_vm1, %v4575_v59, %v4425_v38  ;;  %v897_v52 = vpop.permute.xlu0 %896  ;;  %v10642_v59 = vpop.f32.mrf.mxu0 }
 0x262   : > { %v1219_v34 = vsel %vm1151_vm1, %v1060_v10, %v897_v52  ;;  %4316 = vrot.lane.b32.xlu1 %v10579_v15, %s8823_s8  ;;  %8348 = vmatmul.mubr.msk.bf16.gmra.mxu0 %vm2394_vm2, %v4745_v42  ;;  %12591 = vst [vmem:[#allocation103_spill] sm:$0xff] %v10642_v59  ;;  %v10646_v10 = vpop.f32.mrf.mxu1  ;;  %v10660_v59 = vld [vmem:[%s8877_s29 + $0x1a8] sm:$0xff]  }
 0x263   : > { %788 = vrot.lane.b32.xlu0 %v10569_v49, %s8823_s8  ;;  %8232 = vmatmul.mubr.msk.bf16.gmra.mxu1 %vm2394_vm2, %v1219_v34  ;;  %v10649_v32 = vpop.f32.mrf.mxu0 }
 0x264   : > { %v4289_v11 = vpop.permute.xlu1 %4288  ;;  %12592 = vst [vmem:[#allocation104_spill] sm:$0xff] %v10649_v32 }
 0x265   : > { %v761_v52 = vpop.permute.xlu0 %760  ;;  %v10667_v18 = vpop.f32.mrf.mxu0 }
 0x266   : > { %926 = vrot.lane.b32.xlu1 %v10626_v8, %s8822_s7  ;;  %v1063_v34 = vsel %vm958_vm0, %v10146_v36, %v761_v52  ;;  %v4578_v36 = vsel %vm958_vm0, %v10158_v57, %v4289_v11  ;;  %12593 = vst [vmem:[#allocation105_spill] sm:$0xff] %v10667_v18 }
 0x267   : > { %790 = vrot.lane.b32.xlu0 %v10597_v48, %s8823_s8  ;;  %v10681_v47 = vpop.f32.mrf.mxu0 }
 0x268   : > { %v899_v38 = vpop.permute.xlu1 %898  ;;  %12595 = vst [vmem:[#allocation107_spill] sm:$0xff] %v10681_v47 }
 0x269   : > { %v1221_v26 = vsel %vm1151_vm1, %v1063_v34, %v899_v38  ;;  %v763_v42 = vpop.permute.xlu0 %762  ;;  %v10664_v34 = vpop.f32.mrf.mxu1 }
 0x26a   : > { %4454 = vrot.lane.b32.xlu1 %v10638_v13, %s8822_s7  ;;  %8235 = vmatprep.mubr.msk.bf16.mxu1 %vm2394_vm2, %v1221_v26 }
 0x26b   : > { %4318 = vrot.lane.b32.xlu0 %v10592_v31, %s8823_s8  ;;  %v10672_v26 = vpop.f32.mrf.mxu1 }
 0x26c   : > { %v4427_v52 = vpop.permute.xlu1 %4426  ;;  %12594 = vst [vmem:[#allocation106_spill] sm:$0xff] %v10672_v26 }
 0x26d   : > { %v4747_v38 = vsel %vm1151_vm1, %v4578_v36, %v4427_v52  ;;  %v4291_v32 = vpop.permute.xlu0 %4290  ;;  %v1066_v36 = vsel %vm958_vm0, %v10181_v16, %v763_v42  ;;  %v10695_v42 = vpop.f32.mrf.mxu0 }
 0x26e   : > { %4456 = vrot.lane.b32.xlu1 %v10655_v45, %s8822_s7  ;;  %8351 = vmatprep.mubr.msk.bf16.mxu0 %vm2394_vm2, %v4747_v38  ;;  %v4581_v57 = vsel %vm958_vm0, %v10173_v41, %v4291_v32  ;;  %v10690_v41 = vpop.f32.mrf.mxu1  ;;  %12596 = vst [vmem:[#allocation108_spill] sm:$0xff] %v10695_v42  ;;  %v10715_v42 = vld [vmem:[%s8877_s29 + $0x598] sm:$0xff]  }
 0x26f   : > { %928 = vrot.lane.b32.xlu0 %v10660_v59, %s8822_s7 }
 0x270   : > { %v4429_v11 = vpop.permute.xlu1 %4428 }
 0x271   : > { %v4749_v52 = vsel %vm1151_vm1, %v4581_v57, %v4429_v11  ;;  %v901_v18 = vpop.permute.xlu0 %900  ;;  %v10702_v57 = vpop.f32.mrf.mxu1 }
 0x272   : > { %v1223_v38 = vsel %vm1151_vm1, %v1066_v36, %v901_v18  ;;  %4320 = vrot.lane.b32.xlu1 %v10638_v13, %s8823_s8  ;;  %8352 = vmatmul.mubr.msk.bf16.gmra.mxu0 %vm2394_vm2, %v4749_v52  ;;  %v10700_v18 = vld [vmem:[%s8877_s29 + $0x590] sm:$0xff]   ;;  %12597 = vst [vmem:[#allocation109_spill] sm:$0xff] %v10702_v57  ;;  %v10706_v11 = vpop.f32.mrf.mxu0 }
 0x273   : > { %792 = vrot.lane.b32.xlu0 %v10626_v8, %s8823_s8  ;;  %8236 = vmatmul.mubr.msk.bf16.gmra.mxu1 %vm2394_vm2, %v1223_v38  ;;  %12598 = vst [vmem:[#allocation110_spill] sm:$0xff] %v10706_v11  ;;  %v10717_v58 = vpop.f32.mrf.mxu1  ;;  %v10722_v11 = vld [vmem:[%s8877_s29 + $0x1b8] sm:$0xff]  }
 0x274   : > { %v4293_v16 = vpop.permute.xlu1 %4292  ;;  %v10724_v40 = vpop.f32.mrf.mxu0 }
 0x275   : > { %v765_v32 = vpop.permute.xlu0 %764  ;;  %12599 = vst [vmem:[#allocation111_spill] sm:$0xff] %v10724_v40 }
 0x276   : > { %930 = vrot.lane.b32.xlu1 %v10688_v21, %s8822_s7  ;;  %v1069_v36 = vsel %vm958_vm0, %v10205_v7, %v765_v32  ;;  %v4584_v7 = vsel %vm958_vm0, %v10215_v14, %v4293_v16  ;;  %v10736_v26 = vpop.f32.mrf.mxu0 }
 0x277   : > { %794 = vrot.lane.b32.xlu0 %v10660_v59, %s8823_s8  ;;  %12601 = vst [vmem:[#allocation113_spill] sm:$0xff] %v10736_v26  ;;  %v10750_v26 = vld [vmem:[%s8877_s29 + $0x1c0] sm:$0xff]  }
 0x278   : > { %v903_v52 = vpop.permute.xlu1 %902 }
 0x279   : > { %v1225_v38 = vsel %vm1151_vm1, %v1069_v36, %v903_v52  ;;  %v767_v47 = vpop.permute.xlu0 %766  ;;  %v10728_v36 = vpop.f32.mrf.mxu1 }
 0x27a   : > { %4458 = vrot.lane.b32.xlu1 %v10700_v18, %s8822_s7  ;;  %8239 = vmatprep.mubr.msk.bf16.mxu1 %vm2394_vm2, %v1225_v38  ;;  %12600 = vst [vmem:[#allocation112_spill] sm:$0xff] %v10728_v36 }
 0x27b   : > { %4322 = vrot.lane.b32.xlu0 %v10655_v45, %s8823_s8  ;;  %v10740_v40 = vpop.f32.mrf.mxu1 }
 0x27c   : > { %v4431_v32 = vpop.permute.xlu1 %4430  ;;  %12602 = vst [vmem:[#allocation114_spill] sm:$0xff] %v10740_v40 }
 0x27d   : > { %v4751_v52 = vsel %vm1151_vm1, %v4584_v7, %v4431_v32  ;;  %v4295_v38 = vpop.permute.xlu0 %4294  ;;  %v1072_v7 = vsel %vm958_vm0, %v10233_v54, %v767_v47  ;;  %v10757_v54 = vpop.f32.mrf.mxu1 }
 0x27e   : > { %4460 = vrot.lane.b32.xlu1 %v10715_v42, %s8822_s7  ;;  %8355 = vmatprep.mubr.msk.bf16.mxu0 %vm2394_vm2, %v4751_v52  ;;  %v4587_v14 = vsel %vm958_vm0, %v10228_v3, %v4295_v38  ;;  %v10755_v3 = vpop.f32.mrf.mxu0  ;;  %12604 = vst [vmem:[#allocation116_spill] sm:$0xff] %v10757_v54 }
 0x27f   : > { %932 = vrot.lane.b32.xlu0 %v10722_v11, %s8822_s7  ;;  %12603 = vst [vmem:[#allocation115_spill] sm:$0xff] %v10755_v3 }
 0x280   : > { %v4433_v16 = vpop.permute.xlu1 %4432 }
 0x281   : > { %v4753_v32 = vsel %vm1151_vm1, %v4587_v14, %v4433_v16  ;;  %v905_v36 = vpop.permute.xlu0 %904  ;;  %v10764_v14 = vld [vmem:[%s8877_s29 + $0x5a0] sm:$0xff]  }
 0x282   : > { %v1227_v52 = vsel %vm1151_vm1, %v1072_v7, %v905_v36  ;;  %4324 = vrot.lane.b32.xlu1 %v10700_v18, %s8823_s8  ;;  %8356 = vmatmul.mubr.msk.bf16.gmra.mxu0 %vm2394_vm2, %v4753_v32  ;;  %v10759_v36 = vpop.f32.mrf.mxu0  ;;  %v10770_v32 = vpop.f32.mrf.mxu1 }
 0x283   : > { %796 = vrot.lane.b32.xlu0 %v10688_v21, %s8823_s8  ;;  %8240 = vmatmul.mubr.msk.bf16.gmra.mxu1 %vm2394_vm2, %v1227_v52  ;;  %12605 = vst [vmem:[#allocation117_spill] sm:$0xff] %v10759_v36  ;;  %12606 = vst [vmem:[#allocation118_spill] sm:$0xff] %v10770_v32  ;;  %v10779_v36 = vld [vmem:[%s8877_s29 + $0x5a8] sm:$0xff]  }
 0x284   : > { %v4297_v47 = vpop.permute.xlu1 %4296  ;;  %v10773_v54 = vpop.f32.mrf.mxu0 }
 0x285   : > { %v769_v38 = vpop.permute.xlu0 %768  ;;  %12607 = vst [vmem:[#allocation119_spill] sm:$0xff] %v10773_v54  ;;  %v10781_v40 = vpop.f32.mrf.mxu1 }
 0x286   : > { %934 = vrot.lane.b32.xlu1 %v10750_v26, %s8822_s7  ;;  %v1075_v16 = vsel %vm958_vm0, %v10257_v20, %v769_v38  ;;  %12608 = vst [vmem:[#allocation120_spill] sm:$0xff] %v10781_v40  ;;  %v10786_v20 = vld [vmem:[%s8877_s29 + $0x1c8] sm:$0xff]   ;;  %v4590_v38 = vsel %vm958_vm0, %v10267_v62, %v4297_v47  ;;  %v10791_v43 = vpop.f32.mrf.mxu0 }
 0x287   : > { %798 = vrot.lane.b32.xlu0 %v10722_v11, %s8823_s8  ;;  %12609 = vst [vmem:[#allocation121_spill] sm:$0xff] %v10791_v43 }
 0x288   : > { %v907_v7 = vpop.permute.xlu1 %906  ;;  %v10805_v40 = vpop.f32.mrf.mxu0 }
 0x289   : > { %v1229_v52 = vsel %vm1151_vm1, %v1075_v16, %v907_v7  ;;  %v771_v3 = vpop.permute.xlu0 %770  ;;  %12611 = vst [vmem:[#allocation123_spill] sm:$0xff] %v10805_v40 }
 0x28a   : > { %4462 = vrot.lane.b32.xlu1 %v10764_v14, %s8822_s7  ;;  %8243 = vmatprep.mubr.msk.bf16.mxu1 %vm2394_vm2, %v1229_v52  ;;  %v10796_v52 = vpop.f32.mrf.mxu1 }
 0x28b   : > { %4326 = vrot.lane.b32.xlu0 %v10715_v42, %s8823_s8  ;;  %12610 = vst [vmem:[#allocation122_spill] sm:$0xff] %v10796_v52  ;;  %v10812_v52 = vld [vmem:[%s8877_s29 + $0x1d0] sm:$0xff]  }
 0x28c   : > { %v4435_v16 = vpop.permute.xlu1 %4434 }
 0x28d   : > { %v4755_v7 = vsel %vm1151_vm1, %v4590_v38, %v4435_v16  ;;  %v4299_v54 = vpop.permute.xlu0 %4298  ;;  %v1078_v38 = vsel %vm958_vm0, %v10285_v44, %v771_v3  ;;  %v10819_v44 = vpop.f32.mrf.mxu0 }
 0x28e   : > { %4464 = vrot.lane.b32.xlu1 %v10779_v36, %s8822_s7  ;;  %8359 = vmatprep.mubr.msk.bf16.mxu0 %vm2394_vm2, %v4755_v7  ;;  %v4593_v62 = vsel %vm958_vm0, %v10280_v19, %v4299_v54  ;;  %v10814_v19 = vpop.f32.mrf.mxu1  ;;  %12613 = vst [vmem:[#allocation125_spill] sm:$0xff] %v10819_v44  ;;  %v10824_v54 = vld [vmem:[%s8877_s29 + $0x5b0] sm:$0xff]  }
 0x28f   : > { %936 = vrot.lane.b32.xlu0 %v10786_v20, %s8822_s7  ;;  %12612 = vst [vmem:[#allocation124_spill] sm:$0xff] %v10814_v19  ;;  %v10841_v19 = vld [vmem:[%s8877_s29 + $0x5b8] sm:$0xff]  }
 0x290   : > { %v4437_v47 = vpop.permute.xlu1 %4436 }
 0x291   : > { %v4757_v16 = vsel %vm1151_vm1, %v4593_v62, %v4437_v47  ;;  %v909_v43 = vpop.permute.xlu0 %908  ;;  %v10826_v62 = vpop.f32.mrf.mxu1 }
 0x292   : > { %v1231_v7 = vsel %vm1151_vm1, %v1078_v38, %v909_v43  ;;  %4328 = vrot.lane.b32.xlu1 %v10764_v14, %s8823_s8  ;;  %8360 = vmatmul.mubr.msk.bf16.gmra.mxu0 %vm2394_vm2, %v4757_v16  ;;  %12614 = vst [vmem:[#allocation126_spill] sm:$0xff] %v10826_v62  ;;  %v10830_v47 = vpop.f32.mrf.mxu0 }
 0x293   : > { %800 = vrot.lane.b32.xlu0 %v10750_v26, %s8823_s8  ;;  %8244 = vmatmul.mubr.msk.bf16.gmra.mxu1 %vm2394_vm2, %v1231_v7  ;;  %12615 = vst [vmem:[#allocation127_spill] sm:$0xff] %v10830_v47  ;;  %v10834_v7 = vpop.f32.mrf.mxu1  ;;  %v10846_v47 = vld [vmem:[%s8877_s29 + $0x1d8] sm:$0xff]  }
 0x294   : > { %v4301_v3 = vpop.permute.xlu1 %4300  ;;  %12616 = vst [vmem:[#allocation128_spill] sm:$0xff] %v10834_v7  ;;  %v10848_v62 = vpop.f32.mrf.mxu0 }
 0x295   : > { %v773_v43 = vpop.permute.xlu0 %772  ;;  %12617 = vst [vmem:[#allocation129_spill] sm:$0xff] %v10848_v62 }
 0x296   : > { %938 = vrot.lane.b32.xlu1 %v10812_v52, %s8822_s7  ;;  %v1081_v38 = vsel %vm958_vm0, %v10309_v37, %v773_v43  ;;  %v4596_v37 = vsel %vm958_vm0, %v10319_v9, %v4301_v3 }
 0x297   : > { %802 = vrot.lane.b32.xlu0 %v10786_v20, %s8823_s8 }
 0x298   : > { %v911_v16 = vpop.permute.xlu1 %910 }
 0x299   : > { %v1233_v44 = vsel %vm1151_vm1, %v1081_v38, %v911_v16  ;;  %v775_v40 = vpop.permute.xlu0 %774  ;;  %v10852_v38 = vpop.f32.mrf.mxu1 }
 0x29a   : > { %4466 = vrot.lane.b32.xlu1 %v10824_v54, %s8822_s7  ;;  %8247 = vmatprep.mubr.msk.bf16.mxu1 %vm2394_vm2, %v1233_v44  ;;  %12618 = vst [vmem:[#allocation130_spill] sm:$0xff] %v10852_v38  ;;  %v10860_v44 = vpop.f32.mrf.mxu0 }
 0x29b   : > { %4330 = vrot.lane.b32.xlu0 %v10779_v36, %s8823_s8  ;;  %12619 = vst [vmem:[#allocation131_spill] sm:$0xff] %v10860_v44  ;;  %v10864_v62 = vpop.f32.mrf.mxu1 }
 0x29c   : > { %v4439_v43 = vpop.permute.xlu1 %4438  ;;  %12620 = vst [vmem:[#allocation132_spill] sm:$0xff] %v10864_v62  ;;  %v10869_v32 = vpop.f32.mrf.mxu0  ;;  %v10910_v62 = vld [vmem:[%s8877_s29 + $0x1e8] sm:$0xff]  }
 0x29d   : > { %v4759_v16 = vsel %vm1151_vm1, %v4596_v37, %v4439_v43  ;;  %v4303_v7 = vpop.permute.xlu0 %4302  ;;  %v1084_v37 = vsel %vm958_vm0, %v10337_v28, %v775_v40  ;;  %12621 = vst [vmem:[#allocation133_spill] sm:$0xff] %v10869_v32  ;;  %v10881_v28 = vpop.f32.mrf.mxu1 }
 0x29e   : > { %4468 = vrot.lane.b32.xlu1 %v10841_v19, %s8822_s7  ;;  %8363 = vmatprep.mubr.msk.bf16.mxu0 %vm2394_vm2, %v4759_v16  ;;  %v4599_v9 = vsel %vm958_vm0, %v10332_v39, %v4303_v7  ;;  %v10876_v39 = vld [vmem:[%s8877_s29 + $0x1e0] sm:$0xff]   ;;  %12622 = vst [vmem:[#allocation134_spill] sm:$0xff] %v10881_v28 }
 0x29f   : > { %940 = vrot.lane.b32.xlu0 %v10846_v47, %s8822_s7 }
 0x2a0   : > { %v4441_v3 = vpop.permute.xlu1 %4440 }
 0x2a1   : > { %v4761_v43 = vsel %vm1151_vm1, %v4599_v9, %v4441_v3  ;;  %v913_v38 = vpop.permute.xlu0 %912  ;;  %v10883_v9 = vpop.f32.mrf.mxu0 }
 0x2a2   : > { %v1235_v16 = vsel %vm1151_vm1, %v1084_v37, %v913_v38  ;;  %4332 = vrot.lane.b32.xlu1 %v10824_v54, %s8823_s8  ;;  %8364 = vmatmul.mubr.msk.bf16.gmra.mxu0 %vm2394_vm2, %v4761_v43  ;;  %12623 = vst [vmem:[#allocation135_spill] sm:$0xff] %v10883_v9  ;;  %v10888_v38 = vld [vmem:[%s8877_s29 + $0x5c0] sm:$0xff]   ;;  %v10890_v3 = vpop.f32.mrf.mxu1  ;;  %v10903_v9 = vld [vmem:[%s8877_s29 + $0x5c8] sm:$0xff]  }
 0x2a3   : > { %804 = vrot.lane.b32.xlu0 %v10812_v52, %s8823_s8  ;;  %8248 = vmatmul.mubr.msk.bf16.gmra.mxu1 %vm2394_vm2, %v1235_v16  ;;  %12624 = vst [vmem:[#allocation136_spill] sm:$0xff] %v10890_v3  ;;  %v10897_v44 = vpop.f32.mrf.mxu0 }
 0x2a4   : > { %v4305_v40 = vpop.permute.xlu1 %4304  ;;  %12625 = vst [vmem:[#allocation137_spill] sm:$0xff] %v10897_v44  ;;  %v10905_v3 = vpop.f32.mrf.mxu1 }
 0x2a5   : > { %v777_v7 = vpop.permute.xlu0 %776  ;;  %12626 = vst [vmem:[#allocation138_spill] sm:$0xff] %v10905_v3  ;;  %v10915_v44 = vpop.f32.mrf.mxu0 }
 0x2a6   : > { %942 = vrot.lane.b32.xlu1 %v10876_v39, %s8822_s7  ;;  %v1087_v37 = vsel %vm958_vm0, %v10361_v51, %v777_v7  ;;  %v4602_v51 = vsel %vm958_vm0, %v10371_v30, %v4305_v40  ;;  %12627 = vst [vmem:[#allocation139_spill] sm:$0xff] %v10915_v44 }
 0x2a7   : > { %806 = vrot.lane.b32.xlu0 %v10846_v47, %s8823_s8  ;;  %v10924_v3 = vpop.f32.mrf.mxu0 }
 0x2a8   : > { %v915_v43 = vpop.permute.xlu1 %914 }
 0x2a9   : > { %v1237_v16 = vsel %vm1151_vm1, %v1087_v37, %v915_v43  ;;  %v779_v32 = vpop.permute.xlu0 %778 }
 0x2aa   : > { %4470 = vrot.lane.b32.xlu1 %v10888_v38, %s8822_s7  ;;  %8251 = vmatprep.mubr.msk.bf16.mxu1 %vm2394_vm2, %v1237_v16  ;;  %v10920_v16 = vpop.f32.mrf.mxu1 }
 0x2ab   : > { %4334 = vrot.lane.b32.xlu0 %v10841_v19, %s8823_s8  ;;  %12628 = vst [vmem:[#allocation140_spill] sm:$0xff] %v10920_v16  ;;  %v10936_v16 = vld [vmem:[%s8877_s29 + $0x1f0] sm:$0xff]  }
 0x2ac   : > { %v4443_v7 = vpop.permute.xlu1 %4442  ;;  %v10938_v28 = vpop.f32.mrf.mxu1 }
 0x2ad   : > { %v4763_v37 = vsel %vm1151_vm1, %v4602_v51, %v4443_v7  ;;  %v4307_v43 = vpop.permute.xlu0 %4306  ;;  %v1090_v51 = vsel %vm958_vm0, %v10389_v0, %v779_v32  ;;  %12629 = vst [vmem:[#allocation141_spill] sm:$0xff] %v10938_v28  ;;  %v10943_v0 = vpop.f32.mrf.mxu0  ;;  %v10965_v28 = vld [vmem:[%s8877_s29 + $0x5d8] sm:$0xff]  }
 0x2ae   : > { %4472 = vrot.lane.b32.xlu1 %v10903_v9, %s8822_s7  ;;  %8367 = vmatprep.mubr.msk.bf16.mxu0 %vm2394_vm2, %v4763_v37  ;;  %v4605_v30 = vsel %vm958_vm0, %v10384_v56, %v4307_v43  ;;  %v10945_v32 = vpop.f32.mrf.mxu1  ;;  %v10950_v43 = vld [vmem:[%s8877_s29 + $0x5d0] sm:$0xff]   ;;  %12632 = vst [vmem:[#allocation144_spill] sm:$0xff] %v10965_v28 }
 0x2af   : > { %944 = vrot.lane.b32.xlu0 %v10910_v62, %s8822_s7  ;;  %12630 = vst [vmem:[#allocation142_spill] sm:$0xff] %v10945_v32 }
 0x2b0   : > { %v4445_v40 = vpop.permute.xlu1 %4444 }
 0x2b1   : > { %v4765_v7 = vsel %vm1151_vm1, %v4605_v30, %v4445_v40  ;;  %v917_v44 = vpop.permute.xlu0 %916  ;;  %v10954_v30 = vpop.f32.mrf.mxu0 }
 0x2b2   : > { %v1239_v37 = vsel %vm1151_vm1, %v1090_v51, %v917_v44  ;;  %4336 = vrot.lane.b32.xlu1 %v10888_v38, %s8823_s8  ;;  %8368 = vmatmul.mubr.msk.bf16.gmra.mxu0 %vm2394_vm2, %v4765_v7  ;;  %v10958_v7 = vpop.f32.mrf.mxu1 }
 0x2b3   : > { %808 = vrot.lane.b32.xlu0 %v10876_v39, %s8823_s8  ;;  %8252 = vmatmul.mubr.msk.bf16.gmra.mxu1 %vm2394_vm2, %v1239_v37  ;;  %12631 = vst [vmem:[#allocation143_spill] sm:$0xff] %v10958_v7  ;;  %v10972_v57 = vpop.f32.mrf.mxu0 }
 0x2b4   : > { %v4309_v56 = vpop.permute.xlu1 %4308 }
 0x2b5   : > { %v781_v44 = vpop.permute.xlu0 %780 }
 0x2b6   : > { %946 = vrot.lane.b32.xlu1 %v10936_v16, %s8822_s7  ;;  %v1093_v40 = vsel %vm958_vm0, %v10413_v63, %v781_v44  ;;  %v4608_v63 = vsel %vm958_vm0, %v10423_v25, %v4309_v56 }
 0x2b7   : > { %810 = vrot.lane.b32.xlu0 %v10910_v62, %s8823_s8 }
 0x2b8   : > { %v919_v51 = vpop.permute.xlu1 %918 }
 0x2b9   : > { %v1241_v37 = vsel %vm1151_vm1, %v1093_v40, %v919_v51  ;;  %v783_v32 = vpop.permute.xlu0 %782  ;;  %v10976_v40 = vpop.f32.mrf.mxu1 }
 0x2ba   : > { %4474 = vrot.lane.b32.xlu1 %v10950_v43, %s8822_s7  ;;  %8255 = vmatprep.mubr.msk.bf16.mxu1 %vm2394_vm2, %v1241_v37  ;;  %12634 = vst [vmem:[#allocation146_spill] sm:$0xff] %v10976_v40  ;;  %v10979_v37 = vpop.f32.mrf.mxu0 }
 0x2bb   : > { %4338 = vrot.lane.b32.xlu0 %v10903_v9, %s8823_s8  ;;  %12635 = vst [vmem:[#allocation147_spill] sm:$0xff] %v10979_v37  ;;  %v10988_v17 = vpop.f32.mrf.mxu1 }
 0x2bc   : > { %v4447_v44 = vpop.permute.xlu1 %4446  ;;  %12636 = vst [vmem:[#allocation148_spill] sm:$0xff] %v10988_v17  ;;  %v10993_v37 = vpop.f32.mrf.mxu0 }
 0x2bd   : > { %v4767_v51 = vsel %vm1151_vm1, %v4608_v63, %v4447_v44  ;;  %v4311_v7 = vpop.permute.xlu0 %4310  ;;  %v1096_v63 = vsel %vm958_vm0, %v10441_v50, %v783_v32  ;;  %12637 = vst [vmem:[#allocation149_spill] sm:$0xff] %v10993_v37 }
 0x2be   : > { %4476 = vrot.lane.b32.xlu1 %v10965_v28, %s8822_s7  ;;  %8371 = vmatprep.mubr.msk.bf16.mxu0 %vm2394_vm2, %v4767_v51  ;;  %v4611_v25 = vsel %vm958_vm0, %v10436_v2, %v4311_v7  ;;  %v8781_v2 = vld [vmem:[%s8877_s29 + $0x200] sm:$0xff]   ;;  %v11000_v7 = vpop.f32.mrf.mxu1 }
 0x2bf   : > { %948 = vrot.lane.b32.xlu0 %v10970_v46, %s8822_s7  ;;  %12638 = vst [vmem:[#allocation150_spill] sm:$0xff] %v11000_v7 }
 0x2c0   : > { %v4449_v56 = vpop.permute.xlu1 %4448 }
 0x2c1   : > { %v4769_v44 = vsel %vm1151_vm1, %v4611_v25, %v4449_v56  ;;  %v921_v40 = vpop.permute.xlu0 %920  ;;  %v11005_v25 = vpop.f32.mrf.mxu0 }
 0x2c2   : > { %v1243_v51 = vsel %vm1151_vm1, %v1096_v63, %v921_v40  ;;  %4340 = vrot.lane.b32.xlu1 %v10950_v43, %s8823_s8  ;;  %8372 = vmatmul.mubr.msk.bf16.gmra.mxu0 %vm2394_vm2, %v4769_v44  ;;  %12639 = vst [vmem:[#allocation151_spill] sm:$0xff] %v11005_v25  ;;  %v11009_v40 = vld [vmem:[%s8877_s29 + $0x5e0] sm:$0xff]   ;;  %v11011_v56 = vpop.f32.mrf.mxu1  ;;  %v11024_v25 = vld [vmem:[%s8877_s29 + $0x5e8] sm:$0xff]  }
 0x2c3   : > { %812 = vrot.lane.b32.xlu0 %v10936_v16, %s8823_s8  ;;  %8256 = vmatmul.mubr.msk.bf16.gmra.mxu1 %vm2394_vm2, %v1243_v51  ;;  %12640 = vst [vmem:[#allocation152_spill] sm:$0xff] %v11011_v56  ;;  %v11018_v17 = vpop.f32.mrf.mxu0 }
 0x2c4   : > { %v4313_v50 = vpop.permute.xlu1 %4312  ;;  %v11026_v56 = vpop.f32.mrf.mxu1 }
 0x2c5   : > { %v785_v32 = vpop.permute.xlu0 %784  ;;  %12641 = vst [vmem:[#allocation153_spill] sm:$0xff] %v11026_v56 }
 0x2c6   : > { %950 = vrot.lane.b32.xlu1 %v8781_v2, %s8822_s7  ;;  %v1099_v63 = vsel %vm958_vm0, %v10465_v1, %v785_v32  ;;  %v11031_v1 = vpop.f32.mrf.mxu0  ;;  %v4614_v32 = vsel %vm958_vm0, %v10475_v33, %v4313_v50 }
 0x2c7   : > { %814 = vrot.lane.b32.xlu0 %v10970_v46, %s8823_s8  ;;  %v8784_v46 = vld [vmem:[%s8877_s29 + $0x208] sm:$0xff]   ;;  %12642 = vst [vmem:[#allocation154_spill] sm:$0xff] %v11031_v1 }
 0x2c8   : > { %v923_v44 = vpop.permute.xlu1 %922  ;;  %v11042_v56 = vpop.f32.mrf.mxu0 }
 0x2c9   : > { %v1245_v51 = vsel %vm1151_vm1, %v1099_v63, %v923_v44  ;;  %v787_v7 = vpop.permute.xlu0 %786 }
 0x2ca   : > { %4478 = vrot.lane.b32.xlu1 %v11009_v40, %s8822_s7  ;;  %8259 = vmatprep.mubr.msk.bf16.mxu1 %vm2394_vm2, %v1245_v51  ;;  %v11039_v51 = vpop.f32.mrf.mxu1 }
 0x2cb   : > { %4342 = vrot.lane.b32.xlu0 %v10965_v28, %s8823_s8  ;;  %12643 = vst [vmem:[#allocation155_spill] sm:$0xff] %v11039_v51  ;;  %v8785_v51 = vld [vmem:[%s8877_s29 + $0x210] sm:$0xff]  }
 0x2cc   : > { %v4451_v63 = vpop.permute.xlu1 %4450  ;;  %v11046_v50 = vpop.f32.mrf.mxu1 }
 0x2cd   : > { %v4771_v44 = vsel %vm1151_vm1, %v4614_v32, %v4451_v63  ;;  %v4315_v37 = vpop.permute.xlu0 %4314  ;;  %12644 = vst [vmem:[#allocation156_spill] sm:$0xff] %v11046_v50  ;;  %v1102_v32 = vsel %vm958_vm0, %v10493_v23, %v787_v7 }
 0x2ce   : > { %4480 = vrot.lane.b32.xlu1 %v11024_v25, %s8822_s7  ;;  %8375 = vmatprep.mubr.msk.bf16.mxu0 %vm2394_vm2, %v4771_v44  ;;  %v4617_v1 = vsel %vm958_vm0, %v10488_v60, %v4315_v37  ;;  %v11058_v60 = vpop.f32.mrf.mxu0  ;;  %v11060_v23 = vpop.f32.mrf.mxu1 }
 0x2cf   : > { %952 = vrot.lane.b32.xlu0 %v8784_v46, %s8822_s7  ;;  %12645 = vst [vmem:[#allocation157_spill] sm:$0xff] %v11060_v23 }
 0x2d0   : > { %v4453_v33 = vpop.permute.xlu1 %4452 }
 0x2d1   : > { %v4773_v63 = vsel %vm1151_vm1, %v4617_v1, %v4453_v33  ;;  %v925_v28 = vpop.permute.xlu0 %924  ;;  %v11067_v1 = vpop.f32.mrf.mxu0 }
 0x2d2   : > { %v1247_v44 = vsel %vm1151_vm1, %v1102_v32, %v925_v28  ;;  %4344 = vrot.lane.b32.xlu1 %v11009_v40, %s8823_s8  ;;  %8376 = vmatmul.mubr.msk.bf16.gmra.mxu0 %vm2394_vm2, %v4773_v63  ;;  %v11064_v28 = vld [vmem:[%s8877_s29 + $0x5f0] sm:$0xff]   ;;  %v11071_v32 = vpop.f32.mrf.mxu1 }
 0x2d3   : > { %816 = vrot.lane.b32.xlu0 %v8781_v2, %s8823_s8  ;;  %8260 = vmatmul.mubr.msk.bf16.gmra.mxu1 %vm2394_vm2, %v1247_v44  ;;  %12646 = vst [vmem:[#allocation158_spill] sm:$0xff] %v11071_v32  ;;  %v11074_v50 = vpop.f32.mrf.mxu0 }
 0x2d4   : > { %v4317_v37 = vpop.permute.xlu1 %4316  ;;  %12647 = vst [vmem:[#allocation159_spill] sm:$0xff] %v11074_v50  ;;  %v11087_v32 = vpop.f32.mrf.mxu1 }
 0x2d5   : > { %v789_v7 = vpop.permute.xlu0 %788  ;;  %12648 = vst [vmem:[#allocation160_spill] sm:$0xff] %v11087_v32  ;;  %v11090_v23 = vpop.f32.mrf.mxu0 }
 0x2d6   : > { %954 = vrot.lane.b32.xlu1 %v8785_v51, %s8822_s7  ;;  %v1105_v2 = vsel %vm958_vm0, %v10517_v5, %v789_v7  ;;  %v11080_v51 = vld [vmem:[%s8877_s29 + $0x5f8] sm:$0xff]   ;;  %v4620_v5 = vsel %vm958_vm0, %v10527_v12, %v4317_v37  ;;  %12649 = vst [vmem:[#allocation161_spill] sm:$0xff] %v11090_v23 }
 0x2d7   : > { %818 = vrot.lane.b32.xlu0 %v8784_v46, %s8823_s8  ;;  %v8789_v46 = vld [vmem:[%s8877_s29 + $0x218] sm:$0xff]   ;;  %v11103_v50 = vpop.f32.mrf.mxu0 }
 0x2d8   : > { %v927_v33 = vpop.permute.xlu1 %926 }
 0x2d9   : > { %v1249_v63 = vsel %vm1151_vm1, %v1105_v2, %v927_v33  ;;  %v791_v44 = vpop.permute.xlu0 %790 }
 0x2da   : > { %4482 = vrot.lane.b32.xlu1 %v11064_v28, %s8822_s7  ;;  %8263 = vmatprep.mubr.msk.bf16.mxu1 %vm2394_vm2, %v1249_v63  ;;  %v11095_v63 = vpop.f32.mrf.mxu1 }
 0x2db   : > { %4346 = vrot.lane.b32.xlu0 %v11024_v25, %s8823_s8  ;;  %12650 = vst [vmem:[#allocation162_spill] sm:$0xff] %v11095_v63  ;;  %v11137_v63 = vld [vmem:[%s8877_s29 + $0x618] sm:$0xff]  }
 0x2dc   : > { %v4455_v7 = vpop.permute.xlu1 %4454 }
 0x2dd   : > { %v4775_v2 = vsel %vm1151_vm1, %v4620_v5, %v4455_v7  ;;  %v4319_v33 = vpop.permute.xlu0 %4318  ;;  %v1108_v5 = vsel %vm958_vm0, %v10545_v4, %v791_v44  ;;  %v11118_v4 = vld [vmem:[%s8877_s29 + $0x600] sm:$0xff]   ;;  %v11120_v44 = vpop.f32.mrf.mxu0 }
 0x2de   : > { %4484 = vrot.lane.b32.xlu1 %v11080_v51, %s8822_s7  ;;  %8379 = vmatprep.mubr.msk.bf16.mxu0 %vm2394_vm2, %v4775_v2  ;;  %v4623_v12 = vsel %vm958_vm0, %v10540_v35, %v4319_v33  ;;  %v11112_v2 = vpop.f32.mrf.mxu1  ;;  %12653 = vst [vmem:[#allocation165_spill] sm:$0xff] %v11118_v4 }
 0x2df   : > { %956 = vrot.lane.b32.xlu0 %v8789_v46, %s8822_s7  ;;  %v11110_v46 = vld [vmem:[%s8877_s29 + $0x608] sm:$0xff]   ;;  %12652 = vst [vmem:[#allocation164_spill] sm:$0xff] %v11112_v2  ;;  %v11144_v2 = vld [vmem:[%s8877_s29 + $0x610] sm:$0xff]  }
 0x2e0   : > { %v4457_v37 = vpop.permute.xlu1 %4456  ;;  %12651 = vst [vmem:[#allocation163_spill] sm:$0xff] %v11110_v46  ;;  %v11124_v33 = vpop.f32.mrf.mxu1  ;;  %12657 = vst [vmem:[#allocation169_spill] sm:$0xff] %v11144_v2 }
 0x2e1   : > { %v4777_v7 = vsel %vm1151_vm1, %v4623_v12, %v4457_v37  ;;  %v929_v32 = vpop.permute.xlu0 %928  ;;  %12654 = vst [vmem:[#allocation166_spill] sm:$0xff] %v11124_v33  ;;  %v11128_v12 = vpop.f32.mrf.mxu0 }
 0x2e2   : > { %v1251_v23 = vsel %vm1151_vm1, %v1108_v5, %v929_v32  ;;  %4350 = vrot.lane.b32.xlu1 %v11080_v51, %s8823_s8  ;;  %8380 = vmatmul.mubr.msk.bf16.gmra.mxu0 %vm2394_vm2, %v4777_v7  ;;  %12655 = vst [vmem:[#allocation167_spill] sm:$0xff] %v11128_v12  ;;  %v11139_v33 = vpop.f32.mrf.mxu1 }
 0x2e3   : > { %4348 = vrot.lane.b32.xlu0 %v11064_v28, %s8823_s8  ;;  %8264 = vmatmul.mubr.msk.bf16.gmra.mxu1 %vm2394_vm2, %v1251_v23  ;;  %12656 = vst [vmem:[#allocation168_spill] sm:$0xff] %v11139_v33  ;;  %v11146_v12 = vpop.f32.mrf.mxu0 }
 0x2e4   : > { %v4321_v35 = vpop.permute.xlu1 %4320 }
 0x2e5   : > { %v793_v32 = vpop.permute.xlu0 %792  ;;  %v11158_v33 = vpop.f32.mrf.mxu0 }
 0x2e6   : > { %4488 = vrot.lane.b32.xlu1 %v11110_v46, %s8822_s7  ;;  %v1111_v23 = vsel %vm958_vm0, %v10569_v49, %v793_v32  ;;  %v4626_v49 = vsel %vm958_vm0, %v10579_v15, %v4321_v35 }
 0x2e7   : > { %4486 = vrot.lane.b32.xlu0 %v11118_v4, %s8822_s7 }
 0x2e8   : > { %v931_v37 = vpop.permute.xlu1 %930 }
 0x2e9   : > { %v1253_v5 = vsel %vm1151_vm1, %v1111_v23, %v931_v37  ;;  %v795_v7 = vpop.permute.xlu0 %794  ;;  %v11150_v23 = vpop.f32.mrf.mxu1 }
 0x2ea   : > { %4354 = vrot.lane.b32.xlu1 %v11110_v46, %s8823_s8  ;;  %8267 = vmatprep.mubr.msk.bf16.mxu1 %vm2394_vm2, %v1253_v5  ;;  %12658 = vst [vmem:[#allocation170_spill] sm:$0xff] %v11150_v23 }
 0x2eb   : > { %4352 = vrot.lane.b32.xlu0 %v11118_v4, %s8823_s8  ;;  %v11162_v23 = vpop.f32.mrf.mxu1 }
 0x2ec   : > { %v4459_v32 = vpop.permute.xlu1 %4458  ;;  %12659 = vst [vmem:[#allocation171_spill] sm:$0xff] %v11162_v23 }
 0x2ed   : > { %v4779_v37 = vsel %vm1151_vm1, %v4626_v49, %v4459_v32  ;;  %v4323_v5 = vpop.permute.xlu0 %4322  ;;  %v1114_v49 = vsel %vm958_vm0, %v10597_v48, %v795_v7  ;;  %v11180_v48 = vpop.f32.mrf.mxu0 }
 0x2ee   : > { %4492 = vrot.lane.b32.xlu1 %v11137_v63, %s8822_s7  ;;  %8383 = vmatprep.mubr.msk.bf16.mxu0 %vm2394_vm2, %v4779_v37  ;;  %v4629_v15 = vsel %vm958_vm0, %v10592_v31, %v4323_v5  ;;  %v11172_v37 = vld [vmem:[%s8877_s29 + $0x628] sm:$0xff]   ;;  %v11178_v31 = vld [vmem:[%s8877_s29 + $0x620] sm:$0xff]   ;;  %v11182_v5 = vpop.f32.mrf.mxu1 }
 0x2ef   : > { %4490 = vrot.lane.b32.xlu0 %v11144_v2, %s8822_s7  ;;  %12660 = vst [vmem:[#allocation172_spill] sm:$0xff] %v11172_v37  ;;  %12661 = vst [vmem:[#allocation173_spill] sm:$0xff] %v11178_v31 }
 0x2f0   : > { %v4461_v35 = vpop.permute.xlu1 %4460  ;;  %12662 = vst [vmem:[#allocation174_spill] sm:$0xff] %v11182_v5 }
 0x2f1   : > { %v4781_v32 = vsel %vm1151_vm1, %v4629_v15, %v4461_v35  ;;  %v933_v4 = vpop.permute.xlu0 %932  ;;  %v11184_v15 = vpop.f32.mrf.mxu0 }
 0x2f2   : > { %v1255_v46 = vsel %vm1151_vm1, %v1114_v49, %v933_v4  ;;  %4358 = vrot.lane.b32.xlu1 %v11137_v63, %s8823_s8  ;;  %8384 = vmatmul.mubr.msk.bf16.gmra.mxu0 %vm2394_vm2, %v4781_v32  ;;  %12663 = vst [vmem:[#allocation175_spill] sm:$0xff] %v11184_v15  ;;  %v11192_v49 = vpop.f32.mrf.mxu1  ;;  %v11201_v15 = vld [vmem:[%s8877_s29 + $0x638] sm:$0xff]  }
 0x2f3   : > { %4356 = vrot.lane.b32.xlu0 %v11144_v2, %s8823_s8  ;;  %8268 = vmatmul.mubr.msk.bf16.gmra.mxu1 %vm2394_vm2, %v1255_v46  ;;  %12664 = vst [vmem:[#allocation176_spill] sm:$0xff] %v11192_v49  ;;  %v11195_v5 = vpop.f32.mrf.mxu0  ;;  %12665 = vst [vmem:[#allocation177_spill] sm:$0xff] %v11201_v15 }
 0x2f4   : > { %v4325_v7 = vpop.permute.xlu1 %4324  ;;  %v11203_v2 = vpop.f32.mrf.mxu1 }
 0x2f5   : > { %v797_v4 = vpop.permute.xlu0 %796  ;;  %12666 = vst [vmem:[#allocation178_spill] sm:$0xff] %v11203_v2 }
 0x2f6   : > { %4496 = vrot.lane.b32.xlu1 %v11172_v37, %s8822_s7  ;;  %v1117_v46 = vsel %vm958_vm0, %v10626_v8, %v797_v4  ;;  %v11208_v8 = vld [vmem:[%s8877_s29 + $0x630] sm:$0xff]   ;;  %v4632_v4 = vsel %vm958_vm0, %v10638_v13, %v4325_v7 }
 0x2f7   : > { %4494 = vrot.lane.b32.xlu0 %v11178_v31, %s8822_s7  ;;  %12667 = vst [vmem:[#allocation179_spill] sm:$0xff] %v11208_v8 }
 0x2f8   : > { %v935_v35 = vpop.permute.xlu1 %934 }
 0x2f9   : > { %v1257_v32 = vsel %vm1151_vm1, %v1117_v46, %v935_v35  ;;  %v799_v23 = vpop.permute.xlu0 %798 }
 0x2fa   : > { %4362 = vrot.lane.b32.xlu1 %v11172_v37, %s8823_s8  ;;  %8271 = vmatprep.mubr.msk.bf16.mxu1 %vm2394_vm2, %v1257_v32  ;;  %v11213_v37 = vpop.f32.mrf.mxu0  ;;  %v11218_v32 = vpop.f32.mrf.mxu1 }
 0x2fb   : > { %4360 = vrot.lane.b32.xlu0 %v11178_v31, %s8823_s8  ;;  %12668 = vst [vmem:[#allocation180_spill] sm:$0xff] %v11213_v37  ;;  %12669 = vst [vmem:[#allocation181_spill] sm:$0xff] %v11218_v32  ;;  %v8798_v32 = vld [vmem:[%s8877_s29 + $0x648] sm:$0xff]  }
 0x2fc   : > { %v4463_v46 = vpop.permute.xlu1 %4462  ;;  %v11227_v31 = vpop.f32.mrf.mxu0 }
 0x2fd   : > { %v4783_v35 = vsel %vm1151_vm1, %v4632_v4, %v4463_v46  ;;  %v4327_v49 = vpop.permute.xlu0 %4326  ;;  %v1120_v4 = vsel %vm958_vm0, %v10660_v59, %v799_v23  ;;  %v11234_v37 = vpop.f32.mrf.mxu1 }
 0x2fe   : > { %4500 = vrot.lane.b32.xlu1 %v11201_v15, %s8822_s7  ;;  %8387 = vmatprep.mubr.msk.bf16.mxu0 %vm2394_vm2, %v4783_v35  ;;  %v4635_v13 = vsel %vm958_vm0, %v10655_v45, %v4327_v49  ;;  %12670 = vst [vmem:[#allocation182_spill] sm:$0xff] %v11234_v37  ;;  %v8799_v45 = vld [vmem:[%s8877_s29 + $0x640] sm:$0xff]   ;;  %v11240_v59 = vpop.f32.mrf.mxu0 }
 0x2ff   : > { %4498 = vrot.lane.b32.xlu0 %v11208_v8, %s8822_s7  ;;  %12671 = vst [vmem:[#allocation183_spill] sm:$0xff] %v11240_v59  ;;  %v11243_v49 = vpop.f32.mrf.mxu1 }
 0x300   : > { %v4465_v7 = vpop.permute.xlu1 %4464  ;;  %12672 = vst [vmem:[#allocation184_spill] sm:$0xff] %v11243_v49  ;;  %v8801_v49 = vld [vmem:[%s8877_s29 + $0x650] sm:$0xff]  }
 0x301   : > { %v4785_v46 = vsel %vm1151_vm1, %v4635_v13, %v4465_v7  ;;  %v937_v2 = vpop.permute.xlu0 %936  ;;  %v11246_v13 = vpop.f32.mrf.mxu0 }
 0x302   : > { %v1259_v35 = vsel %vm1151_vm1, %v1120_v4, %v937_v2  ;;  %4366 = vrot.lane.b32.xlu1 %v11201_v15, %s8823_s8  ;;  %8388 = vmatmul.mubr.msk.bf16.gmra.mxu0 %vm2394_vm2, %v4785_v46  ;;  %v11250_v46 = vpop.f32.mrf.mxu1 }
 0x303   : > { %4364 = vrot.lane.b32.xlu0 %v11208_v8, %s8823_s8  ;;  %8272 = vmatmul.mubr.msk.bf16.gmra.mxu1 %vm2394_vm2, %v1259_v35  ;;  %12673 = vst [vmem:[#allocation185_spill] sm:$0xff] %v11250_v46  ;;  %v8800_v8 = vld [vmem:[%s8877_s29 + $0x658] sm:$0xff]   ;;  %v11258_v15 = vpop.f32.mrf.mxu0 }
 0x304   : > { %v4329_v23 = vpop.permute.xlu1 %4328 }
 0x305   : > { %v801_v2 = vpop.permute.xlu0 %800  ;;  %v4638_v59 = vsel %vm958_vm0, %v10700_v18, %v4329_v23 }
 0x306   : > { %4504 = vrot.lane.b32.xlu1 %v8798_v32, %s8822_s7  ;;  %v1123_v7 = vsel %vm958_vm0, %v10688_v21, %v801_v2  ;;  %v11262_v2 = vpop.f32.mrf.mxu1 }
 0x307   : > { %4502 = vrot.lane.b32.xlu0 %v8799_v45, %s8822_s7  ;;  %12674 = vst [vmem:[#allocation186_spill] sm:$0xff] %v11262_v2 }
 0x308   : > { %v939_v4 = vpop.permute.xlu1 %938 }
 0x309   : > { %v1261_v35 = vsel %vm1151_vm1, %v1123_v7, %v939_v4  ;;  %v803_v37 = vpop.permute.xlu0 %802 }
 0x30a   : > { %4370 = vrot.lane.b32.xlu1 %v8798_v32, %s8823_s8  ;;  %8275 = vmatprep.mubr.msk.bf16.mxu1 %vm2394_vm2, %v1261_v35  ;;  %v11268_v32 = vpop.f32.mrf.mxu0  ;;  %v11272_v35 = vpop.f32.mrf.mxu1  ;;  %v1126_v18 = vsel %vm958_vm0, %v10722_v11, %v803_v37 }
 0x30b   : > { %4368 = vrot.lane.b32.xlu0 %v8799_v45, %s8823_s8  ;;  %12675 = vst [vmem:[#allocation187_spill] sm:$0xff] %v11272_v35 }
 0x30c   : > { %v4467_v21 = vpop.permute.xlu1 %4466 }
 0x30d   : > { %v4787_v46 = vsel %vm1151_vm1, %v4638_v59, %v4467_v21  ;;  %v4331_v7 = vpop.permute.xlu0 %4330  ;;  %v11277_v21 = vpop.f32.mrf.mxu0 }
 0x30e   : > { %4508 = vrot.lane.b32.xlu1 %v8800_v8, %s8822_s7  ;;  %8391 = vmatprep.mubr.msk.bf16.mxu0 %vm2394_vm2, %v4787_v46  ;;  %v4641_v45 = vsel %vm958_vm0, %v10715_v42, %v4331_v7  ;;  %v11282_v46 = vpop.f32.mrf.mxu1 }
 0x30f   : > { %4506 = vrot.lane.b32.xlu0 %v8801_v49, %s8822_s7  ;;  %12676 = vst [vmem:[#allocation188_spill] sm:$0xff] %v11282_v46  ;;  %v11284_v7 = vpop.f32.mrf.mxu0 }
 0x310   : > { %v4469_v4 = vpop.permute.xlu1 %4468  ;;  %v11286_v35 = vpop.f32.mrf.mxu1 }
 0x311   : > { %v4789_v59 = vsel %vm1151_vm1, %v4641_v45, %v4469_v4  ;;  %v941_v23 = vpop.permute.xlu0 %940  ;;  %12677 = vst [vmem:[#allocation189_spill] sm:$0xff] %v11286_v35 }
 0x312   : > { %v1263_v8 = vsel %vm1151_vm1, %v1126_v18, %v941_v23  ;;  %8392 = vmatmul.mubr.msk.bf16.gmra.mxu0 %vm2394_vm2, %v4789_v59  ;;  %v11291_v18 = vpop.f32.mrf.mxu0  ;;  %v11294_v59 = vpop.f32.mrf.mxu1 }
 0x313   : > { %8276 = vmatmul.mubr.msk.bf16.gmra.mxu1 %vm2394_vm2, %v1263_v8  ;;  %12678 = vst [vmem:[#allocation190_spill] sm:$0xff] %v11294_v59 }
 0x314   : > { %v4333_v49 = vpop.permute.xlu1 %4332  ;;  %v11299_v46 = vpop.f32.mrf.mxu0 }
 0x315   : > { %v805_v42 = vpop.permute.xlu0 %804  ;;  %v4644_v23 = vsel %vm958_vm0, %v10764_v14, %v4333_v49 }
 0x316   : > { %v1129_v11 = vsel %vm958_vm0, %v10750_v26, %v805_v42  ;;  %v11302_v26 = vpop.f32.mrf.mxu1  ;;  %v11304_v42 = vpop.f32.mrf.mxu0 }
 0x317   : > { %12679 = vst [vmem:[#allocation191_spill] sm:$0xff] %v11302_v26  ;;  %12680 = vst [vmem:[#allocation192_spill] sm:$0xff] %v11304_v42 }
 0x318   : > { %v943_v37 = vpop.permute.xlu1 %942 }
 0x319   : > { %v1265_v45 = vsel %vm1151_vm1, %v1129_v11, %v943_v37  ;;  %v807_v4 = vpop.permute.xlu0 %806 }
 0x31a   : > { %8279 = vmatprep.mubr.msk.bf16.mxu1 %vm2394_vm2, %v1265_v45  ;;  %v1132_v45 = vsel %vm958_vm0, %v10786_v20, %v807_v4 }
 0x31c   : > { %v4471_v8 = vpop.permute.xlu1 %4470 }
 0x31d   : > { %v4791_v2 = vsel %vm1151_vm1, %v4644_v23, %v4471_v8  ;;  %v4335_v35 = vpop.permute.xlu0 %4334  ;;  %v11313_v8 = vpop.f32.mrf.mxu1 }
 0x31e   : > { %8395 = vmatprep.mubr.msk.bf16.mxu0 %vm2394_vm2, %v4791_v2  ;;  %v4647_v11 = vsel %vm958_vm0, %v10779_v36, %v4335_v35  ;;  %12681 = vst [vmem:[#allocation193_spill] sm:$0xff] %v11313_v8  ;;  %v11316_v2 = vpop.f32.mrf.mxu0 }
 0x31f   : > { %v11318_v59 = vpop.f32.mrf.mxu1 }
 0x320   : > { %v4473_v37 = vpop.permute.xlu1 %4472  ;;  %12682 = vst [vmem:[#allocation194_spill] sm:$0xff] %v11318_v59  ;;  %v11320_v35 = vpop.f32.mrf.mxu0 }
 0x321   : > { %v4793_v14 = vsel %vm1151_vm1, %v4647_v11, %v4473_v37  ;;  %v945_v49 = vpop.permute.xlu0 %944  ;;  %v11324_v11 = vpop.f32.mrf.mxu1 }
 0x322   : > { %v1267_v23 = vsel %vm1151_vm1, %v1132_v45, %v945_v49  ;;  %8396 = vmatmul.mubr.msk.bf16.gmra.mxu0 %vm2394_vm2, %v4793_v14  ;;  %12683 = vst [vmem:[#allocation195_spill] sm:$0xff] %v11324_v11  ;;  %v11328_v14 = vpop.f32.mrf.mxu0 }
 0x323   : > { %8280 = vmatmul.mubr.msk.bf16.gmra.mxu1 %vm2394_vm2, %v1267_v23  ;;  %v11332_v59 = vpop.f32.mrf.mxu1 }
 0x324   : > { %v4337_v26 = vpop.permute.xlu1 %4336  ;;  %12684 = vst [vmem:[#allocation196_spill] sm:$0xff] %v11332_v59 }
 0x325   : > { %v809_v36 = vpop.permute.xlu0 %808  ;;  %v4650_v49 = vsel %vm958_vm0, %v10824_v54, %v4337_v26 }
 0x326   : > { %v1135_v20 = vsel %vm958_vm0, %v10812_v52, %v809_v36  ;;  %v11335_v52 = vpop.f32.mrf.mxu0 }
 0x328   : > { %v947_v4 = vpop.permute.xlu1 %946  ;;  %v11345_v59 = vpop.f32.mrf.mxu0 }
 0x329   : > { %v1269_v37 = vsel %vm1151_vm1, %v1135_v20, %v947_v4  ;;  %v811_v45 = vpop.permute.xlu0 %810  ;;  %v11340_v4 = vpop.f32.mrf.mxu1 }
 0x32a   : > { %8283 = vmatprep.mubr.msk.bf16.mxu1 %vm2394_vm2, %v1269_v37  ;;  %12685 = vst [vmem:[#allocation197_spill] sm:$0xff] %v11340_v4  ;;  %v1138_v37 = vsel %vm958_vm0, %v10846_v47, %v811_v45 }
 0x32c   : > { %v4475_v23 = vpop.permute.xlu1 %4474 }
 0x32d   : > { %v4795_v8 = vsel %vm1151_vm1, %v4650_v49, %v4475_v23  ;;  %v4339_v42 = vpop.permute.xlu0 %4338  ;;  %v11349_v23 = vpop.f32.mrf.mxu1 }
 0x32e   : > { %8399 = vmatprep.mubr.msk.bf16.mxu0 %vm2394_vm2, %v4795_v8  ;;  %v4653_v36 = vsel %vm958_vm0, %v10841_v19, %v4339_v42  ;;  %12686 = vst [vmem:[#allocation198_spill] sm:$0xff] %v11349_v23  ;;  %v11352_v8 = vpop.f32.mrf.mxu0 }
 0x32f   : > { %v11354_v11 = vpop.f32.mrf.mxu1 }
 0x330   : > { %v4477_v20 = vpop.permute.xlu1 %4476  ;;  %12687 = vst [vmem:[#allocation199_spill] sm:$0xff] %v11354_v11 }
 0x331   : > { %v4797_v54 = vsel %vm1151_vm1, %v4653_v36, %v4477_v20  ;;  %v949_v26 = vpop.permute.xlu0 %948 }
 0x332   : > { %v1271_v49 = vsel %vm1151_vm1, %v1138_v37, %v949_v26  ;;  %8400 = vmatmul.mubr.msk.bf16.gmra.mxu0 %vm2394_vm2, %v4797_v54  ;;  %v11359_v37 = vpop.f32.mrf.mxu0  ;;  %v11362_v54 = vpop.f32.mrf.mxu1 }
 0x333   : > { %8284 = vmatmul.mubr.msk.bf16.gmra.mxu1 %vm2394_vm2, %v1271_v49  ;;  %12688 = vst [vmem:[#allocation200_spill] sm:$0xff] %v11362_v54 }
 0x334   : > { %v4341_v19 = vpop.permute.xlu1 %4340  ;;  %v11364_v26 = vpop.f32.mrf.mxu0 }
 0x335   : > { %v813_v42 = vpop.permute.xlu0 %812  ;;  %v4656_v49 = vsel %vm958_vm0, %v10888_v38, %v4341_v19 }
 0x336   : > { %v1141_v47 = vsel %vm958_vm0, %v10876_v39, %v813_v42  ;;  %v11370_v39 = vpop.f32.mrf.mxu1  ;;  %v11372_v42 = vpop.f32.mrf.mxu0 }
 0x338   : > { %v951_v45 = vpop.permute.xlu1 %950 }
 0x339   : > { %v1273_v36 = vsel %vm1151_vm1, %v1141_v47, %v951_v45  ;;  %v815_v20 = vpop.permute.xlu0 %814 }
 0x33a   : > { %8287 = vmatprep.mubr.msk.bf16.mxu1 %vm2394_vm2, %v1273_v36  ;;  %v11376_v36 = vpop.f32.mrf.mxu1  ;;  %v1144_v54 = vsel %vm958_vm0, %v10910_v62, %v815_v20  ;;  %v3267_v62 = vadd.f32 %v10633_v22, %v9646_v27 }
 0x33b   : > { %12689 = vst [vmem:[#allocation201_spill] sm:$0xff] %v11376_v36 }
 0x33c   : > { %v4479_v23 = vpop.permute.xlu1 %4478 }
 0x33d   : > { %v4799_v11 = vsel %vm1151_vm1, %v4656_v49, %v4479_v23  ;;  %v4343_v4 = vpop.permute.xlu0 %4342  ;;  %v11386_v49 = vpop.f32.mrf.mxu0 }
 0x33e   : > { %8403 = vmatprep.mubr.msk.bf16.mxu0 %vm2394_vm2, %v4799_v11  ;;  %v4659_v47 = vsel %vm958_vm0, %v10903_v9, %v4343_v4  ;;  %v3270_v11 = vadd.f32 %v10664_v34, %v9660_v29  ;;  %v11388_v4 = vpop.f32.mrf.mxu1  ;;  %v11401_v29 = vld [vmem:[%s12477_s2] ss:$0 sm:$0xff] }
 0x33f   : > { %12690 = vst [vmem:[#allocation202_spill] sm:$0xff] %v11388_v4 }
 0x340   : > { %v4481_v45 = vpop.permute.xlu1 %4480  ;;  %v5553_v20 = vadd.f32 %v10972_v57, %v3270_v11  ;;  %v11403_v34 = vpop.f32.mrf.mxu1 }
 0x341   : > { %v4801_v38 = vsel %vm1151_vm1, %v4659_v47, %v4481_v45  ;;  %v953_v19 = vpop.permute.xlu0 %952  ;;  %v11394_v47 = vpop.f32.mrf.mxu0  ;;  %12691 = vst [vmem:[#allocation203_spill] sm:$0xff] %v11403_v34 }
 0x342   : > { %v1275_v23 = vsel %vm1151_vm1, %v1144_v54, %v953_v19  ;;  %8404 = vmatmul.mubr.msk.bf16.gmra.mxu0 %vm2394_vm2, %v4801_v38  ;;  %v5552_v54 = vadd.f32 %v10943_v0, %v3267_v62  ;;  %v5688_v22 = vadd.f32 %v11401_v29, %v5553_v20  ;;  %v3286_v0 = vadd.f32 %v10717_v58, %v9687_v61 }
 0x343   : > { %8288 = vmatmul.mubr.msk.bf16.gmra.mxu1 %vm2394_vm2, %v1275_v23  ;;  %v11407_v57 = vpop.f32.mrf.mxu0  ;;  %v3275_v62 = vadd.f32 %v10616_v53, %v9643_v24 }
 0x344   : > { %v4345_v9 = vpop.permute.xlu1 %4344  ;;  %v5816_v61 = vmax.f32 %v5688_v22, 0.0  ;;  %v5557_v58 = vadd.f32 %v11018_v17, %v3286_v0 }
 0x345   : > { %v817_v36 = vpop.permute.xlu0 %816  ;;  %v4662_v23 = vsel %vm958_vm0, %v10950_v43, %v4345_v9  ;;  %v5554_v43 = vadd.f32 %v10924_v3, %v3275_v62 }
 0x346   : > { %v1147_v45 = vsel %vm958_vm0, %v10936_v16, %v817_v36  ;;  %v3278_v16 = vadd.f32 %v10646_v10, %v9654_v55  ;;  %v5687_v36 = vadd.f32 %v11401_v29, %v5552_v54  ;;  %v3283_v55 = vadd.f32 %v10690_v41, %v9674_v6  ;;  %v11426_v10 = vpop.f32.mrf.mxu0  ;;  %v12694_v54 = vld [vmem:[#allocation144_spill] sm:$0xff]  ;;  %v12695_v41 = vld [vmem:[#allocation145_spill] sm:$0xff] }
 0x347   : > { %v5692_v3 = vadd.f32 %v11401_v29, %v5557_v58 }
 0x348   : > { %v955_v38 = vpop.permute.xlu1 %954  ;;  %v5555_v20 = vadd.f32 %v10954_v30, %v3278_v16  ;;  %v5815_v53 = vmax.f32 %v5687_v36, 0.0  ;;  %v12693_v30 = vld [vmem:[#allocation149_spill] sm:$0xff]  ;;  %v11440_v62 = vpop.f32.mrf.mxu0 }
 0x349   : > { %v1277_v19 = vsel %vm1151_vm1, %v1147_v45, %v955_v38  ;;  %v819_v27 = vpop.permute.xlu0 %818  ;;  %v11420_v45 = vpop.f32.mrf.mxu1  ;;  %v5556_v9 = vadd.f32 %v12693_v30, %v3283_v55 }
 0x34a   : > { %8291 = vmatprep.mubr.msk.bf16.mxu1 %vm2394_vm2, %v1277_v19  ;;  %v5690_v6 = vadd.f32 %v11401_v29, %v5555_v20  ;;  %v1150_v17 = vsel %vm958_vm0, %v12695_v41, %v819_v27  ;;  %v5689_v20 = vadd.f32 %v11401_v29, %v5554_v43  ;;  %v12699_v27 = vld [vmem:[#allocation7_spill] sm:$0xff]  ;;  %v12704_v43 = vld [vmem:[#allocation5_spill] sm:$0xff]  ;;  %v11460_v34 = vpop.f32.mrf.mxu0 }
 0x34b   : > { %v11430_v24 = vpop.f32.mrf.mxu1  ;;  %v5691_v58 = vadd.f32 %v11401_v29, %v5556_v9  ;;  %v12706_v9 = vld [vmem:[#allocation147_spill] sm:$0xff] }
 0x34c   : > { %v4483_v11 = vpop.permute.xlu1 %4482  ;;  %12692 = vst [vmem:[#allocation204_spill] sm:$0xff] %v11430_v24 }
 0x34d   : > { %v4803_v38 = vsel %vm1151_vm1, %v4662_v23, %v4483_v11  ;;  %v4347_v19 = vpop.permute.xlu0 %4346  ;;  %v5943_v11 = vpack.c.bf16 %v5816_v61, %v5815_v53  ;;  %v11447_v30 = vpop.f32.mrf.mxu1  ;;  %v5819_v4 = vmax.f32 %v5691_v58, 0.0 }
 0x34e   : > { %8407 = vmatprep.mubr.msk.bf16.mxu0 %vm2394_vm2, %v4803_v38  ;;  %v4665_v16 = vsel %vm958_vm0, %v12694_v54, %v4347_v19  ;;  %v12696_v38 = vld [vmem:[#allocation3_spill] sm:$0xff]  ;;  %v12697_v19 = vld [vmem:[#allocation109_spill] sm:$0xff]  ;;  %12698 = vst [vmem:[#allocation149_spill] sm:$0xff] %v11447_v30  ;;  %v12700_v54 = vld [vmem:[#allocation118_spill] sm:$0xff]  ;;  %v5820_v30 = vmax.f32 %v5692_v3, 0.0 }
 0x34f   : > { %v3294_v55 = vadd.f32 %v12697_v19, %v12696_v38  ;;  %v3302_v61 = vadd.f32 %v12700_v54, %v12699_v27  ;;  %v12705_v19 = vld [vmem:[#allocation114_spill] sm:$0xff]  ;;  %v5817_v27 = vmax.f32 %v5689_v20, 0.0 }
 0x350   : > { %v4485_v23 = vpop.permute.xlu1 %4484  ;;  %v3299_v24 = vadd.f32 %v12705_v19, %v12704_v43  ;;  %v12709_v43 = vld [vmem:[#allocation116_spill] sm:$0xff] }
 0x351   : > { %v4805_v22 = vsel %vm1151_vm1, %v4665_v16, %v4485_v23  ;;  %v957_v0 = vpop.permute.xlu0 %956  ;;  %v12701_v16 = vld [vmem:[#allocation2_spill] sm:$0xff] }
 0x352   : > { %v1279_v36 = vsel %vm1151_vm1, %v1150_v17, %v957_v0  ;;  %8408 = vmatmul.mubr.msk.bf16.gmra.mxu0 %vm2394_vm2, %v4805_v22  ;;  %v12702_v23 = vld [vmem:[#allocation106_spill] sm:$0xff]  ;;  %v5818_v17 = vmax.f32 %v5690_v6, 0.0  ;;  %v12703_v22 = vld [vmem:[#allocation151_spill] sm:$0xff]  ;;  %v11466_v6 = vpop.f32.mrf.mxu0 }
 0x353   : > { %8292 = vmatmul.mubr.msk.bf16.gmra.mxu1 %vm2394_vm2, %v1279_v36  ;;  %v3291_v41 = vadd.f32 %v12702_v23, %v12701_v16  ;;  %v5559_v0 = vadd.f32 %v12703_v22, %v3294_v55  ;;  %v5561_v36 = vadd.f32 %v11067_v1, %v3302_v61  ;;  %v5560_v16 = vadd.f32 %v11042_v56, %v3299_v24  ;;  %v12708_v24 = vld [vmem:[#allocation6_spill] sm:$0xff] }
 0x354   : > { %8439 = vmatprep.mubr.msk.bf16.mxu1 %vm958_vm0, %v5943_v11  ;;  %v4351_v53 = vpop.permute.xlu1 %4350  ;;  %v11463_v11 = vpop.f32.mrf.mxu1  ;;  %v5944_v22 = vpack.c.bf16 %v5818_v17, %v5817_v27  ;;  %v3310_v19 = vadd.f32 %v12709_v43, %v12708_v24  ;;  %v12712_v17 = vld [vmem:[#allocation126_spill] sm:$0xff]  ;;  %v12714_v27 = vld [vmem:[#allocation112_spill] sm:$0xff] }
 0x355   : > { %v4349_v38 = vpop.permute.xlu0 %4348  ;;  %v5558_v54 = vadd.f32 %v12706_v9, %v3291_v41  ;;  %12707 = vst [vmem:[#allocation144_spill] sm:$0xff] %v11463_v11  ;;  %v4671_v55 = vsel %vm958_vm0, %v11024_v25, %v4351_v53  ;;  %v5694_v3 = vadd.f32 %v11401_v29, %v5559_v0  ;;  %v5945_v41 = vpack.c.bf16 %v5820_v30, %v5819_v4  ;;  %v11486_v30 = vpop.f32.mrf.mxu0 }
 0x356   : > { %v4668_v1 = vsel %vm958_vm0, %v11009_v40, %v4349_v38  ;;  %v5696_v58 = vadd.f32 %v11401_v29, %v5561_v36  ;;  %v11479_v53 = vpop.f32.mrf.mxu1  ;;  %v12711_v40 = vld [vmem:[#allocation11_spill] sm:$0xff]  ;;  %v5695_v4 = vadd.f32 %v11401_v29, %v5560_v16  ;;  %v12713_v36 = vld [vmem:[#allocation4_spill] sm:$0xff] }
 0x357   : > { %v5693_v25 = vadd.f32 %v11401_v29, %v5558_v54  ;;  %12710 = vst [vmem:[#allocation145_spill] sm:$0xff] %v11479_v53  ;;  %v3318_v0 = vadd.f32 %v12712_v17, %v12711_v40  ;;  %v3307_v9 = vadd.f32 %v12714_v27, %v12713_v36  ;;  %v5822_v54 = vmax.f32 %v5694_v3, 0.0  ;;  %v12718_v17 = vld [vmem:[#allocation161_spill] sm:$0xff]  ;;  %v11500_v53 = vpop.f32.mrf.mxu0 }
 0x358   : > { %v4489_v23 = vpop.permute.xlu1 %4488  ;;  %v5824_v16 = vmax.f32 %v5696_v58, 0.0 }
 0x359   : > { %v4809_v20 = vsel %vm1151_vm1, %v4671_v55, %v4489_v23  ;;  %v4487_v61 = vpop.permute.xlu0 %4486  ;;  %v5563_v55 = vadd.f32 %v11058_v60, %v3310_v19  ;;  %v11493_v23 = vpop.f32.mrf.mxu1  ;;  %v5565_v24 = vadd.f32 %v11120_v44, %v3318_v0  ;;  %v5821_v43 = vmax.f32 %v5693_v25, 0.0 }
 0x35a   : > { %v4807_v56 = vsel %vm1151_vm1, %v4668_v1, %v4487_v61  ;;  %v12715_v1 = vld [vmem:[#allocation9_spill] sm:$0xff]  ;;  %v12716_v61 = vld [vmem:[#allocation122_spill] sm:$0xff] }
 0x35b   : > { %8411 = vmatprep.mubr.msk.bf16.mxu0 %vm2394_vm2, %v4807_v56  ;;  %8440 = vmatmul.mubr.msk.bf16.vlgmr.msra.gmra.mxu1 %vm958_vm0, %v5944_v22  ;;  %v3315_v56 = vadd.f32 %v12716_v61, %v12715_v1  ;;  %v5946_v19 = vpack.c.bf16 %v5822_v54, %v5821_v43  ;;  %v5698_v36 = vadd.f32 %v11401_v29, %v5563_v55  ;;  %v11505_v27 = vpop.f32.mrf.mxu1  ;;  %v12719_v1 = vld [vmem:[#allocation10_spill] sm:$0xff]  ;;  %v12720_v61 = vld [vmem:[#allocation124_spill] sm:$0xff]  ;;  %v12721_v54 = vld [vmem:[#allocation15_spill] sm:$0xff] }
 0x35c   : > { %8412 = vmatmul.mubr.msk.bf16.gmra.mxu0 %vm2394_vm2, %v4809_v20  ;;  %8443 = vmatprep.mubr.msk.bf16.mxu1 %vm958_vm0, %v5945_v41  ;;  %v4355_v38 = vpop.permute.xlu1 %4354  ;;  %v12717_v20 = vld [vmem:[#allocation154_spill] sm:$0xff]  ;;  %v5823_v41 = vmax.f32 %v5695_v4, 0.0  ;;  %v5700_v4 = vadd.f32 %v11401_v29, %v5565_v24  ;;  %v12723_v24 = vld [vmem:[#allocation8_spill] sm:$0xff] }
 0x35d   : > { %v4353_v22 = vpop.permute.xlu0 %4352  ;;  %v5562_v40 = vadd.f32 %v12717_v20, %v3307_v9  ;;  %v5564_v11 = vadd.f32 %v12718_v17, %v3315_v56  ;;  %v4677_v60 = vsel %vm958_vm0, %v11080_v51, %v4355_v38  ;;  %v3326_v51 = vadd.f32 %v12720_v61, %v12719_v1  ;;  %v12722_v55 = vld [vmem:[#allocation134_spill] sm:$0xff]  ;;  %v11520_v56 = vpop.f32.mrf.mxu0  ;;  %v12724_v43 = vld [vmem:[#allocation120_spill] sm:$0xff] }
 0x35e   : > { %v4674_v44 = vsel %vm958_vm0, %v11064_v28, %v4353_v22  ;;  %v5947_v0 = vpack.c.bf16 %v5824_v16, %v5823_v41  ;;  %v3334_v28 = vadd.f32 %v12722_v55, %v12721_v54  ;;  %v3323_v20 = vadd.f32 %v12724_v43, %v12723_v24  ;;  %v11527_v17 = vpop.f32.mrf.mxu1 }
 0x35f   : > { %v5697_v38 = vadd.f32 %v11401_v29, %v5562_v40  ;;  %v5699_v22 = vadd.f32 %v11401_v29, %v5564_v11  ;;  %v5826_v40 = vmax.f32 %v5698_v36, 0.0  ;;  %v5567_v41 = vadd.f32 %v11103_v50, %v3326_v51  ;;  %v12728_v36 = vld [vmem:[#allocation163_spill] sm:$0xff] }
 0x360   : > { %v4493_v3 = vpop.permute.xlu1 %4492  ;;  %v5828_v11 = vmax.f32 %v5700_v4, 0.0  ;;  %v11539_v43 = vpop.f32.mrf.mxu1  ;;  %v12729_v4 = vld [vmem:[#allocation165_spill] sm:$0xff] }
 0x361   : > { %v4813_v58 = vsel %vm1151_vm1, %v4677_v60, %v4493_v3  ;;  %v4491_v25 = vpop.permute.xlu0 %4490  ;;  %v12725_v3 = vld [vmem:[#allocation13_spill] sm:$0xff]  ;;  %v5827_v61 = vmax.f32 %v5699_v22, 0.0  ;;  %v5702_v24 = vadd.f32 %v11401_v29, %v5567_v41 }
 0x362   : > { %v4811_v9 = vsel %vm1151_vm1, %v4674_v44, %v4491_v25  ;;  %v5569_v25 = vadd.f32 %v11180_v48, %v3334_v28 }
 0x363   : > { %8415 = vmatprep.mubr.msk.bf16.mxu0 %vm2394_vm2, %v4811_v9  ;;  %8444 = vmatmul.mubr.msk.bf16.gmra.mxu1 %vm958_vm0, %v5946_v19  ;;  %v12726_v19 = vld [vmem:[#allocation130_spill] sm:$0xff]  ;;  %v11532_v9 = vpop.f32.mrf.mxu0 }
 0x364   : > { %8416 = vmatmul.mubr.msk.bf16.gmra.mxu0 %vm2394_vm2, %v4813_v58  ;;  %8447 = vmatprep.mubr.msk.bf16.mxu1 %vm958_vm0, %v5947_v0  ;;  %v4359_v16 = vpop.permute.xlu1 %4358  ;;  %v3331_v44 = vadd.f32 %v12726_v19, %v12725_v3  ;;  %v5825_v58 = vmax.f32 %v5697_v38, 0.0  ;;  %v12727_v0 = vld [vmem:[#allocation159_spill] sm:$0xff]  ;;  %v5949_v3 = vpack.c.bf16 %v5828_v11, %v5827_v61  ;;  %v5704_v22 = vadd.f32 %v11401_v29, %v5569_v25  ;;  %v12731_v19 = vld [vmem:[#allocation132_spill] sm:$0xff] }
 0x365   : > { %v4357_v60 = vpop.permute.xlu0 %4356  ;;  %v5566_v1 = vadd.f32 %v12727_v0, %v3323_v20  ;;  %v4683_v50 = vsel %vm958_vm0, %v12728_v36, %v4359_v16  ;;  %v11545_v20 = vpop.f32.mrf.mxu0  ;;  %v12730_v16 = vld [vmem:[#allocation14_spill] sm:$0xff]  ;;  %v12735_v61 = vld [vmem:[#allocation12_spill] sm:$0xff] }
 0x366   : > { %v5568_v54 = vadd.f32 %v11146_v12, %v3331_v44  ;;  %v5948_v55 = vpack.c.bf16 %v5826_v40, %v5825_v58  ;;  %v4680_v48 = vsel %vm958_vm0, %v12729_v4, %v4357_v60  ;;  %v3342_v40 = vadd.f32 %v12731_v19, %v12730_v16  ;;  %v11551_v44 = vpop.f32.mrf.mxu1  ;;  %v12733_v60 = vld [vmem:[#allocation19_spill] sm:$0xff]  ;;  %v12734_v58 = vld [vmem:[#allocation141_spill] sm:$0xff]  ;;  %v12736_v36 = vld [vmem:[#allocation128_spill] sm:$0xff] }
 0x367   : > { %v5701_v41 = vadd.f32 %v11401_v29, %v5566_v1  ;;  %12732 = vst [vmem:[#allocation3_spill] sm:$0xff] %v11551_v44  ;;  %v3350_v11 = vadd.f32 %v12734_v58, %v12733_v60  ;;  %v5830_v1 = vmax.f32 %v5702_v24, 0.0  ;;  %v11566_v19 = vpop.f32.mrf.mxu0 }
 0x368   : > { %v4497_v51 = vpop.permute.xlu1 %4496  ;;  %v5703_v25 = vadd.f32 %v11401_v29, %v5568_v54 }
 0x369   : > { %v4817_v28 = vsel %vm1151_vm1, %v4683_v50, %v4497_v51  ;;  %v4495_v38 = vpop.permute.xlu0 %4494  ;;  %v3339_v50 = vadd.f32 %v12736_v36, %v12735_v61  ;;  %v5571_v51 = vadd.f32 %v11158_v33, %v3342_v40  ;;  %v5573_v16 = vadd.f32 %v11227_v31, %v3350_v11 }
 0x36a   : > { %v4815_v12 = vsel %vm1151_vm1, %v4680_v48, %v4495_v38  ;;  %v12737_v48 = vld [vmem:[#allocation17_spill] sm:$0xff]  ;;  %v12738_v38 = vld [vmem:[#allocation138_spill] sm:$0xff]  ;;  %v5829_v54 = vmax.f32 %v5701_v41, 0.0  ;;  %v5831_v58 = vmax.f32 %v5703_v25, 0.0 }
 0x36b   : > { %8419 = vmatprep.mubr.msk.bf16.mxu0 %vm2394_vm2, %v4815_v12  ;;  %8448 = vmatmul.mubr.msk.bf16.gmra.mxu1 %vm958_vm0, %v5948_v55  ;;  %v3347_v55 = vadd.f32 %v12738_v38, %v12737_v48  ;;  %v5832_v12 = vmax.f32 %v5704_v22, 0.0  ;;  %v5706_v36 = vadd.f32 %v11401_v29, %v5571_v51  ;;  %v12741_v22 = vld [vmem:[#allocation169_spill] sm:$0xff]  ;;  %v11579_v38 = vpop.f32.mrf.mxu0  ;;  %v12742_v25 = vld [vmem:[#allocation18_spill] sm:$0xff]  ;;  %v12745_v51 = vld [vmem:[#allocation23_spill] sm:$0xff] }
 0x36c   : > { %8420 = vmatmul.mubr.msk.bf16.gmra.mxu0 %vm2394_vm2, %v4817_v28  ;;  %8451 = vmatprep.mubr.msk.bf16.mxu1 %vm958_vm0, %v5949_v3  ;;  %v4363_v0 = vpop.permute.xlu1 %4362  ;;  %v12739_v28 = vld [vmem:[#allocation167_spill] sm:$0xff]  ;;  %v11569_v3 = vpop.f32.mrf.mxu1  ;;  %v5950_v40 = vpack.c.bf16 %v5830_v1, %v5829_v54 }
 0x36d   : > { %v4361_v4 = vpop.permute.xlu0 %4360  ;;  %v5570_v60 = vadd.f32 %v12739_v28, %v3339_v50  ;;  %12740 = vst [vmem:[#allocation109_spill] sm:$0xff] %v11569_v3  ;;  %v5572_v61 = vadd.f32 %v11195_v5, %v3347_v55  ;;  %v4689_v33 = vsel %vm958_vm0, %v11137_v63, %v4363_v0  ;;  %v5951_v48 = vpack.c.bf16 %v5832_v12, %v5831_v58  ;;  %v12743_v55 = vld [vmem:[#allocation140_spill] sm:$0xff]  ;;  %v11592_v54 = vpop.f32.mrf.mxu0 }
 0x36e   : > { %v4686_v31 = vsel %vm958_vm0, %v12741_v22, %v4361_v4  ;;  %v5708_v50 = vadd.f32 %v11401_v29, %v5573_v16  ;;  %v3358_v63 = vadd.f32 %v12743_v55, %v12742_v25  ;;  %v11585_v1 = vpop.f32.mrf.mxu1  ;;  %v12746_v4 = vld [vmem:[#allocation148_spill] sm:$0xff] }
 0x36f   : > { %v5705_v0 = vadd.f32 %v11401_v29, %v5570_v60  ;;  %12744 = vst [vmem:[#allocation7_spill] sm:$0xff] %v11585_v1  ;;  %v3366_v12 = vadd.f32 %v12746_v4, %v12745_v51  ;;  %v5707_v16 = vadd.f32 %v11401_v29, %v5572_v61  ;;  %v12747_v58 = vld [vmem:[#allocation16_spill] sm:$0xff]  ;;  %v12752_v4 = vld [vmem:[#allocation175_spill] sm:$0xff]  ;;  %v11606_v3 = vpop.f32.mrf.mxu0 }
 0x370   : > { %v4501_v24 = vpop.permute.xlu1 %4500  ;;  %v12748_v60 = vld [vmem:[#allocation136_spill] sm:$0xff]  ;;  %v5836_v55 = vmax.f32 %v5708_v50, 0.0 }
 0x371   : > { %v4821_v11 = vsel %vm1151_vm1, %v4689_v33, %v4501_v24  ;;  %v4499_v41 = vpop.permute.xlu0 %4498  ;;  %v3355_v33 = vadd.f32 %v12748_v60, %v12747_v58  ;;  %v5834_v24 = vmax.f32 %v5706_v36, 0.0  ;;  %v12749_v22 = vld [vmem:[#allocation180_spill] sm:$0xff]  ;;  %v5577_v61 = vadd.f32 %v11268_v32, %v3366_v12  ;;  %v12755_v32 = vld [vmem:[#allocation173_spill] sm:$0xff] }
 0x372   : > { %v4819_v5 = vsel %vm1151_vm1, %v4686_v31, %v4499_v41  ;;  %v5575_v31 = vadd.f32 %v12749_v22, %v3358_v63  ;;  %v5833_v51 = vmax.f32 %v5705_v0, 0.0  ;;  %v12753_v36 = vld [vmem:[#allocation172_spill] sm:$0xff] }
 0x373   : > { %8423 = vmatprep.mubr.msk.bf16.mxu0 %vm2394_vm2, %v4819_v5  ;;  %8452 = vmatmul.mubr.msk.bf16.gmra.mxu1 %vm958_vm0, %v5950_v40  ;;  %v12750_v40 = vld [vmem:[#allocation21_spill] sm:$0xff]  ;;  %v12751_v5 = vld [vmem:[#allocation143_spill] sm:$0xff]  ;;  %v5574_v44 = vadd.f32 %v12752_v4, %v3355_v33 }
 0x374   : > { %8424 = vmatmul.mubr.msk.bf16.gmra.mxu0 %vm2394_vm2, %v4821_v11  ;;  %8455 = vmatprep.mubr.msk.bf16.mxu1 %vm958_vm0, %v5951_v48  ;;  %v4367_v28 = vpop.permute.xlu1 %4366  ;;  %v3363_v25 = vadd.f32 %v12751_v5, %v12750_v40  ;;  %v11603_v11 = vpop.f32.mrf.mxu1  ;;  %v5835_v48 = vmax.f32 %v5707_v16, 0.0  ;;  %v5952_v60 = vpack.c.bf16 %v5834_v24, %v5833_v51  ;;  %v5710_v22 = vadd.f32 %v11401_v29, %v5575_v31  ;;  %v12756_v5 = vld [vmem:[#allocation22_spill] sm:$0xff]  ;;  %v12758_v31 = vld [vmem:[#allocation27_spill] sm:$0xff] }
 0x375   : > { %v4365_v41 = vpop.permute.xlu0 %4364  ;;  %v4695_v63 = vsel %vm958_vm0, %v12753_v36, %v4367_v28  ;;  %v5709_v24 = vadd.f32 %v11401_v29, %v5574_v44  ;;  %v12759_v51 = vld [vmem:[#allocation155_spill] sm:$0xff]  ;;  %v11626_v36 = vpop.f32.mrf.mxu0 }
 0x376   : > { %v5576_v1 = vadd.f32 %v11246_v13, %v3363_v25  ;;  %v11611_v50 = vpop.f32.mrf.mxu1  ;;  %v4692_v0 = vsel %vm958_vm0, %v12755_v32, %v4365_v41  ;;  %v5953_v16 = vpack.c.bf16 %v5836_v55, %v5835_v48  ;;  %v5712_v13 = vadd.f32 %v11401_v29, %v5577_v61  ;;  %v12757_v25 = vld [vmem:[#allocation146_spill] sm:$0xff]  ;;  %v12760_v61 = vld [vmem:[#allocation20_spill] sm:$0xff] }
 0x377   : > { %12754 = vst [vmem:[#allocation118_spill] sm:$0xff] %v11611_v50  ;;  %v3374_v28 = vadd.f32 %v12757_v25, %v12756_v5  ;;  %v3382_v41 = vadd.f32 %v12759_v51, %v12758_v31  ;;  %v12761_v48 = vld [vmem:[#allocation142_spill] sm:$0xff]  ;;  %v5838_v44 = vmax.f32 %v5710_v22, 0.0  ;;  %v5837_v25 = vmax.f32 %v5709_v24, 0.0  ;;  %v11640_v50 = vpop.f32.mrf.mxu0  ;;  %v12766_v22 = vld [vmem:[#allocation177_spill] sm:$0xff] }
 0x378   : > { %v4505_v58 = vpop.permute.xlu1 %4504  ;;  %v5711_v4 = vadd.f32 %v11401_v29, %v5576_v1  ;;  %v11633_v32 = vpop.f32.mrf.mxu1  ;;  %v5840_v1 = vmax.f32 %v5712_v13, 0.0  ;;  %v12767_v13 = vld [vmem:[#allocation179_spill] sm:$0xff] }
 0x379   : > { %v4825_v12 = vsel %vm1151_vm1, %v4695_v63, %v4505_v58  ;;  %v4503_v33 = vpop.permute.xlu0 %4502  ;;  %v3371_v63 = vadd.f32 %v12761_v48, %v12760_v61  ;;  %v5579_v58 = vadd.f32 %v11258_v15, %v3374_v28  ;;  %12762 = vst [vmem:[#allocation2_spill] sm:$0xff] %v11633_v32  ;;  %v5581_v5 = vadd.f32 %v11299_v46, %v3382_v41 }
 0x37a   : > { %v4823_v40 = vsel %vm1151_vm1, %v4692_v0, %v4503_v33  ;;  %v12763_v0 = vld [vmem:[#allocation25_spill] sm:$0xff]  ;;  %v12764_v33 = vld [vmem:[#allocation152_spill] sm:$0xff]  ;;  %v5954_v61 = vpack.c.bf16 %v5838_v44, %v5837_v25  ;;  %v11645_v32 = vpop.f32.mrf.mxu1 }
 0x37b   : > { %8427 = vmatprep.mubr.msk.bf16.mxu0 %vm2394_vm2, %v4823_v40  ;;  %8456 = vmatmul.mubr.msk.bf16.gmra.mxu1 %vm958_vm0, %v5952_v60  ;;  %v3379_v40 = vadd.f32 %v12764_v33, %v12763_v0  ;;  %v5714_v48 = vadd.f32 %v11401_v29, %v5579_v58  ;;  %v12769_v33 = vld [vmem:[#allocation153_spill] sm:$0xff] }
 0x37c   : > { %8428 = vmatmul.mubr.msk.bf16.gmra.mxu0 %vm2394_vm2, %v4825_v12  ;;  %8459 = vmatprep.mubr.msk.bf16.mxu1 %vm958_vm0, %v5953_v16  ;;  %v4371_v55 = vpop.permute.xlu1 %4370  ;;  %v12765_v12 = vld [vmem:[#allocation183_spill] sm:$0xff]  ;;  %v5839_v16 = vmax.f32 %v5711_v4, 0.0 }
 0x37d   : > { %v4369_v60 = vpop.permute.xlu0 %4368  ;;  %v5578_v31 = vadd.f32 %v12765_v12, %v3371_v63  ;;  %v5580_v51 = vadd.f32 %v11284_v7, %v3379_v40  ;;  %v4701_v15 = vsel %vm958_vm0, %v12766_v22, %v4371_v55  ;;  %v5716_v7 = vadd.f32 %v11401_v29, %v5581_v5  ;;  %v11651_v63 = vpop.f32.mrf.mxu0  ;;  %v12768_v55 = vld [vmem:[#allocation26_spill] sm:$0xff]  ;;  %v12771_v40 = vld [vmem:[#allocation160_spill] sm:$0xff] }
 0x37e   : > { %v4698_v46 = vsel %vm958_vm0, %v12767_v13, %v4369_v60  ;;  %v5955_v4 = vpack.c.bf16 %v5840_v1, %v5839_v16  ;;  %v3390_v44 = vadd.f32 %v12769_v33, %v12768_v55  ;;  %v12770_v60 = vld [vmem:[#allocation31_spill] sm:$0xff]  ;;  %v12772_v5 = vld [vmem:[#allocation24_spill] sm:$0xff]  ;;  %v12773_v12 = vld [vmem:[#allocation150_spill] sm:$0xff]  ;;  %v5842_v22 = vmax.f32 %v5714_v48, 0.0 }
 0x37f   : > { %v5713_v58 = vadd.f32 %v11401_v29, %v5578_v31  ;;  %v3398_v25 = vadd.f32 %v12771_v40, %v12770_v60  ;;  %v5715_v1 = vadd.f32 %v11401_v29, %v5580_v51  ;;  %v3387_v16 = vadd.f32 %v12773_v12, %v12772_v5  ;;  %v11667_v31 = vpop.f32.mrf.mxu1  ;;  %v12775_v13 = vld [vmem:[#allocation157_spill] sm:$0xff] }
 0x380   : > { %v4509_v28 = vpop.permute.xlu1 %4508 }
 0x381   : > { %v4829_v24 = vsel %vm1151_vm1, %v4701_v15, %v4509_v28  ;;  %v4507_v41 = vpop.permute.xlu0 %4506  ;;  %v5583_v15 = vadd.f32 %v11291_v18, %v3390_v44  ;;  %v12774_v28 = vld [vmem:[#allocation29_spill] sm:$0xff]  ;;  %v5841_v51 = vmax.f32 %v5713_v58, 0.0  ;;  %v5843_v55 = vmax.f32 %v5715_v1, 0.0  ;;  %v12779_v1 = vld [vmem:[#allocation168_spill] sm:$0xff] }
 0x382   : > { %v4827_v0 = vsel %vm1151_vm1, %v4698_v46, %v4507_v41  ;;  %v5844_v46 = vmax.f32 %v5716_v7, 0.0  ;;  %v5585_v41 = vadd.f32 %v11328_v14, %v3398_v25  ;;  %v12776_v7 = vld [vmem:[#allocation30_spill] sm:$0xff] }
 0x383   : > { %8431 = vmatprep.mubr.msk.bf16.mxu0 %vm2394_vm2, %v4827_v0  ;;  %8460 = vmatmul.mubr.msk.bf16.gmra.mxu1 %vm958_vm0, %v5954_v61  ;;  %v3395_v61 = vadd.f32 %v12775_v13, %v12774_v28  ;;  %v11672_v0 = vpop.f32.mrf.mxu0  ;;  %v5956_v33 = vpack.c.bf16 %v5842_v22, %v5841_v51  ;;  %v5718_v18 = vadd.f32 %v11401_v29, %v5583_v15  ;;  %v12777_v14 = vld [vmem:[#allocation158_spill] sm:$0xff]  ;;  %v12781_v22 = vld [vmem:[#allocation156_spill] sm:$0xff] }
 0x384   : > { %8432 = vmatmul.mubr.msk.bf16.gmra.mxu0 %vm2394_vm2, %v4829_v24  ;;  %8463 = vmatprep.mubr.msk.bf16.mxu1 %vm958_vm0, %v5955_v4  ;;  %v5582_v24 = vadd.f32 %v11277_v21, %v3387_v16  ;;  %v11675_v4 = vpop.f32.mrf.mxu1  ;;  %v5957_v44 = vpack.c.bf16 %v5844_v46, %v5843_v55  ;;  %v5720_v60 = vadd.f32 %v11401_v29, %v5585_v41  ;;  %v12778_v21 = vld [vmem:[#allocation35_spill] sm:$0xff]  ;;  %v12780_v16 = vld [vmem:[#allocation28_spill] sm:$0xff] }
 0x385   : > { %v5584_v48 = vadd.f32 %v11316_v2, %v3395_v61  ;;  %v11680_v40 = vpop.f32.mrf.mxu0  ;;  %v3406_v25 = vadd.f32 %v12777_v14, %v12776_v7  ;;  %v3414_v2 = vadd.f32 %v12779_v1, %v12778_v21  ;;  %v3403_v15 = vadd.f32 %v12781_v22, %v12780_v16  ;;  %v12782_v61 = vld [vmem:[#allocation33_spill] sm:$0xff]  ;;  %v12783_v46 = vld [vmem:[#allocation164_spill] sm:$0xff]  ;;  %v12785_v16 = vld [vmem:[#allocation34_spill] sm:$0xff] }
 0x386   : > { %v5717_v58 = vadd.f32 %v11401_v29, %v5582_v24  ;;  %v11685_v5 = vpop.f32.mrf.mxu1  ;;  %v5846_v28 = vmax.f32 %v5718_v18, 0.0  ;;  %v3411_v41 = vadd.f32 %v12783_v46, %v12782_v61  ;;  %v5848_v51 = vmax.f32 %v5720_v60, 0.0  ;;  %v12784_v7 = vld [vmem:[#allocation192_spill] sm:$0xff]  ;;  %v12790_v46 = vld [vmem:[#allocation162_spill] sm:$0xff] }
 0x387   : > { %v5719_v12 = vadd.f32 %v11401_v29, %v5584_v48  ;;  %v5587_v13 = vadd.f32 %v11320_v35, %v3406_v25  ;;  %v5589_v24 = vadd.f32 %v11359_v37, %v3414_v2  ;;  %v11698_v55 = vpop.f32.mrf.mxu0  ;;  %v5586_v14 = vadd.f32 %v12784_v7, %v3403_v15  ;;  %v12786_v37 = vld [vmem:[#allocation166_spill] sm:$0xff]  ;;  %v12788_v15 = vld [vmem:[#allocation176_spill] sm:$0xff]  ;;  %v12791_v7 = vld [vmem:[#allocation37_spill] sm:$0xff] }
 0x388   : > { %v11701_v48 = vpop.f32.mrf.mxu1  ;;  %v5588_v21 = vadd.f32 %v11345_v59, %v3411_v41  ;;  %v3422_v2 = vadd.f32 %v12786_v37, %v12785_v16 }
 0x389   : > { %v11704_v1 = vpop.f32.mrf.mxu0  ;;  %v5722_v35 = vadd.f32 %v11401_v29, %v5587_v13  ;;  %v5724_v60 = vadd.f32 %v11401_v29, %v5589_v24  ;;  %v12789_v13 = vld [vmem:[#allocation32_spill] sm:$0xff] }
 0x38a   : > { %v11711_v22 = vpop.f32.mrf.mxu1  ;;  %v5723_v61 = vadd.f32 %v11401_v29, %v5588_v21  ;;  %v3419_v41 = vadd.f32 %v12790_v46, %v12789_v13  ;;  %v5591_v24 = vadd.f32 %v11352_v8, %v3422_v2 }
 0x38b   : > { %8464 = vmatmul.mubr.msk.bf16.gmra.mxu1 %vm958_vm0, %v5956_v33  ;;  %v5845_v33 = vmax.f32 %v5717_v58, 0.0  ;;  %v5721_v58 = vadd.f32 %v11401_v29, %v5586_v14  ;;  %v12792_v14 = vld [vmem:[#allocation171_spill] sm:$0xff] }
 0x38c   : > { %8467 = vmatprep.mubr.msk.bf16.mxu1 %vm958_vm0, %v5957_v44  ;;  %v5847_v44 = vmax.f32 %v5719_v12, 0.0  ;;  %v12787_v12 = vld [vmem:[#allocation39_spill] sm:$0xff]  ;;  %v5590_v21 = vadd.f32 %v11335_v52, %v3419_v41  ;;  %v12797_v41 = vld [vmem:[#allocation36_spill] sm:$0xff] }
 0x38d   : > { %v5958_v18 = vpack.c.bf16 %v5846_v28, %v5845_v33  ;;  %v3430_v59 = vadd.f32 %v12788_v15, %v12787_v12  ;;  %v11717_v28 = vpop.f32.mrf.mxu0  ;;  %v11723_v33 = vpop.f32.mrf.mxu1  ;;  %v5849_v37 = vmax.f32 %v5721_v58, 0.0  ;;  %v5851_v12 = vmax.f32 %v5723_v61, 0.0  ;;  %v12795_v52 = vld [vmem:[#allocation43_spill] sm:$0xff]  ;;  %v12796_v58 = vld [vmem:[#allocation184_spill] sm:$0xff] }
 0x38e   : > { %v5959_v25 = vpack.c.bf16 %v5848_v51, %v5847_v44  ;;  %v5850_v51 = vmax.f32 %v5722_v35, 0.0  ;;  %v3427_v44 = vadd.f32 %v12792_v14, %v12791_v7  ;;  %v5726_v35 = vadd.f32 %v11401_v29, %v5591_v24  ;;  %v12793_v7 = vld [vmem:[#allocation38_spill] sm:$0xff] }
 0x38f   : > { %v5593_v16 = vadd.f32 %v11394_v47, %v3430_v59  ;;  %v11730_v15 = vpop.f32.mrf.mxu0  ;;  %v11733_v8 = vpop.f32.mrf.mxu1  ;;  %v5725_v47 = vadd.f32 %v11401_v29, %v5590_v21  ;;  %v12800_v21 = vld [vmem:[#allocation181_spill] sm:$0xff] }
 0x390   : > { %v5960_v13 = vpack.c.bf16 %v5850_v51, %v5849_v37  ;;  %v12798_v51 = vld [vmem:[#allocation170_spill] sm:$0xff]  ;;  %v12799_v37 = vld [vmem:[#allocation41_spill] sm:$0xff] }
 0x391   : > { %v5728_v46 = vadd.f32 %v11401_v29, %v5593_v16  ;;  %v11743_v61 = vpop.f32.mrf.mxu0  ;;  %v3435_v24 = vadd.f32 %v12798_v51, %v12797_v41  ;;  %v11749_v16 = vpop.f32.mrf.mxu1 }
 0x393   : > { %8468 = vmatmul.mubr.msk.bf16.gmra.mxu1 %vm958_vm0, %v5958_v18  ;;  %v5852_v18 = vmax.f32 %v5724_v60, 0.0  ;;  %v12794_v60 = vld [vmem:[#allocation174_spill] sm:$0xff] }
 0x394   : > { %8471 = vmatprep.mubr.msk.bf16.mxu1 %vm958_vm0, %v5959_v25  ;;  %v5592_v25 = vadd.f32 %v11372_v42, %v3427_v44  ;;  %v3438_v14 = vadd.f32 %v12794_v60, %v12793_v7  ;;  %v3446_v42 = vadd.f32 %v12796_v58, %v12795_v52  ;;  %v5854_v44 = vmax.f32 %v5726_v35, 0.0  ;;  %v11754_v60 = vpop.f32.mrf.mxu0 }
 0x395   : > { %v5961_v2 = vpack.c.bf16 %v5852_v18, %v5851_v12  ;;  %v3443_v12 = vadd.f32 %v12800_v21, %v12799_v37  ;;  %v5594_v52 = vadd.f32 %v11364_v26, %v3435_v24  ;;  %v12804_v26 = vld [vmem:[#allocation47_spill] sm:$0xff] }
 0x396   : > { %v5727_v59 = vadd.f32 %v11401_v29, %v5592_v25  ;;  %v5595_v18 = vadd.f32 %v11386_v49, %v3438_v14  ;;  %v5597_v7 = vadd.f32 %v11460_v34, %v3446_v42  ;;  %v5853_v25 = vmax.f32 %v5725_v47, 0.0  ;;  %v11759_v49 = vpop.f32.mrf.mxu1  ;;  %v11762_v37 = vpop.f32.mrf.mxu0  ;;  %v12802_v34 = vld [vmem:[#allocation182_spill] sm:$0xff] }
 0x397   : > { %v5596_v58 = vadd.f32 %v11426_v10, %v3443_v12  ;;  %v5729_v47 = vadd.f32 %v11401_v29, %v5594_v52  ;;  %v12805_v10 = vld [vmem:[#allocation188_spill] sm:$0xff] }
 0x398   : > { %v5962_v41 = vpack.c.bf16 %v5854_v44, %v5853_v25  ;;  %v5730_v35 = vadd.f32 %v11401_v29, %v5595_v18  ;;  %v5732_v51 = vadd.f32 %v11401_v29, %v5597_v7  ;;  %v11767_v21 = vpop.f32.mrf.mxu1  ;;  %v12806_v44 = vld [vmem:[#allocation40_spill] sm:$0xff]  ;;  %v12807_v18 = vld [vmem:[#allocation178_spill] sm:$0xff]  ;;  %v12808_v25 = vld [vmem:[#allocation45_spill] sm:$0xff] }
 0x399   : > { %12803 = vst [vmem:[#allocation106_spill] sm:$0xff] %v11767_v21  ;;  %v5731_v24 = vadd.f32 %v11401_v29, %v5596_v58  ;;  %v3451_v12 = vadd.f32 %v12807_v18, %v12806_v44  ;;  %v5857_v21 = vmax.f32 %v5729_v47, 0.0 }
 0x39a   : > { %v11783_v58 = vpop.f32.mrf.mxu1 }
 0x39b   : > { %8472 = vmatmul.mubr.msk.bf16.gmra.mxu1 %vm958_vm0, %v5960_v13  ;;  %v5856_v13 = vmax.f32 %v5728_v46, 0.0  ;;  %v12801_v46 = vld [vmem:[#allocation42_spill] sm:$0xff] }
 0x39c   : > { %8475 = vmatprep.mubr.msk.bf16.mxu1 %vm958_vm0, %v5961_v2  ;;  %v5855_v2 = vmax.f32 %v5727_v59, 0.0  ;;  %v3454_v42 = vadd.f32 %v12802_v34, %v12801_v46  ;;  %v3462_v59 = vadd.f32 %v12805_v10, %v12804_v26  ;;  %v5860_v46 = vmax.f32 %v5732_v51, 0.0  ;;  %v12810_v51 = vld [vmem:[#allocation46_spill] sm:$0xff] }
 0x39d   : > { %v5598_v26 = vadd.f32 %v11407_v57, %v3451_v12  ;;  %v12813_v57 = vld [vmem:[#allocation51_spill] sm:$0xff] }
 0x39e   : > { %v5963_v14 = vpack.c.bf16 %v5856_v13, %v5855_v2  ;;  %v5858_v13 = vmax.f32 %v5730_v35, 0.0  ;;  %v5599_v7 = vadd.f32 %v11440_v62, %v3454_v42  ;;  %v12809_v2 = vld [vmem:[#allocation186_spill] sm:$0xff]  ;;  %v5601_v34 = vadd.f32 %v11520_v56, %v3462_v59  ;;  %v12811_v56 = vld [vmem:[#allocation187_spill] sm:$0xff] }
 0x39f   : > { %v3459_v52 = vadd.f32 %v12809_v2, %v12808_v25  ;;  %v3470_v59 = vadd.f32 %v12811_v56, %v12810_v51  ;;  %v5733_v47 = vadd.f32 %v11401_v29, %v5598_v26  ;;  %v11793_v25 = vpop.f32.mrf.mxu1  ;;  %v12818_v26 = vld [vmem:[#allocation190_spill] sm:$0xff] }
 0x3a0   : > { %v5964_v44 = vpack.c.bf16 %v5858_v13, %v5857_v21  ;;  %v5734_v35 = vadd.f32 %v11401_v29, %v5599_v7  ;;  %v5736_v42 = vadd.f32 %v11401_v29, %v5601_v34  ;;  %12812 = vst [vmem:[#allocation151_spill] sm:$0xff] %v11793_v25  ;;  %v12815_v13 = vld [vmem:[#allocation44_spill] sm:$0xff]  ;;  %v12816_v7 = vld [vmem:[#allocation185_spill] sm:$0xff] }
 0x3a1   : > { %v5600_v10 = vadd.f32 %v11486_v30, %v3459_v52  ;;  %v3467_v2 = vadd.f32 %v12816_v7, %v12815_v13  ;;  %v12817_v34 = vld [vmem:[#allocation49_spill] sm:$0xff]  ;;  %v5861_v56 = vmax.f32 %v5733_v47, 0.0  ;;  %v12819_v7 = vld [vmem:[#allocation50_spill] sm:$0xff] }
 0x3a2   : > { %v5862_v52 = vmax.f32 %v5734_v35, 0.0  ;;  %v5864_v51 = vmax.f32 %v5736_v42, 0.0 }
 0x3a3   : > { %8476 = vmatmul.mubr.msk.bf16.gmra.mxu1 %vm958_vm0, %v5962_v41  ;;  %v11780_v41 = vpop.f32.mrf.mxu0  ;;  %v5735_v21 = vadd.f32 %v11401_v29, %v5600_v10  ;;  %v11809_v10 = vpop.f32.mrf.mxu1 }
 0x3a4   : > { %8479 = vmatprep.mubr.msk.bf16.mxu1 %vm958_vm0, %v5963_v14  ;;  %v5859_v14 = vmax.f32 %v5731_v24, 0.0  ;;  %v12814_v24 = vld [vmem:[#allocation193_spill] sm:$0xff]  ;;  %v5966_v13 = vpack.c.bf16 %v5862_v52, %v5861_v56 }
 0x3a5   : > { %v11788_v18 = vpop.f32.mrf.mxu0  ;;  %v3478_v30 = vadd.f32 %v12814_v24, %v12813_v57  ;;  %v5602_v57 = vadd.f32 %v11466_v6, %v3467_v2  ;;  %v5863_v24 = vmax.f32 %v5735_v21, 0.0  ;;  %v12822_v21 = vld [vmem:[#allocation197_spill] sm:$0xff] }
 0x3a6   : > { %v5965_v62 = vpack.c.bf16 %v5860_v46, %v5859_v14  ;;  %v5603_v46 = vadd.f32 %v11500_v53, %v3470_v59  ;;  %v3475_v14 = vadd.f32 %v12818_v26, %v12817_v34  ;;  %v11815_v53 = vpop.f32.mrf.mxu1  ;;  %v12824_v34 = vld [vmem:[#allocation189_spill] sm:$0xff] }
 0x3a7   : > { %v11799_v12 = vpop.f32.mrf.mxu0  ;;  %v5967_v59 = vpack.c.bf16 %v5864_v51, %v5863_v24  ;;  %v5737_v6 = vadd.f32 %v11401_v29, %v5602_v57  ;;  %v12825_v56 = vld [vmem:[#allocation53_spill] sm:$0xff]  ;;  %v12826_v57 = vld [vmem:[#allocation195_spill] sm:$0xff] }
 0x3a8   : > { %v5738_v35 = vadd.f32 %v11401_v29, %v5603_v46  ;;  %v12823_v46 = vld [vmem:[#allocation48_spill] sm:$0xff]  ;;  %v3491_v24 = vadd.f32 %v12826_v57, %v12825_v56 }
 0x3a9   : > { %v11812_v25 = vpop.f32.mrf.mxu0  ;;  %v3483_v26 = vadd.f32 %v12824_v34, %v12823_v46 }
 0x3ab   : > { %8480 = vmatmul.mubr.msk.bf16.gmra.mxu1 %vm958_vm0, %v5964_v44  ;;  %v5605_v44 = vadd.f32 %v11579_v38, %v3478_v30  ;;  %v12820_v38 = vld [vmem:[#allocation191_spill] sm:$0xff]  ;;  %v11825_v52 = vpop.f32.mrf.mxu0 }
 0x3ac   : > { %8483 = vmatprep.mubr.msk.bf16.mxu1 %vm958_vm0, %v5965_v62  ;;  %v5604_v62 = vadd.f32 %v11545_v20, %v3475_v14  ;;  %v3486_v47 = vadd.f32 %v12820_v38, %v12819_v7  ;;  %v12821_v30 = vld [vmem:[#allocation55_spill] sm:$0xff]  ;;  %v5866_v14 = vmax.f32 %v5738_v35, 0.0  ;;  %v5865_v38 = vmax.f32 %v5737_v6, 0.0 }
 0x3ad   : > { %v5740_v42 = vadd.f32 %v11401_v29, %v5605_v44  ;;  %v3494_v20 = vadd.f32 %v12822_v21, %v12821_v30  ;;  %v11831_v44 = vpop.f32.mrf.mxu1  ;;  %v11838_v21 = vpop.f32.mrf.mxu0 }
 0x3ae   : > { %v5739_v2 = vadd.f32 %v11401_v29, %v5604_v62  ;;  %v5607_v51 = vadd.f32 %v11566_v19, %v3486_v47  ;;  %v5606_v62 = vadd.f32 %v11532_v9, %v3483_v26  ;;  %v5968_v46 = vpack.c.bf16 %v5866_v14, %v5865_v38  ;;  %v12830_v26 = vld [vmem:[#allocation52_spill] sm:$0xff]  ;;  %v12831_v14 = vld [vmem:[#allocation194_spill] sm:$0xff]  ;;  %v12833_v38 = vld [vmem:[#allocation199_spill] sm:$0xff] }
 0x3af   : > { %v5609_v7 = vadd.f32 %v11640_v50, %v3494_v20  ;;  %v11841_v19 = vpop.f32.mrf.mxu1  ;;  %v12828_v50 = vld [vmem:[#allocation196_spill] sm:$0xff] }
 0x3b0   : > { %v5867_v30 = vmax.f32 %v5739_v2, 0.0  ;;  %v5742_v35 = vadd.f32 %v11401_v29, %v5607_v51  ;;  %v5741_v9 = vadd.f32 %v11401_v29, %v5606_v62  ;;  %v3499_v51 = vadd.f32 %v12831_v14, %v12830_v26 }
 0x3b1   : > { %v5744_v34 = vadd.f32 %v11401_v29, %v5609_v7  ;;  %v12832_v7 = vld [vmem:[#allocation57_spill] sm:$0xff] }
 0x3b2   : > { %v11844_v56 = vpop.f32.mrf.mxu0  ;;  %v5870_v57 = vmax.f32 %v5742_v35, 0.0  ;;  %v3507_v62 = vadd.f32 %v12833_v38, %v12832_v7 }
 0x3b3   : > { %8484 = vmatmul.mubr.msk.bf16.gmra.mxu1 %vm958_vm0, %v5966_v13  ;;  %v5868_v13 = vmax.f32 %v5740_v42, 0.0  ;;  %v12827_v42 = vld [vmem:[#allocation54_spill] sm:$0xff] }
 0x3b4   : > { %8487 = vmatprep.mubr.msk.bf16.mxu1 %vm958_vm0, %v5967_v59  ;;  %v5608_v59 = vadd.f32 %v11606_v3, %v3491_v24  ;;  %v3502_v6 = vadd.f32 %v12828_v50, %v12827_v42  ;;  %v12829_v3 = vld [vmem:[#allocation59_spill] sm:$0xff]  ;;  %v11862_v42 = vpop.f32.mrf.mxu0  ;;  %v5612_v35 = vadd.f32 %v11672_v0, %v3507_v62 }
 0x3b5   : > { %v5969_v47 = vpack.c.bf16 %v5868_v13, %v5867_v30  ;;  %v3510_v20 = vadd.f32 %v11370_v39, %v12829_v3  ;;  %v11857_v13 = vpop.f32.mrf.mxu1  ;;  %v5872_v30 = vmax.f32 %v5744_v34, 0.0  ;;  %v5869_v39 = vmax.f32 %v5741_v9, 0.0  ;;  %v12834_v34 = vld [vmem:[#allocation58_spill] sm:$0xff] }
 0x3b6   : > { %v5743_v2 = vadd.f32 %v11401_v29, %v5608_v59  ;;  %v5611_v24 = vadd.f32 %v11626_v36, %v3502_v6  ;;  %v5610_v59 = vadd.f32 %v11592_v54, %v3499_v51  ;;  %v11870_v14 = vpop.f32.mrf.mxu0  ;;  %v12836_v54 = vld [vmem:[#allocation63_spill] sm:$0xff]  ;;  %v12837_v51 = vld [vmem:[#allocation56_spill] sm:$0xff] }
 0x3b7   : > { %v5970_v3 = vpack.c.bf16 %v5870_v57, %v5869_v39  ;;  %v3526_v0 = vadd.f32 %v11420_v45, %v12836_v54  ;;  %v12838_v57 = vld [vmem:[#allocation198_spill] sm:$0xff] }
 0x3b8   : > { %v5871_v50 = vmax.f32 %v5743_v2, 0.0  ;;  %v5746_v36 = vadd.f32 %v11401_v29, %v5611_v24  ;;  %v5745_v9 = vadd.f32 %v11401_v29, %v5610_v59  ;;  %v5747_v2 = vadd.f32 %v11401_v29, %v5612_v35 }
 0x3b9   : > { %v3515_v24 = vadd.f32 %v12838_v57, %v12837_v51  ;;  %v12841_v51 = vld [vmem:[#allocation62_spill] sm:$0xff] }
 0x3ba   : > { %v5971_v6 = vpack.c.bf16 %v5872_v30, %v5871_v50  ;;  %v5874_v38 = vmax.f32 %v5746_v36, 0.0  ;;  %v12839_v30 = vld [vmem:[#allocation61_spill] sm:$0xff]  ;;  %v5617_v50 = vadd.f32 %v11743_v61, %v3526_v0  ;;  %v12842_v61 = vld [vmem:[#allocation203_spill] sm:$0xff] }
 0x3bb   : > { %8488 = vmatmul.mubr.msk.bf16.gmra.mxu1 %vm958_vm0, %v5968_v46  ;;  %v5613_v46 = vadd.f32 %v11698_v55, %v3510_v20  ;;  %v12835_v55 = vld [vmem:[#allocation200_spill] sm:$0xff]  ;;  %v5614_v45 = vadd.f32 %v11651_v63, %v3515_v24  ;;  %v3534_v0 = vadd.f32 %v12842_v61, %v12841_v51  ;;  %v12843_v63 = vld [vmem:[#allocation67_spill] sm:$0xff] }
 0x3bc   : > { %8491 = vmatprep.mubr.msk.bf16.mxu1 %vm958_vm0, %v5969_v47  ;;  %v11865_v47 = vpop.f32.mrf.mxu1  ;;  %v3518_v20 = vadd.f32 %v12835_v55, %v12834_v34  ;;  %v5873_v34 = vmax.f32 %v5745_v9, 0.0 }
 0x3bd   : > { %v5748_v26 = vadd.f32 %v11401_v29, %v5613_v46  ;;  %v12840_v46 = vld [vmem:[#allocation202_spill] sm:$0xff]  ;;  %v5749_v9 = vadd.f32 %v11401_v29, %v5614_v45  ;;  %v12848_v45 = vld [vmem:[#allocation149_spill] sm:$0xff] }
 0x3be   : > { %v11875_v7 = vpop.f32.mrf.mxu1  ;;  %v5615_v62 = vadd.f32 %v11680_v40, %v3518_v20  ;;  %v3523_v39 = vadd.f32 %v12840_v46, %v12839_v30  ;;  %v5972_v36 = vpack.c.bf16 %v5874_v38, %v5873_v34  ;;  %v12846_v30 = vld [vmem:[#allocation201_spill] sm:$0xff] }
 0x3bf   : > { %v5876_v59 = vmax.f32 %v5748_v26, 0.0  ;;  %v5752_v26 = vadd.f32 %v11401_v29, %v5617_v50  ;;  %v12847_v34 = vld [vmem:[#allocation65_spill] sm:$0xff]  ;;  %v5877_v61 = vmax.f32 %v5749_v9, 0.0 }
 0x3c0   : > { %v11891_v35 = vpop.f32.mrf.mxu1  ;;  %v5616_v55 = vadd.f32 %v11717_v28, %v3523_v39  ;;  %v5750_v40 = vadd.f32 %v11401_v29, %v5615_v62  ;;  %v12845_v62 = vld [vmem:[#allocation60_spill] sm:$0xff] }
 0x3c1   : > { %v3531_v46 = vadd.f32 %v12846_v30, %v12845_v62 }
 0x3c2   : > { %v11901_v57 = vpop.f32.mrf.mxu1  ;;  %v5751_v24 = vadd.f32 %v11401_v29, %v5616_v55  ;;  %v5878_v39 = vmax.f32 %v5750_v40, 0.0 }
 0x3c3   : > { %8492 = vmatmul.mubr.msk.bf16.gmra.mxu1 %vm958_vm0, %v5970_v3  ;;  %v11888_v3 = vpop.f32.mrf.mxu0  ;;  %v5618_v55 = vadd.f32 %v11704_v1, %v3531_v46  ;;  %v12851_v1 = vld [vmem:[#allocation71_spill] sm:$0xff]  ;;  %v12853_v46 = vld [vmem:[#allocation204_spill] sm:$0xff] }
 0x3c4   : > { %8495 = vmatprep.mubr.msk.bf16.mxu1 %vm958_vm0, %v5971_v6  ;;  %v5875_v6 = vmax.f32 %v5747_v2, 0.0  ;;  %v12844_v2 = vld [vmem:[#allocation145_spill] sm:$0xff]  ;;  %v11913_v50 = vpop.f32.mrf.mxu1  ;;  %v5974_v62 = vpack.c.bf16 %v5878_v39, %v5877_v61 }
 0x3c5   : > { %v11894_v54 = vpop.f32.mrf.mxu0  ;;  %v3542_v28 = vadd.f32 %v12844_v2, %v12843_v63  ;;  %v5879_v63 = vmax.f32 %v5751_v24, 0.0  ;;  %v12852_v24 = vld [vmem:[#allocation64_spill] sm:$0xff] }
 0x3c6   : > { %v5973_v20 = vpack.c.bf16 %v5876_v59, %v5875_v6  ;;  %v5619_v59 = vadd.f32 %v11730_v15, %v3534_v0  ;;  %v3539_v6 = vadd.f32 %v12848_v45, %v12847_v34  ;;  %v11923_v15 = vpop.f32.mrf.mxu1  ;;  %v12849_v34 = vld [vmem:[#allocation66_spill] sm:$0xff]  ;;  %v3547_v39 = vadd.f32 %v12853_v46, %v12852_v24  ;;  %v12857_v24 = vld [vmem:[#allocation68_spill] sm:$0xff] }
 0x3c7   : > { %v11907_v38 = vpop.f32.mrf.mxu0  ;;  %v5621_v51 = vadd.f32 %v11788_v18, %v3542_v28  ;;  %v5753_v18 = vadd.f32 %v11401_v29, %v5618_v55  ;;  %v3563_v46 = vadd.f32 %v11493_v23, %v12857_v24  ;;  %v12864_v24 = vld [vmem:[#allocation3_spill] sm:$0xff] }
 0x3c8   : > { %v5754_v40 = vadd.f32 %v11401_v29, %v5619_v59 }
 0x3c9   : > { %v11920_v2 = vpop.f32.mrf.mxu0  ;;  %v5756_v30 = vadd.f32 %v11401_v29, %v5621_v51  ;;  %v12854_v51 = vld [vmem:[#allocation69_spill] sm:$0xff] }
 0x3ca   : > { %v5882_v59 = vmax.f32 %v5754_v40, 0.0  ;;  %v3555_v61 = vadd.f32 %v11505_v27, %v12854_v51  ;;  %v11952_v27 = vld [vmem:[%s12477_s2] ss:$0 sm:$0xff] }
 0x3cb   : > { %8496 = vmatmul.mubr.msk.bf16.gmra.mxu1 %vm958_vm0, %v5972_v36  ;;  %v5880_v36 = vmax.f32 %v5752_v26, 0.0  ;;  %v12850_v26 = vld [vmem:[#allocation144_spill] sm:$0xff]  ;;  %v5364_v28 = vpop.f32.mrf.mxu0  ;;  %v5884_v55 = vmax.f32 %v5756_v30, 0.0 }
 0x3cc   : > { %8499 = vmatprep.mubr.msk.bf16.mxu1 %vm958_vm0, %v5973_v20  ;;  %v5620_v20 = vadd.f32 %v11762_v37, %v3539_v6  ;;  %v3550_v45 = vadd.f32 %v12850_v26, %v12849_v34  ;;  %v3558_v37 = vadd.f32 %v11539_v43, %v12851_v1  ;;  %v5624_v34 = vadd.f32 %v11812_v25, %v3555_v61 }
 0x3cd   : > { %v5975_v0 = vpack.c.bf16 %v5880_v36, %v5879_v63  ;;  %v11937_v36 = vpop.f32.mrf.mxu1 }
 0x3ce   : > { %v5755_v9 = vadd.f32 %v11401_v29, %v5620_v20  ;;  %v5623_v6 = vadd.f32 %v11780_v41, %v3550_v45  ;;  %v5625_v63 = vadd.f32 %v11838_v21, %v3558_v37  ;;  %v5881_v20 = vmax.f32 %v5753_v18, 0.0  ;;  %v12855_v18 = vld [vmem:[#allocation70_spill] sm:$0xff] }
 0x3cf   : > { %v11947_v41 = vpop.f32.mrf.mxu1 }
 0x3d0   : > { %v5976_v26 = vpack.c.bf16 %v5882_v59, %v5881_v20  ;;  %v5758_v40 = vadd.f32 %v11401_v29, %v5623_v6  ;;  %v5760_v21 = vadd.f32 %v11952_v27, %v5625_v63  ;;  %v12856_v29 = vld [vmem:[#allocation75_spill] sm:$0xff]  ;;  %v12859_v6 = vld [vmem:[#allocation109_spill] sm:$0xff] }
 0x3d1   : > { %v3574_v37 = vadd.f32 %v11603_v11, %v12856_v29  ;;  %v5626_v11 = vadd.f32 %v11799_v12, %v3563_v46  ;;  %v12862_v12 = vld [vmem:[#allocation79_spill] sm:$0xff] }
 0x3d2   : > { %v11942_v43 = vpop.f32.mrf.mxu0  ;;  %v5888_v61 = vmax.f32 %v5760_v21, 0.0  ;;  %v12860_v21 = vld [vmem:[#allocation74_spill] sm:$0xff]  ;;  %v3590_v29 = vadd.f32 %v11667_v31, %v12862_v12 }
 0x3d3   : > { %8500 = vmatmul.mubr.msk.bf16.gmra.mxu1 %vm958_vm0, %v5974_v62  ;;  %v5622_v62 = vadd.f32 %v11754_v60, %v3547_v39  ;;  %v3566_v60 = vadd.f32 %v11527_v17, %v12855_v18  ;;  %v11960_v1 = vpop.f32.mrf.mxu1  ;;  %v5886_v39 = vmax.f32 %v5758_v40, 0.0  ;;  %v12858_v17 = vld [vmem:[#allocation73_spill] sm:$0xff]  ;;  %v12861_v18 = vld [vmem:[#allocation7_spill] sm:$0xff] }
 0x3d4   : > { %8503 = vmatprep.mubr.msk.bf16.mxu1 %vm958_vm0, %v5975_v0  ;;  %v5883_v0 = vmax.f32 %v5755_v9, 0.0  ;;  %v11955_v30 = vpop.f32.mrf.mxu0  ;;  %v5759_v9 = vadd.f32 %v11952_v27, %v5624_v34  ;;  %v3571_v51 = vadd.f32 %v12859_v6, %v12858_v17  ;;  %v12865_v17 = vld [vmem:[#allocation77_spill] sm:$0xff]  ;;  %v12866_v6 = vld [vmem:[#allocation2_spill] sm:$0xff] }
 0x3d5   : > { %v5757_v25 = vadd.f32 %v11952_v27, %v5622_v62  ;;  %v5627_v59 = vadd.f32 %v11825_v52, %v3566_v60  ;;  %v11976_v62 = vpop.f32.mrf.mxu1  ;;  %v5761_v60 = vadd.f32 %v11952_v27, %v5626_v11 }
 0x3d6   : > { %v5977_v45 = vpack.c.bf16 %v5884_v55, %v5883_v0  ;;  %v5629_v55 = vadd.f32 %v11888_v3, %v3574_v37  ;;  %v11973_v63 = vpop.f32.mrf.mxu0  ;;  %v5887_v0 = vmax.f32 %v5759_v9, 0.0  ;;  %v5628_v34 = vadd.f32 %v11862_v42, %v3571_v51  ;;  %v12863_v9 = vld [vmem:[#allocation72_spill] sm:$0xff] }
 0x3d7   : > { %v5885_v20 = vmax.f32 %v5757_v25, 0.0  ;;  %v3582_v3 = vadd.f32 %v12861_v18, %v12860_v21  ;;  %v11984_v25 = vpop.f32.mrf.mxu1  ;;  %v3579_v46 = vadd.f32 %v12864_v24, %v12863_v9  ;;  %v3587_v51 = vadd.f32 %v12866_v6, %v12865_v17 }
 0x3d8   : > { %v5979_v52 = vpack.c.bf16 %v5888_v61, %v5887_v0  ;;  %v5764_v40 = vadd.f32 %v11952_v27, %v5629_v55  ;;  %v5763_v42 = vadd.f32 %v11952_v27, %v5628_v34  ;;  %v5633_v55 = vadd.f32 %v5364_v28, %v3590_v29  ;;  %v12869_v29 = vld [vmem:[#allocation76_spill] sm:$0xff] }
 0x3d9   : > { %v5978_v23 = vpack.c.bf16 %v5886_v39, %v5885_v20  ;;  %v5889_v20 = vmax.f32 %v5761_v60, 0.0  ;;  %v5630_v31 = vadd.f32 %v11844_v56, %v3579_v46  ;;  %v11999_v11 = vpop.f32.mrf.mxu1  ;;  %v5632_v34 = vadd.f32 %v11907_v38, %v3587_v51  ;;  %v12868_v56 = vld [vmem:[#allocation83_spill] sm:$0xff] }
 0x3da   : > { %v5892_v61 = vmax.f32 %v5764_v40, 0.0  ;;  %v5891_v0 = vmax.f32 %v5763_v42, 0.0  ;;  %v5768_v18 = vadd.f32 %v11952_v27, %v5633_v55  ;;  %v3606_v60 = vadd.f32 %v11711_v22, %v12868_v56  ;;  %v12870_v42 = vld [vmem:[#allocation118_spill] sm:$0xff] }
 0x3db   : > { %8504 = vmatmul.mubr.msk.bf16.gmra.mxu1 %vm958_vm0, %v5976_v26  ;;  %v5762_v26 = vadd.f32 %v11952_v27, %v5627_v59  ;;  %v5631_v59 = vadd.f32 %v11870_v14, %v3582_v3  ;;  %v12867_v3 = vld [vmem:[#allocation78_spill] sm:$0xff]  ;;  %v5765_v40 = vadd.f32 %v11952_v27, %v5630_v31  ;;  %v5767_v38 = vadd.f32 %v11952_v27, %v5632_v34 }
 0x3dc   : > { %8507 = vmatprep.mubr.msk.bf16.mxu1 %vm958_vm0, %v5977_v45  ;;  %v5380_v45 = vpop.f32.mrf.mxu0  ;;  %v5981_v14 = vpack.c.bf16 %v5892_v61, %v5891_v0  ;;  %v3598_v28 = vadd.f32 %v11645_v32, %v12867_v3  ;;  %v3595_v9 = vadd.f32 %v12870_v42, %v12869_v29  ;;  %v12871_v32 = vld [vmem:[#allocation81_spill] sm:$0xff]  ;;  %v5896_v17 = vmax.f32 %v5768_v18, 0.0 }
 0x3dd   : > { %v5890_v39 = vmax.f32 %v5762_v26, 0.0  ;;  %v5766_v21 = vadd.f32 %v11952_v27, %v5631_v59  ;;  %v3603_v59 = vadd.f32 %v11685_v5, %v12871_v32  ;;  %v5637_v6 = vadd.f32 %v5380_v45, %v3606_v60  ;;  %v12872_v5 = vld [vmem:[#allocation82_spill] sm:$0xff] }
 0x3de   : > { %v5635_v46 = vadd.f32 %v11920_v2, %v3598_v28  ;;  %v5893_v51 = vmax.f32 %v5765_v40, 0.0  ;;  %v5634_v22 = vadd.f32 %v11894_v54, %v3595_v9  ;;  %v5895_v61 = vmax.f32 %v5767_v38, 0.0  ;;  %v12873_v54 = vld [vmem:[#allocation87_spill] sm:$0xff]  ;;  %v12874_v28 = vld [vmem:[#allocation80_spill] sm:$0xff] }
 0x3df   : > { %v5894_v24 = vmax.f32 %v5766_v21, 0.0  ;;  %v5636_v55 = vadd.f32 %v11955_v30, %v3603_v59  ;;  %v3614_v45 = vadd.f32 %v11701_v48, %v12872_v5  ;;  %v3622_v30 = vadd.f32 %v11759_v49, %v12873_v54  ;;  %v12875_v48 = vld [vmem:[#allocation85_spill] sm:$0xff] }
 0x3e0   : > { %v5770_v0 = vadd.f32 %v11952_v27, %v5635_v46  ;;  %v5983_v2 = vpack.c.bf16 %v5896_v17, %v5895_v61  ;;  %v3611_v40 = vadd.f32 %v11675_v4, %v12874_v28  ;;  %v3619_v29 = vadd.f32 %v11733_v8, %v12875_v48 }
 0x3e1   : > { %v5982_v31 = vpack.c.bf16 %v5894_v24, %v5893_v51  ;;  %v5771_v18 = vadd.f32 %v11952_v27, %v5636_v55  ;;  %v5639_v60 = vadd.f32 %v11973_v63, %v3614_v45 }
 0x3e2   : > { %v11990_v37 = vpop.f32.mrf.mxu0  ;;  %v5898_v56 = vmax.f32 %v5770_v0, 0.0  ;;  %v5638_v49 = vadd.f32 %v11942_v43, %v3611_v40  ;;  %v12877_v43 = vld [vmem:[#allocation91_spill] sm:$0xff]  ;;  %v12878_v0 = vld [vmem:[#allocation84_spill] sm:$0xff] }
 0x3e3   : > { %8508 = vmatmul.mubr.msk.bf16.gmra.mxu1 %vm958_vm0, %v5978_v23  ;;  %v12003_v26 = vpop.f32.mrf.mxu1  ;;  %v5899_v59 = vmax.f32 %v5771_v18, 0.0  ;;  %v5774_v4 = vadd.f32 %v11952_v27, %v5639_v60 }
 0x3e4   : > { %8511 = vmatprep.mubr.msk.bf16.mxu1 %vm958_vm0, %v5979_v52  ;;  %v5393_v23 = vpop.f32.mrf.mxu0  ;;  %v5980_v52 = vpack.c.bf16 %v5890_v39, %v5889_v20  ;;  %v5773_v8 = vadd.f32 %v11952_v27, %v5638_v49  ;;  %v12882_v49 = vld [vmem:[#allocation88_spill] sm:$0xff] }
 0x3e5   : > { %v12017_v39 = vpop.f32.mrf.mxu1  ;;  %v5640_v17 = vadd.f32 %v5393_v23, %v3619_v29 }
 0x3e6   : > { %v8398_v12 = vpop.f32.mrf.mxu0 }
 0x3e7   : > { %v12024_v34 = vpop.f32.mrf.mxu1  ;;  %v5775_v23 = vadd.f32 %v11952_v27, %v5640_v17 }
 0x3e8   : > { %v5396_v20 = vpop.f32.mrf.mxu0 }
 0x3e9   : > { %v12040_v38 = vpop.f32.mrf.mxu1  ;;  %v5641_v9 = vadd.f32 %v5396_v20, %v3622_v30  ;;  %v5901_v30 = vmax.f32 %v5773_v8, 0.0 }
 0x3eb   : > { %8512 = vmatmul.mubr.msk.bf16.gmra.mxu1 %vm958_vm0, %v5980_v52  ;;  %v5772_v52 = vadd.f32 %v11952_v27, %v5637_v6  ;;  %v5776_v63 = vadd.f32 %v11952_v27, %v5641_v9 }
 0x3ec   : > { %8515 = vmatprep.mubr.msk.bf16.mxu1 %vm958_vm0, %v5981_v14  ;;  %v5769_v14 = vadd.f32 %v11952_v27, %v5634_v22  ;;  %v12876_v22 = vld [vmem:[#allocation86_spill] sm:$0xff] }
 0x3ed   : > { %v5900_v42 = vmax.f32 %v5772_v52, 0.0  ;;  %v3630_v61 = vadd.f32 %v11749_v16, %v12876_v22  ;;  %v5902_v52 = vmax.f32 %v5774_v4, 0.0  ;;  %v12879_v16 = vld [vmem:[#allocation89_spill] sm:$0xff] }
 0x3ee   : > { %v5897_v24 = vmax.f32 %v5769_v14, 0.0  ;;  %v3635_v45 = vadd.f32 %v11783_v58, %v12879_v16  ;;  %v5904_v14 = vmax.f32 %v5776_v63, 0.0  ;;  %v12884_v63 = vld [vmem:[#allocation93_spill] sm:$0xff] }
 0x3ef   : > { %v5985_v51 = vpack.c.bf16 %v5900_v42, %v5899_v59  ;;  %v5643_v5 = vadd.f32 %v8398_v12, %v3630_v61  ;;  %v12880_v12 = vld [vmem:[#allocation90_spill] sm:$0xff]  ;;  %v12881_v42 = vld [vmem:[#allocation151_spill] sm:$0xff]  ;;  %v3651_v22 = vadd.f32 %v11831_v44, %v12884_v63 }
 0x3f0   : > { %v5984_v6 = vpack.c.bf16 %v5898_v56, %v5897_v24  ;;  %v5986_v56 = vpack.c.bf16 %v5902_v52, %v5901_v30  ;;  %v3646_v9 = vadd.f32 %v12881_v42, %v12880_v12  ;;  %v12883_v59 = vld [vmem:[#allocation106_spill] sm:$0xff] }
 0x3f1   : > { %v5778_v60 = vadd.f32 %v11952_v27, %v5643_v5  ;;  %v3643_v17 = vadd.f32 %v12883_v59, %v12882_v49  ;;  %v12888_v49 = vld [vmem:[#allocation97_spill] sm:$0xff]  ;;  %v12890_v63 = vld [vmem:[#allocation98_spill] sm:$0xff] }
 0x3f2   : > { %v12027_v21 = vpop.f32.mrf.mxu0  ;;  %v3667_v59 = vadd.f32 %v11875_v7, %v12888_v49 }
 0x3f3   : > { %8516 = vmatmul.mubr.msk.bf16.gmra.mxu1 %vm958_vm0, %v5982_v31  ;;  %v12045_v46 = vpop.f32.mrf.mxu1  ;;  %v3638_v31 = vadd.f32 %v11809_v10, %v12877_v43  ;;  %v5903_v10 = vmax.f32 %v5775_v23, 0.0  ;;  %v5646_v23 = vadd.f32 %v12027_v21, %v3643_v17 }
 0x3f4   : > { %8519 = vmatprep.mubr.msk.bf16.mxu1 %vm958_vm0, %v5983_v2  ;;  %v5409_v3 = vpop.f32.mrf.mxu0  ;;  %v3627_v2 = vadd.f32 %v11723_v33, %v12878_v0 }
 0x3f5   : > { %v12052_v55 = vpop.f32.mrf.mxu1  ;;  %v5644_v40 = vadd.f32 %v5409_v3, %v3635_v45  ;;  %v5987_v48 = vpack.c.bf16 %v5904_v14, %v5903_v10  ;;  %v5781_v30 = vadd.f32 %v11952_v27, %v5646_v23 }
 0x3f6   : > { %v8402_v32 = vpop.f32.mrf.mxu0  ;;  %v5642_v18 = vadd.f32 %v11990_v37, %v3627_v2 }
 0x3f7   : > { %v12064_v28 = vpop.f32.mrf.mxu1  ;;  %v5779_v37 = vadd.f32 %v11952_v27, %v5644_v40  ;;  %v5647_v4 = vadd.f32 %v8402_v32, %v3646_v9 }
 0x3f8   : > { %v5412_v20 = vpop.f32.mrf.mxu0  ;;  %v5777_v58 = vadd.f32 %v11952_v27, %v5642_v18  ;;  %v12887_v18 = vld [vmem:[#allocation92_spill] sm:$0xff] }
 0x3f9   : > { %v5645_v54 = vadd.f32 %v5412_v20, %v3638_v31  ;;  %v12071_v24 = vpop.f32.mrf.mxu1  ;;  %v12885_v20 = vld [vmem:[#allocation95_spill] sm:$0xff]  ;;  %v5907_v0 = vmax.f32 %v5779_v37, 0.0  ;;  %v5782_v16 = vadd.f32 %v11952_v27, %v5647_v4  ;;  %v3659_v10 = vadd.f32 %v11815_v53, %v12887_v18  ;;  %v12892_v18 = vld [vmem:[#allocation101_spill] sm:$0xff] }
 0x3fa   : > { %v3654_v43 = vadd.f32 %v11857_v13, %v12885_v20  ;;  %v5905_v31 = vmax.f32 %v5777_v58, 0.0 }
 0x3fb   : > { %8520 = vmatmul.mubr.msk.bf16.gmra.mxu1 %vm958_vm0, %v5984_v6  ;;  %v5780_v33 = vadd.f32 %v11952_v27, %v5645_v54  ;;  %v5906_v6 = vmax.f32 %v5778_v60, 0.0  ;;  %v12886_v54 = vld [vmem:[#allocation94_spill] sm:$0xff]  ;;  %v5910_v40 = vmax.f32 %v5782_v16, 0.0 }
 0x3fc   : > { %8523 = vmatprep.mubr.msk.bf16.mxu1 %vm958_vm0, %v5985_v51  ;;  %v3662_v44 = vadd.f32 %v11841_v19, %v12886_v54  ;;  %v12127_v54 = vld [vmem:[%s12479_s4] ss:$0 sm:$0xff] }
 0x3fd   : > { %v5908_v61 = vmax.f32 %v5780_v33, 0.0  ;;  %v5988_v5 = vpack.c.bf16 %v5906_v6, %v5905_v31  ;;  %v5909_v33 = vmax.f32 %v5781_v30, 0.0  ;;  %v12889_v6 = vld [vmem:[#allocation96_spill] sm:$0xff] }
 0x3fe   : > { %v3675_v4 = vadd.f32 %v11865_v47, %v12889_v6 }
 0x3ff   : > { %v5989_v14 = vpack.c.bf16 %v5908_v61, %v5907_v0  ;;  %v5990_v42 = vpack.c.bf16 %v5910_v40, %v5909_v33 }
 0x402   : > { %v8405_v29 = vpop.f32.mrf.mxu0 }
 0x403   : > { %8524 = vmatmul.mubr.msk.bf16.gmra.mxu1 %vm958_vm0, %v5986_v56  ;;  %v12078_v51 = vpop.f32.mrf.mxu1  ;;  %v5650_v19 = vadd.f32 %v8405_v29, %v3659_v10  ;;  %v3683_v10 = vadd.f32 %v11923_v15, %v12892_v18  ;;  %v12898_v18 = vld [vmem:[#allocation107_spill] sm:$0xff] }
 0x404   : > { %8527 = vmatprep.mubr.msk.bf16.mxu1 %vm958_vm0, %v5987_v48  ;;  %v5425_v3 = vpop.f32.mrf.mxu0 }
 0x405   : > { %v5648_v2 = vadd.f32 %v5425_v3, %v3651_v22  ;;  %v12086_v32 = vpop.f32.mrf.mxu1  ;;  %v5785_v53 = vadd.f32 %v11952_v27, %v5650_v19  ;;  %v3678_v22 = vadd.f32 %v11891_v35, %v12890_v63  ;;  %v12893_v19 = vld [vmem:[#allocation100_spill] sm:$0xff]  ;;  %v12895_v63 = vld [vmem:[#allocation103_spill] sm:$0xff] }
 0x406   : > { %v8406_v8 = vpop.f32.mrf.mxu0 }
 0x407   : > { %v5783_v21 = vadd.f32 %v11952_v27, %v5648_v2  ;;  %v12097_v56 = vpop.f32.mrf.mxu1  ;;  %v5651_v60 = vadd.f32 %v8406_v8, %v3662_v44  ;;  %v5913_v23 = vmax.f32 %v5785_v53, 0.0 }
 0x408   : > { %v5428_v52 = vpop.f32.mrf.mxu0 }
 0x409   : > { %v5649_v45 = vadd.f32 %v5428_v52, %v3654_v43  ;;  %v5911_v12 = vmax.f32 %v5783_v21, 0.0  ;;  %v5786_v9 = vadd.f32 %v11952_v27, %v5651_v60  ;;  %v12100_v58 = vpop.f32.mrf.mxu1  ;;  %v12891_v43 = vld [vmem:[#allocation99_spill] sm:$0xff] }
 0x40a   : > { %v3670_v31 = vadd.f32 %v11901_v57, %v12891_v43 }
 0x40b   : > { %v5784_v13 = vadd.f32 %v11952_v27, %v5649_v45  ;;  %8528 = vmatmul.mubr.msk.bf16.gmra.mxu1 %vm958_vm0, %v5988_v5  ;;  %v5914_v61 = vmax.f32 %v5786_v9, 0.0 }
 0x40c   : > { %8531 = vmatprep.mubr.msk.bf16.mxu1 %vm958_vm0, %v5989_v14 }
 0x40d   : > { %v5912_v48 = vmax.f32 %v5784_v13, 0.0  ;;  %v5992_v16 = vpack.c.bf16 %v5914_v61, %v5913_v23 }
 0x40f   : > { %v5991_v37 = vpack.c.bf16 %v5912_v48, %v5911_v12  ;;  %v3691_v12 = vadd.f32 %v11913_v50, %v12893_v19  ;;  %v3686_v50 = vadd.f32 %v11947_v41, %v12895_v63 }
 0x412   : > { %v8409_v3 = vpop.f32.mrf.mxu0 }
 0x413   : > { %v12105_v17 = vpop.f32.mrf.mxu1  ;;  %8532 = vmatmul.mubr.msk.bf16.gmra.mxu1 %vm958_vm0, %v5990_v42  ;;  %v5654_v0 = vadd.f32 %v8409_v3, %v3675_v4 }
 0x414   : > { %8535 = vmatprep.mubr.msk.bf16.mxu1 %vm958_vm0, %v5991_v37  ;;  %v5441_v29 = vpop.f32.mrf.mxu0  ;;  %v12894_v37 = vld [vmem:[#allocation102_spill] sm:$0xff] }
 0x415   : > { %v12113_v8 = vpop.f32.mrf.mxu1  ;;  %v5652_v7 = vadd.f32 %v5441_v29, %v3667_v59  ;;  %v5789_v57 = vadd.f32 %v11952_v27, %v5654_v0  ;;  %v3694_v3 = vadd.f32 %v11937_v36, %v12894_v37 }
 0x416   : > { %v8410_v20 = vpop.f32.mrf.mxu0 }
 0x417   : > { %v12117_v2 = vpop.f32.mrf.mxu1  ;;  %v5655_v52 = vadd.f32 %v8410_v20, %v3678_v22  ;;  %v5787_v47 = vadd.f32 %v11952_v27, %v5652_v7  ;;  %v5917_v49 = vmax.f32 %v5789_v57, 0.0  ;;  %v12897_v57 = vld [vmem:[#allocation104_spill] sm:$0xff] }
 0x418   : > { %v5444_v5 = vpop.f32.mrf.mxu0 }
 0x419   : > { %v5790_v35 = vadd.f32 %v11952_v27, %v5655_v52  ;;  %v12122_v45 = vpop.f32.mrf.mxu1  ;;  %v5653_v14 = vadd.f32 %v5444_v5, %v3670_v31  ;;  %v5915_v40 = vmax.f32 %v5787_v47, 0.0 }
 0x41b   : > { %v5788_v44 = vadd.f32 %v11952_v27, %v5653_v14  ;;  %v8441_v30 = vpop.f32.mrf.mxu1  ;;  %8536 = vmatmul.mubr.msk.bf16.gmra.mxu1 %vm958_vm0, %v5992_v16  ;;  %v5918_v60 = vmax.f32 %v5790_v35, 0.0  ;;  %v12896_v16 = vld [vmem:[#allocation105_spill] sm:$0xff] }
 0x41c   : > { %v6265_v13 = vadd.f32 %v8441_v30, %v12127_v54  ;;  %v8413_v21 = vpop.f32.mrf.mxu0  ;;  %v3699_v47 = vadd.f32 %v11976_v62, %v12896_v16 }
 0x41d   : > { %v5916_v48 = vmax.f32 %v5788_v44, 0.0  ;;  %v6256_v33 = vpop.f32.mrf.mxu1  ;;  %v5658_v15 = vadd.f32 %v8413_v21, %v3691_v12  ;;  %v5994_v22 = vpack.c.bf16 %v5918_v60, %v5917_v49  ;;  %v3707_v44 = vadd.f32 %v11960_v1, %v12897_v57 }
 0x41e   : > { %6769 = vst [vmem:[%s12134_s19 + $0x10] sm:$0xff] %v6265_v13  ;;  %v6257_v42 = vadd.f32 %v12127_v54, %v6256_v33  ;;  %v5457_v9 = vpop.f32.mrf.mxu0 }
 0x41f   : > { %v5993_v59 = vpack.c.bf16 %v5916_v48, %v5915_v40  ;;  %v5656_v53 = vadd.f32 %v5457_v9, %v3683_v10  ;;  %v8442_v29 = vpop.f32.mrf.mxu1  ;;  %v5793_v41 = vadd.f32 %v11952_v27, %v5658_v15  ;;  %v3710_v10 = vadd.f32 %v11984_v25, %v12898_v18 }
 0x420   : > { %6767 = vst [vmem:[%s12134_s19] sm:$0xff] %v6257_v42  ;;  %v6268_v6 = vadd.f32 %v8442_v29, %v12127_v54  ;;  %v8414_v4 = vpop.f32.mrf.mxu0  ;;  %v12899_v42 = vld [vmem:[#allocation108_spill] sm:$0xff] }
 0x421   : > { %v5659_v61 = vadd.f32 %v8414_v4, %v3694_v3  ;;  %v6259_v7 = vpop.f32.mrf.mxu1  ;;  %8539 = vmatprep.mubr.msk.bf16.mxu1 %vm958_vm0, %v5993_v59  ;;  %v5791_v43 = vadd.f32 %v11952_v27, %v5656_v53  ;;  %v5921_v62 = vmax.f32 %v5793_v41, 0.0  ;;  %v3702_v9 = vadd.f32 %v11999_v11, %v12899_v42  ;;  %v12902_v41 = vld [vmem:[#allocation113_spill] sm:$0xff] }
 0x422   : > { %6770 = vst [vmem:[%s12134_s19 + $0x18] sm:$0xff] %v6268_v6  ;;  %v6260_v36 = vadd.f32 %v12127_v54, %v6259_v7  ;;  %v5460_v20 = vpop.f32.mrf.mxu0 }
 0x423   : > { %v5794_v31 = vadd.f32 %v11952_v27, %v5659_v61  ;;  %v5657_v23 = vadd.f32 %v5460_v20, %v3686_v50  ;;  %v8445_v0 = vpop.f32.mrf.mxu1  ;;  %8540 = vmatmul.mubr.msk.bf16.gmra.mxu1 %vm958_vm0, %v5994_v22  ;;  %v5919_v40 = vmax.f32 %v5791_v43, 0.0  ;;  %v12900_v22 = vld [vmem:[#allocation111_spill] sm:$0xff]  ;;  %v12901_v20 = vld [vmem:[#allocation110_spill] sm:$0xff] }
 0x424   : > { %6768 = vst [vmem:[%s12134_s19 + $0x8] sm:$0xff] %v6260_v36  ;;  %v6281_v52 = vadd.f32 %v8445_v0, %v12127_v54  ;;  %v8417_v5 = vpop.f32.mrf.mxu0  ;;  %v3715_v61 = vadd.f32 %v12017_v39, %v12900_v22  ;;  %v3723_v43 = vadd.f32 %v12003_v26, %v12901_v20 }
 0x425   : > { %v5792_v35 = vadd.f32 %v11952_v27, %v5657_v23  ;;  %v6272_v14 = vpop.f32.mrf.mxu1  ;;  %v5922_v30 = vmax.f32 %v5794_v31, 0.0  ;;  %v5662_v19 = vadd.f32 %v8417_v5, %v3707_v44  ;;  %v12903_v44 = vld [vmem:[#allocation115_spill] sm:$0xff] }
 0x426   : > { %6773 = vst [vmem:[%s12134_s19 + $0x30] sm:$0xff] %v6281_v52  ;;  %v6273_v13 = vadd.f32 %v12127_v54, %v6272_v14  ;;  %v5473_v21 = vpop.f32.mrf.mxu0  ;;  %v3726_v52 = vadd.f32 %v12024_v34, %v12902_v41 }
 0x427   : > { %v5920_v60 = vmax.f32 %v5792_v35, 0.0  ;;  %v5660_v48 = vadd.f32 %v5473_v21, %v3699_v47  ;;  %v8446_v33 = vpop.f32.mrf.mxu1  ;;  %v5996_v59 = vpack.c.bf16 %v5922_v30, %v5921_v62  ;;  %v5797_v63 = vadd.f32 %v11952_v27, %v5662_v19 }
 0x428   : > { %6771 = vst [vmem:[%s12134_s19 + $0x20] sm:$0xff] %v6273_v13  ;;  %v6284_v12 = vadd.f32 %v8446_v33, %v12127_v54  ;;  %v8418_v1 = vpop.f32.mrf.mxu0  ;;  %v3718_v30 = vadd.f32 %v12040_v38, %v12903_v44 }
 0x429   : > { %v5995_v37 = vpack.c.bf16 %v5920_v60, %v5919_v40  ;;  %v5663_v3 = vadd.f32 %v8418_v1, %v3710_v10  ;;  %v6275_v49 = vpop.f32.mrf.mxu1  ;;  %v5795_v29 = vadd.f32 %v11952_v27, %v5660_v48  ;;  %v5925_v39 = vmax.f32 %v5797_v63, 0.0  ;;  %v12904_v1 = vld [vmem:[#allocation119_spill] sm:$0xff] }
 0x42a   : > { %6774 = vst [vmem:[%s12134_s19 + $0x38] sm:$0xff] %v6284_v12  ;;  %v6276_v25 = vadd.f32 %v12127_v54, %v6275_v49  ;;  %v5476_v53 = vpop.f32.mrf.mxu0  ;;  %v3731_v42 = vadd.f32 %v12052_v55, %v12904_v1 }
 0x42b   : > { %v5798_v15 = vadd.f32 %v11952_v27, %v5663_v3  ;;  %v5661_v6 = vadd.f32 %v5476_v53, %v3702_v9  ;;  %v8449_v4 = vpop.f32.mrf.mxu1  ;;  %8543 = vmatprep.mubr.msk.bf16.mxu1 %vm958_vm0, %v5995_v37  ;;  %v5923_v5 = vmax.f32 %v5795_v29, 0.0  ;;  %v12905_v3 = vld [vmem:[#allocation117_spill] sm:$0xff] }
 0x42c   : > { %6772 = vst [vmem:[%s12134_s19 + $0x28] sm:$0xff] %v6276_v25  ;;  %v6297_v11 = vadd.f32 %v8449_v4, %v12127_v54  ;;  %v8421_v50 = vpop.f32.mrf.mxu0  ;;  %8544 = vmatmul.mubr.msk.bf16.gmra.mxu1 %vm958_vm0, %v5996_v59  ;;  %v3739_v49 = vadd.f32 %v12045_v46, %v12905_v3  ;;  %v12906_v29 = vld [vmem:[#allocation121_spill] sm:$0xff] }
 0x42d   : > { %v5796_v7 = vadd.f32 %v11952_v27, %v5661_v6  ;;  %v6288_v36 = vpop.f32.mrf.mxu1  ;;  %v5926_v31 = vmax.f32 %v5798_v15, 0.0  ;;  %v5666_v14 = vadd.f32 %v8421_v50, %v3723_v43  ;;  %v3742_v15 = vadd.f32 %v12064_v28, %v12906_v29 }
 0x42e   : > { %6777 = vst [vmem:[%s12134_s19 + $0x50] sm:$0xff] %v6297_v11  ;;  %v6289_v23 = vadd.f32 %v12127_v54, %v6288_v36  ;;  %v5489_v0 = vpop.f32.mrf.mxu0 }
 0x42f   : > { %v5924_v16 = vmax.f32 %v5796_v7, 0.0  ;;  %v5664_v47 = vadd.f32 %v5489_v0, %v3715_v61  ;;  %v8450_v35 = vpop.f32.mrf.mxu1  ;;  %v5998_v10 = vpack.c.bf16 %v5926_v31, %v5925_v39  ;;  %v5801_v19 = vadd.f32 %v11952_v27, %v5666_v14  ;;  %v12907_v61 = vld [vmem:[#allocation123_spill] sm:$0xff] }
 0x430   : > { %6775 = vst [vmem:[%s12134_s19 + $0x40] sm:$0xff] %v6289_v23  ;;  %v6300_v57 = vadd.f32 %v8450_v35, %v12127_v54  ;;  %v8422_v26 = vpop.f32.mrf.mxu0  ;;  %v3734_v7 = vadd.f32 %v12071_v24, %v12907_v61  ;;  %v12908_v35 = vld [vmem:[#allocation127_spill] sm:$0xff]  ;;  %v12914_v61 = vld [vmem:[#allocation137_spill] sm:$0xff] }
 0x431   : > { %v5997_v13 = vpack.c.bf16 %v5924_v16, %v5923_v5  ;;  %v5667_v21 = vadd.f32 %v8422_v26, %v3726_v52  ;;  %v6291_v18 = vpop.f32.mrf.mxu1  ;;  %v5799_v60 = vadd.f32 %v11952_v27, %v5664_v47  ;;  %v5929_v55 = vmax.f32 %v5801_v19, 0.0  ;;  %v12909_v26 = vld [vmem:[#allocation125_spill] sm:$0xff]  ;;  %v12911_v19 = vld [vmem:[#allocation131_spill] sm:$0xff] }
 0x432   : > { %6778 = vst [vmem:[%s12134_s19 + $0x58] sm:$0xff] %v6300_v57  ;;  %v6292_v34 = vadd.f32 %v12127_v54, %v6291_v18  ;;  %v5492_v40 = vpop.f32.mrf.mxu0  ;;  %v3747_v39 = vadd.f32 %v12086_v32, %v12908_v35  ;;  %v3755_v44 = vadd.f32 %v12078_v51, %v12909_v26  ;;  %v12910_v18 = vld [vmem:[#allocation129_spill] sm:$0xff] }
 0x433   : > { %v5802_v48 = vadd.f32 %v11952_v27, %v5667_v21  ;;  %v5665_v33 = vadd.f32 %v5492_v40, %v3718_v30  ;;  %v8453_v62 = vpop.f32.mrf.mxu1  ;;  %8547 = vmatprep.mubr.msk.bf16.mxu1 %vm958_vm0, %v5997_v13  ;;  %v5927_v6 = vmax.f32 %v5799_v60, 0.0 }
 0x434   : > { %6776 = vst [vmem:[%s12134_s19 + $0x48] sm:$0xff] %v6292_v34  ;;  %v6313_v38 = vadd.f32 %v8453_v62, %v12127_v54  ;;  %v8425_v12 = vpop.f32.mrf.mxu0  ;;  %8548 = vmatmul.mubr.msk.bf16.gmra.mxu1 %vm958_vm0, %v5998_v10  ;;  %v3758_v10 = vadd.f32 %v12097_v56, %v12910_v18 }
 0x435   : > { %v5800_v9 = vadd.f32 %v11952_v27, %v5665_v33  ;;  %v6304_v37 = vpop.f32.mrf.mxu1  ;;  %v5930_v59 = vmax.f32 %v5802_v48, 0.0  ;;  %v5670_v50 = vadd.f32 %v8425_v12, %v3739_v49 }
 0x436   : > { %6781 = vst [vmem:[%s12134_s19 + $0x70] sm:$0xff] %v6313_v38  ;;  %v6305_v25 = vadd.f32 %v12127_v54, %v6304_v37  ;;  %v5505_v53 = vpop.f32.mrf.mxu0  ;;  %v3750_v38 = vadd.f32 %v12100_v58, %v12911_v19 }
 0x437   : > { %v5928_v4 = vmax.f32 %v5800_v9, 0.0  ;;  %v5668_v63 = vadd.f32 %v5505_v53, %v3731_v42  ;;  %v8454_v11 = vpop.f32.mrf.mxu1  ;;  %v6000_v31 = vpack.c.bf16 %v5930_v59, %v5929_v55  ;;  %v5805_v16 = vadd.f32 %v11952_v27, %v5670_v50 }
 0x438   : > { %6779 = vst [vmem:[%s12134_s19 + $0x60] sm:$0xff] %v6305_v25  ;;  %v6316_v22 = vadd.f32 %v8454_v11, %v12127_v54  ;;  %v8426_v46 = vpop.f32.mrf.mxu0  ;;  %v12913_v11 = vld [vmem:[#allocation133_spill] sm:$0xff] }
 0x439   : > { %v5999_v36 = vpack.c.bf16 %v5928_v4, %v5927_v6  ;;  %v5671_v20 = vadd.f32 %v8426_v46, %v3742_v15  ;;  %v6307_v43 = vpop.f32.mrf.mxu1  ;;  %v5803_v0 = vadd.f32 %v11952_v27, %v5668_v63  ;;  %v5933_v32 = vmax.f32 %v5805_v16, 0.0  ;;  %v12912_v15 = vld [vmem:[#allocation135_spill] sm:$0xff] }
 0x43a   : > { %6782 = vst [vmem:[%s12134_s19 + $0x78] sm:$0xff] %v6316_v22  ;;  %v6308_v28 = vadd.f32 %v12127_v54, %v6307_v43  ;;  %v5508_v23 = vpop.f32.mrf.mxu0  ;;  %v3763_v6 = vadd.f32 %v12113_v8, %v12912_v15  ;;  %v3771_v55 = vadd.f32 %v12105_v17, %v12913_v11 }
 0x43b   : > { %v5806_v41 = vadd.f32 %v11952_v27, %v5671_v20  ;;  %v5669_v52 = vadd.f32 %v5508_v23, %v3734_v7  ;;  %v8457_v5 = vpop.f32.mrf.mxu1  ;;  %8551 = vmatprep.mubr.msk.bf16.mxu1 %vm958_vm0, %v5999_v36  ;;  %v5931_v34 = vmax.f32 %v5803_v0, 0.0  ;;  %v3774_v7 = vadd.f32 %v12117_v2, %v12914_v61  ;;  %v12915_v0 = vld [vmem:[#allocation139_spill] sm:$0xff] }
 0x43c   : > { %6780 = vst [vmem:[%s12134_s19 + $0x68] sm:$0xff] %v6308_v28  ;;  %v6329_v24 = vadd.f32 %v8457_v5, %v12127_v54  ;;  %v8429_v47 = vpop.f32.mrf.mxu0  ;;  %8552 = vmatmul.mubr.msk.bf16.gmra.mxu1 %vm958_vm0, %v6000_v31 }
 0x43d   : > { %v5804_v14 = vadd.f32 %v11952_v27, %v5669_v52  ;;  %v6320_v57 = vpop.f32.mrf.mxu1  ;;  %v5934_v30 = vmax.f32 %v5806_v41, 0.0  ;;  %v5674_v33 = vadd.f32 %v8429_v47, %v3755_v44  ;;  %v3766_v41 = vadd.f32 %v12122_v45, %v12915_v0 }
 0x43e   : > { %6785 = vst [vmem:[%s12134_s19 + $0x90] sm:$0xff] %v6329_v24  ;;  %v6321_v13 = vadd.f32 %v12127_v54, %v6320_v57  ;;  %v5521_v21 = vpop.f32.mrf.mxu0 }
 0x43f   : > { %v5932_v40 = vmax.f32 %v5804_v14, 0.0  ;;  %v5672_v60 = vadd.f32 %v5521_v21, %v3747_v39  ;;  %v8458_v48 = vpop.f32.mrf.mxu1  ;;  %v6002_v9 = vpack.c.bf16 %v5934_v30, %v5933_v32  ;;  %v5809_v53 = vadd.f32 %v11952_v27, %v5674_v33 }
 0x440   : > { %6783 = vst [vmem:[%s12134_s19 + $0x80] sm:$0xff] %v6321_v13  ;;  %v6332_v62 = vadd.f32 %v8458_v48, %v12127_v54  ;;  %v8430_v51 = vpop.f32.mrf.mxu0 }
 0x441   : > { %v6001_v12 = vpack.c.bf16 %v5932_v40, %v5931_v34  ;;  %v5675_v1 = vadd.f32 %v8430_v51, %v3758_v10  ;;  %v6323_v42 = vpop.f32.mrf.mxu1  ;;  %v5807_v3 = vadd.f32 %v11952_v27, %v5672_v60  ;;  %v5937_v8 = vmax.f32 %v5809_v53, 0.0 }
 0x442   : > { %6786 = vst [vmem:[%s12134_s19 + $0x98] sm:$0xff] %v6332_v62  ;;  %v6324_v56 = vadd.f32 %v12127_v54, %v6323_v42  ;;  %v5524_v37 = vpop.f32.mrf.mxu0 }
 0x443   : > { %v5810_v49 = vadd.f32 %v11952_v27, %v5675_v1  ;;  %v5673_v59 = vadd.f32 %v5524_v37, %v3750_v38  ;;  %v8461_v25 = vpop.f32.mrf.mxu1  ;;  %8555 = vmatprep.mubr.msk.bf16.mxu1 %vm958_vm0, %v6001_v12  ;;  %v5935_v36 = vmax.f32 %v5807_v3, 0.0 }
 0x444   : > { %6784 = vst [vmem:[%s12134_s19 + $0x88] sm:$0xff] %v6324_v56  ;;  %v6345_v58 = vadd.f32 %v8461_v25, %v12127_v54  ;;  %v8433_v29 = vpop.f32.mrf.mxu0  ;;  %8556 = vmatmul.mubr.msk.bf16.gmra.mxu1 %vm958_vm0, %v6002_v9 }
 0x445   : > { %v5808_v4 = vadd.f32 %v11952_v27, %v5673_v59  ;;  %v6336_v63 = vpop.f32.mrf.mxu1  ;;  %v5938_v50 = vmax.f32 %v5810_v49, 0.0  ;;  %v5678_v28 = vadd.f32 %v8433_v29, %v3771_v55 }
 0x446   : > { %6789 = vst [vmem:[%s12134_s19 + $0xb0] sm:$0xff] %v6345_v58  ;;  %v6337_v22 = vadd.f32 %v12127_v54, %v6336_v63  ;;  %v5537_v46 = vpop.f32.mrf.mxu0 }
 0x447   : > { %v5936_v20 = vmax.f32 %v5808_v4, 0.0  ;;  %v5676_v43 = vadd.f32 %v5537_v46, %v3763_v6  ;;  %v8462_v31 = vpop.f32.mrf.mxu1  ;;  %v6004_v24 = vpack.c.bf16 %v5938_v50, %v5937_v8  ;;  %v5813_v45 = vadd.f32 %v11952_v27, %v5678_v28 }
 0x448   : > { %6787 = vst [vmem:[%s12134_s19 + $0xa0] sm:$0xff] %v6337_v22  ;;  %v6348_v23 = vadd.f32 %v8462_v31, %v12127_v54  ;;  %v8434_v17 = vpop.f32.mrf.mxu0 }
 0x449   : > { %v6003_v52 = vpack.c.bf16 %v5936_v20, %v5935_v36  ;;  %v5679_v5 = vadd.f32 %v8434_v17, %v3774_v7  ;;  %v6339_v16 = vpop.f32.mrf.mxu1  ;;  %v5811_v35 = vadd.f32 %v11952_v27, %v5676_v43  ;;  %v5941_v40 = vmax.f32 %v5813_v45, 0.0 }
 0x44a   : > { %6790 = vst [vmem:[%s12134_s19 + $0xb8] sm:$0xff] %v6348_v23  ;;  %v6340_v2 = vadd.f32 %v12127_v54, %v6339_v16  ;;  %v5540_v47 = vpop.f32.mrf.mxu0 }
 0x44b   : > { %v5814_v39 = vadd.f32 %v11952_v27, %v5679_v5  ;;  %v5677_v14 = vadd.f32 %v5540_v47, %v3766_v41  ;;  %v8465_v57 = vpop.f32.mrf.mxu1  ;;  %8559 = vmatprep.mubr.msk.bf16.mxu1 %vm958_vm0, %v6003_v52  ;;  %v5939_v18 = vmax.f32 %v5811_v35, 0.0 }
 0x44c   : > { %6788 = vst [vmem:[%s12134_s19 + $0xa8] sm:$0xff] %v6340_v2  ;;  %v6361_v26 = vadd.f32 %v8465_v57, %v12127_v54  ;;  %8560 = vmatmul.mubr.msk.bf16.gmra.mxu1 %vm958_vm0, %v6004_v24 }
 0x44d   : > { %v5812_v44 = vadd.f32 %v11952_v27, %v5677_v14  ;;  %v6352_v30 = vpop.f32.mrf.mxu1  ;;  %v5942_v13 = vmax.f32 %v5814_v39, 0.0 }
 0x44e   : > { %6793 = vst [vmem:[%s12134_s19 + $0xd0] sm:$0xff] %v6361_v26  ;;  %v6353_v21 = vadd.f32 %v12127_v54, %v6352_v30 }
 0x44f   : > { %v5940_v10 = vmax.f32 %v5812_v44, 0.0  ;;  %v8466_v34 = vpop.f32.mrf.mxu1  ;;  %v6006_v33 = vpack.c.bf16 %v5942_v13, %v5941_v40 }
 0x450   : > { %6791 = vst [vmem:[%s12134_s19 + $0xc0] sm:$0xff] %v6353_v21  ;;  %v6364_v60 = vadd.f32 %v8466_v34, %v12127_v54 }
 0x451   : > { %v6005_v48 = vpack.c.bf16 %v5940_v10, %v5939_v18  ;;  %v6355_v32 = vpop.f32.mrf.mxu1 }
 0x452   : > { %6794 = vst [vmem:[%s12134_s19 + $0xd8] sm:$0xff] %v6364_v60  ;;  %v6356_v27 = vadd.f32 %v12127_v54, %v6355_v32 }
 0x453   : > { %v8469_v62 = vpop.f32.mrf.mxu1  ;;  %8563 = vmatprep.mubr.msk.bf16.mxu1 %vm958_vm0, %v6005_v48 }
 0x454   : > { %6792 = vst [vmem:[%s12134_s19 + $0xc8] sm:$0xff] %v6356_v27  ;;  %v6377_v51 = vadd.f32 %v8469_v62, %v12127_v54  ;;  %8564 = vmatmul.mubr.msk.bf16.gmra.mxu1 %vm958_vm0, %v6006_v33 }
 0x455   : > { %v6368_v19 = vpop.f32.mrf.mxu1 }
 0x456   : > { %6797 = vst [vmem:[%s12134_s19 + $0xf0] sm:$0xff] %v6377_v51  ;;  %v6369_v38 = vadd.f32 %v12127_v54, %v6368_v19 }
 0x457   : > { %v8470_v12 = vpop.f32.mrf.mxu1 }
 0x458   : > { %6795 = vst [vmem:[%s12134_s19 + $0xe0] sm:$0xff] %v6369_v38  ;;  %v6380_v1 = vadd.f32 %v8470_v12, %v12127_v54 }
 0x459   : > { %v6371_v42 = vpop.f32.mrf.mxu1 }
 0x45a   : > { %6798 = vst [vmem:[%s12134_s19 + $0xf8] sm:$0xff] %v6380_v1  ;;  %v6372_v9 = vadd.f32 %v12127_v54, %v6371_v42 }
 0x45b   : > { %v8473_v56 = vpop.f32.mrf.mxu1 }
 0x45c   : > { %6796 = vst [vmem:[%s12134_s19 + $0xe8] sm:$0xff] %v6372_v9  ;;  %v6393_v37 = vadd.f32 %v8473_v56, %v12127_v54 }
 0x45d   : > { %v6384_v3 = vpop.f32.mrf.mxu1 }
 0x45e   : > { %6801 = vst [vmem:[%s12134_s19 + $0x110] sm:$0xff] %v6393_v37  ;;  %v6385_v49 = vadd.f32 %v12127_v54, %v6384_v3 }
 0x45f   : > { %v8474_v59 = vpop.f32.mrf.mxu1 }
 0x460   : > { %6799 = vst [vmem:[%s12134_s19 + $0x100] sm:$0xff] %v6385_v49  ;;  %v6396_v25 = vadd.f32 %v8474_v59, %v12127_v54 }
 0x461   : > { %v6387_v53 = vpop.f32.mrf.mxu1 }
 0x462   : > { %6802 = vst [vmem:[%s12134_s19 + $0x118] sm:$0xff] %v6396_v25  ;;  %v6388_v58 = vadd.f32 %v12127_v54, %v6387_v53 }
 0x463   : > { %v8477_v29 = vpop.f32.mrf.mxu1 }
 0x464   : > { %6800 = vst [vmem:[%s12134_s19 + $0x108] sm:$0xff] %v6388_v58  ;;  %v6409_v15 = vadd.f32 %v8477_v29, %v12127_v54 }
 0x465   : > { %v6400_v6 = vpop.f32.mrf.mxu1 }
 0x466   : > { %6805 = vst [vmem:[%s12134_s19 + $0x130] sm:$0xff] %v6409_v15  ;;  %v6401_v4 = vadd.f32 %v12127_v54, %v6400_v6 }
 0x467   : > { %v8478_v63 = vpop.f32.mrf.mxu1 }
 0x468   : > { %6803 = vst [vmem:[%s12134_s19 + $0x120] sm:$0xff] %v6401_v4  ;;  %v6412_v11 = vadd.f32 %v8478_v63, %v12127_v54 }
 0x469   : > { %v6403_v55 = vpop.f32.mrf.mxu1 }
 0x46a   : > { %6806 = vst [vmem:[%s12134_s19 + $0x138] sm:$0xff] %v6412_v11  ;;  %v6404_v50 = vadd.f32 %v12127_v54, %v6403_v55 }
 0x46b   : > { %v8481_v22 = vpop.f32.mrf.mxu1 }
 0x46c   : > { %6804 = vst [vmem:[%s12134_s19 + $0x128] sm:$0xff] %v6404_v50  ;;  %v6425_v46 = vadd.f32 %v8481_v22, %v12127_v54 }
 0x46d   : > { %v6416_v61 = vpop.f32.mrf.mxu1 }
 0x46e   : > { %6809 = vst [vmem:[%s12134_s19 + $0x150] sm:$0xff] %v6425_v46  ;;  %v6417_v7 = vadd.f32 %v12127_v54, %v6416_v61 }
 0x46f   : > { %v8482_v36 = vpop.f32.mrf.mxu1 }
 0x470   : > { %6807 = vst [vmem:[%s12134_s19 + $0x140] sm:$0xff] %v6417_v7  ;;  %v6428_v20 = vadd.f32 %v8482_v36, %v12127_v54 }
 0x471   : > { %v6419_v43 = vpop.f32.mrf.mxu1 }
 0x472   : > { %6810 = vst [vmem:[%s12134_s19 + $0x158] sm:$0xff] %v6428_v20  ;;  %v6420_v31 = vadd.f32 %v12127_v54, %v6419_v43 }
 0x473   : > { %v8485_v8 = vpop.f32.mrf.mxu1 }
 0x474   : > { %6808 = vst [vmem:[%s12134_s19 + $0x148] sm:$0xff] %v6420_v31  ;;  %v6441_v28 = vadd.f32 %v8485_v8, %v12127_v54 }
 0x475   : > { %v6432_v23 = vpop.f32.mrf.mxu1 }
 0x476   : > { %6813 = vst [vmem:[%s12134_s19 + $0x170] sm:$0xff] %v6441_v28  ;;  %v6433_v17 = vadd.f32 %v12127_v54, %v6432_v23 }
 0x477   : > { %v8486_v0 = vpop.f32.mrf.mxu1 }
 0x478   : > { %6811 = vst [vmem:[%s12134_s19 + $0x160] sm:$0xff] %v6433_v17  ;;  %v6444_v41 = vadd.f32 %v8486_v0, %v12127_v54 }
 0x479   : > { %v6435_v52 = vpop.f32.mrf.mxu1 }
 0x47a   : > { %6814 = vst [vmem:[%s12134_s19 + $0x178] sm:$0xff] %v6444_v41  ;;  %v6436_v5 = vadd.f32 %v12127_v54, %v6435_v52 }
 0x47b   : > { %v8489_v16 = vpop.f32.mrf.mxu1 }
 0x47c   : > { %6812 = vst [vmem:[%s12134_s19 + $0x168] sm:$0xff] %v6436_v5  ;;  %v6457_v24 = vadd.f32 %v8489_v16, %v12127_v54 }
 0x47d   : > { %v6448_v2 = vpop.f32.mrf.mxu1 }
 0x47e   : > { %6817 = vst [vmem:[%s12134_s19 + $0x190] sm:$0xff] %v6457_v24  ;;  %v6449_v47 = vadd.f32 %v12127_v54, %v6448_v2 }
 0x47f   : > { %v8490_v35 = vpop.f32.mrf.mxu1 }
 0x480   : > { %6815 = vst [vmem:[%s12134_s19 + $0x180] sm:$0xff] %v6449_v47  ;;  %v6460_v39 = vadd.f32 %v8490_v35, %v12127_v54 }
 0x481   : > { %v6451_v14 = vpop.f32.mrf.mxu1 }
 0x482   : > { %6818 = vst [vmem:[%s12134_s19 + $0x198] sm:$0xff] %v6460_v39  ;;  %v6452_v57 = vadd.f32 %v12127_v54, %v6451_v14 }
 0x483   : > { %v8493_v45 = vpop.f32.mrf.mxu1 }
 0x484   : > { %6816 = vst [vmem:[%s12134_s19 + $0x188] sm:$0xff] %v6452_v57  ;;  %v6473_v26 = vadd.f32 %v8493_v45, %v12127_v54 }
 0x485   : > { %v6464_v44 = vpop.f32.mrf.mxu1 }
 0x486   : > { %6821 = vst [vmem:[%s12134_s19 + $0x1b0] sm:$0xff] %v6473_v26  ;;  %v6465_v30 = vadd.f32 %v12127_v54, %v6464_v44 }
 0x487   : > { %v8494_v13 = vpop.f32.mrf.mxu1 }
 0x488   : > { %6819 = vst [vmem:[%s12134_s19 + $0x1a0] sm:$0xff] %v6465_v30  ;;  %v6476_v21 = vadd.f32 %v8494_v13, %v12127_v54 }
 0x489   : > { %v6467_v18 = vpop.f32.mrf.mxu1 }
 0x48a   : > { %6822 = vst [vmem:[%s12134_s19 + $0x1b8] sm:$0xff] %v6476_v21  ;;  %v6468_v10 = vadd.f32 %v12127_v54, %v6467_v18 }
 0x48b   : > { %v8497_v34 = vpop.f32.mrf.mxu1 }
 0x48c   : > { %6820 = vst [vmem:[%s12134_s19 + $0x1a8] sm:$0xff] %v6468_v10  ;;  %v6489_v40 = vadd.f32 %v8497_v34, %v12127_v54 }
 0x48d   : > { %v6480_v60 = vpop.f32.mrf.mxu1 }
 0x48e   : > { %6825 = vst [vmem:[%s12134_s19 + $0x1d0] sm:$0xff] %v6489_v40  ;;  %v6481_v48 = vadd.f32 %v12127_v54, %v6480_v60 }
 0x48f   : > { %v8498_v32 = vpop.f32.mrf.mxu1 }
 0x490   : > { %6823 = vst [vmem:[%s12134_s19 + $0x1c0] sm:$0xff] %v6481_v48  ;;  %v6492_v33 = vadd.f32 %v8498_v32, %v12127_v54 }
 0x491   : > { %v6483_v27 = vpop.f32.mrf.mxu1 }
 0x492   : > { %6826 = vst [vmem:[%s12134_s19 + $0x1d8] sm:$0xff] %v6492_v33  ;;  %v6484_v62 = vadd.f32 %v12127_v54, %v6483_v27 }
 0x493   : > { %v8501_v51 = vpop.f32.mrf.mxu1 }
 0x494   : > { %6824 = vst [vmem:[%s12134_s19 + $0x1c8] sm:$0xff] %v6484_v62  ;;  %v6505_v19 = vadd.f32 %v8501_v51, %v12127_v54 }
 0x495   : > { %v6496_v38 = vpop.f32.mrf.mxu1 }
 0x496   : > { %6829 = vst [vmem:[%s12134_s19 + $0x1f0] sm:$0xff] %v6505_v19  ;;  %v6497_v12 = vadd.f32 %v12127_v54, %v6496_v38 }
 0x497   : > { %v8502_v1 = vpop.f32.mrf.mxu1 }
 0x498   : > { %6827 = vst [vmem:[%s12134_s19 + $0x1e0] sm:$0xff] %v6497_v12  ;;  %v6508_v42 = vadd.f32 %v8502_v1, %v12127_v54 }
 0x499   : > { %v6499_v9 = vpop.f32.mrf.mxu1 }
 0x49a   : > { %6830 = vst [vmem:[%s12134_s19 + $0x1f8] sm:$0xff] %v6508_v42  ;;  %v6500_v56 = vadd.f32 %v12127_v54, %v6499_v9 }
 0x49b   : > { %v8505_v37 = vpop.f32.mrf.mxu1 }
 0x49c   : > { %6828 = vst [vmem:[%s12134_s19 + $0x1e8] sm:$0xff] %v6500_v56  ;;  %v6521_v3 = vadd.f32 %v8505_v37, %v12127_v54 }
 0x49d   : > { %v6512_v49 = vpop.f32.mrf.mxu1 }
 0x49e   : > { %6833 = vst [vmem:[%s12134_s19 + $0x210] sm:$0xff] %v6521_v3  ;;  %v6513_v59 = vadd.f32 %v12127_v54, %v6512_v49 }
 0x49f   : > { %v8506_v25 = vpop.f32.mrf.mxu1 }
 0x4a0   : > { %6831 = vst [vmem:[%s12134_s19 + $0x200] sm:$0xff] %v6513_v59  ;;  %v6524_v53 = vadd.f32 %v8506_v25, %v12127_v54 }
 0x4a1   : > { %v6515_v58 = vpop.f32.mrf.mxu1 }
 0x4a2   : > { %6834 = vst [vmem:[%s12134_s19 + $0x218] sm:$0xff] %v6524_v53  ;;  %v6516_v29 = vadd.f32 %v12127_v54, %v6515_v58 }
 0x4a3   : > { %v8509_v15 = vpop.f32.mrf.mxu1 }
 0x4a4   : > { %6832 = vst [vmem:[%s12134_s19 + $0x208] sm:$0xff] %v6516_v29  ;;  %v6537_v6 = vadd.f32 %v8509_v15, %v12127_v54 }
 0x4a5   : > { %v6528_v4 = vpop.f32.mrf.mxu1 }
 0x4a6   : > { %6837 = vst [vmem:[%s12134_s19 + $0x230] sm:$0xff] %v6537_v6  ;;  %v6529_v63 = vadd.f32 %v12127_v54, %v6528_v4 }
 0x4a7   : > { %v8510_v11 = vpop.f32.mrf.mxu1 }
 0x4a8   : > { %6835 = vst [vmem:[%s12134_s19 + $0x220] sm:$0xff] %v6529_v63  ;;  %v6540_v55 = vadd.f32 %v8510_v11, %v12127_v54 }
 0x4a9   : > { %v6531_v50 = vpop.f32.mrf.mxu1 }
 0x4aa   : > { %6838 = vst [vmem:[%s12134_s19 + $0x238] sm:$0xff] %v6540_v55  ;;  %v6532_v22 = vadd.f32 %v12127_v54, %v6531_v50 }
 0x4ab   : > { %v8513_v46 = vpop.f32.mrf.mxu1 }
 0x4ac   : > { %6836 = vst [vmem:[%s12134_s19 + $0x228] sm:$0xff] %v6532_v22  ;;  %v6553_v61 = vadd.f32 %v8513_v46, %v12127_v54 }
 0x4ad   : > { %v6544_v7 = vpop.f32.mrf.mxu1 }
 0x4ae   : > { %6841 = vst [vmem:[%s12134_s19 + $0x250] sm:$0xff] %v6553_v61  ;;  %v6545_v36 = vadd.f32 %v12127_v54, %v6544_v7 }
 0x4af   : > { %v8514_v20 = vpop.f32.mrf.mxu1 }
 0x4b0   : > { %6839 = vst [vmem:[%s12134_s19 + $0x240] sm:$0xff] %v6545_v36  ;;  %v6556_v43 = vadd.f32 %v8514_v20, %v12127_v54 }
 0x4b1   : > { %v6547_v31 = vpop.f32.mrf.mxu1 }
 0x4b2   : > { %6842 = vst [vmem:[%s12134_s19 + $0x258] sm:$0xff] %v6556_v43  ;;  %v6548_v8 = vadd.f32 %v12127_v54, %v6547_v31 }
 0x4b3   : > { %v8517_v28 = vpop.f32.mrf.mxu1 }
 0x4b4   : > { %6840 = vst [vmem:[%s12134_s19 + $0x248] sm:$0xff] %v6548_v8  ;;  %v6569_v23 = vadd.f32 %v8517_v28, %v12127_v54 }
 0x4b5   : > { %v6560_v17 = vpop.f32.mrf.mxu1 }
 0x4b6   : > { %6845 = vst [vmem:[%s12134_s19 + $0x270] sm:$0xff] %v6569_v23  ;;  %v6561_v0 = vadd.f32 %v12127_v54, %v6560_v17 }
 0x4b7   : > { %v8518_v41 = vpop.f32.mrf.mxu1 }
 0x4b8   : > { %6843 = vst [vmem:[%s12134_s19 + $0x260] sm:$0xff] %v6561_v0  ;;  %v6572_v52 = vadd.f32 %v8518_v41, %v12127_v54 }
 0x4b9   : > { %v6563_v5 = vpop.f32.mrf.mxu1 }
 0x4ba   : > { %6846 = vst [vmem:[%s12134_s19 + $0x278] sm:$0xff] %v6572_v52  ;;  %v6564_v16 = vadd.f32 %v12127_v54, %v6563_v5 }
 0x4bb   : > { %v8521_v24 = vpop.f32.mrf.mxu1 }
 0x4bc   : > { %6844 = vst [vmem:[%s12134_s19 + $0x268] sm:$0xff] %v6564_v16  ;;  %v6585_v2 = vadd.f32 %v8521_v24, %v12127_v54 }
 0x4bd   : > { %v6576_v47 = vpop.f32.mrf.mxu1 }
 0x4be   : > { %6849 = vst [vmem:[%s12134_s19 + $0x290] sm:$0xff] %v6585_v2  ;;  %v6577_v35 = vadd.f32 %v12127_v54, %v6576_v47 }
 0x4bf   : > { %v8522_v39 = vpop.f32.mrf.mxu1 }
 0x4c0   : > { %6847 = vst [vmem:[%s12134_s19 + $0x280] sm:$0xff] %v6577_v35  ;;  %v6588_v14 = vadd.f32 %v8522_v39, %v12127_v54 }
 0x4c1   : > { %v6579_v57 = vpop.f32.mrf.mxu1 }
 0x4c2   : > { %6850 = vst [vmem:[%s12134_s19 + $0x298] sm:$0xff] %v6588_v14  ;;  %v6580_v45 = vadd.f32 %v12127_v54, %v6579_v57 }
 0x4c3   : > { %v8525_v26 = vpop.f32.mrf.mxu1 }
 0x4c4   : > { %6848 = vst [vmem:[%s12134_s19 + $0x288] sm:$0xff] %v6580_v45  ;;  %v6601_v44 = vadd.f32 %v8525_v26, %v12127_v54 }
 0x4c5   : > { %v6592_v30 = vpop.f32.mrf.mxu1 }
 0x4c6   : > { %6853 = vst [vmem:[%s12134_s19 + $0x2b0] sm:$0xff] %v6601_v44  ;;  %v6593_v13 = vadd.f32 %v12127_v54, %v6592_v30 }
 0x4c7   : > { %v8526_v21 = vpop.f32.mrf.mxu1 }
 0x4c8   : > { %6851 = vst [vmem:[%s12134_s19 + $0x2a0] sm:$0xff] %v6593_v13  ;;  %v6604_v18 = vadd.f32 %v8526_v21, %v12127_v54 }
 0x4c9   : > { %v6595_v10 = vpop.f32.mrf.mxu1 }
 0x4ca   : > { %6854 = vst [vmem:[%s12134_s19 + $0x2b8] sm:$0xff] %v6604_v18  ;;  %v6596_v34 = vadd.f32 %v12127_v54, %v6595_v10  ;;  %v8813_v10 = vld [vmem:[%s12479_s4] ss:$0 sm:$0xff] }
 0x4cb   : > { %v8529_v40 = vpop.f32.mrf.mxu1 }
 0x4cc   : > { %6852 = vst [vmem:[%s12134_s19 + $0x2a8] sm:$0xff] %v6596_v34  ;;  %v6617_v60 = vadd.f32 %v8529_v40, %v12127_v54 }
 0x4cd   : > { %v6608_v48 = vpop.f32.mrf.mxu1 }
 0x4ce   : > { %6857 = vst [vmem:[%s12134_s19 + $0x2d0] sm:$0xff] %v6617_v60  ;;  %v6609_v32 = vadd.f32 %v12127_v54, %v6608_v48 }
 0x4cf   : > { %v8530_v33 = vpop.f32.mrf.mxu1 }
 0x4d0   : > { %6855 = vst [vmem:[%s12134_s19 + $0x2c0] sm:$0xff] %v6609_v32  ;;  %v6620_v27 = vadd.f32 %v8530_v33, %v12127_v54 }
 0x4d1   : > { %v6611_v62 = vpop.f32.mrf.mxu1 }
 0x4d2   : > { %6858 = vst [vmem:[%s12134_s19 + $0x2d8] sm:$0xff] %v6620_v27  ;;  %v6612_v51 = vadd.f32 %v12127_v54, %v6611_v62 }
 0x4d3   : > { %v8533_v19 = vpop.f32.mrf.mxu1 }
 0x4d4   : > { %6856 = vst [vmem:[%s12134_s19 + $0x2c8] sm:$0xff] %v6612_v51  ;;  %v6633_v38 = vadd.f32 %v8533_v19, %v12127_v54 }
 0x4d5   : > { %v6624_v12 = vpop.f32.mrf.mxu1 }
 0x4d6   : > { %6861 = vst [vmem:[%s12134_s19 + $0x2f0] sm:$0xff] %v6633_v38  ;;  %v6625_v1 = vadd.f32 %v12127_v54, %v6624_v12 }
 0x4d7   : > { %v8534_v42 = vpop.f32.mrf.mxu1 }
 0x4d8   : > { %6859 = vst [vmem:[%s12134_s19 + $0x2e0] sm:$0xff] %v6625_v1  ;;  %v6636_v9 = vadd.f32 %v8534_v42, %v12127_v54 }
 0x4d9   : > { %v6627_v56 = vpop.f32.mrf.mxu1 }
 0x4da   : > { %6862 = vst [vmem:[%s12134_s19 + $0x2f8] sm:$0xff] %v6636_v9  ;;  %v6628_v37 = vadd.f32 %v12127_v54, %v6627_v56 }
 0x4db   : > { %v8537_v3 = vpop.f32.mrf.mxu1 }
 0x4dc   : > { %6860 = vst [vmem:[%s12134_s19 + $0x2e8] sm:$0xff] %v6628_v37  ;;  %v6649_v49 = vadd.f32 %v8537_v3, %v12127_v54 }
 0x4dd   : > { %v6640_v59 = vpop.f32.mrf.mxu1 }
 0x4de   : > { %6865 = vst [vmem:[%s12134_s19 + $0x310] sm:$0xff] %v6649_v49  ;;  %v6641_v25 = vadd.f32 %v12127_v54, %v6640_v59 }
 0x4df   : > { %v8538_v53 = vpop.f32.mrf.mxu1 }
 0x4e0   : > { %6863 = vst [vmem:[%s12134_s19 + $0x300] sm:$0xff] %v6641_v25  ;;  %v6652_v58 = vadd.f32 %v8538_v53, %v12127_v54 }
 0x4e1   : > { %v6643_v29 = vpop.f32.mrf.mxu1 }
 0x4e2   : > { %6866 = vst [vmem:[%s12134_s19 + $0x318] sm:$0xff] %v6652_v58  ;;  %v6644_v15 = vadd.f32 %v12127_v54, %v6643_v29 }
 0x4e3   : > { %v8541_v6 = vpop.f32.mrf.mxu1 }
 0x4e4   : > { %6864 = vst [vmem:[%s12134_s19 + $0x308] sm:$0xff] %v6644_v15  ;;  %v6665_v4 = vadd.f32 %v8541_v6, %v12127_v54 }
 0x4e5   : > { %v6656_v63 = vpop.f32.mrf.mxu1 }
 0x4e6   : > { %6869 = vst [vmem:[%s12134_s19 + $0x330] sm:$0xff] %v6665_v4  ;;  %v6657_v11 = vadd.f32 %v12127_v54, %v6656_v63 }
 0x4e7   : > { %v8542_v55 = vpop.f32.mrf.mxu1 }
 0x4e8   : > { %6867 = vst [vmem:[%s12134_s19 + $0x320] sm:$0xff] %v6657_v11  ;;  %v6668_v50 = vadd.f32 %v8542_v55, %v12127_v54 }
 0x4e9   : > { %v6659_v22 = vpop.f32.mrf.mxu1 }
 0x4ea   : > { %6870 = vst [vmem:[%s12134_s19 + $0x338] sm:$0xff] %v6668_v50  ;;  %v6660_v46 = vadd.f32 %v12127_v54, %v6659_v22 }
 0x4ec   : > { %6868 = vst [vmem:[%s12134_s19 + $0x328] sm:$0xff] %v6660_v46  ;;  %v8545_v61 = vpop.f32.mrf.mxu1 }
 0x4ed   : > { %v6681_v7 = vadd.f32 %v8545_v61, %v12127_v54 }
 0x4ee   : > { %v6672_v36 = vpop.f32.mrf.mxu1 }
 0x4ef   : > { %6873 = vst [vmem:[%s12134_s19 + $0x350] sm:$0xff] %v6681_v7  ;;  %v6673_v20 = vadd.f32 %v12127_v54, %v6672_v36 }
 0x4f0   : > { %v8546_v43 = vpop.f32.mrf.mxu1 }
 0x4f1   : > { %6871 = vst [vmem:[%s12134_s19 + $0x340] sm:$0xff] %v6673_v20  ;;  %v6684_v31 = vadd.f32 %v8546_v43, %v12127_v54 }
 0x4f2   : > { %v6675_v8 = vpop.f32.mrf.mxu1 }
 0x4f3   : > { %6874 = vst [vmem:[%s12134_s19 + $0x358] sm:$0xff] %v6684_v31  ;;  %v6676_v28 = vadd.f32 %v12127_v54, %v6675_v8 }
 0x4f4   : > { %v8549_v23 = vpop.f32.mrf.mxu1 }
 0x4f5   : > { %6872 = vst [vmem:[%s12134_s19 + $0x348] sm:$0xff] %v6676_v28  ;;  %v6697_v17 = vadd.f32 %v8549_v23, %v12127_v54 }
 0x4f6   : > { %v6688_v0 = vpop.f32.mrf.mxu1 }
 0x4f7   : > { %6877 = vst [vmem:[%s12134_s19 + $0x370] sm:$0xff] %v6697_v17  ;;  %v6689_v41 = vadd.f32 %v12127_v54, %v6688_v0 }
 0x4f8   : > { %v8550_v52 = vpop.f32.mrf.mxu1 }
 0x4f9   : > { %6875 = vst [vmem:[%s12134_s19 + $0x360] sm:$0xff] %v6689_v41  ;;  %v6700_v5 = vadd.f32 %v8550_v52, %v12127_v54 }
 0x4fa   : > { %v6691_v16 = vpop.f32.mrf.mxu1 }
 0x4fb   : > { %6878 = vst [vmem:[%s12134_s19 + $0x378] sm:$0xff] %v6700_v5  ;;  %v6692_v24 = vadd.f32 %v12127_v54, %v6691_v16 }
 0x4fc   : > { %v8553_v2 = vpop.f32.mrf.mxu1 }
 0x4fd   : > { %6876 = vst [vmem:[%s12134_s19 + $0x368] sm:$0xff] %v6692_v24  ;;  %v6713_v47 = vadd.f32 %v8553_v2, %v12127_v54 }
 0x4fe   : > { %v6704_v35 = vpop.f32.mrf.mxu1 }
 0x4ff   : > { %6881 = vst [vmem:[%s12134_s19 + $0x390] sm:$0xff] %v6713_v47  ;;  %v6705_v39 = vadd.f32 %v12127_v54, %v6704_v35 }
 0x500   : > { %v8554_v14 = vpop.f32.mrf.mxu1 }
 0x501   : > { %6879 = vst [vmem:[%s12134_s19 + $0x380] sm:$0xff] %v6705_v39  ;;  %v6716_v57 = vadd.f32 %v8554_v14, %v12127_v54 }
 0x502   : > { %v6707_v45 = vpop.f32.mrf.mxu1 }
 0x503   : > { %6882 = vst [vmem:[%s12134_s19 + $0x398] sm:$0xff] %v6716_v57  ;;  %v6708_v26 = vadd.f32 %v12127_v54, %v6707_v45 }
 0x504   : > { %v8557_v44 = vpop.f32.mrf.mxu1 }
 0x505   : > { %6880 = vst [vmem:[%s12134_s19 + $0x388] sm:$0xff] %v6708_v26  ;;  %v6729_v30 = vadd.f32 %v8557_v44, %v12127_v54 }
 0x506   : > { %v6720_v13 = vpop.f32.mrf.mxu1 }
 0x507   : > { %6885 = vst [vmem:[%s12134_s19 + $0x3b0] sm:$0xff] %v6729_v30  ;;  %v6721_v21 = vadd.f32 %v12127_v54, %v6720_v13 }
 0x508   : > { %v8558_v18 = vpop.f32.mrf.mxu1 }
 0x509   : > { %6883 = vst [vmem:[%s12134_s19 + $0x3a0] sm:$0xff] %v6721_v21  ;;  %v6732_v34 = vadd.f32 %v8813_v10, %v8558_v18 }
 0x50a   : > { %v6723_v40 = vpop.f32.mrf.mxu1 }
 0x50b   : > { %6886 = vst [vmem:[%s12134_s19 + $0x3b8] sm:$0xff] %v6732_v34  ;;  %v6724_v60 = vadd.f32 %v8813_v10, %v6723_v40 }
 0x50c   : > { %v8561_v48 = vpop.f32.mrf.mxu1 }
 0x50d   : > { %6884 = vst [vmem:[%s12134_s19 + $0x3a8] sm:$0xff] %v6724_v60  ;;  %v6745_v32 = vadd.f32 %v8813_v10, %v8561_v48 }
 0x50e   : > { %v6736_v33 = vpop.f32.mrf.mxu1 }
 0x50f   : > { %6889 = vst [vmem:[%s12134_s19 + $0x3d0] sm:$0xff] %v6745_v32  ;;  %v6737_v54 = vadd.f32 %v8813_v10, %v6736_v33 }
 0x510   : > { %v8562_v27 = vpop.f32.mrf.mxu1 }
 0x511   : > { %6887 = vst [vmem:[%s12134_s19 + $0x3c0] sm:$0xff] %v6737_v54  ;;  %v6748_v62 = vadd.f32 %v8813_v10, %v8562_v27 }
 0x512   : > { %v6739_v51 = vpop.f32.mrf.mxu1 }
 0x513   : > { %6890 = vst [vmem:[%s12134_s19 + $0x3d8] sm:$0xff] %v6748_v62  ;;  %v6740_v19 = vadd.f32 %v8813_v10, %v6739_v51 }
 0x514   : > { %v8565_v38 = vpop.f32.mrf.mxu1 }
 0x515   : > { %6888 = vst [vmem:[%s12134_s19 + $0x3c8] sm:$0xff] %v6740_v19  ;;  %v6761_v12 = vadd.f32 %v8813_v10, %v8565_v38 }
 0x516   : > { %v6752_v1 = vpop.f32.mrf.mxu1 }
 0x517   : > { %6893 = vst [vmem:[%s12134_s19 + $0x3f0] sm:$0xff] %v6761_v12  ;;  %v6753_v42 = vadd.f32 %v8813_v10, %v6752_v1 }
 0x518   : > { %v8566_v9 = vpop.f32.mrf.mxu1 }
 0x519   : > { %6891 = vst [vmem:[%s12134_s19 + $0x3e0] sm:$0xff] %v6753_v42  ;;  %v6764_v56 = vadd.f32 %v8813_v10, %v8566_v9 }
 0x51a   : > { %v6755_v37 = vpop.f32.mrf.mxu1 }
 0x51b   : > { %6894 = vst [vmem:[%s12134_s19 + $0x3f8] sm:$0xff] %v6764_v56  ;;  %v6756_v3 = vadd.f32 %v8813_v10, %v6755_v37 }
 0x51d   : > { %6892 = vst [vmem:[%s12134_s19 + $0x3e8] sm:$0xff] %v6756_v3 }
 0x51e PF: > { %s15_s18 = sadd.s32 1, %s8820_s18  }
 0x51f   : > { %p12_p4 = scmp.ge.s32.totalorder %s15_s18, 4  }
 0x521   :  { %14 = sbr.rel (!%p12_p4) target bundleno = 1 (0x1), region = 74 }

// kernel: forward.6
= control target key start
LH: loop header
LB: loop body
LE: loop exit
PB: predicated region body
PF: predicated region fallthrough
CT: control target
= control target key end

     0   :  { %s571_s6 = smov 0   ;;  %s690_s0 = inlined_call_operand.vmem [shape: f32[8,6144], index: 0, kind: input, shape index: {}]   ;;  %s691_s1 = inlined_call_operand.vmem [shape: f32[4,6144], index: 1, kind: output, shape index: {}]  }
   0x1 LB: > { %s518_s7 = sadd.s32 4294967295, %s559_s6   ;;  %p522_p0 = scmp.ge.s32.totalorder %s559_s6, 1  ;;  %s559_s6 = sphi %s571_s6, %s11_s6  }
   0x2   : > { %p88_p1 = scmp.lt.s32.totalorder %s559_s6, 7 }
   0x4   : > { %p89_p2 = pnand %p522_p0, %p88_p1 }
   0x5   : > { %s523_s8 = sshll.u32 (!%p89_p2), %s518_s7, 3 }
   0x6   : > { %92 = sbr.rel (%p89_p2) target bundleno = 87 (0x57), region = 24  ;;  %p109_p3 = scmp.lt.s32.totalorder (!%p89_p2), %s523_s8, 47 }
   0xb   : > { %s693_s8 = smov (!%p109_p3, %s523_s8), 47  ;;  %vm424_vm0 = vcmask 1041408   ;;  %vm433_vm1 = vcmask 1042432  }
   0xc   : > { %s524_s9 = sshll.u32 %s693_s8, 3  ;;  %s526_s13 = sshll.u32 %s693_s8, 2 }
   0xd   : > { %s585_s12 = scalar_lea.vmem %s690_s0, %s524_s9  ;;  %s658_s16 = scalar_lea.vmem %s691_s1, %s526_s13 }
   0xe   : > { %v120_v0 = vld [vmem:[%s585_s12] sm:$0xf]  ;;  %v121_v1 = vld [vmem:[%s585_s12 + $0x8] sm:$0xf]  ;;  %v128_v2 = vld [vmem:[%s585_s12] sm:$0xf0] }
   0xf   : > { %v129_v3 = vld [vmem:[%s585_s12 + $0x8] sm:$0xf0]  ;;  %v144_v4 = vrot.slane %v128_v2, 6  ;;  %v208_v5 = vmin.f32 %v120_v0, 4.1351666 }
  0x10   : > { %v145_v6 = vrot.slane %v129_v3, 6  ;;  %v209_v7 = vmin.f32 %v121_v1, 4.1351666  ;;  %v130_v10 = vld [vmem:[%s585_s12 + $0x10] sm:$0xf0] }
  0x11   : > { %v160_v8 = vsub.f32 %v128_v2, %v144_v4  ;;  %v280_v9 = vmul.f32 1.442695, %v208_v5  ;;  %v131_v13 = vld [vmem:[%s585_s12 + $0x18] sm:$0xf0]  ;;  %v146_v14 = vrot.slane %v130_v10, 6 }
  0x12   : > { %v161_v11 = vsub.f32 %v129_v3, %v145_v6  ;;  %v282_v12 = vmul.f32 1.442695, %v209_v7  ;;  %v122_v16 = vld [vmem:[%s585_s12 + $0x10] sm:$0xf]  ;;  %v123_v17 = vld [vmem:[%s585_s12 + $0x18] sm:$0xf] }
  0x13   : > { %v168_v15 = vmul.f32 0.5, %v160_v8  ;;  %537 = vpow2.f32 %v280_v9  ;;  %v147_v20 = vrot.slane %v131_v13, 6  ;;  %v595_v21 = vsub.f32 %v130_v10, %v146_v14  ;;  %v602_v33 = vld [vmem:[%s585_s12 + $0x20] sm:$0xf0]  ;;  %v605_v34 = vld [vmem:[%s585_s12 + $0x28] sm:$0xf0] }
  0x14   : > { %v169_v18 = vmul.f32 0.5, %v161_v11  ;;  %539 = vpow2.f32 %v282_v12  ;;  %v210_v22 = vmin.f32 %v122_v16, 4.1351666  ;;  %v211_v23 = vmin.f32 %v123_v17, 4.1351666 }
  0x15   : > { %v184_v19 = vrot.slane %v168_v15, 2  ;;  %v224_v24 = vrot.slane %v160_v8, 6  ;;  %v597_v25 = vsub.f32 %v131_v13, %v147_v20  ;;  %v170_v26 = vmul.f32 0.5, %v595_v21  ;;  %v124_v37 = vld [vmem:[%s585_s12 + $0x20] sm:$0xf] }
  0x16   : > { %v185_v27 = vrot.slane %v169_v18, 2  ;;  %v284_v28 = vmul.f32 1.442695, %v210_v22  ;;  %v286_v29 = vmul.f32 1.442695, %v211_v23  ;;  %v296_v31 = vrot.slane %v160_v8, 4 }
  0x17   : > { %v200_v30 = vadd.f32 %v184_v19, %v128_v2  ;;  %v171_v32 = vmul.f32 0.5, %v597_v25  ;;  %v225_v35 = vrot.slane %v161_v11, 6  ;;  %v186_v36 = vrot.slane %v170_v26, 2  ;;  %v125_v38 = vld [vmem:[%s585_s12 + $0x28] sm:$0xf] }
  0x18   : > { %541 = vpow2.f32 %v284_v28  ;;  %v240_v39 = vmul.f32 %v224_v24, %v120_v0  ;;  %v297_v40 = vrot.slane %v161_v11, 4  ;;  %v226_v42 = vrot.slane %v595_v21, 6  ;;  %v623_v6 = vld [vmem:[%s585_s12 + $0x30] sm:$0xf0]  ;;  %v626_v7 = vld [vmem:[%s585_s12 + $0x38] sm:$0xf0] }
  0x19   : > { %v187_v41 = vrot.slane %v171_v32, 2  ;;  %v201_v43 = vadd.f32 %v185_v27, %v129_v3  ;;  %543 = vpow2.f32 %v286_v29  ;;  %v148_v44 = vrot.slane %v602_v33, 6 }
  0x1a   : > { %v149_v45 = vrot.slane %v605_v34, 6  ;;  %v256_v46 = vrot.slane %v200_v30, 4  ;;  %v227_v47 = vrot.slane %v597_v25, 6  ;;  %v212_v48 = vmin.f32 %v124_v37, 4.1351666 }
  0x1b   : > { %v213_v49 = vmin.f32 %v125_v38, 4.1351666  ;;  %v202_v50 = vadd.f32 %v186_v36, %v130_v10  ;;  %v203_v51 = vadd.f32 %v187_v41, %v131_v13  ;;  %v614_v52 = vsub.f32 %v602_v33, %v148_v44 }
  0x1c   : > { %v617_v53 = vsub.f32 %v605_v34, %v149_v45  ;;  %v241_v54 = vmul.f32 %v225_v35, %v121_v1  ;;  %v288_v55 = vmul.f32 1.442695, %v212_v48  ;;  %v257_v58 = vrot.slane %v201_v43, 4  ;;  %v638_v45 = vld [vmem:[%s585_s12 + $0x30] sm:$0xf] }
  0x1d   : > { %v290_v56 = vmul.f32 1.442695, %v213_v49  ;;  %v242_v59 = vmul.f32 %v226_v42, %v122_v16  ;;  %v298_v60 = vrot.slane %v595_v21, 4  ;;  %v172_v61 = vmul.f32 0.5, %v614_v52 }
  0x1e   : > { %v272_v63 = vadd.f32 %v256_v46, %v240_v39  ;;  %v173_v2 = vmul.f32 0.5, %v617_v53  ;;  %545 = vpow2.f32 %v288_v55  ;;  %v243_v4 = vmul.f32 %v227_v47, %v123_v17 }
  0x1f   : > { %v258_v1 = vrot.slane %v202_v50, 4  ;;  %v259_v5 = vrot.slane %v203_v51, 4  ;;  %v188_v9 = vrot.slane %v172_v61, 2  ;;  %v228_v10 = vrot.slane %v614_v52, 6 }
  0x20   : > { %v538_v57 = vpop.eup %537  ;;  %547 = vpow2.f32 %v290_v56  ;;  %v273_v11 = vadd.f32 %v257_v58, %v241_v54  ;;  %v299_v13 = vrot.slane %v597_v25, 4  ;;  %v229_v14 = vrot.slane %v617_v53, 6 }
  0x21   : > { %v540_v62 = vpop.eup %539  ;;  %v312_v0 = vmul.f32 %v538_v57, %v296_v31  ;;  %v189_v16 = vrot.slane %v173_v2, 2  ;;  %v150_v17 = vrot.slane %v623_v6, 6  ;;  %v151_v18 = vrot.slane %v626_v7, 6 }
  0x22   : > { %v313_v3 = vmul.f32 %v540_v62, %v297_v40  ;;  %v274_v20 = vadd.f32 %v258_v1, %v242_v59  ;;  %v275_v21 = vadd.f32 %v259_v5, %v243_v4  ;;  %v300_v22 = vrot.slane %v614_v52, 4 }
  0x23   : > { %v320_v8 = vmul.f32 0.5, %v312_v0  ;;  %v204_v25 = vadd.f32 %v188_v9, %v602_v33  ;;  %v244_v27 = vmul.f32 %v228_v10, %v124_v37  ;;  %v245_v31 = vmul.f32 %v229_v14, %v125_v38 }
  0x24   : > { %v321_v12 = vmul.f32 0.5, %v313_v3  ;;  %v205_v39 = vadd.f32 %v189_v16, %v605_v34  ;;  %v301_v40 = vrot.slane %v617_v53, 4  ;;  %v641_v38 = vsub.f32 %v623_v6, %v150_v17  ;;  %v644_v34 = vld [vmem:[%s585_s12 + $0x38] sm:$0xf] }
  0x25   : > { %v336_v15 = vrot.slane %v320_v8, 2  ;;  %v542_v23 = vpop.eup %541  ;;  %v260_v46 = vrot.slane %v204_v25, 4  ;;  %v647_v53 = vsub.f32 %v626_v7, %v151_v18  ;;  %v214_v54 = vmin.f32 %v638_v45, 4.1351666 }
  0x26   : > { %v337_v19 = vrot.slane %v321_v12, 2  ;;  %v314_v30 = vmul.f32 %v542_v23, %v298_v60  ;;  %v544_v32 = vpop.eup %543  ;;  %v261_v52 = vrot.slane %v205_v39, 4 }
  0x27   : > { %v352_v24 = vsub.f32 %v272_v63, %v336_v15  ;;  %v376_v26 = vadd.f32 %v336_v15, %v272_v63  ;;  %v315_v43 = vmul.f32 %v544_v32, %v299_v13  ;;  %v276_v61 = vadd.f32 %v260_v46, %v244_v27 }
  0x28   : > { %v353_v28 = vsub.f32 %v273_v11, %v337_v19  ;;  %v377_v29 = vadd.f32 %v337_v19, %v273_v11  ;;  %v322_v44 = vmul.f32 0.5, %v314_v30  ;;  %v215_v63 = vmin.f32 %v644_v34, 4.1351666 }
  0x29   : > { %v360_v35 = vmax.f32 %v352_v24, 0.0  ;;  %v384_v36 = vmax.f32 %v376_v26, 0.0  ;;  %v323_v49 = vmul.f32 0.5, %v315_v43  ;;  %v277_v13 = vadd.f32 %v261_v52, %v245_v31 }
  0x2a   : > { %v361_v41 = vmax.f32 %v353_v28, 0.0  ;;  %v385_v42 = vmax.f32 %v377_v29, 0.0  ;;  %v338_v50 = vrot.slane %v322_v44, 2  ;;  %v292_v23 = vmul.f32 1.442695, %v214_v54 }
  0x2b   : > { %v368_v33 = vmin.f32 %v360_v35, 32.0  ;;  %v392_v37 = vmin.f32 %v384_v36, 32.0  ;;  %v546_v55 = vpop.eup %545  ;;  %v339_v57 = vrot.slane %v323_v49, 2  ;;  %v294_v29 = vmul.f32 1.442695, %v215_v63 }
  0x2c   : > { %v369_v47 = vmin.f32 %v361_v41, 32.0  ;;  %v393_v48 = vmin.f32 %v385_v42, 32.0  ;;  %v354_v58 = vsub.f32 %v274_v20, %v338_v50  ;;  %v378_v59 = vadd.f32 %v338_v50, %v274_v20 }
  0x2d   : > { %v408_v51 = vrot.slane %v392_v37, 6  ;;  %v316_v62 = vmul.f32 %v546_v55, %v300_v22  ;;  %v548_v0 = vpop.eup %547  ;;  %v355_v4 = vsub.f32 %v275_v21, %v339_v57  ;;  %v379_v8 = vadd.f32 %v339_v57, %v275_v21 }
  0x2e   : > { %v409_v56 = vrot.slane %v393_v48, 6  ;;  %v362_v1 = vmax.f32 %v354_v58, 0.0  ;;  %v386_v9 = vmax.f32 %v378_v59, 0.0  ;;  %v317_v10 = vmul.f32 %v548_v0, %v301_v40 }
  0x2f   : > { %v425_v60 = vsel %vm424_vm0, %v368_v33, %v408_v51  ;;  %v363_v12 = vmax.f32 %v355_v4, 0.0  ;;  %v324_v14 = vmul.f32 0.5, %v316_v62  ;;  %v387_v16 = vmax.f32 %v379_v8, 0.0 }
  0x30   : > { %v426_v2 = vsel %vm424_vm0, %v369_v47, %v409_v56  ;;  %v434_v3 = vsel %vm433_vm1, %v425_v60, %v408_v51  ;;  %v370_v15 = vmin.f32 %v362_v1, 32.0  ;;  %v394_v17 = vmin.f32 %v386_v9, 32.0 }
  0x31   : > { %v435_v5 = vsel %vm433_vm1, %v426_v2, %v409_v56  ;;  %v325_v18 = vmul.f32 0.5, %v317_v10  ;;  %v340_v19 = vrot.slane %v324_v14, 2  ;;  %v174_v20 = vmul.f32 0.5, %v641_v38 }
  0x32   : > { %v450_v11 = vcombine.low %v434_v3, %v435_v5  ;;  %v175_v22 = vmul.f32 0.5, %v647_v53  ;;  %v371_v24 = vmin.f32 %v363_v12, 32.0  ;;  %v395_v26 = vmin.f32 %v387_v16, 32.0 }
  0x33   : > { %v410_v21 = vrot.slane %v394_v17, 6  ;;  %v341_v25 = vrot.slane %v325_v18, 2  ;;  %v356_v27 = vsub.f32 %v276_v61, %v340_v19  ;;  %v380_v28 = vadd.f32 %v340_v19, %v276_v61 }
  0x34   : > { %458 = vst [vmem:[%s658_s16] sm:$0xff] %v450_v11  ;;  %549 = vpow2.f32 %v292_v23  ;;  %v411_v30 = vrot.slane %v395_v26, 6  ;;  %v190_v46 = vrot.slane %v174_v20, 2  ;;  %v191_v51 = vrot.slane %v175_v22, 2 }
  0x35   : > { %v427_v31 = vsel %vm424_vm0, %v370_v15, %v410_v21  ;;  %v357_v32 = vsub.f32 %v277_v13, %v341_v25  ;;  %v381_v35 = vadd.f32 %v341_v25, %v277_v13  ;;  %v364_v39 = vmax.f32 %v356_v27, 0.0 }
  0x36   : > { %v436_v36 = vsel %vm433_vm1, %v427_v31, %v410_v21  ;;  %v388_v40 = vmax.f32 %v380_v28, 0.0  ;;  %551 = vpow2.f32 %v294_v29  ;;  %v428_v41 = vsel %vm424_vm0, %v371_v24, %v411_v30 }
  0x37   : > { %v365_v42 = vmax.f32 %v357_v32, 0.0  ;;  %v389_v43 = vmax.f32 %v381_v35, 0.0  ;;  %v437_v44 = vsel %vm433_vm1, %v428_v41, %v411_v30  ;;  %v372_v33 = vmin.f32 %v364_v39, 32.0 }
  0x38   : > { %v396_v37 = vmin.f32 %v388_v40, 32.0  ;;  %v451_v47 = vcombine.low %v436_v36, %v437_v44  ;;  %v206_v55 = vadd.f32 %v190_v46, %v623_v6  ;;  %v230_v56 = vrot.slane %v641_v38, 6 }
  0x39   : > { %v373_v48 = vmin.f32 %v365_v42, 32.0  ;;  %v397_v49 = vmin.f32 %v389_v43, 32.0  ;;  %v207_v60 = vadd.f32 %v191_v51, %v626_v7  ;;  %v231_v61 = vrot.slane %v647_v53, 6 }
  0x3a   : > { %v412_v50 = vrot.slane %v396_v37, 6  ;;  %459 = vst [vmem:[%s658_s16 + $0x8] sm:$0xff] %v451_v47  ;;  %v302_v62 = vrot.slane %v641_v38, 4  ;;  %v246_v0 = vmul.f32 %v230_v56, %v638_v45  ;;  %v262_v2 = vrot.slane %v206_v55, 4 }
  0x3b   : > { %v413_v52 = vrot.slane %v397_v49, 6  ;;  %v303_v6 = vrot.slane %v647_v53, 4  ;;  %v247_v4 = vmul.f32 %v231_v61, %v644_v34  ;;  %v263_v1 = vrot.slane %v207_v60, 4 }
  0x3c   : > { %v429_v54 = vsel %vm424_vm0, %v372_v33, %v412_v50  ;;  %v278_v9 = vadd.f32 %v262_v2, %v246_v0 }
  0x3d   : > { %v430_v57 = vsel %vm424_vm0, %v373_v48, %v413_v52  ;;  %v438_v58 = vsel %vm433_vm1, %v429_v54, %v412_v50  ;;  %v279_v11 = vadd.f32 %v263_v1, %v247_v4 }
  0x3e   : > { %v439_v59 = vsel %vm433_vm1, %v430_v57, %v413_v52 }
  0x3f   : > { %v452_v63 = vcombine.low %v438_v58, %v439_v59 }
  0x41   : > { %v550_v3 = vpop.eup %549  ;;  %460 = vst [vmem:[%s658_s16 + $0x10] sm:$0xff] %v452_v63 }
  0x42   : > { %v318_v5 = vmul.f32 %v550_v3, %v302_v62 }
  0x43   : > { %v552_v8 = vpop.eup %551 }
  0x44   : > { %v319_v10 = vmul.f32 %v552_v8, %v303_v6  ;;  %v326_v7 = vmul.f32 0.5, %v318_v5 }
  0x46   : > { %v327_v12 = vmul.f32 0.5, %v319_v10  ;;  %v342_v13 = vrot.slane %v326_v7, 2 }
  0x48   : > { %v343_v38 = vrot.slane %v327_v12, 2  ;;  %v358_v14 = vsub.f32 %v278_v9, %v342_v13  ;;  %v382_v15 = vadd.f32 %v342_v13, %v278_v9 }
  0x4a   : > { %v359_v45 = vsub.f32 %v279_v11, %v343_v38  ;;  %v366_v16 = vmax.f32 %v358_v14, 0.0  ;;  %v383_v53 = vadd.f32 %v343_v38, %v279_v11  ;;  %v390_v17 = vmax.f32 %v382_v15, 0.0 }
  0x4c   : > { %v367_v18 = vmax.f32 %v359_v45, 0.0  ;;  %v374_v19 = vmin.f32 %v366_v16, 32.0  ;;  %v391_v34 = vmax.f32 %v383_v53, 0.0  ;;  %v398_v20 = vmin.f32 %v390_v17, 32.0 }
  0x4e   : > { %v375_v22 = vmin.f32 %v367_v18, 32.0  ;;  %v399_v23 = vmin.f32 %v391_v34, 32.0  ;;  %v414_v24 = vrot.slane %v398_v20, 6 }
  0x50   : > { %v415_v26 = vrot.slane %v399_v23, 6  ;;  %v431_v21 = vsel %vm424_vm0, %v374_v19, %v414_v24 }
  0x51   : > { %v440_v25 = vsel %vm433_vm1, %v431_v21, %v414_v24 }
  0x52   : > { %v432_v27 = vsel %vm424_vm0, %v375_v22, %v415_v26 }
  0x53   : > { %v441_v28 = vsel %vm433_vm1, %v432_v27, %v415_v26 }
  0x54   : > { %v453_v29 = vcombine.low %v440_v25, %v441_v28 }
  0x56   : > { %461 = vst [vmem:[%s658_s16 + $0x18] sm:$0xff] %v453_v29 }
  0x57 PF: > { %s11_s6 = sadd.s32 1, %s559_s6  }
  0x58   : > { %p8_p4 = scmp.ge.s32.totalorder %s11_s6, 8  }
  0x5a   :  { %10 = sbr.rel (!%p8_p4) target bundleno = 1 (0x1), region = 54 }

// kernel: neg.5
= control target key start
LH: loop header
LB: loop body
LE: loop exit
PB: predicated region body
PF: predicated region fallthrough
CT: control target
= control target key end

     0   :  { %s24_s0 = inlined_call_operand.vmem [shape: f32[2,16], index: 0, kind: input, shape index: {}]   ;;  %s25_s1 = inlined_call_operand.vmem [shape: f32[2,16], index: 1, kind: output, shape index: {}]  }
   0x1   :  { %v2_v0 = vld [vmem:[%s24_s0] sm:$0x3] }
   0x2   :  { %v5_v1 = vxor.u32 2147483648, %v2_v0 }
   0x4   :  { %7 = vst [vmem:[%s25_s1] sm:$0x3] %v5_v1 }

// kernel: forward.7
= control target key start
LH: loop header
LB: loop body
LE: loop exit
PB: predicated region body
PF: predicated region fallthrough
CT: control target
= control target key end

     0   :  { %s2356_s27 = smov 0   ;;  %s2769_s0 = inlined_call_operand.vmem [shape: bf16[32,1568], index: 0, kind: input, shape index: {}]   ;;  %s2770_s1 = inlined_call_operand.vmem [shape: bf16[1568,128], index: 1, kind: input, shape index: {}]   ;;  %s2771_s2 = inlined_call_operand.vmem [shape: f32[1,128], index: 2, kind: input, shape index: {}]   ;;  %s2772_s3 = inlined_call_operand.vmem [shape: bf16[128,128], index: 3, kind: input, shape index: {}]   ;;  %s2773_s4 = inlined_call_operand.vmem [shape: f32[1,128], index: 4, kind: input, shape index: {}]   ;;  %s2774_s5 = inlined_call_operand.vmem [shape: bf16[128,128], index: 5, kind: input, shape index: {}]   ;;  %s2775_s6 = inlined_call_operand.vmem [shape: f32[1,128], index: 6, kind: input, shape index: {}]   ;;  %s2776_s7 = inlined_call_operand.vmem [shape: f32[32,128], index: 7, kind: output, shape index: {0}]   ;;  %s2777_s8 = inlined_call_operand.vmem [shape: f32[32,128], index: 8, kind: output, shape index: {1}]  }
   0x1 LB: > { %s1812_s28 = sadd.s32 4294967295, %s2307_s27   ;;  %p1816_p0 = scmp.ge.s32.totalorder %s2307_s27, 1  ;;  %s2307_s27 = sphi %s2356_s27, %s19_s27  }
   0x2   : > { %p267_p1 = scmp.lt.s32.totalorder %s2307_s27, 3 }
   0x4   : > { %p268_p2 = pnand %p1816_p0, %p267_p1 }
   0x5   : > { %s1817_s17 = sshll.u32 (!%p268_p2), %s1812_s28, 1 }
   0x6   : > { %271 = sbr.rel (%p268_p2) target bundleno = 723 (0x2d3), region = 48  ;;  %p308_p3 = scmp.lt.s32.totalorder (!%p268_p2), %s1817_s17, 3 }
   0xb   : > { %v2168_v0 = vld [vmem:[%s2770_s1 + $0x78] sm:$0xff]   ;;  %v2172_v4 = vld [vmem:[%s2770_s1 + $0x70] sm:$0xff]   ;;  %v2176_v8 = vld [vmem:[%s2770_s1 + $0x68] sm:$0xff]   ;;  %s2779_s17 = smov (!%p308_p3, %s1817_s17), 3  ;;  %vm1197_vm0 = vcmask 261120   ;;  %vm2310_vm1 = vmmov 0  }
   0xc   : > { %v2169_v1 = vld [vmem:[%s2770_s1 + $0xf8] sm:$0xff]   ;;  %1956 = vmatprep.subr.bf16.mxu0 %v2168_v0  ;;  %v2173_v5 = vld [vmem:[%s2770_s1 + $0xf0] sm:$0xff]   ;;  %v2177_v9 = vld [vmem:[%s2770_s1 + $0xe8] sm:$0xff]   ;;  %s2157_s20 = smul.u32 52, %s2779_s17  ;;  %s1820_s9 = sshll.u32 %s2779_s17, 3 }
   0xd   : > { %v2170_v2 = vld [vmem:[%s2770_s1 + $0x38] sm:$0xff]   ;;  %1978 = vmatprep.subr.bf16.mxu1 %v2169_v1  ;;  %v2174_v6 = vld [vmem:[%s2770_s1 + $0x30] sm:$0xff]   ;;  %v2178_v10 = vld [vmem:[%s2770_s1 + $0x28] sm:$0xff]   ;;  %s318_s13 = scalar_lea.vmem %s2776_s7, %s1820_s9  ;;  %s324_s18 = scalar_lea.vmem %s2777_s8, %s1820_s9 }
   0xe   : > { %v2171_v3 = vld [vmem:[%s2770_s1 + $0xb8] sm:$0xff]   ;;  %1957 = vmatpush3.bf16.msra.mxu0 %v2170_v2  ;;  %v2175_v7 = vld [vmem:[%s2770_s1 + $0xb0] sm:$0xff]   ;;  %v2179_v11 = vld [vmem:[%s2770_s1 + $0xa8] sm:$0xff]   ;;  %s2462_s10 = scalar_lea.vmem %s2769_s0, %s2157_s20 }
   0xf   : > { %1979 = vmatpush3.bf16.msra.mxu1 %v2171_v3  ;;  %1958 = vmatprep.subr.bf16.mxu0 %v2172_v4  ;;  %v2180_v12 = vld [vmem:[%s2770_s1 + $0x60] sm:$0xff]   ;;  %v2184_v16 = vld [vmem:[%s2770_s1 + $0x58] sm:$0xff]   ;;  %v2188_v20 = vld [vmem:[%s2770_s1 + $0x50] sm:$0xff]  }
  0x10   : > { %1980 = vmatprep.subr.bf16.mxu1 %v2173_v5  ;;  %v2181_v13 = vld [vmem:[%s2770_s1 + $0xe0] sm:$0xff]   ;;  %v2185_v17 = vld [vmem:[%s2770_s1 + $0xd8] sm:$0xff]   ;;  %v2189_v21 = vld [vmem:[%s2770_s1 + $0xd0] sm:$0xff]  }
  0x11   : > { %v2182_v14 = vld [vmem:[%s2770_s1 + $0x20] sm:$0xff]   ;;  %v2186_v18 = vld [vmem:[%s2770_s1 + $0x18] sm:$0xff]   ;;  %v2190_v22 = vld [vmem:[%s2770_s1 + $0x10] sm:$0xff]  }
  0x12   : > { %1959 = vmatpush3.bf16.msra.mxu0 %v2174_v6  ;;  %v2183_v15 = vld [vmem:[%s2770_s1 + $0xa0] sm:$0xff]   ;;  %v2187_v19 = vld [vmem:[%s2770_s1 + $0x98] sm:$0xff]   ;;  %v2191_v23 = vld [vmem:[%s2770_s1 + $0x90] sm:$0xff]  }
  0x13   : > { %1981 = vmatpush3.bf16.msra.mxu1 %v2175_v7  ;;  %1960 = vmatprep.subr.bf16.mxu0 %v2176_v8  ;;  %v2192_v24 = vld [vmem:[%s2770_s1 + $0x48] sm:$0xff]   ;;  %v2196_v28 = vld [vmem:[%s2770_s1 + $0x40] sm:$0xff]   ;;  %v2206_v36 = vld [vmem:[%s2770_s1 + $0x178] sm:$0xff]  }
  0x14   : > { %1982 = vmatprep.subr.bf16.mxu1 %v2177_v9  ;;  %v2193_v25 = vld [vmem:[%s2770_s1 + $0xc8] sm:$0xff]   ;;  %v2197_v29 = vld [vmem:[%s2770_s1 + $0xc0] sm:$0xff]   ;;  %v2207_v37 = vld [vmem:[%s2770_s1 + $0x1f8] sm:$0xff]  }
  0x15   : > { %v2194_v26 = vld [vmem:[%s2770_s1 + $0x8] sm:$0xff]   ;;  %v2198_v30 = vld [vmem:[%s2770_s1] sm:$0xff]   ;;  %v2208_v38 = vld [vmem:[%s2770_s1 + $0x138] sm:$0xff]  }
  0x16   : > { %1961 = vmatpush3.bf16.msra.mxu0 %v2178_v10  ;;  %v2195_v27 = vld [vmem:[%s2770_s1 + $0x88] sm:$0xff]   ;;  %v2199_v31 = vld [vmem:[%s2770_s1 + $0x80] sm:$0xff]   ;;  %v2209_v39 = vld [vmem:[%s2770_s1 + $0x1b8] sm:$0xff]  }
  0x17   : > { %1983 = vmatpush3.bf16.msra.mxu1 %v2179_v11  ;;  %1962 = vmatprep.subr.bf16.mxu0 %v2180_v12  ;;  %v2200_v32 = vld [vmem:[%s2462_s10] ss:$52 sps:$4 sm:$0xff]   ;;  %v2202_v33 = vld [vmem:[%s2462_s10 + $0x4] ss:$52 sps:$4 sm:$0xff]   ;;  %v2203_v34 = vld [vmem:[%s2462_s10 + $0x8] ss:$52 sps:$4 sm:$0xff]  }
  0x18   : > { %1984 = vmatprep.subr.bf16.mxu1 %v2181_v13  ;;  %v2205_v35 = vld [vmem:[%s2462_s10 + $0xc] ss:$52 sps:$4 sm:$0xff]   ;;  %1233 = vmatprep.mubr.bf16.mxu0 %v2202_v33  ;;  %v2210_v40 = vld [vmem:[%s2770_s1 + $0x170] sm:$0xff]   ;;  %v2222_v52 = vld [vmem:[%s2770_s1 + $0x158] sm:$0xff]  }
  0x19   : > { %1274 = vmatprep.mubr.bf16.mxu1 %v2205_v35  ;;  %v2211_v41 = vld [vmem:[%s2770_s1 + $0x1f0] sm:$0xff]   ;;  %v2214_v44 = vld [vmem:[%s2770_s1 + $0x168] sm:$0xff]   ;;  %v2218_v48 = vld [vmem:[%s2770_s1 + $0x160] sm:$0xff]  }
  0x1a   : > { %1963 = vmatpush3.bf16.msra.mxu0 %v2182_v14  ;;  %v2212_v42 = vld [vmem:[%s2770_s1 + $0x130] sm:$0xff]   ;;  %v2215_v45 = vld [vmem:[%s2770_s1 + $0x1e8] sm:$0xff]   ;;  %v2219_v49 = vld [vmem:[%s2770_s1 + $0x1e0] sm:$0xff]  }
  0x1b   : > { %1985 = vmatpush3.bf16.msra.mxu1 %v2183_v15  ;;  %1964 = vmatprep.subr.bf16.mxu0 %v2184_v16  ;;  %v2213_v43 = vld [vmem:[%s2770_s1 + $0x1b0] sm:$0xff]   ;;  %v2216_v46 = vld [vmem:[%s2770_s1 + $0x128] sm:$0xff]   ;;  %v2220_v50 = vld [vmem:[%s2770_s1 + $0x120] sm:$0xff]  }
  0x1c   : > { %1986 = vmatprep.subr.bf16.mxu1 %v2185_v17  ;;  %v2217_v47 = vld [vmem:[%s2770_s1 + $0x1a8] sm:$0xff]   ;;  %v2221_v51 = vld [vmem:[%s2770_s1 + $0x1a0] sm:$0xff]   ;;  %v2223_v53 = vld [vmem:[%s2770_s1 + $0x1d8] sm:$0xff]  }
  0x1d   : > { %v2224_v54 = vld [vmem:[%s2770_s1 + $0x118] sm:$0xff]   ;;  %v2226_v56 = vld [vmem:[%s2770_s1 + $0x150] sm:$0xff]   ;;  %v2230_v60 = vld [vmem:[%s2770_s1 + $0x148] sm:$0xff]  }
  0x1e   : > { %1965 = vmatpush3.bf16.msra.mxu0 %v2186_v18  ;;  %v2225_v55 = vld [vmem:[%s2770_s1 + $0x198] sm:$0xff]   ;;  %v2227_v57 = vld [vmem:[%s2770_s1 + $0x1d0] sm:$0xff]   ;;  %v2231_v61 = vld [vmem:[%s2770_s1 + $0x1c8] sm:$0xff]  }
  0x1f   : > { %1987 = vmatpush3.bf16.msra.mxu1 %v2187_v19  ;;  %1966 = vmatprep.subr.bf16.mxu0 %v2188_v20  ;;  %v2228_v58 = vld [vmem:[%s2770_s1 + $0x110] sm:$0xff]   ;;  %v2232_v62 = vld [vmem:[%s2770_s1 + $0x108] sm:$0xff]   ;;  %v2234_v0 = vld [vmem:[%s2770_s1 + $0x140] sm:$0xff]  }
  0x20   : > { %1988 = vmatprep.subr.bf16.mxu1 %v2189_v21  ;;  %v2229_v59 = vld [vmem:[%s2770_s1 + $0x190] sm:$0xff]   ;;  %v2233_v63 = vld [vmem:[%s2770_s1 + $0x188] sm:$0xff]   ;;  %v2235_v1 = vld [vmem:[%s2770_s1 + $0x1c0] sm:$0xff]  }
  0x21   : > { %v2236_v2 = vld [vmem:[%s2770_s1 + $0x100] sm:$0xff]   ;;  %v2240_v5 = vld [vmem:[%s2462_s10 + $0x14] ss:$52 sps:$4 sm:$0xff]   ;;  %v2241_v6 = vld [vmem:[%s2462_s10 + $0x18] ss:$52 sps:$4 sm:$0xff]  }
  0x22   : > { %1967 = vmatpush3.bf16.msra.mxu0 %v2190_v22  ;;  %v2237_v3 = vld [vmem:[%s2770_s1 + $0x180] sm:$0xff]   ;;  %v2243_v7 = vld [vmem:[%s2462_s10 + $0x1c] ss:$52 sps:$4 sm:$0xff]   ;;  %v2252_v16 = vld [vmem:[%s2770_s1 + $0x268] sm:$0xff]  }
  0x23   : > { %1989 = vmatpush3.bf16.msra.mxu1 %v2191_v23  ;;  %1968 = vmatprep.subr.bf16.mxu0 %v2192_v24  ;;  %v2238_v4 = vld [vmem:[%s2462_s10 + $0x10] ss:$52 sps:$4 sm:$0xff]   ;;  %v2244_v8 = vld [vmem:[%s2770_s1 + $0x278] sm:$0xff]   ;;  %v2253_v17 = vld [vmem:[%s2770_s1 + $0x2e8] sm:$0xff]  }
  0x24   : > { %1990 = vmatprep.subr.bf16.mxu1 %v2193_v25  ;;  %v2245_v9 = vld [vmem:[%s2770_s1 + $0x2f8] sm:$0xff]   ;;  %v2248_v12 = vld [vmem:[%s2770_s1 + $0x270] sm:$0xff]   ;;  %v2254_v18 = vld [vmem:[%s2770_s1 + $0x228] sm:$0xff]  }
  0x25   : > { %v2246_v10 = vld [vmem:[%s2770_s1 + $0x238] sm:$0xff]   ;;  %v2249_v13 = vld [vmem:[%s2770_s1 + $0x2f0] sm:$0xff]   ;;  %v2255_v19 = vld [vmem:[%s2770_s1 + $0x2a8] sm:$0xff]  }
  0x26   : > { %1969 = vmatpush3.bf16.msra.mxu0 %v2194_v26  ;;  %v2247_v11 = vld [vmem:[%s2770_s1 + $0x2b8] sm:$0xff]   ;;  %v2250_v14 = vld [vmem:[%s2770_s1 + $0x230] sm:$0xff]   ;;  %v2256_v20 = vld [vmem:[%s2770_s1 + $0x260] sm:$0xff]  }
  0x27   : > { %1991 = vmatpush3.bf16.msra.mxu1 %v2195_v27  ;;  %1970 = vmatprep.subr.bf16.mxu0 %v2196_v28  ;;  %v2251_v15 = vld [vmem:[%s2770_s1 + $0x2b0] sm:$0xff]   ;;  %v2257_v21 = vld [vmem:[%s2770_s1 + $0x2e0] sm:$0xff]   ;;  %v2260_v24 = vld [vmem:[%s2770_s1 + $0x258] sm:$0xff]  }
  0x28   : > { %1992 = vmatprep.subr.bf16.mxu1 %v2197_v29  ;;  %v2258_v22 = vld [vmem:[%s2770_s1 + $0x220] sm:$0xff]   ;;  %v2261_v25 = vld [vmem:[%s2770_s1 + $0x2d8] sm:$0xff]   ;;  %v2264_v28 = vld [vmem:[%s2770_s1 + $0x250] sm:$0xff]  }
  0x29   : > { %v2259_v23 = vld [vmem:[%s2770_s1 + $0x2a0] sm:$0xff]   ;;  %v2262_v26 = vld [vmem:[%s2770_s1 + $0x218] sm:$0xff]   ;;  %v2265_v29 = vld [vmem:[%s2770_s1 + $0x2d0] sm:$0xff]  }
  0x2a   : > { %1971 = vmatpush3.bf16.msra.mxu0 %v2198_v30  ;;  %v2263_v27 = vld [vmem:[%s2770_s1 + $0x298] sm:$0xff]   ;;  %v2266_v30 = vld [vmem:[%s2770_s1 + $0x210] sm:$0xff]   ;;  %v2269_v33 = vld [vmem:[%s2770_s1 + $0x2c8] sm:$0xff]  }
  0x2b   : > { %1993 = vmatpush3.bf16.msra.mxu1 %v2199_v31  ;;  %2000 = vmatprep.subr.bf16.mxu0 %v2206_v36  ;;  %v2267_v31 = vld [vmem:[%s2770_s1 + $0x290] sm:$0xff]   ;;  %v2271_v35 = vld [vmem:[%s2770_s1 + $0x288] sm:$0xff]   ;;  %v2272_v36 = vld [vmem:[%s2770_s1 + $0x240] sm:$0xff]  }
  0x2c   : > { %2022 = vmatprep.subr.bf16.mxu1 %v2207_v37  ;;  %v2273_v37 = vld [vmem:[%s2770_s1 + $0x2c0] sm:$0xff]  }
  0x2d   : > { %1234 = vmatmul.mubr.bf16.vlgmr.msra.gmra.mxu0 %v2200_v32  ;;  %v2268_v32 = vld [vmem:[%s2770_s1 + $0x248] sm:$0xff]  }
  0x2e   : > { %1275 = vmatmul.mubr.bf16.vlgmr.msra.gmra.mxu1 %v2203_v34  ;;  %2001 = vmatpush3.bf16.msra.mxu0 %v2208_v38  ;;  %v2270_v34 = vld [vmem:[%s2770_s1 + $0x208] sm:$0xff]   ;;  %v2274_v38 = vld [vmem:[%s2770_s1 + $0x200] sm:$0xff]  }
  0x2f   : > { %2023 = vmatpush3.bf16.msra.mxu1 %v2209_v39  ;;  %2002 = vmatprep.subr.bf16.mxu0 %v2210_v40  ;;  %v2275_v39 = vld [vmem:[%s2770_s1 + $0x280] sm:$0xff]  }
  0x30   : > { %2024 = vmatprep.subr.bf16.mxu1 %v2211_v41  ;;  %1315 = vmatprep.mubr.bf16.mxu0 %v2240_v5  ;;  %v2276_v40 = vld [vmem:[%s2462_s10 + $0x20] ss:$52 sps:$4 sm:$0xff]   ;;  %v2278_v41 = vld [vmem:[%s2462_s10 + $0x24] ss:$52 sps:$4 sm:$0xff]  }
  0x31   : > { %1356 = vmatprep.mubr.bf16.mxu1 %v2243_v7 }
  0x32   : > { %2003 = vmatpush3.bf16.msra.mxu0 %v2212_v42  ;;  %v2279_v42 = vld [vmem:[%s2462_s10 + $0x28] ss:$52 sps:$4 sm:$0xff]  }
  0x33   : > { %2025 = vmatpush3.bf16.msra.mxu1 %v2213_v43  ;;  %2004 = vmatprep.subr.bf16.mxu0 %v2214_v44  ;;  %v2281_v43 = vld [vmem:[%s2462_s10 + $0x2c] ss:$52 sps:$4 sm:$0xff]   ;;  %v2309_v44 = vmov 0.0  }
  0x34   : > { %2026 = vmatprep.subr.bf16.mxu1 %v2215_v45  ;;  %v2282_v45 = vld [vmem:[%s2770_s1 + $0x308] sm:$0xff]  }
  0x36   : > { %2005 = vmatpush3.bf16.msra.mxu0 %v2216_v46  ;;  %v2283_v46 = vld [vmem:[%s2770_s1 + $0x300] sm:$0xff]  }
  0x37   : > { %2027 = vmatpush3.bf16.msra.mxu1 %v2217_v47  ;;  %2006 = vmatprep.subr.bf16.mxu0 %v2218_v48  ;;  %v2284_v47 = vld [vmem:[%s2462_s10 + $0x30] ss:$52 sps:$4 sm:$0xff]   ;;  %v2285_v48 = vld [vmem:[%s2772_s3 + $0x38] sm:$0xff]  }
  0x38   : > { %2028 = vmatprep.subr.bf16.mxu1 %v2219_v49  ;;  %v2286_v49 = vld [vmem:[%s2772_s3 + $0x30] sm:$0xff]  }
  0x3a   : > { %2007 = vmatpush3.bf16.msra.mxu0 %v2220_v50  ;;  %v2287_v50 = vld [vmem:[%s2772_s3 + $0x28] sm:$0xff]  }
  0x3b   : > { %2029 = vmatpush3.bf16.msra.mxu1 %v2221_v51  ;;  %2008 = vmatprep.subr.bf16.mxu0 %v2222_v52  ;;  %v2288_v51 = vld [vmem:[%s2772_s3 + $0x20] sm:$0xff]   ;;  %v2289_v52 = vld [vmem:[%s2772_s3 + $0x18] sm:$0xff]  }
  0x3c   : > { %2030 = vmatprep.subr.bf16.mxu1 %v2223_v53  ;;  %v2290_v53 = vld [vmem:[%s2772_s3 + $0x10] sm:$0xff]  }
  0x3e   : > { %2009 = vmatpush3.bf16.msra.mxu0 %v2224_v54  ;;  %v2291_v54 = vld [vmem:[%s2772_s3 + $0x8] sm:$0xff]  }
  0x3f   : > { %2031 = vmatpush3.bf16.msra.mxu1 %v2225_v55  ;;  %2010 = vmatprep.subr.bf16.mxu0 %v2226_v56  ;;  %v2292_v55 = vld [vmem:[%s2772_s3] sm:$0xff]   ;;  %v2293_v56 = vld [vmem:[%s2774_s5 + $0x38] sm:$0xff]  }
  0x40   : > { %2032 = vmatprep.subr.bf16.mxu1 %v2227_v57  ;;  %v2294_v57 = vld [vmem:[%s2774_s5 + $0x30] sm:$0xff]  }
  0x42   : > { %2011 = vmatpush3.bf16.msra.mxu0 %v2228_v58  ;;  %v2295_v58 = vld [vmem:[%s2774_s5 + $0x28] sm:$0xff]  }
  0x43   : > { %2033 = vmatpush3.bf16.msra.mxu1 %v2229_v59  ;;  %2012 = vmatprep.subr.bf16.mxu0 %v2230_v60  ;;  %v2296_v59 = vld [vmem:[%s2774_s5 + $0x20] sm:$0xff]   ;;  %v2297_v60 = vld [vmem:[%s2774_s5 + $0x18] sm:$0xff]  }
  0x44   : > { %2034 = vmatprep.subr.bf16.mxu1 %v2231_v61 }
  0x46   : > { %2013 = vmatpush3.bf16.msra.mxu0 %v2232_v62 }
  0x47   : > { %2035 = vmatpush3.bf16.msra.mxu1 %v2233_v63  ;;  %2014 = vmatprep.subr.bf16.mxu0 %v2234_v0 }
  0x48   : > { %2036 = vmatprep.subr.bf16.mxu1 %v2235_v1 }
  0x4a   : > { %2015 = vmatpush3.bf16.msra.mxu0 %v2236_v2 }
  0x4b   : > { %2037 = vmatpush3.bf16.msra.mxu1 %v2237_v3  ;;  %2044 = vmatprep.subr.bf16.mxu0 %v2244_v8 }
  0x4c   : > { %2066 = vmatprep.subr.bf16.mxu1 %v2245_v9  ;;  %v1823_v9 = vld [vmem:[%s2771_s2] ss:$0 sm:$0xff] }
  0x4d   : > { %1316 = vmatmul.mubr.bf16.vlgmr.msra.gmra.mxu0 %v2238_v4 }
  0x4e   : > { %1357 = vmatmul.mubr.bf16.vlgmr.msra.gmra.mxu1 %v2241_v6  ;;  %2045 = vmatpush3.bf16.msra.mxu0 %v2246_v10 }
  0x4f   : > { %2067 = vmatpush3.bf16.msra.mxu1 %v2247_v11  ;;  %2046 = vmatprep.subr.bf16.mxu0 %v2248_v12 }
  0x50   : > { %2068 = vmatprep.subr.bf16.mxu1 %v2249_v13  ;;  %1397 = vmatprep.mubr.bf16.mxu0 %v2278_v41 }
  0x51   : > { %1438 = vmatprep.mubr.bf16.mxu1 %v2281_v43 }
  0x52   : > { %2047 = vmatpush3.bf16.msra.mxu0 %v2250_v14 }
  0x53   : > { %2069 = vmatpush3.bf16.msra.mxu1 %v2251_v15  ;;  %2048 = vmatprep.subr.bf16.mxu0 %v2252_v16 }
  0x54   : > { %2070 = vmatprep.subr.bf16.mxu1 %v2253_v17 }
  0x56   : > { %2049 = vmatpush3.bf16.msra.mxu0 %v2254_v18 }
  0x57   : > { %2071 = vmatpush3.bf16.msra.mxu1 %v2255_v19  ;;  %2050 = vmatprep.subr.bf16.mxu0 %v2256_v20 }
  0x58   : > { %2072 = vmatprep.subr.bf16.mxu1 %v2257_v21 }
  0x5a   : > { %2051 = vmatpush3.bf16.msra.mxu0 %v2258_v22 }
  0x5b   : > { %2073 = vmatpush3.bf16.msra.mxu1 %v2259_v23  ;;  %2052 = vmatprep.subr.bf16.mxu0 %v2260_v24 }
  0x5c   : > { %2074 = vmatprep.subr.bf16.mxu1 %v2261_v25 }
  0x5e   : > { %2053 = vmatpush3.bf16.msra.mxu0 %v2262_v26 }
  0x5f   : > { %2075 = vmatpush3.bf16.msra.mxu1 %v2263_v27  ;;  %2054 = vmatprep.subr.bf16.mxu0 %v2264_v28 }
  0x60   : > { %2076 = vmatprep.subr.bf16.mxu1 %v2265_v29 }
  0x62   : > { %2055 = vmatpush3.bf16.msra.mxu0 %v2266_v30 }
  0x63   : > { %2077 = vmatpush3.bf16.msra.mxu1 %v2267_v31  ;;  %2056 = vmatprep.subr.bf16.mxu0 %v2268_v32 }
  0x64   : > { %2078 = vmatprep.subr.bf16.mxu1 %v2269_v33 }
  0x66   : > { %2057 = vmatpush3.bf16.msra.mxu0 %v2270_v34 }
  0x67   : > { %2079 = vmatpush3.bf16.msra.mxu1 %v2271_v35  ;;  %2058 = vmatprep.subr.bf16.mxu0 %v2272_v36 }
  0x68   : > { %2080 = vmatprep.subr.bf16.mxu1 %v2273_v37 }
  0x6a   : > { %2059 = vmatpush3.bf16.msra.mxu0 %v2274_v38 }
  0x6b   : > { %2081 = vmatpush3.bf16.msra.mxu1 %v2275_v39  ;;  %2109 = vmatprep.subr.bf16.mxu0 %v2309_v44 }
  0x6c   : > { %2117 = vmatprep.subr.bf16.mxu1 %v2309_v44 }
  0x6d   : > { %1398 = vmatmul.mubr.bf16.vlgmr.msra.gmra.mxu0 %v2276_v40 }
  0x6e   : > { %1439 = vmatmul.mubr.bf16.vlgmr.msra.gmra.mxu1 %v2279_v42  ;;  %2110 = vmatpush3.bf16.msra.mxu0 %v2282_v45 }
  0x6f   : > { %2111 = vmatprep.subr.bf16.mxu0 %v2309_v44  ;;  %2113 = vmatprep.mubr.msk.bf16.mxu0 %vm2310_vm1, %v2309_v44 }
  0x70   : > { %2133 = vmatprep.mubr.msk.bf16.mxu1 %vm2310_vm1, %v2309_v44  ;;  %2118 = vmatpush3.bf16.msra.mxu1 %v2285_v48 }
  0x71   : > { %2119 = vmatprep.subr.bf16.mxu1 %v2309_v44 }
  0x72   : > { %2112 = vmatpush3.bf16.msra.mxu0 %v2283_v46 }
  0x73   : > { %2137 = vmatprep.subr.bf16.mxu0 %v2309_v44 }
  0x74   : > { %2120 = vmatpush3.bf16.msra.mxu1 %v2286_v49 }
  0x75   : > { %2114 = vmatmul.mubr.msk.bf16.vlgmr.msra.gmra.mxu0 %vm1197_vm0, %v2284_v47  ;;  %2121 = vmatprep.subr.bf16.mxu1 %v2309_v44 }
  0x76   : > { %2153 = vmatprep.mubr.msk.bf16.mxu0 %vm2310_vm1, %v2309_v44  ;;  %2138 = vmatpush3.bf16.msra.mxu0 %v2293_v56  ;;  %v2298_v56 = vld [vmem:[%s2774_s5 + $0x10] sm:$0xff]  }
  0x77   : > { %2139 = vmatprep.subr.bf16.mxu0 %v2309_v44 }
  0x78   : > { %2122 = vmatpush3.bf16.msra.mxu1 %v2287_v50 }
  0x79   : > { %2123 = vmatprep.subr.bf16.mxu1 %v2309_v44 }
  0x7a   : > { %2140 = vmatpush3.bf16.msra.mxu0 %v2294_v57  ;;  %v2299_v57 = vld [vmem:[%s2774_s5 + $0x8] sm:$0xff]  }
  0x7b   : > { %2141 = vmatprep.subr.bf16.mxu0 %v2309_v44 }
  0x7c   : > { %2124 = vmatpush3.bf16.msra.mxu1 %v2288_v51 }
  0x7d   : > { %2125 = vmatprep.subr.bf16.mxu1 %v2309_v44 }
  0x7e   : > { %2142 = vmatpush3.bf16.msra.mxu0 %v2295_v58  ;;  %v2300_v58 = vld [vmem:[%s2774_s5] sm:$0xff]  }
  0x7f   : > { %2143 = vmatprep.subr.bf16.mxu0 %v2309_v44 }
  0x80   : > { %2126 = vmatpush3.bf16.msra.mxu1 %v2289_v52 }
  0x81   : > { %2127 = vmatprep.subr.bf16.mxu1 %v2309_v44 }
  0x82   : > { %2144 = vmatpush3.bf16.msra.mxu0 %v2296_v59  ;;  %v1936_v59 = vld [vmem:[%s2773_s4] ss:$0 sm:$0xff] }
  0x83   : > { %2145 = vmatprep.subr.bf16.mxu0 %v2309_v44 }
  0x84   : > { %2128 = vmatpush3.bf16.msra.mxu1 %v2290_v53 }
  0x85   : > { %2129 = vmatprep.subr.bf16.mxu1 %v2309_v44 }
  0x86   : > { %2146 = vmatpush3.bf16.msra.mxu0 %v2297_v60 }
  0x87   : > { %2147 = vmatprep.subr.bf16.mxu0 %v2309_v44 }
  0x88   : > { %2130 = vmatpush3.bf16.msra.mxu1 %v2291_v54 }
  0x89   : > { %2131 = vmatprep.subr.bf16.mxu1 %v2309_v44 }
  0x8a   : > { %2148 = vmatpush3.bf16.msra.mxu0 %v2298_v56 }
  0x8b   : > { %2149 = vmatprep.subr.bf16.mxu0 %v2309_v44 }
  0x8c   : > { %2132 = vmatpush3.bf16.msra.mxu1 %v2292_v55 }
  0x8e   : > { %2150 = vmatpush3.bf16.msra.mxu0 %v2299_v57 }
  0x8f   : > { %2151 = vmatprep.subr.bf16.mxu0 %v2309_v44 }
  0x92   : > { %2152 = vmatpush3.bf16.msra.mxu0 %v2300_v58 }
  0xed   : > { %v1972_v61 = vpop.f32.mrf.mxu0 }
  0xee   : > { %v1994_v62 = vpop.f32.mrf.mxu1 }
  0xef   : > { %v1973_v63 = vpop.f32.mrf.mxu0 }
  0xf0   : > { %v1995_v0 = vpop.f32.mrf.mxu1  ;;  %v1974_v8 = vadd.f32 %v1973_v63, %v1972_v61 }
  0xf1   : > { %v1975_v1 = vpop.f32.mrf.mxu0  ;;  %v1996_v13 = vadd.f32 %v1995_v0, %v1994_v62 }
  0xf2   : > { %v1997_v2 = vpop.f32.mrf.mxu1  ;;  %v1236_v12 = vadd.f32 %v1974_v8, %v1823_v9 }
  0xf3   : > { %v1976_v3 = vpop.f32.mrf.mxu0 }
  0xf4   : > { %v1998_v5 = vpop.f32.mrf.mxu1  ;;  %v1977_v14 = vadd.f32 %v1976_v3, %v1975_v1  ;;  %v1277_v18 = vadd.f32 %v1996_v13, %v1236_v12 }
  0xf5   : > { %v1999_v20 = vadd.f32 %v1998_v5, %v1997_v2 }
  0xf6   : > { %v1239_v19 = vadd.f32 %v1977_v14, %v1823_v9 }
  0xf8   : > { %v1280_v26 = vadd.f32 %v1999_v20, %v1239_v19 }
 0x10d   : > { %v2016_v4 = vpop.f32.mrf.mxu0 }
 0x10e   : > { %v2038_v6 = vpop.f32.mrf.mxu1 }
 0x10f   : > { %v2017_v7 = vpop.f32.mrf.mxu0 }
 0x110   : > { %v2039_v10 = vpop.f32.mrf.mxu1  ;;  %v2018_v15 = vadd.f32 %v2017_v7, %v2016_v4  ;;  %v1945_v4 = vld [vmem:[%s2775_s6] ss:$0 sm:$0xff] }
 0x111   : > { %v2019_v11 = vpop.f32.mrf.mxu0  ;;  %v2040_v22 = vadd.f32 %v2039_v10, %v2038_v6 }
 0x112   : > { %v2041_v16 = vpop.f32.mrf.mxu1  ;;  %v1318_v21 = vadd.f32 %v2018_v15, %v1277_v18 }
 0x113   : > { %v2020_v17 = vpop.f32.mrf.mxu0 }
 0x114   : > { %v2021_v23 = vadd.f32 %v2020_v17, %v2019_v11  ;;  %v2042_v24 = vpop.f32.mrf.mxu1  ;;  %v1359_v29 = vadd.f32 %v2040_v22, %v1318_v21 }
 0x115   : > { %v2043_v34 = vadd.f32 %v2042_v24, %v2041_v16 }
 0x116   : > { %v1321_v30 = vadd.f32 %v2021_v23, %v1280_v26 }
 0x118   : > { %v1362_v39 = vadd.f32 %v2043_v34, %v1321_v30 }
 0x12d   : > { %v2060_v25 = vpop.f32.mrf.mxu0 }
 0x12e   : > { %v2082_v27 = vpop.f32.mrf.mxu1 }
 0x12f   : > { %v2061_v28 = vpop.f32.mrf.mxu0 }
 0x130   : > { %v2062_v31 = vadd.f32 %v2061_v28, %v2060_v25  ;;  %v2083_v32 = vpop.f32.mrf.mxu1 }
 0x131   : > { %v2063_v33 = vpop.f32.mrf.mxu0  ;;  %v2084_v36 = vadd.f32 %v2083_v32, %v2082_v27 }
 0x132   : > { %v1400_v35 = vadd.f32 %v2062_v31, %v1359_v29  ;;  %v2085_v37 = vpop.f32.mrf.mxu1 }
 0x133   : > { %v2064_v38 = vpop.f32.mrf.mxu0 }
 0x134   : > { %v2065_v40 = vadd.f32 %v2064_v38, %v2063_v33  ;;  %v2086_v41 = vpop.f32.mrf.mxu1  ;;  %v1441_v42 = vadd.f32 %v2084_v36, %v1400_v35 }
 0x135   : > { %v1481_v43 = vpop.f32.mrf.mxu0  ;;  %v2087_v46 = vadd.f32 %v2086_v41, %v2085_v37 }
 0x136   : > { %v1403_v45 = vadd.f32 %v2065_v40, %v1362_v39  ;;  %v1482_v48 = vadd.f32 %v1481_v43, %v1441_v42 }
 0x137   : > { %v2115_v47 = vpop.f32.mrf.mxu0 }
 0x138   : > { %v1444_v49 = vadd.f32 %v2087_v46, %v1403_v45  ;;  %v1488_v53 = vmax.f32 %v1482_v48, 0.0 }
 0x139   : > { %v1484_v50 = vpop.f32.mrf.mxu0 }
 0x13a   : > { %v1485_v51 = vadd.f32 %v1484_v50, %v1444_v49 }
 0x13b   : > { %v2116_v52 = vpop.f32.mrf.mxu0 }
 0x13c   : > { %v1489_v54 = vmax.f32 %v1485_v51, 0.0 }
 0x13e   : > { %v1490_v55 = vpack.c.bf16 %v1489_v54, %v1488_v53 }
 0x140   : > { %2134 = vmatmul.mubr.bf16.vlgmr.msra.gmra.mxu1 %v1490_v55 }
 0x200   : > { %v1596_v60 = vpop.f32.mrf.mxu1 }
 0x201   : > { %v1597_v61 = vadd.f32 %v1936_v59, %v1596_v60 }
 0x202   : > { %v2135_v62 = vpop.f32.mrf.mxu1 }
 0x203   : > { %v1603_v63 = vmax.f32 %v1597_v61, 0.0 }
 0x204   : > { %v1599_v0 = vpop.f32.mrf.mxu1 }
 0x205   : > { %1605 = vst [vmem:[%s318_s13] sm:$0xff] %v1603_v63  ;;  %v1600_v44 = vadd.f32 %v1936_v59, %v1599_v0 }
 0x206   : > { %v2136_v1 = vpop.f32.mrf.mxu1 }
 0x207   : > { %v1604_v2 = vmax.f32 %v1600_v44, 0.0 }
 0x209   : > { %1606 = vst [vmem:[%s318_s13 + $0x8] sm:$0xff] %v1604_v2  ;;  %v1607_v3 = vpack.c.bf16 %v1604_v2, %v1603_v63 }
 0x20b   : > { %2154 = vmatmul.mubr.bf16.vlgmr.msra.gmra.mxu0 %v1607_v3 }
 0x2cb   : > { %v1713_v5 = vpop.f32.mrf.mxu0 }
 0x2cc   : > { %v1714_v6 = vadd.f32 %v1945_v4, %v1713_v5 }
 0x2cd   : > { %v2155_v7 = vpop.f32.mrf.mxu0 }
 0x2ce   : > { %1720 = vst [vmem:[%s324_s18] sm:$0xff] %v1714_v6 }
 0x2cf   : > { %v1716_v8 = vpop.f32.mrf.mxu0 }
 0x2d0   : > { %v1717_v9 = vadd.f32 %v1945_v4, %v1716_v8 }
 0x2d1   : > { %v2156_v10 = vpop.f32.mrf.mxu0 }
 0x2d2   : > { %1721 = vst [vmem:[%s324_s18 + $0x8] sm:$0xff] %v1717_v9 }
 0x2d3 PF: > { %s19_s27 = sadd.s32 1, %s2307_s27  }
 0x2d4   : > { %p16_p4 = scmp.ge.s32.totalorder %s19_s27, 4  }
 0x2d6   :  { %18 = sbr.rel (!%p16_p4) target bundleno = 1 (0x1), region = 90 }

</bundles_post_ra>
